<compile_context>
chip_gen: v6e
topology: v6e:2x2x1
jax: 0.10.0
libtpu: 0.0.40
codegen_flags: <defaults>
</compile_context>

<pallas_src>
import jax
import jax.numpy as jnp
from jax.experimental import pallas as pl
from jax.experimental.pallas import tpu as pltpu


def mlp_kernel(x_ref, w1_ref, b1_ref, w2_ref, b2_ref, w3_ref, b3_ref, o_ref):
    """Fused 3-layer MLP forward for one batch tile.

    x_ref : [TB, D]    f32 (cast to bf16 in-kernel)
    w1_ref: [D, 1024]  bf16    b1_ref: [1, 1024] f32
    w2_ref: [1024,256] bf16    b2_ref: [1, 256]  f32
    w3_ref: [1, 256]   bf16    b3_ref: [1, 1]    f32
    o_ref : [1, TB]    f32  (lane-dense row; reshaped to a column outside)
    """
    x = x_ref[...].astype(jnp.bfloat16)                          # in-VMEM cast

    # Layer 1: Linear(D, 1024) + ReLU (bf16 MXU operands, f32 accumulation).
    # K=32 is left as-is: layer 2 dominates MXU work, padding D buys nothing.
    h1 = jnp.dot(x, w1_ref[...], preferred_element_type=jnp.float32)
    h1 = jnp.maximum(h1 + b1_ref[...], 0.0)                      # [TB, 1024] f32

    # Layer 2: Linear(1024, 256) + Tanh.
    h2 = jnp.dot(h1.astype(jnp.bfloat16), w2_ref[...],
                 preferred_element_type=jnp.float32)
    # TODO(synk): if profiling ever shows the EUP binding on v6e/v7x, evaluate
    # tanh on bf16 inputs (not on v5e — no bf16 EUP).
    h2 = jnp.tanh(h2 + b2_ref[...])                              # [TB, 256] f32

    # Layer 3: Linear(256, 1) as VPU multiply + XLU lane reduction
    # (an N=1 MXU matmul would use 1/128 output lanes).
    w3_row = w3_ref[...].astype(jnp.float32)                     # [1, 256]
    out_row = jnp.sum(h2 * w3_row, axis=-1)                      # [TB]
    # Lane-dense [1, TB] store (contiguous writeback, no per-lane masking).
    o_ref[...] = (out_row[None, :] + b3_ref[...]).astype(o_ref.dtype)


def _tensorcores_per_device():
    """Best-effort TensorCore count per JAX device (megacore sharding target)."""
    try:
        d = jax.devices()[0]
    except Exception:
        return 1
    n = getattr(d, "num_cores", None)
    if isinstance(n, int) and n >= 1:
        return n
    kind = str(getattr(d, "device_kind", "")).lower()
    # Dual-TensorCore chips: v4 / v5p (megacore) and v7x.
    if any(tag in kind for tag in ("v4", "v5p", "v7", "7x")):
        return 2
    return 1


def _choose_batch_tiling(batch, n_cores, max_tb=1024):
    """Pick (tile, n_tiles): at least n_cores tiles (megacore), tile <= max_tb,
    tile a multiple of 8 (sublane); collapses to grid=1 on single-TC chips."""
    n_tiles = max(n_cores, pl.cdiv(batch, max_tb))
    tb = pl.cdiv(batch, n_tiles)
    tb = pl.cdiv(tb, 8) * 8
    n_tiles = pl.cdiv(batch, tb)
    return tb, n_tiles


def mlp_forward(x, kparams, *, tb=None, weight_buffers=1):
    """x: [B, D] f32. kparams: output of prepare_params(). Returns [B, 1] f32."""
    w1, b1, w2, b2, w3_row, b3 = kparams
    B, D = x.shape

    if tb is None:
        tb, n_tiles = _choose_batch_tiling(B, _tensorcores_per_device())
    else:
        n_tiles = pl.cdiv(B, tb)
    Bp = n_tiles * tb
    if Bp != B:
        # Tail padding (only when B isn't a multiple of the chosen tile).
        # Padded rows produce garbage that is sliced off below; safe because the
        # kernel never accumulates into or aliases its output.
        x = jnp.pad(x, ((0, Bp - B), (0, 0)))

    def const(a):
        """Constant-index_map spec: block stays VMEM-resident across the grid;
        single-buffered so resident weight VMEM isn't doubled."""
        idx = lambda i: (0,) * a.ndim
        if weight_buffers is None:
            return pl.BlockSpec(a.shape, idx)
        return pl.BlockSpec(a.shape, idx, pipeline_mode=pl.Buffered(weight_buffers))

    out = pl.pallas_call(
        mlp_kernel,
        out_shape=jax.ShapeDtypeStruct((n_tiles, tb), jnp.float32),
        grid=(n_tiles,),
        in_specs=[
            pl.BlockSpec((tb, D), lambda i: (i, 0)),   # x: batch-tiled (double-buffered)
            const(w1), const(b1),
            const(w2), const(b2),
            const(w3_row), const(b3),
        ],
        out_specs=pl.BlockSpec((1, tb), lambda i: (i, 0)),  # lane-dense row per tile
        compiler_params=pltpu.CompilerParams(
            dimension_semantics=("parallel",),         # shards across TCs on dual-TC chips
        ),
    )(x, w1, b1, w2, b2, w3_row, b3)

    return out.reshape(Bp, 1)[:B]


def init_params(key, in_features):
    """Deterministic f32 init mimicking PyTorch Linear default (U(+-1/sqrt(fan_in)))."""
    dims = [(in_features, 1024), (1024, 256), (256, 1)]
    params = []
    for fan_in, fan_out in dims:
        kw, kb, key = jax.random.split(key, 3)
        bound = 1.0 / jnp.sqrt(float(fan_in))
        w = jax.random.uniform(kw, (fan_in, fan_out), jnp.float32, -bound, bound)
        b = jax.random.uniform(kb, (1, fan_out), jnp.float32, -bound, bound)
        params += [w, b]
    return params


def prepare_params(params):
    """One-time conversion to the kernel's HBM layout:
    bf16 weights (halves weight DMA), w3 stored as a [1, 256] row, f32 biases."""
    w1, b1, w2, b2, w3, b3 = params
    return (w1.astype(jnp.bfloat16), b1,
            w2.astype(jnp.bfloat16), b2,
            w3.T.astype(jnp.bfloat16), b3)


def reference_forward(x, params):
    """Pure-JAX reference mirroring the kernel numerics (bf16 dot operands,
    f32 accumulation / activation math)."""
    w1, b1, w2, b2, w3, b3 = params
    bf = lambda a: a.astype(jnp.bfloat16).astype(jnp.float32)
    h1 = jnp.maximum(bf(x) @ bf(w1) + b1, 0.0)
    h2 = jnp.tanh(bf(h1) @ bf(w2) + b2)
    return h2 @ bf(w3) + b3


if __name__ == "__main__":
    key = jax.random.PRNGKey(0)
    k_x, k_p = jax.random.split(key)

    B, D = 256, 32                      # small tabular batch; X.shape[1] = 32
    x = jax.random.normal(k_x, (B, D), jnp.float32)
    params = init_params(k_p, D)        # PyTorch-semantics f32 params
    kparams = prepare_params(params)    # kernel layout (bf16 weights, w3 row)

    try:
        out = jax.block_until_ready(mlp_forward(x, kparams))
    except Exception:
        # Fallback if this jax build rejects single-buffered constant blocks
        # (pl.Buffered(1)); every other optimization is kept.
        out = jax.block_until_ready(mlp_forward(x, kparams, weight_buffers=None))

    ref = reference_forward(x, params)
    assert out.shape == (B, 1)
    assert jnp.allclose(out, ref, atol=1e-2, rtol=1e-2), "mismatch vs reference"

    print("KERNEL_OK")
</pallas_src>

<mosaic_0001>
module attributes {stable_mosaic.version = 11 : i64} {
  func.func @mlp_kernel(%arg0: i32, %arg1: memref<256x32xf32, #tpu.memory_space<vmem>>, %arg2: memref<32x1024xbf16, #tpu.memory_space<vmem>>, %arg3: memref<1x1024xf32, #tpu.memory_space<vmem>>, %arg4: memref<1024x256xbf16, #tpu.memory_space<vmem>>, %arg5: memref<1x256xf32, #tpu.memory_space<vmem>>, %arg6: memref<1x256xbf16, #tpu.memory_space<vmem>>, %arg7: memref<1x1xf32, #tpu.memory_space<vmem>>, %arg8: memref<1x256xf32, #tpu.memory_space<vmem>>) attributes {dimension_semantics = [#tpu.dimension_semantics<parallel>], iteration_bounds = array<i64: 1>, scalar_prefetch = 0 : i64, scratch_operands = 0 : i64, tpu.core_type = #tpu.core_type<tc>, window_params = [{transform_indices = @transform_0, window_bounds = array<i64: 256, 32>}, {pipeline_mode = #tpu.pipeline_mode<synchronous>, transform_indices = @transform_1, window_bounds = array<i64: 32, 1024>}, {pipeline_mode = #tpu.pipeline_mode<synchronous>, transform_indices = @transform_2, window_bounds = array<i64: 1, 1024>}, {pipeline_mode = #tpu.pipeline_mode<synchronous>, transform_indices = @transform_3, window_bounds = array<i64: 1024, 256>}, {pipeline_mode = #tpu.pipeline_mode<synchronous>, transform_indices = @transform_4, window_bounds = array<i64: 1, 256>}, {pipeline_mode = #tpu.pipeline_mode<synchronous>, transform_indices = @transform_5, window_bounds = array<i64: 1, 256>}, {pipeline_mode = #tpu.pipeline_mode<synchronous>, transform_indices = @transform_6, window_bounds = array<i64: 1, 1>}, {transform_indices = @transform_7, window_bounds = array<i64: 1, 256>}]} {
    %c0 = arith.constant 0 : index
    %c0_0 = arith.constant 0 : index
    %0 = vector.load %arg1[%c0, %c0_0] : memref<256x32xf32, #tpu.memory_space<vmem>>, vector<256x32xf32>
    %1 = arith.truncf %0 : vector<256x32xf32> to vector<256x32xbf16>
    %c0_1 = arith.constant 0 : index
    %c0_2 = arith.constant 0 : index
    %2 = vector.load %arg2[%c0_1, %c0_2] : memref<32x1024xbf16, #tpu.memory_space<vmem>>, vector<32x1024xbf16>
    %cst = arith.constant dense<0.000000e+00> : vector<256x1024xf32>
    %3 = tpu.matmul %1, %2, %cst {dimension_numbers = #tpu.dot_dimension_numbers<[1], [0], [0], [1], [0, 0, 1, 1], [], []>} : vector<256x32xbf16>, vector<32x1024xbf16>, vector<256x1024xf32> -> vector<256x1024xf32>
    %c0_3 = arith.constant 0 : index
    %c0_4 = arith.constant 0 : index
    %4 = vector.load %arg3[%c0_3, %c0_4] : memref<1x1024xf32, #tpu.memory_space<vmem>>, vector<1x1024xf32>
    %5 = vector.broadcast %4 : vector<1x1024xf32> to vector<256x1024xf32>
    %6 = arith.addf %3, %5 : vector<256x1024xf32>
    %cst_5 = arith.constant 0.000000e+00 : f32
    %7 = vector.broadcast %cst_5 : f32 to vector<256x1024xf32>
    %8 = arith.maximumf %6, %7 : vector<256x1024xf32>
    %9 = arith.truncf %8 : vector<256x1024xf32> to vector<256x1024xbf16>
    %c0_6 = arith.constant 0 : index
    %c0_7 = arith.constant 0 : index
    %10 = vector.load %arg4[%c0_6, %c0_7] : memref<1024x256xbf16, #tpu.memory_space<vmem>>, vector<1024x256xbf16>
    %cst_8 = arith.constant dense<0.000000e+00> : vector<256x256xf32>
    %11 = tpu.matmul %9, %10, %cst_8 {dimension_numbers = #tpu.dot_dimension_numbers<[1], [0], [0], [1], [0, 0, 1, 1], [], []>} : vector<256x1024xbf16>, vector<1024x256xbf16>, vector<256x256xf32> -> vector<256x256xf32>
    %c0_9 = arith.constant 0 : index
    %c0_10 = arith.constant 0 : index
    %12 = vector.load %arg5[%c0_9, %c0_10] : memref<1x256xf32, #tpu.memory_space<vmem>>, vector<1x256xf32>
    %13 = vector.broadcast %12 : vector<1x256xf32> to vector<256x256xf32>
    %14 = arith.addf %11, %13 : vector<256x256xf32>
    %15 = math.tanh %14 : vector<256x256xf32>
    %c0_11 = arith.constant 0 : index
    %c0_12 = arith.constant 0 : index
    %16 = vector.load %arg6[%c0_11, %c0_12] : memref<1x256xbf16, #tpu.memory_space<vmem>>, vector<1x256xbf16>
    %17 = arith.extf %16 : vector<1x256xbf16> to vector<1x256xf32>
    %18 = vector.broadcast %17 : vector<1x256xf32> to vector<256x256xf32>
    %19 = arith.mulf %15, %18 : vector<256x256xf32>
    %cst_13 = arith.constant dense<0.000000e+00> : vector<256xf32>
    %20 = vector.multi_reduction <add>, %19, %cst_13 [1] : vector<256x256xf32> to vector<256xf32>
    %21 = vector.shape_cast %20 : vector<256xf32> to vector<1x256xf32>
    %c0_14 = arith.constant 0 : index
    %c0_15 = arith.constant 0 : index
    %22 = vector.load %arg7[%c0_14, %c0_15] : memref<1x1xf32, #tpu.memory_space<vmem>>, vector<1x1xf32>
    %23 = vector.broadcast %22 : vector<1x1xf32> to vector<1x256xf32>
    %24 = arith.addf %21, %23 : vector<1x256xf32>
    %c0_16 = arith.constant 0 : index
    %c0_17 = arith.constant 0 : index
    %25 = vector.load %arg8[%c0_16, %c0_17] : memref<1x256xf32, #tpu.memory_space<vmem>>, vector<1x256xf32>
    tpu.vector_store %arg8[%c0_16, %c0_17], %24 {strides = array<i32>} : memref<1x256xf32, #tpu.memory_space<vmem>>, vector<1x256xf32>,
    return
  }
  func.func @transform_0(%arg0: i32) -> (i32, i32) {
    %c0_i32 = arith.constant 0 : i32
    %c0_i32_0 = arith.constant 0 : i32
    return %arg0, %c0_i32 : i32, i32
  }
  func.func @transform_1(%arg0: i32) -> (i32, i32) {
    %c0_i32 = arith.constant 0 : i32
    %c0_i32_0 = arith.constant 0 : i32
    %c0_i32_1 = arith.constant 0 : i32
    return %c0_i32, %c0_i32_0 : i32, i32
  }
  func.func @transform_2(%arg0: i32) -> (i32, i32) {
    %c0_i32 = arith.constant 0 : i32
    %c0_i32_0 = arith.constant 0 : i32
    %c0_i32_1 = arith.constant 0 : i32
    return %c0_i32, %c0_i32_0 : i32, i32
  }
  func.func @transform_3(%arg0: i32) -> (i32, i32) {
    %c0_i32 = arith.constant 0 : i32
    %c0_i32_0 = arith.constant 0 : i32
    %c0_i32_1 = arith.constant 0 : i32
    return %c0_i32, %c0_i32_0 : i32, i32
  }
  func.func @transform_4(%arg0: i32) -> (i32, i32) {
    %c0_i32 = arith.constant 0 : i32
    %c0_i32_0 = arith.constant 0 : i32
    %c0_i32_1 = arith.constant 0 : i32
    return %c0_i32, %c0_i32_0 : i32, i32
  }
  func.func @transform_5(%arg0: i32) -> (i32, i32) {
    %c0_i32 = arith.constant 0 : i32
    %c0_i32_0 = arith.constant 0 : i32
    %c0_i32_1 = arith.constant 0 : i32
    return %c0_i32, %c0_i32_0 : i32, i32
  }
  func.func @transform_6(%arg0: i32) -> (i32, i32) {
    %c0_i32 = arith.constant 0 : i32
    %c0_i32_0 = arith.constant 0 : i32
    %c0_i32_1 = arith.constant 0 : i32
    return %c0_i32, %c0_i32_0 : i32, i32
  }
  func.func @transform_7(%arg0: i32) -> (i32, i32) {
    %c0_i32 = arith.constant 0 : i32
    %c0_i32_0 = arith.constant 0 : i32
    return %arg0, %c0_i32 : i32, i32
  }
}

module attributes {stable_mosaic.version = 11 : i64} {
  func.func @mlp_kernel(%arg0: i32, %arg1: memref<256x32xf32, #tpu.memory_space<vmem>>, %arg2: memref<32x1024xbf16, #tpu.memory_space<vmem>>, %arg3: memref<1x1024xf32, #tpu.memory_space<vmem>>, %arg4: memref<1024x256xbf16, #tpu.memory_space<vmem>>, %arg5: memref<1x256xf32, #tpu.memory_space<vmem>>, %arg6: memref<1x256xbf16, #tpu.memory_space<vmem>>, %arg7: memref<1x1xf32, #tpu.memory_space<vmem>>, %arg8: memref<1x256xf32, #tpu.memory_space<vmem>>) attributes {dimension_semantics = [#tpu.dimension_semantics<parallel>], iteration_bounds = array<i64: 1>, scalar_prefetch = 0 : i64, scratch_operands = 0 : i64, tpu.core_type = #tpu.core_type<tc>, window_params = [{transform_indices = @transform_0, window_bounds = array<i64: 256, 32>}, {pipeline_mode = #tpu.pipeline_mode<synchronous>, transform_indices = @transform_1, window_bounds = array<i64: 32, 1024>}, {pipeline_mode = #tpu.pipeline_mode<synchronous>, transform_indices = @transform_2, window_bounds = array<i64: 1, 1024>}, {pipeline_mode = #tpu.pipeline_mode<synchronous>, transform_indices = @transform_3, window_bounds = array<i64: 1024, 256>}, {pipeline_mode = #tpu.pipeline_mode<synchronous>, transform_indices = @transform_4, window_bounds = array<i64: 1, 256>}, {pipeline_mode = #tpu.pipeline_mode<synchronous>, transform_indices = @transform_5, window_bounds = array<i64: 1, 256>}, {pipeline_mode = #tpu.pipeline_mode<synchronous>, transform_indices = @transform_6, window_bounds = array<i64: 1, 1>}, {transform_indices = @transform_7, window_bounds = array<i64: 1, 256>}]} {
    %c0 = arith.constant 0 : index
    %c0_0 = arith.constant 0 : index
    %0 = vector.load %arg1[%c0, %c0_0] : memref<256x32xf32, #tpu.memory_space<vmem>>, vector<256x32xf32>
    %1 = arith.truncf %0 : vector<256x32xf32> to vector<256x32xbf16>
    %c0_1 = arith.constant 0 : index
    %c0_2 = arith.constant 0 : index
    %2 = vector.load %arg2[%c0_1, %c0_2] : memref<32x1024xbf16, #tpu.memory_space<vmem>>, vector<32x1024xbf16>
    %cst = arith.constant dense<0.000000e+00> : vector<256x1024xf32>
    %3 = tpu.matmul %1, %2, %cst {dimension_numbers = #tpu.dot_dimension_numbers<[1], [0], [0], [1], [0, 0, 1, 1], [], []>} : vector<256x32xbf16>, vector<32x1024xbf16>, vector<256x1024xf32> -> vector<256x1024xf32>
    %c0_3 = arith.constant 0 : index
    %c0_4 = arith.constant 0 : index
    %4 = vector.load %arg3[%c0_3, %c0_4] : memref<1x1024xf32, #tpu.memory_space<vmem>>, vector<1x1024xf32>
    %5 = vector.broadcast %4 : vector<1x1024xf32> to vector<256x1024xf32>
    %6 = arith.addf %3, %5 : vector<256x1024xf32>
    %cst_5 = arith.constant 0.000000e+00 : f32
    %7 = vector.broadcast %cst_5 : f32 to vector<256x1024xf32>
    %8 = arith.maximumf %6, %7 : vector<256x1024xf32>
    %9 = arith.truncf %8 : vector<256x1024xf32> to vector<256x1024xbf16>
    %c0_6 = arith.constant 0 : index
    %c0_7 = arith.constant 0 : index
    %10 = vector.load %arg4[%c0_6, %c0_7] : memref<1024x256xbf16, #tpu.memory_space<vmem>>, vector<1024x256xbf16>
    %cst_8 = arith.constant dense<0.000000e+00> : vector<256x256xf32>
    %11 = tpu.matmul %9, %10, %cst_8 {dimension_numbers = #tpu.dot_dimension_numbers<[1], [0], [0], [1], [0, 0, 1, 1], [], []>} : vector<256x1024xbf16>, vector<1024x256xbf16>, vector<256x256xf32> -> vector<256x256xf32>
    %c0_9 = arith.constant 0 : index
    %c0_10 = arith.constant 0 : index
    %12 = vector.load %arg5[%c0_9, %c0_10] : memref<1x256xf32, #tpu.memory_space<vmem>>, vector<1x256xf32>
    %13 = vector.broadcast %12 : vector<1x256xf32> to vector<256x256xf32>
    %14 = arith.addf %11, %13 : vector<256x256xf32>
    %15 = math.tanh %14 : vector<256x256xf32>
    %c0_11 = arith.constant 0 : index
    %c0_12 = arith.constant 0 : index
    %16 = vector.load %arg6[%c0_11, %c0_12] : memref<1x256xbf16, #tpu.memory_space<vmem>>, vector<1x256xbf16>
    %17 = arith.extf %16 : vector<1x256xbf16> to vector<1x256xf32>
    %18 = vector.broadcast %17 : vector<1x256xf32> to vector<256x256xf32>
    %19 = arith.mulf %15, %18 : vector<256x256xf32>
    %cst_13 = arith.constant dense<0.000000e+00> : vector<256xf32>
    %20 = vector.multi_reduction <add>, %19, %cst_13 [1] : vector<256x256xf32> to vector<256xf32>
    %21 = vector.shape_cast %20 : vector<256xf32> to vector<1x256xf32>
    %c0_14 = arith.constant 0 : index
    %c0_15 = arith.constant 0 : index
    %22 = vector.load %arg7[%c0_14, %c0_15] : memref<1x1xf32, #tpu.memory_space<vmem>>, vector<1x1xf32>
    %23 = vector.broadcast %22 : vector<1x1xf32> to vector<1x256xf32>
    %24 = arith.addf %21, %23 : vector<1x256xf32>
    %c0_16 = arith.constant 0 : index
    %c0_17 = arith.constant 0 : index
    %25 = vector.load %arg8[%c0_16, %c0_17] : memref<1x256xf32, #tpu.memory_space<vmem>>, vector<1x256xf32>
    tpu.vector_store %arg8[%c0_16, %c0_17], %24 {strides = array<i32>} : memref<1x256xf32, #tpu.memory_space<vmem>>, vector<1x256xf32>,
    return
  }
  func.func @transform_0(%arg0: i32) -> (i32, i32) {
    %c0_i32 = arith.constant 0 : i32
    %c0_i32_0 = arith.constant 0 : i32
    return %arg0, %c0_i32 : i32, i32
  }
  func.func @transform_1(%arg0: i32) -> (i32, i32) {
    %c0_i32 = arith.constant 0 : i32
    %c0_i32_0 = arith.constant 0 : i32
    %c0_i32_1 = arith.constant 0 : i32
    return %c0_i32, %c0_i32_0 : i32, i32
  }
  func.func @transform_2(%arg0: i32) -> (i32, i32) {
    %c0_i32 = arith.constant 0 : i32
    %c0_i32_0 = arith.constant 0 : i32
    %c0_i32_1 = arith.constant 0 : i32
    return %c0_i32, %c0_i32_0 : i32, i32
  }
  func.func @transform_3(%arg0: i32) -> (i32, i32) {
    %c0_i32 = arith.constant 0 : i32
    %c0_i32_0 = arith.constant 0 : i32
    %c0_i32_1 = arith.constant 0 : i32
    return %c0_i32, %c0_i32_0 : i32, i32
  }
  func.func @transform_4(%arg0: i32) -> (i32, i32) {
    %c0_i32 = arith.constant 0 : i32
    %c0_i32_0 = arith.constant 0 : i32
    %c0_i32_1 = arith.constant 0 : i32
    return %c0_i32, %c0_i32_0 : i32, i32
  }
  func.func @transform_5(%arg0: i32) -> (i32, i32) {
    %c0_i32 = arith.constant 0 : i32
    %c0_i32_0 = arith.constant 0 : i32
    %c0_i32_1 = arith.constant 0 : i32
    return %c0_i32, %c0_i32_0 : i32, i32
  }
  func.func @transform_6(%arg0: i32) -> (i32, i32) {
    %c0_i32 = arith.constant 0 : i32
    %c0_i32_0 = arith.constant 0 : i32
    %c0_i32_1 = arith.constant 0 : i32
    return %c0_i32, %c0_i32_0 : i32, i32
  }
  func.func @transform_7(%arg0: i32) -> (i32, i32) {
    %c0_i32 = arith.constant 0 : i32
    %c0_i32_0 = arith.constant 0 : i32
    return %arg0, %c0_i32 : i32, i32
  }
}

</mosaic_0001>

<bundles_post_ra>
// kernel: tpu_custom_call.1
= control target key start
LH: loop header
LB: loop body
LE: loop exit
PB: predicated region body
PF: predicated region fallthrough
CT: control target
= control target key end

     0   :  { %s9542_s0 = inlined_call_operand.vmem [shape: f32[256,32], index: 0, kind: input, shape index: {}]   ;;  %s9543_s1 = inlined_call_operand.vmem [shape: bf16[32,1024], index: 1, kind: input, shape index: {}]   ;;  %s9544_s2 = inlined_call_operand.vmem [shape: f32[1,1024], index: 2, kind: input, shape index: {}]   ;;  %s9545_s3 = inlined_call_operand.hbm [shape: bf16[1024,256], index: 3, kind: input, shape index: {}]   ;;  %s9546_s4 = inlined_call_operand.vmem [shape: f32[1,256], index: 4, kind: input, shape index: {}]   ;;  %s9547_s5 = inlined_call_operand.vmem [shape: bf16[1,256], index: 5, kind: input, shape index: {}]   ;;  %s9548_s6 = inlined_call_operand.<no memory space> [shape: f32[1,1], index: 6, kind: input, shape index: {}]   ;;  %s9549_s7 = inlined_call_operand.hbm [shape: f32[1,256], index: 7, kind: output, shape index: {}]  }
   0x1   :  { %v12_v0 = vstv %s9548_s6 }
   0x2   :  { %13 = vst [vmem:[#allocation2] sm:$0x1] %v12_v0 }
   0x3   :  { %14 = vsyncpa [#allocation4], 0 }
   0x4   :  { %15 = vsyncpa [#allocation5], 0  ;;  %s6801_s26 = smov [#allocation3]  }
   0x5   :  { %s27_s27 = sshll.u32 %s6801_s26, 4  ;;  %s28_s27 = int_to_ptr.vmem [resolvable:$true] %s27_s27 }
   0x6   :  { %s6765_s28 = scalar_lea.vmem %s28_s27, 16384  ;;  %p6770_p1 = scmp.lt.s32.totalorder %s28_s27, %s28_s27 }
   0x7   :  { %p6766_p0 = scmp.ne.s32.totalorder %s28_s27, %s6765_s28  ;;  %p6771_p2 = scmp.lt.s32.totalorder %s6765_s28, %s6765_s28 }
   0x9   :  { %p6772_p3 = por %p6771_p2, %p6770_p1 }
   0xb   :  { %p6773_p4 = pnand %p6772_p3, %p6766_p0 }
   0xd   :  { %6776 = shalt.err (!%p6773_p4)
}
   0xe   :  { %s6802_s29 = smov 128   ;;  %s6803_s30 = smov 8  }
   0xf   :  { %33 = dma.hbm_to_vmem [thread:$0]  %s9545_s3, 16384, %s28_s27, [#allocation4], %s6802_s29, %s6802_s29, %s6803_s30  }
  0x10   :  { %6797 = dma.done.wait [#allocation4], 16384  }
  0x11   :  { %6798 = vsyncadd [#allocation4], 4294950912  ;;  %v6804_v1 = vmov 0   ;;  %v100_v2 = vld [vmem:[%s9543_s1 + $0x40] sm:$0xff]  ;;  %v101_v4 = vld [vmem:[%s9543_s1 + $0x48] sm:$0xff]  ;;  %vm230_vm0 = vcmask 261120  }
  0x12   :  { %311 = vmatprep.mubr.bf16.mxu0 %v6804_v1  ;;  %504 = vmatprep.mubr.bf16.mxu1 %v6804_v1  ;;  %v104_v3 = vld [vmem:[%s9543_s1 + $0x60] sm:$0xff]  ;;  %v105_v6 = vld [vmem:[%s9543_s1 + $0x68] sm:$0xff]  ;;  %v102_v17 = vld [vmem:[%s9543_s1 + $0x50] sm:$0xff]  ;;  %vm6005_vm1 = vcmask 130112   ;;  %vm6012_vm2 = vcmask 195712   ;;  %vm6019_vm3 = vcmask 261312  }
  0x13   :  { %6434 = vset.pattern.permute.xlu0 %v6804_v1  ;;  %6435 = vset.pattern.permute.xlu1 %v6804_v1  ;;  %v6229_v5 = vcombine.high %v100_v2, %v104_v3  ;;  %v6228_v7 = vcombine.low %v100_v2, %v104_v3  ;;  %v92_v8 = vld [vmem:[%s9543_s1] sm:$0xff]  ;;  %v6231_v10 = vcombine.high %v101_v4, %v105_v6  ;;  %v93_v13 = vld [vmem:[%s9543_s1 + $0x8] sm:$0xff]  ;;  %v106_v18 = vld [vmem:[%s9543_s1 + $0x70] sm:$0xff]  ;;  %vm6026_vm4 = vcmask 326912  }
  0x14   :  { %v96_v9 = vld [vmem:[%s9543_s1 + $0x20] sm:$0xff]  ;;  %v6230_v11 = vcombine.low %v101_v4, %v105_v6  ;;  %v97_v14 = vld [vmem:[%s9543_s1 + $0x28] sm:$0xff]  ;;  %v103_v21 = vld [vmem:[%s9543_s1 + $0x58] sm:$0xff]  ;;  %v6233_v24 = vcombine.high %v102_v17, %v106_v18  ;;  %v6232_v27 = vcombine.low %v102_v17, %v106_v18  ;;  %vm6033_vm5 = vcmask 392512  }
  0x15   :  { %v6221_v12 = vcombine.high %v92_v8, %v96_v9  ;;  %291 = vmatprep.subr.bf16.mxu0 %v6229_v5  ;;  %v6223_v15 = vcombine.high %v93_v13, %v97_v14  ;;  %v44_v16 = vld [vmem:[%s9542_s0] sm:$0xff]  ;;  %484 = vmatprep.subr.bf16.mxu1 %v6231_v10  ;;  %v6220_v19 = vcombine.low %v92_v8, %v96_v9  ;;  %v45_v20 = vld [vmem:[%s9542_s0 + $0x8] sm:$0xff]  ;;  %v107_v22 = vld [vmem:[%s9543_s1 + $0x78] sm:$0xff]  ;;  %vm6040_vm6 = vcmask 458112  }
  0x16   :  { %292 = vmatpush1.bf16.msra.mxu0 %v6228_v7  ;;  %485 = vmatpush1.bf16.msra.mxu1 %v6230_v11  ;;  %v6222_v23 = vcombine.low %v93_v13, %v97_v14  ;;  %v6235_v25 = vcombine.high %v103_v21, %v107_v22  ;;  %v6899_v26 = vpack.c.bf16 %v45_v20, %v44_v16  ;;  %v94_v29 = vld [vmem:[%s9543_s1 + $0x10] sm:$0xff]  ;;  %v95_v31 = vld [vmem:[%s9543_s1 + $0x18] sm:$0xff]  ;;  %v48_v42 = vld [vmem:[%s9542_s0 + $0x20] sm:$0xff]  ;;  %vm6047_vm7 = vcmask 523712  }
  0x17   :  { %293 = vmatprep.subr.bf16.mxu0 %v6221_v12  ;;  %486 = vmatprep.subr.bf16.mxu1 %v6223_v15  ;;  %v6234_v28 = vcombine.low %v103_v21, %v107_v22  ;;  %v98_v30 = vld [vmem:[%s9543_s1 + $0x30] sm:$0xff]  ;;  %v99_v33 = vld [vmem:[%s9543_s1 + $0x38] sm:$0xff]  ;;  %v49_v43 = vld [vmem:[%s9542_s0 + $0x28] sm:$0xff]  ;;  %vm6054_vm8 = vcmask 589312   ;;  %vm6061_vm9 = vcmask 654912   ;;  %vm6068_vm10 = vcmask 720512  }
  0x18   :  { %v6225_v32 = vcombine.high %v94_v29, %v98_v30  ;;  %v46_v34 = vld [vmem:[%s9542_s0 + $0x10] sm:$0xff]  ;;  %v47_v35 = vld [vmem:[%s9542_s0 + $0x18] sm:$0xff]  ;;  %v6224_v36 = vcombine.low %v94_v29, %v98_v30  ;;  %v6227_v37 = vcombine.high %v95_v31, %v99_v33  ;;  %v6226_v38 = vcombine.low %v95_v31, %v99_v33  ;;  %v52_v48 = vld [vmem:[%s9542_s0 + $0x40] sm:$0xff] }
  0x19   :  { %v6925_v39 = vpack.c.bf16 %v47_v35, %v46_v34  ;;  %v6438_v40 = vld [vmem:[#allocation3 + $0x74] ss:$8 sps:$4 sm:$0xff]   ;;  %v6939_v44 = vpack.c.bf16 %v49_v43, %v48_v42  ;;  %v53_v49 = vld [vmem:[%s9542_s0 + $0x48] sm:$0xff]  ;;  %v6436_v21 = vld [vmem:[#allocation3 + $0x70] ss:$8 sps:$4 sm:$0xff]   ;;  %vm6075_vm11 = vcmask 786112  }
  0x1a   :  { %294 = vmatpush1.bf16.msra.mxu0 %v6220_v19  ;;  %487 = vmatpush1.bf16.msra.mxu1 %v6222_v23  ;;  %v6441_v41 = vld [vmem:[#allocation3 + $0x174] ss:$8 sps:$4 sm:$0xff]   ;;  %v6967_v50 = vpack.c.bf16 %v53_v49, %v52_v48  ;;  %v57_v55 = vld [vmem:[%s9542_s0 + $0x68] sm:$0xff]  ;;  %v6439_v22 = vld [vmem:[#allocation3 + $0x170] ss:$8 sps:$4 sm:$0xff]   ;;  %vm6082_vm12 = vcmask 851712  }
  0x1b   :  { %677 = vmatprep.subr.bf16.mxu0 %v6233_v24  ;;  %870 = vmatprep.subr.bf16.mxu1 %v6235_v25  ;;  %v50_v45 = vld [vmem:[%s9542_s0 + $0x30] sm:$0xff]  ;;  %v51_v46 = vld [vmem:[%s9542_s0 + $0x38] sm:$0xff]  ;;  %v56_v54 = vld [vmem:[%s9542_s0 + $0x60] sm:$0xff]  ;;  %vm6089_vm13 = vcmask 917312   ;;  %vm6096_vm14 = vcmask 982912   ;;  %vm6103_vm15 = vcmask 1048512  }
  0x1c   :  { %v6953_v47 = vpack.c.bf16 %v51_v46, %v50_v45  ;;  %v54_v51 = vld [vmem:[%s9542_s0 + $0x50] sm:$0xff]  ;;  %v55_v52 = vld [vmem:[%s9542_s0 + $0x58] sm:$0xff]  ;;  %v6995_v56 = vpack.c.bf16 %v57_v55, %v56_v54  ;;  %v60_v60 = vld [vmem:[%s9542_s0 + $0x80] sm:$0xff] }
  0x1d   :  { %6236 = vmatmul.mubr.msk.bf16.vlgmr.msra.gmra.mxu0 %vm230_vm0, %v6899_v26  ;;  %6252 = vmatmul.mubr.msk.bf16.vlgmr.msra.gmra.mxu1 %vm230_vm0, %v6899_v26  ;;  %v6981_v53 = vpack.c.bf16 %v55_v52, %v54_v51  ;;  %v58_v57 = vld [vmem:[%s9542_s0 + $0x70] sm:$0xff]  ;;  %v59_v58 = vld [vmem:[%s9542_s0 + $0x78] sm:$0xff]  ;;  %v61_v61 = vld [vmem:[%s9542_s0 + $0x88] sm:$0xff] }
  0x1e   :  { %678 = vmatpush1.bf16.msra.mxu0 %v6232_v27  ;;  %871 = vmatpush1.bf16.msra.mxu1 %v6234_v28  ;;  %v7009_v59 = vpack.c.bf16 %v59_v58, %v58_v57  ;;  %v7023_v62 = vpack.c.bf16 %v61_v61, %v60_v60  ;;  %v62_v63 = vld [vmem:[%s9542_s0 + $0x90] sm:$0xff]  ;;  %v63_v0 = vld [vmem:[%s9542_s0 + $0x98] sm:$0xff]  ;;  %v64_v3 = vld [vmem:[%s9542_s0 + $0xa0] sm:$0xff] }
  0x1f   :  { %321 = vmatprep.mubr.bf16.mxu0 %v6804_v1  ;;  %514 = vmatprep.mubr.bf16.mxu1 %v6804_v1  ;;  %v7037_v2 = vpack.c.bf16 %v63_v0, %v62_v63  ;;  %v65_v4 = vld [vmem:[%s9542_s0 + $0xa8] sm:$0xff]  ;;  %v66_v6 = vld [vmem:[%s9542_s0 + $0xb0] sm:$0xff]  ;;  %v67_v7 = vld [vmem:[%s9542_s0 + $0xb8] sm:$0xff] }
  0x20   :  { %679 = vmatprep.subr.bf16.mxu0 %v6225_v32  ;;  %872 = vmatprep.subr.bf16.mxu1 %v6227_v37  ;;  %v7051_v5 = vpack.c.bf16 %v65_v4, %v64_v3  ;;  %v7065_v8 = vpack.c.bf16 %v67_v7, %v66_v6  ;;  %v68_v9 = vld [vmem:[%s9542_s0 + $0xc0] sm:$0xff]  ;;  %v69_v10 = vld [vmem:[%s9542_s0 + $0xc8] sm:$0xff]  ;;  %v70_v12 = vld [vmem:[%s9542_s0 + $0xd0] sm:$0xff] }
  0x21   :  { %v7079_v11 = vpack.c.bf16 %v69_v10, %v68_v9  ;;  %v71_v13 = vld [vmem:[%s9542_s0 + $0xd8] sm:$0xff]  ;;  %v72_v15 = vld [vmem:[%s9542_s0 + $0xe0] sm:$0xff]  ;;  %v73_v16 = vld [vmem:[%s9542_s0 + $0xe8] sm:$0xff] }
  0x22   :  { %680 = vmatpush1.bf16.msra.mxu0 %v6224_v36  ;;  %873 = vmatpush1.bf16.msra.mxu1 %v6226_v38  ;;  %v7093_v14 = vpack.c.bf16 %v71_v13, %v70_v12  ;;  %v7107_v17 = vpack.c.bf16 %v73_v16, %v72_v15  ;;  %v74_v18 = vld [vmem:[%s9542_s0 + $0xf0] sm:$0xff]  ;;  %v75_v19 = vld [vmem:[%s9542_s0 + $0xf8] sm:$0xff]  ;;  %v6442_v25 = vld [vmem:[#allocation3 + $0x60] ss:$8 sps:$4 sm:$0xff]  }
  0x23   :  { %2215 = vmatprep.subr.bf16.mxu0 %v6438_v40  ;;  %2408 = vmatprep.subr.bf16.mxu1 %v6441_v41  ;;  %v7121_v20 = vpack.c.bf16 %v75_v19, %v74_v18  ;;  %v6444_v23 = vld [vmem:[#allocation3 + $0x64] ss:$8 sps:$4 sm:$0xff]   ;;  %v6445_v27 = vld [vmem:[#allocation3 + $0x160] ss:$8 sps:$4 sm:$0xff]   ;;  %v6450_v28 = vld [vmem:[#allocation3 + $0x54] ss:$8 sps:$4 sm:$0xff]  }
  0x24   :  { %v6447_v24 = vld [vmem:[#allocation3 + $0x164] ss:$8 sps:$4 sm:$0xff]   ;;  %v6453_v29 = vld [vmem:[#allocation3 + $0x154] ss:$8 sps:$4 sm:$0xff]   ;;  %v6448_v30 = vld [vmem:[#allocation3 + $0x50] ss:$8 sps:$4 sm:$0xff]  }
  0x25   :  { %6237 = vmatmul.mubr.msk.bf16.gmra.mxu0 %vm230_vm0, %v6925_v39  ;;  %6253 = vmatmul.mubr.msk.bf16.gmra.mxu1 %vm230_vm0, %v6925_v39  ;;  %v6451_v31 = vld [vmem:[#allocation3 + $0x150] ss:$8 sps:$4 sm:$0xff]   ;;  %v6456_v32 = vld [vmem:[#allocation3 + $0x44] ss:$8 sps:$4 sm:$0xff]   ;;  %v6454_v33 = vld [vmem:[#allocation3 + $0x40] ss:$8 sps:$4 sm:$0xff]  }
  0x26   :  { %331 = vmatprep.mubr.bf16.mxu0 %v6804_v1  ;;  %524 = vmatprep.mubr.bf16.mxu1 %v6804_v1  ;;  %v6457_v34 = vld [vmem:[#allocation3 + $0x140] ss:$8 sps:$4 sm:$0xff]   ;;  %v6462_v35 = vld [vmem:[#allocation3 + $0x34] ss:$8 sps:$4 sm:$0xff]   ;;  %v6460_v37 = vld [vmem:[#allocation3 + $0x30] ss:$8 sps:$4 sm:$0xff]  }
  0x27   :  { %v6465_v36 = vld [vmem:[#allocation3 + $0x134] ss:$8 sps:$4 sm:$0xff]   ;;  %v6463_v38 = vld [vmem:[#allocation3 + $0x130] ss:$8 sps:$4 sm:$0xff]   ;;  %v6468_v40 = vld [vmem:[#allocation3 + $0x24] ss:$8 sps:$4 sm:$0xff]  }
  0x28   :  { %v6466_v41 = vld [vmem:[#allocation3 + $0x20] ss:$8 sps:$4 sm:$0xff]   ;;  %v6474_v43 = vld [vmem:[#allocation3 + $0x14] ss:$8 sps:$4 sm:$0xff]   ;;  %v6472_v46 = vld [vmem:[#allocation3 + $0x10] ss:$8 sps:$4 sm:$0xff]  }
  0x29   :  { %v6469_v42 = vld [vmem:[#allocation3 + $0x120] ss:$8 sps:$4 sm:$0xff]   ;;  %v6477_v45 = vld [vmem:[#allocation3 + $0x114] ss:$8 sps:$4 sm:$0xff]   ;;  %v6475_v48 = vld [vmem:[#allocation3 + $0x110] ss:$8 sps:$4 sm:$0xff]  }
  0x2a   :  { %v6480_v49 = vld [vmem:[#allocation3 + $0x4] ss:$8 sps:$4 sm:$0xff]   ;;  %v6478_v51 = vld [vmem:[#allocation3] ss:$8 sps:$4 sm:$0xff]   ;;  %v6486_v54 = vld [vmem:[#allocation3 + $0xf4] ss:$8 sps:$4 sm:$0xff]  }
  0x2b   :  { %v6481_v52 = vld [vmem:[#allocation3 + $0x100] ss:$8 sps:$4 sm:$0xff]   ;;  %v6489_v55 = vld [vmem:[#allocation3 + $0x1f4] ss:$8 sps:$4 sm:$0xff]   ;;  %v6484_v57 = vld [vmem:[#allocation3 + $0xf0] ss:$8 sps:$4 sm:$0xff]  }
  0x2c   :  { %v6487_v58 = vld [vmem:[#allocation3 + $0x1f0] ss:$8 sps:$4 sm:$0xff]   ;;  %v6492_v60 = vld [vmem:[#allocation3 + $0xe4] ss:$8 sps:$4 sm:$0xff]   ;;  %v6490_v61 = vld [vmem:[#allocation3 + $0xe0] ss:$8 sps:$4 sm:$0xff]  }
  0x2d   :  { %6238 = vmatmul.mubr.msk.bf16.gmra.mxu0 %vm230_vm0, %v6939_v44  ;;  %6254 = vmatmul.mubr.msk.bf16.gmra.mxu1 %vm230_vm0, %v6939_v44  ;;  %v6493_v63 = vld [vmem:[#allocation3 + $0x1e0] ss:$8 sps:$4 sm:$0xff]   ;;  %v6498_v0 = vld [vmem:[#allocation3 + $0xd4] ss:$8 sps:$4 sm:$0xff]   ;;  %v6496_v4 = vld [vmem:[#allocation3 + $0xd0] ss:$8 sps:$4 sm:$0xff]  }
  0x2e   :  { %341 = vmatprep.mubr.bf16.mxu0 %v6804_v1  ;;  %534 = vmatprep.mubr.bf16.mxu1 %v6804_v1  ;;  %v6501_v3 = vld [vmem:[#allocation3 + $0x1d4] ss:$8 sps:$4 sm:$0xff]   ;;  %v6499_v6 = vld [vmem:[#allocation3 + $0x1d0] ss:$8 sps:$4 sm:$0xff]   ;;  %v6504_v7 = vld [vmem:[#allocation3 + $0xc4] ss:$8 sps:$4 sm:$0xff]  }
  0x2f   :  { %v6502_v9 = vld [vmem:[#allocation3 + $0xc0] ss:$8 sps:$4 sm:$0xff]   ;;  %v6510_v12 = vld [vmem:[#allocation3 + $0xb4] ss:$8 sps:$4 sm:$0xff]   ;;  %v6508_v15 = vld [vmem:[#allocation3 + $0xb0] ss:$8 sps:$4 sm:$0xff]  }
  0x30   :  { %v6505_v10 = vld [vmem:[#allocation3 + $0x1c0] ss:$8 sps:$4 sm:$0xff]   ;;  %v6513_v13 = vld [vmem:[#allocation3 + $0x1b4] ss:$8 sps:$4 sm:$0xff]   ;;  %v6511_v16 = vld [vmem:[#allocation3 + $0x1b0] ss:$8 sps:$4 sm:$0xff]  }
  0x31   :  { %v6516_v18 = vld [vmem:[#allocation3 + $0xa4] ss:$8 sps:$4 sm:$0xff]   ;;  %v6514_v19 = vld [vmem:[#allocation3 + $0xa0] ss:$8 sps:$4 sm:$0xff]  }
  0x35   :  { %6239 = vmatmul.mubr.msk.bf16.gmra.mxu0 %vm230_vm0, %v6953_v47  ;;  %6255 = vmatmul.mubr.msk.bf16.gmra.mxu1 %vm230_vm0, %v6953_v47 }
  0x36   :  { %351 = vmatprep.mubr.bf16.mxu0 %v6804_v1  ;;  %544 = vmatprep.mubr.bf16.mxu1 %v6804_v1 }
  0x3d   :  { %6240 = vmatmul.mubr.msk.bf16.gmra.mxu0 %vm230_vm0, %v6967_v50  ;;  %6256 = vmatmul.mubr.msk.bf16.gmra.mxu1 %vm230_vm0, %v6967_v50 }
  0x3e   :  { %361 = vmatprep.mubr.bf16.mxu0 %v6804_v1  ;;  %554 = vmatprep.mubr.bf16.mxu1 %v6804_v1 }
  0x45   :  { %6241 = vmatmul.mubr.msk.bf16.gmra.mxu0 %vm230_vm0, %v6981_v53  ;;  %6257 = vmatmul.mubr.msk.bf16.gmra.mxu1 %vm230_vm0, %v6981_v53 }
  0x46   :  { %371 = vmatprep.mubr.bf16.mxu0 %v6804_v1  ;;  %564 = vmatprep.mubr.bf16.mxu1 %v6804_v1 }
  0x4d   :  { %6242 = vmatmul.mubr.msk.bf16.gmra.mxu0 %vm230_vm0, %v6995_v56  ;;  %6258 = vmatmul.mubr.msk.bf16.gmra.mxu1 %vm230_vm0, %v6995_v56 }
  0x4e   :  { %381 = vmatprep.mubr.bf16.mxu0 %v6804_v1  ;;  %574 = vmatprep.mubr.bf16.mxu1 %v6804_v1 }
  0x55   :  { %6243 = vmatmul.mubr.msk.bf16.gmra.mxu0 %vm230_vm0, %v7009_v59  ;;  %6259 = vmatmul.mubr.msk.bf16.gmra.mxu1 %vm230_vm0, %v7009_v59 }
  0x56   :  { %391 = vmatprep.mubr.bf16.mxu0 %v6804_v1  ;;  %584 = vmatprep.mubr.bf16.mxu1 %v6804_v1 }
  0x5d   :  { %6244 = vmatmul.mubr.msk.bf16.gmra.mxu0 %vm230_vm0, %v7023_v62  ;;  %6260 = vmatmul.mubr.msk.bf16.gmra.mxu1 %vm230_vm0, %v7023_v62 }
  0x5e   :  { %401 = vmatprep.mubr.bf16.mxu0 %v6804_v1  ;;  %594 = vmatprep.mubr.bf16.mxu1 %v6804_v1 }
  0x65   :  { %6245 = vmatmul.mubr.msk.bf16.gmra.mxu0 %vm230_vm0, %v7037_v2  ;;  %6261 = vmatmul.mubr.msk.bf16.gmra.mxu1 %vm230_vm0, %v7037_v2 }
  0x66   :  { %411 = vmatprep.mubr.bf16.mxu0 %v6804_v1  ;;  %604 = vmatprep.mubr.bf16.mxu1 %v6804_v1 }
  0x6d   :  { %6246 = vmatmul.mubr.msk.bf16.gmra.mxu0 %vm230_vm0, %v7051_v5  ;;  %6262 = vmatmul.mubr.msk.bf16.gmra.mxu1 %vm230_vm0, %v7051_v5 }
  0x6e   :  { %421 = vmatprep.mubr.bf16.mxu0 %v6804_v1  ;;  %614 = vmatprep.mubr.bf16.mxu1 %v6804_v1 }
  0x75   :  { %6247 = vmatmul.mubr.msk.bf16.gmra.mxu0 %vm230_vm0, %v7065_v8  ;;  %6263 = vmatmul.mubr.msk.bf16.gmra.mxu1 %vm230_vm0, %v7065_v8 }
  0x76   :  { %431 = vmatprep.mubr.bf16.mxu0 %v6804_v1  ;;  %624 = vmatprep.mubr.bf16.mxu1 %v6804_v1 }
  0x7d   :  { %6248 = vmatmul.mubr.msk.bf16.gmra.mxu0 %vm230_vm0, %v7079_v11  ;;  %6264 = vmatmul.mubr.msk.bf16.gmra.mxu1 %vm230_vm0, %v7079_v11 }
  0x7e   :  { %441 = vmatprep.mubr.bf16.mxu0 %v6804_v1  ;;  %634 = vmatprep.mubr.bf16.mxu1 %v6804_v1 }
  0x85   :  { %6249 = vmatmul.mubr.msk.bf16.gmra.mxu0 %vm230_vm0, %v7093_v14  ;;  %6265 = vmatmul.mubr.msk.bf16.gmra.mxu1 %vm230_vm0, %v7093_v14 }
  0x86   :  { %451 = vmatprep.mubr.bf16.mxu0 %v6804_v1  ;;  %644 = vmatprep.mubr.bf16.mxu1 %v6804_v1 }
  0x8d   :  { %6250 = vmatmul.mubr.msk.bf16.gmra.mxu0 %vm230_vm0, %v7107_v17  ;;  %6266 = vmatmul.mubr.msk.bf16.gmra.mxu1 %vm230_vm0, %v7107_v17 }
  0x8e   :  { %461 = vmatprep.mubr.bf16.mxu0 %v6804_v1  ;;  %654 = vmatprep.mubr.bf16.mxu1 %v6804_v1 }
  0x95   :  { %6251 = vmatmul.mubr.msk.bf16.gmra.mxu0 %vm230_vm0, %v7121_v20  ;;  %6267 = vmatmul.mubr.msk.bf16.gmra.mxu1 %vm230_vm0, %v7121_v20 }
  0x96   :  { %697 = vmatprep.mubr.bf16.mxu0 %v6804_v1  ;;  %890 = vmatprep.mubr.bf16.mxu1 %v6804_v1 }
  0x9d   :  { %6268 = vmatmul.mubr.msk.bf16.vlgmr.msra.gmra.mxu0 %vm230_vm0, %v6899_v26  ;;  %6284 = vmatmul.mubr.msk.bf16.vlgmr.msra.gmra.mxu1 %vm230_vm0, %v6899_v26  ;;  %v6459_v26 = vld [vmem:[#allocation3 + $0x144] ss:$8 sps:$4 sm:$0xff]  }
  0x9e   :  { %2216 = vmatpush1.bf16.msra.mxu0 %v6436_v21  ;;  %2409 = vmatpush1.bf16.msra.mxu1 %v6439_v22  ;;  %v6517_v21 = vld [vmem:[#allocation3 + $0x1a0] ss:$8 sps:$4 sm:$0xff]   ;;  %v6522_v22 = vld [vmem:[#allocation3 + $0x94] ss:$8 sps:$4 sm:$0xff]  }
  0x9f   :  { %707 = vmatprep.mubr.bf16.mxu0 %v6804_v1  ;;  %900 = vmatprep.mubr.bf16.mxu1 %v6804_v1 }
  0xa0   :  { %2217 = vmatprep.subr.bf16.mxu0 %v6444_v23  ;;  %2410 = vmatprep.subr.bf16.mxu1 %v6447_v24  ;;  %v6525_v23 = vld [vmem:[#allocation3 + $0x194] ss:$8 sps:$4 sm:$0xff]   ;;  %v6520_v24 = vld [vmem:[#allocation3 + $0x90] ss:$8 sps:$4 sm:$0xff]  }
  0xa2   :  { %2218 = vmatpush1.bf16.msra.mxu0 %v6442_v25  ;;  %2411 = vmatpush1.bf16.msra.mxu1 %v6445_v27  ;;  %v6523_v25 = vld [vmem:[#allocation3 + $0x190] ss:$8 sps:$4 sm:$0xff]   ;;  %v6528_v27 = vld [vmem:[#allocation3 + $0x84] ss:$8 sps:$4 sm:$0xff]  }
  0xa3   :  { %2219 = vmatprep.subr.bf16.mxu0 %v6450_v28  ;;  %2412 = vmatprep.subr.bf16.mxu1 %v6453_v29  ;;  %v6526_v28 = vld [vmem:[#allocation3 + $0x80] ss:$8 sps:$4 sm:$0xff]  }
  0xa4   :  { %v6529_v29 = vld [vmem:[#allocation3 + $0x180] ss:$8 sps:$4 sm:$0xff]  }
  0xa5   :  { %6269 = vmatmul.mubr.msk.bf16.gmra.mxu0 %vm230_vm0, %v6925_v39  ;;  %6285 = vmatmul.mubr.msk.bf16.gmra.mxu1 %vm230_vm0, %v6925_v39  ;;  %v6471_v39 = vld [vmem:[#allocation3 + $0x124] ss:$8 sps:$4 sm:$0xff]  }
  0xa6   :  { %717 = vmatprep.mubr.bf16.mxu0 %v6804_v1  ;;  %910 = vmatprep.mubr.bf16.mxu1 %v6804_v1 }
  0xa7   :  { %2220 = vmatpush1.bf16.msra.mxu0 %v6448_v30  ;;  %2413 = vmatpush1.bf16.msra.mxu1 %v6451_v31  ;;  %v6534_v30 = vld [vmem:[#allocation3 + $0x274] ss:$8 sps:$4 sm:$0xff]  }
  0xa8   :  { %2221 = vmatprep.subr.bf16.mxu0 %v6456_v32  ;;  %2414 = vmatprep.subr.bf16.mxu1 %v6459_v26  ;;  %v6537_v31 = vld [vmem:[#allocation3 + $0x374] ss:$8 sps:$4 sm:$0xff]  }
  0xab   :  { %2222 = vmatpush1.bf16.msra.mxu0 %v6454_v33  ;;  %2415 = vmatpush1.bf16.msra.mxu1 %v6457_v34 }
  0xac   :  { %2223 = vmatprep.subr.bf16.mxu0 %v6462_v35  ;;  %2416 = vmatprep.subr.bf16.mxu1 %v6465_v36 }
  0xad   :  { %6270 = vmatmul.mubr.msk.bf16.gmra.mxu0 %vm230_vm0, %v6939_v44  ;;  %6286 = vmatmul.mubr.msk.bf16.gmra.mxu1 %vm230_vm0, %v6939_v44  ;;  %v6483_v44 = vld [vmem:[#allocation3 + $0x104] ss:$8 sps:$4 sm:$0xff]  }
  0xae   :  { %727 = vmatprep.mubr.bf16.mxu0 %v6804_v1  ;;  %920 = vmatprep.mubr.bf16.mxu1 %v6804_v1 }
  0xaf   :  { %2224 = vmatpush1.bf16.msra.mxu0 %v6460_v37  ;;  %2417 = vmatpush1.bf16.msra.mxu1 %v6463_v38 }
  0xb0   :  { %2225 = vmatprep.subr.bf16.mxu0 %v6468_v40  ;;  %2418 = vmatprep.subr.bf16.mxu1 %v6471_v39 }
  0xb3   :  { %2226 = vmatpush1.bf16.msra.mxu0 %v6466_v41  ;;  %2419 = vmatpush1.bf16.msra.mxu1 %v6469_v42 }
  0xb4   :  { %2227 = vmatprep.subr.bf16.mxu0 %v6474_v43  ;;  %2420 = vmatprep.subr.bf16.mxu1 %v6477_v45 }
  0xb5   :  { %6271 = vmatmul.mubr.msk.bf16.gmra.mxu0 %vm230_vm0, %v6953_v47  ;;  %6287 = vmatmul.mubr.msk.bf16.gmra.mxu1 %vm230_vm0, %v6953_v47  ;;  %v6495_v47 = vld [vmem:[#allocation3 + $0x1e4] ss:$8 sps:$4 sm:$0xff]  }
  0xb6   :  { %737 = vmatprep.mubr.bf16.mxu0 %v6804_v1  ;;  %930 = vmatprep.mubr.bf16.mxu1 %v6804_v1 }
  0xb7   :  { %2228 = vmatpush1.bf16.msra.mxu0 %v6472_v46  ;;  %2421 = vmatpush1.bf16.msra.mxu1 %v6475_v48 }
  0xb8   :  { %2229 = vmatprep.subr.bf16.mxu0 %v6480_v49  ;;  %2422 = vmatprep.subr.bf16.mxu1 %v6483_v44 }
  0xbb   :  { %2230 = vmatpush1.bf16.msra.mxu0 %v6478_v51  ;;  %2423 = vmatpush1.bf16.msra.mxu1 %v6481_v52 }
  0xbc   :  { %2231 = vmatprep.subr.bf16.mxu0 %v6486_v54  ;;  %2424 = vmatprep.subr.bf16.mxu1 %v6489_v55 }
  0xbd   :  { %6272 = vmatmul.mubr.msk.bf16.gmra.mxu0 %vm230_vm0, %v6967_v50  ;;  %6288 = vmatmul.mubr.msk.bf16.gmra.mxu1 %vm230_vm0, %v6967_v50  ;;  %v6507_v50 = vld [vmem:[#allocation3 + $0x1c4] ss:$8 sps:$4 sm:$0xff]  }
  0xbe   :  { %747 = vmatprep.mubr.bf16.mxu0 %v6804_v1  ;;  %940 = vmatprep.mubr.bf16.mxu1 %v6804_v1 }
  0xbf   :  { %2232 = vmatpush2.bf16.msra.mxu0 %v6484_v57  ;;  %2425 = vmatpush2.bf16.msra.mxu1 %v6487_v58 }
  0xc0   :  { %2233 = vmatprep.subr.bf16.mxu0 %v6492_v60  ;;  %2426 = vmatprep.subr.bf16.mxu1 %v6495_v47 }
  0xc3   :  { %2234 = vmatpush2.bf16.msra.mxu0 %v6490_v61  ;;  %2427 = vmatpush2.bf16.msra.mxu1 %v6493_v63 }
  0xc4   :  { %2235 = vmatprep.subr.bf16.mxu0 %v6498_v0  ;;  %2428 = vmatprep.subr.bf16.mxu1 %v6501_v3 }
  0xc5   :  { %6273 = vmatmul.mubr.msk.bf16.gmra.mxu0 %vm230_vm0, %v6981_v53  ;;  %6289 = vmatmul.mubr.msk.bf16.gmra.mxu1 %vm230_vm0, %v6981_v53  ;;  %v6519_v53 = vld [vmem:[#allocation3 + $0x1a4] ss:$8 sps:$4 sm:$0xff]  }
  0xc6   :  { %757 = vmatprep.mubr.bf16.mxu0 %v6804_v1  ;;  %950 = vmatprep.mubr.bf16.mxu1 %v6804_v1 }
  0xc7   :  { %2236 = vmatpush2.bf16.msra.mxu0 %v6496_v4  ;;  %2429 = vmatpush2.bf16.msra.mxu1 %v6499_v6  ;;  %v9550_v4 = vlaneseq }
  0xc8   :  { %2237 = vmatprep.subr.bf16.mxu0 %v6504_v7  ;;  %2430 = vmatprep.subr.bf16.mxu1 %v6507_v50 }
  0xcb   :  { %2238 = vmatpush2.bf16.msra.mxu0 %v6502_v9  ;;  %2431 = vmatpush2.bf16.msra.mxu1 %v6505_v10  ;;  %v7286_v10 = vshrl.u32 %v9550_v4, 7 }
  0xcc   :  { %2239 = vmatprep.subr.bf16.mxu0 %v6510_v12  ;;  %2432 = vmatprep.subr.bf16.mxu1 %v6513_v13 }
  0xcd   :  { %6274 = vmatmul.mubr.msk.bf16.gmra.mxu0 %vm230_vm0, %v6995_v56  ;;  %6290 = vmatmul.mubr.msk.bf16.gmra.mxu1 %vm230_vm0, %v6995_v56  ;;  %v6531_v56 = vld [vmem:[#allocation3 + $0x184] ss:$8 sps:$4 sm:$0xff]   ;;  %9571 = vst [vmem:[#allocation9_spill] sm:$0xff] %v7286_v10  ;;  %v7295_v13 = vsub.s32 1, %v7286_v10 }
  0xce   :  { %767 = vmatprep.mubr.bf16.mxu0 %v6804_v1  ;;  %960 = vmatprep.mubr.bf16.mxu1 %v6804_v1 }
  0xcf   :  { %2240 = vmatpush2.bf16.msra.mxu0 %v6508_v15  ;;  %2433 = vmatpush2.bf16.msra.mxu1 %v6511_v16  ;;  %9572 = vst [vmem:[#allocation10_spill] sm:$0xff] %v7295_v13  ;;  %v7303_v16 = vsub.s32 3, %v7286_v10 }
  0xd0   :  { %2241 = vmatprep.subr.bf16.mxu0 %v6516_v18  ;;  %2434 = vmatprep.subr.bf16.mxu1 %v6519_v53 }
  0xd1   :  { %9574 = vst [vmem:[#allocation12_spill] sm:$0xff] %v7303_v16 }
  0xd3   :  { %2242 = vmatpush2.bf16.msra.mxu0 %v6514_v19  ;;  %2435 = vmatpush2.bf16.msra.mxu1 %v6517_v21  ;;  %v108_v19 = vld [vmem:[%s9544_s2] sm:$0xff] }
  0xd4   :  { %2243 = vmatprep.subr.bf16.mxu0 %v6522_v22  ;;  %2436 = vmatprep.subr.bf16.mxu1 %v6525_v23  ;;  %v7316_v22 = vrot.slane %v108_v19, %v7295_v13  ;;  %v7321_v23 = vrot.slane %v108_v19, %v7303_v16 }
  0xd5   :  { %6275 = vmatmul.mubr.msk.bf16.gmra.mxu0 %vm230_vm0, %v7009_v59  ;;  %6291 = vmatmul.mubr.msk.bf16.gmra.mxu1 %vm230_vm0, %v7009_v59 }
  0xd6   :  { %777 = vmatprep.mubr.bf16.mxu0 %v6804_v1  ;;  %970 = vmatprep.mubr.bf16.mxu1 %v6804_v1 }
  0xd7   :  { %2244 = vmatpush2.bf16.msra.mxu0 %v6520_v24  ;;  %2437 = vmatpush2.bf16.msra.mxu1 %v6523_v25 }
  0xd8   :  { %2245 = vmatprep.subr.bf16.mxu0 %v6528_v27  ;;  %2438 = vmatprep.subr.bf16.mxu1 %v6531_v56  ;;  %v7330_v56 = vsub.s32 0, %v7286_v10 }
  0xda   :  { %9575 = vst [vmem:[#allocation13_spill] sm:$0xff] %v7330_v56 }
  0xdb   :  { %2246 = vmatpush2.bf16.msra.mxu0 %v6526_v28  ;;  %2439 = vmatpush2.bf16.msra.mxu1 %v6529_v29 }
  0xdc   :  { %2601 = vmatprep.subr.bf16.mxu0 %v6534_v30  ;;  %2794 = vmatprep.subr.bf16.mxu1 %v6537_v31  ;;  %v7339_v30 = vsub.s32 2, %v7286_v10  ;;  %v7356_v10 = vrot.slane %v108_v19, %v7330_v56 }
  0xdd   :  { %v7177_v32 = vpop.f32.mrf.mxu0  ;;  %6276 = vmatmul.mubr.msk.bf16.gmra.mxu0 %vm230_vm0, %v7023_v62  ;;  %v7181_v59 = vpop.f32.mrf.mxu1  ;;  %6292 = vmatmul.mubr.msk.bf16.gmra.mxu1 %vm230_vm0, %v7023_v62 }
  0xde   :  { %787 = vmatprep.mubr.bf16.mxu0 %v6804_v1  ;;  %980 = vmatprep.mubr.bf16.mxu1 %v6804_v1  ;;  %9577 = vst [vmem:[#allocation15_spill] sm:$0xff] %v7339_v30 }
  0xdf   :  { %v7186_v26 = vpop.f32.mrf.mxu0  ;;  %v7189_v33 = vpop.f32.mrf.mxu1 }
  0xe0   :  { %v316_v31 = vadd.f32 %v7186_v26, %v7316_v22 }
  0xe1   :  { %v7191_v34 = vpop.f32.mrf.mxu0  ;;  %v7193_v35 = vpop.f32.mrf.mxu1 }
  0xe3   :  { %v7195_v36 = vpop.f32.mrf.mxu0  ;;  %v7197_v37 = vpop.f32.mrf.mxu1 }
  0xe4   :  { %v320_v25 = vadd.f32 %v7195_v36, %v7316_v22  ;;  %v513_v28 = vadd.f32 %v7197_v37, %v7321_v23  ;;  %v509_v37 = vadd.f32 %v7189_v33, %v7321_v23 }
  0xe5   :  { %v7199_v38 = vpop.f32.mrf.mxu0  ;;  %6277 = vmatmul.mubr.msk.bf16.gmra.mxu0 %vm230_vm0, %v7037_v2  ;;  %v7203_v62 = vpop.f32.mrf.mxu1  ;;  %6293 = vmatmul.mubr.msk.bf16.gmra.mxu1 %vm230_vm0, %v7037_v2 }
  0xe6   :  { %797 = vmatprep.mubr.bf16.mxu0 %v6804_v1  ;;  %990 = vmatprep.mubr.bf16.mxu1 %v6804_v1  ;;  %v1060_v16 = vmax.f32 %v320_v25, 0.0  ;;  %v1062_v26 = vmax.f32 %v513_v28, 0.0  ;;  %v1054_v33 = vmax.f32 %v509_v37, 0.0 }
  0xe7   :  { %v7208_v40 = vpop.f32.mrf.mxu0  ;;  %v7211_v39 = vpop.f32.mrf.mxu1 }
  0xe9   :  { %v7213_v41 = vpop.f32.mrf.mxu0  ;;  %v7215_v42 = vpop.f32.mrf.mxu1 }
  0xeb   :  { %v7217_v43 = vpop.f32.mrf.mxu0  ;;  %v7219_v45 = vpop.f32.mrf.mxu1 }
  0xec   :  { %v330_v28 = vadd.f32 %v7217_v43, %v7316_v22  ;;  %v326_v43 = vadd.f32 %v7208_v40, %v7316_v22 }
  0xed   :  { %v7221_v46 = vpop.f32.mrf.mxu0  ;;  %6278 = vmatmul.mubr.msk.bf16.gmra.mxu0 %vm230_vm0, %v7051_v5  ;;  %v7225_v2 = vpop.f32.mrf.mxu1  ;;  %6294 = vmatmul.mubr.msk.bf16.gmra.mxu1 %vm230_vm0, %v7051_v5 }
  0xee   :  { %807 = vmatprep.mubr.bf16.mxu0 %v6804_v1  ;;  %1000 = vmatprep.mubr.bf16.mxu1 %v6804_v1 }
  0xef   :  { %v7230_v48 = vpop.f32.mrf.mxu0  ;;  %v7233_v49 = vpop.f32.mrf.mxu1 }
  0xf1   :  { %v7235_v44 = vpop.f32.mrf.mxu0  ;;  %v7237_v51 = vpop.f32.mrf.mxu1 }
  0xf3   :  { %v7239_v52 = vpop.f32.mrf.mxu0  ;;  %v7241_v54 = vpop.f32.mrf.mxu1 }
  0xf5   :  { %v7243_v55 = vpop.f32.mrf.mxu0  ;;  %6279 = vmatmul.mubr.msk.bf16.gmra.mxu0 %vm230_vm0, %v7065_v8  ;;  %v7247_v5 = vpop.f32.mrf.mxu1  ;;  %6295 = vmatmul.mubr.msk.bf16.gmra.mxu1 %vm230_vm0, %v7065_v8 }
  0xf6   :  { %817 = vmatprep.mubr.bf16.mxu0 %v6804_v1  ;;  %1010 = vmatprep.mubr.bf16.mxu1 %v6804_v1 }
  0xf7   :  { %v7252_v57 = vpop.f32.mrf.mxu0  ;;  %v7255_v58 = vpop.f32.mrf.mxu1 }
  0xf9   :  { %v7257_v60 = vpop.f32.mrf.mxu0  ;;  %v7259_v47 = vpop.f32.mrf.mxu1 }
  0xfb   :  { %v7261_v61 = vpop.f32.mrf.mxu0  ;;  %v7263_v63 = vpop.f32.mrf.mxu1 }
  0xfd   :  { %v7265_v0 = vpop.f32.mrf.mxu0  ;;  %6280 = vmatmul.mubr.msk.bf16.gmra.mxu0 %vm230_vm0, %v7079_v11  ;;  %v7269_v8 = vpop.f32.mrf.mxu1  ;;  %6296 = vmatmul.mubr.msk.bf16.gmra.mxu1 %vm230_vm0, %v7079_v11 }
  0xfe   :  { %827 = vmatprep.mubr.bf16.mxu0 %v6804_v1  ;;  %1020 = vmatprep.mubr.bf16.mxu1 %v6804_v1 }
  0xff   :  { %v7274_v3 = vpop.f32.mrf.mxu0  ;;  %v7277_v6 = vpop.f32.mrf.mxu1 }
 0x101   :  { %v7279_v7 = vpop.f32.mrf.mxu0  ;;  %v7281_v50 = vpop.f32.mrf.mxu1 }
 0x103   :  { %v7283_v9 = vpop.f32.mrf.mxu0  ;;  %v7288_v12 = vpop.f32.mrf.mxu1 }
 0x105   :  { %v7290_v11 = vpop.f32.mrf.mxu0  ;;  %6281 = vmatmul.mubr.msk.bf16.gmra.mxu0 %vm230_vm0, %v7093_v14  ;;  %v7297_v15 = vpop.f32.mrf.mxu1  ;;  %6297 = vmatmul.mubr.msk.bf16.gmra.mxu1 %vm230_vm0, %v7093_v14 }
 0x106   :  { %9573 = vst [vmem:[#allocation11_spill] sm:$0xff] %v7297_v15  ;;  %837 = vmatprep.mubr.bf16.mxu0 %v6804_v1  ;;  %1030 = vmatprep.mubr.bf16.mxu1 %v6804_v1 }
 0x107   :  { %v7305_v18 = vpop.f32.mrf.mxu0  ;;  %v7308_v53 = vpop.f32.mrf.mxu1 }
 0x109   :  { %v7313_v21 = vpop.f32.mrf.mxu0  ;;  %v7318_v14 = vpop.f32.mrf.mxu1 }
 0x10b   :  { %v7323_v24 = vpop.f32.mrf.mxu0  ;;  %v7327_v27 = vpop.f32.mrf.mxu1 }
 0x10d   :  { %v7334_v29 = vpop.f32.mrf.mxu0  ;;  %6282 = vmatmul.mubr.msk.bf16.gmra.mxu0 %vm230_vm0, %v7107_v17  ;;  %v7343_v36 = vpop.f32.mrf.mxu1  ;;  %6298 = vmatmul.mubr.msk.bf16.gmra.mxu1 %vm230_vm0, %v7107_v17  ;;  %v7361_v17 = vrot.slane %v108_v19, %v7339_v30  ;;  %v314_v19 = vadd.f32 %v7177_v32, %v7356_v10 }
 0x10e   :  { %9576 = vst [vmem:[#allocation14_spill] sm:$0xff] %v7334_v29  ;;  %9578 = vst [vmem:[#allocation16_spill] sm:$0xff] %v7343_v36  ;;  %847 = vmatprep.mubr.bf16.mxu0 %v6804_v1  ;;  %1040 = vmatprep.mubr.bf16.mxu1 %v6804_v1  ;;  %v1052_v29 = vmax.f32 %v316_v31, 0.0  ;;  %v523_v31 = vadd.f32 %v7219_v45, %v7321_v23  ;;  %v519_v45 = vadd.f32 %v7211_v39, %v7321_v23 }
 0x10f   :  { %v7350_v4 = vpop.f32.mrf.mxu0  ;;  %v7353_v13 = vpop.f32.mrf.mxu1  ;;  %v511_v25 = vadd.f32 %v7193_v35, %v7361_v17  ;;  %v507_v35 = vadd.f32 %v7181_v59, %v7361_v17  ;;  %v1051_v59 = vmax.f32 %v314_v19, 0.0  ;;  %v328_v39 = vadd.f32 %v7213_v41, %v7356_v10 }
 0x110   :  { %9579 = vst [vmem:[#allocation17_spill] sm:$0xff] %v7350_v4  ;;  %9580 = vst [vmem:[#allocation18_spill] sm:$0xff] %v7353_v13  ;;  %v318_v4 = vadd.f32 %v7191_v34, %v7356_v10  ;;  %v1310_v34 = vpack.c.bf16 %v1062_v26, %v1054_v33  ;;  %v1076_v26 = vmax.f32 %v330_v28, 0.0  ;;  %v6532_v28 = vld [vmem:[#allocation3 + $0x270] ss:$8 sps:$4 sm:$0xff]   ;;  %v340_v19 = vadd.f32 %v7239_v52, %v7316_v22 }
 0x111   :  { %v7358_v36 = vpop.f32.mrf.mxu0  ;;  %v7363_v15 = vpop.f32.mrf.mxu1  ;;  %v517_v41 = vadd.f32 %v7203_v62, %v7361_v17  ;;  %v336_v52 = vadd.f32 %v7230_v48, %v7316_v22  ;;  %v529_v62 = vadd.f32 %v7233_v49, %v7321_v23  ;;  %v6541_v48 = vld [vmem:[#allocation3 + $0x360] ss:$8 sps:$4 sm:$0xff]  }
 0x112   :  { %9581 = vst [vmem:[#allocation19_spill] sm:$0xff] %v7358_v36  ;;  %9582 = vst [vmem:[#allocation20_spill] sm:$0xff] %v7363_v15  ;;  %v1308_v36 = vpack.c.bf16 %v1060_v16, %v1052_v29  ;;  %v1059_v32 = vmax.f32 %v318_v4, 0.0  ;;  %v1061_v29 = vmax.f32 %v511_v25, 0.0  ;;  %v1068_v15 = vmax.f32 %v326_v43, 0.0 }
 0x113   :  { %v7367_v1 = vpop.f32.mrf.mxu0  ;;  %v7373_v56 = vpop.f32.mrf.mxu1  ;;  %v1070_v4 = vmax.f32 %v519_v45, 0.0  ;;  %v6535_v43 = vld [vmem:[#allocation3 + $0x370] ss:$8 sps:$4 sm:$0xff]   ;;  %v1084_v49 = vmax.f32 %v336_v52, 0.0 }
 0x114   :  { %v6547_v52 = vld [vmem:[#allocation3 + $0x350] ss:$8 sps:$4 sm:$0xff]  }
 0x115   :  { %v7379_v37 = vpop.f32.mrf.mxu0  ;;  %6283 = vmatmul.mubr.msk.bf16.gmra.mxu0 %vm230_vm0, %v7121_v20  ;;  %v7387_v30 = vpop.f32.mrf.mxu1  ;;  %6299 = vmatmul.mubr.msk.bf16.gmra.mxu1 %vm230_vm0, %v7121_v20  ;;  %v1307_v20 = vpack.c.bf16 %v1059_v32, %v1051_v59  ;;  %v324_v32 = vadd.f32 %v7199_v38, %v7356_v10  ;;  %v6538_v59 = vld [vmem:[#allocation3 + $0x260] ss:$8 sps:$4 sm:$0xff]  }
 0x116   :  { %9583 = vst [vmem:[#allocation21_spill] sm:$0xff] %v7379_v37  ;;  %9584 = vst [vmem:[#allocation22_spill] sm:$0xff] %v7387_v30  ;;  %2247 = vmatprep.mubr.bf16.mxu0 %v1308_v36  ;;  %2440 = vmatprep.mubr.bf16.mxu1 %v1310_v34  ;;  %v1078_v37 = vmax.f32 %v523_v31, 0.0  ;;  %v1053_v30 = vmax.f32 %v507_v35, 0.0  ;;  %v521_v36 = vadd.f32 %v7215_v42, %v7361_v17 }
 0x117   :  { %v7393_v16 = vpop.f32.mrf.mxu0  ;;  %v7395_v33 = vpop.f32.mrf.mxu1  ;;  %v1316_v35 = vpack.c.bf16 %v1076_v26, %v1068_v15  ;;  %v533_v42 = vadd.f32 %v7241_v54, %v7321_v23  ;;  %v1075_v26 = vmax.f32 %v328_v39, 0.0 }
 0x118   :  { %v1309_v34 = vpack.c.bf16 %v1061_v29, %v1053_v30  ;;  %v1318_v30 = vpack.c.bf16 %v1078_v37, %v1070_v4  ;;  %v6543_v29 = vld [vmem:[#allocation3 + $0x364] ss:$8 sps:$4 sm:$0xff]   ;;  %v1077_v38 = vmax.f32 %v521_v36, 0.0  ;;  %v6546_v4 = vld [vmem:[#allocation3 + $0x254] ss:$8 sps:$4 sm:$0xff]  }
 0x119   :  { %v7397_v40 = vpop.f32.mrf.mxu0  ;;  %v7399_v13 = vpop.f32.mrf.mxu1  ;;  %v6549_v36 = vld [vmem:[#allocation3 + $0x354] ss:$8 sps:$4 sm:$0xff]  }
 0x11a   :  { %9585 = vst [vmem:[#allocation23_spill] sm:$0xff] %v7399_v13  ;;  %v6540_v13 = vld [vmem:[#allocation3 + $0x264] ss:$8 sps:$4 sm:$0xff]  }
 0x11b   :  { %v7405_v25 = vpop.f32.mrf.mxu0  ;;  %v7409_v31 = vpop.f32.mrf.mxu1 }
 0x11d   :  { %v7417_v45 = vpop.f32.mrf.mxu0  ;;  %2248 = vmatmul.mubr.bf16.vlgmr.msra.gmra.mxu0 %v1307_v20  ;;  %v7421_v15 = vpop.f32.mrf.mxu1  ;;  %2441 = vmatmul.mubr.bf16.vlgmr.msra.gmra.mxu1 %v1309_v34  ;;  %v1092_v20 = vmax.f32 %v340_v19, 0.0  ;;  %v1069_v34 = vmax.f32 %v517_v41, 0.0  ;;  %v531_v41 = vadd.f32 %v7237_v51, %v7361_v17  ;;  %v527_v51 = vadd.f32 %v7225_v2, %v7361_v17 }
 0x11e   :  { %9586 = vst [vmem:[#allocation24_spill] sm:$0xff] %v7417_v45  ;;  %9587 = vst [vmem:[#allocation25_spill] sm:$0xff] %v7421_v15  ;;  %2257 = vmatprep.mubr.bf16.mxu0 %v1316_v35  ;;  %2450 = vmatprep.mubr.bf16.mxu1 %v1318_v30  ;;  %v1067_v15 = vmax.f32 %v324_v32, 0.0  ;;  %v1094_v35 = vmax.f32 %v533_v42, 0.0  ;;  %v6544_v32 = vld [vmem:[#allocation3 + $0x250] ss:$8 sps:$4 sm:$0xff]   ;;  %v350_v42 = vadd.f32 %v7261_v61, %v7316_v22 }
 0x11f   :  { %2602 = vmatpush1.bf16.msra.mxu0 %v6532_v28  ;;  %v7425_v54 = vpop.f32.mrf.mxu0  ;;  %v7427_v37 = vpop.f32.mrf.mxu1  ;;  %2795 = vmatpush1.bf16.msra.mxu1 %v6535_v43  ;;  %v338_v28 = vadd.f32 %v7235_v44, %v7356_v10  ;;  %v1317_v45 = vpack.c.bf16 %v1077_v38, %v1069_v34  ;;  %v1086_v43 = vmax.f32 %v529_v62, 0.0  ;;  %v1324_v44 = vpack.c.bf16 %v1092_v20, %v1084_v49  ;;  %v6555_v62 = vld [vmem:[#allocation3 + $0x344] ss:$8 sps:$4 sm:$0xff]   ;;  %v6553_v34 = vld [vmem:[#allocation3 + $0x340] ss:$8 sps:$4 sm:$0xff]  }
 0x120   :  { %9588 = vst [vmem:[#allocation26_spill] sm:$0xff] %v7427_v37  ;;  %2603 = vmatprep.subr.bf16.mxu0 %v6540_v13  ;;  %2796 = vmatprep.subr.bf16.mxu1 %v6543_v29  ;;  %v1315_v19 = vpack.c.bf16 %v1075_v26, %v1067_v15  ;;  %v334_v13 = vadd.f32 %v7221_v46, %v7356_v10  ;;  %v6552_v15 = vld [vmem:[#allocation3 + $0x244] ss:$8 sps:$4 sm:$0xff]   ;;  %v1108_v2 = vmax.f32 %v350_v42, 0.0 }
 0x121   :  { %v7429_v39 = vpop.f32.mrf.mxu0  ;;  %v7433_v30 = vpop.f32.mrf.mxu1  ;;  %v543_v46 = vadd.f32 %v7263_v63, %v7321_v23  ;;  %v1326_v38 = vpack.c.bf16 %v1094_v35, %v1086_v43  ;;  %v1091_v61 = vmax.f32 %v338_v28, 0.0  ;;  %v539_v63 = vadd.f32 %v7255_v58, %v7321_v23 }
 0x122   :  { %v1083_v35 = vmax.f32 %v334_v13, 0.0  ;;  %v1085_v58 = vmax.f32 %v527_v51, 0.0  ;;  %v344_v13 = vadd.f32 %v7243_v55, %v7356_v10  ;;  %v541_v42 = vadd.f32 %v7259_v47, %v7361_v17  ;;  %v6559_v55 = vld [vmem:[#allocation3 + $0x330] ss:$8 sps:$4 sm:$0xff]  }
 0x123   :  { %v7437_v37 = vpop.f32.mrf.mxu0  ;;  %2604 = vmatpush1.bf16.msra.mxu0 %v6538_v59  ;;  %v7443_v29 = vpop.f32.mrf.mxu1  ;;  %2797 = vmatpush1.bf16.msra.mxu1 %v6541_v48  ;;  %v346_v59 = vadd.f32 %v7252_v57, %v7316_v22  ;;  %v6558_v57 = vld [vmem:[#allocation3 + $0x234] ss:$8 sps:$4 sm:$0xff]   ;;  %v1110_v28 = vmax.f32 %v543_v46, 0.0  ;;  %v553_v47 = vadd.f32 %v7288_v12, %v7321_v23 }
 0x124   :  { %2605 = vmatprep.subr.bf16.mxu0 %v6546_v4  ;;  %2798 = vmatprep.subr.bf16.mxu1 %v6549_v36  ;;  %v6550_v4 = vld [vmem:[#allocation3 + $0x240] ss:$8 sps:$4 sm:$0xff]   ;;  %v1093_v36 = vmax.f32 %v531_v41, 0.0  ;;  %v1323_v43 = vpack.c.bf16 %v1091_v61, %v1083_v35  ;;  %v348_v41 = vadd.f32 %v7257_v60, %v7356_v10  ;;  %v537_v60 = vadd.f32 %v7247_v5, %v7361_v17  ;;  %v6567_v35 = vld [vmem:[#allocation3 + $0x324] ss:$8 sps:$4 sm:$0xff]  }
 0x125   :  { %v7447_v26 = vpop.f32.mrf.mxu0  ;;  %2258 = vmatmul.mubr.bf16.gmra.mxu0 %v1315_v19  ;;  %v7453_v20 = vpop.f32.mrf.mxu1  ;;  %2451 = vmatmul.mubr.bf16.gmra.mxu1 %v1317_v45  ;;  %v6561_v19 = vld [vmem:[#allocation3 + $0x334] ss:$8 sps:$4 sm:$0xff]   ;;  %v549_v5 = vadd.f32 %v7277_v6, %v7321_v23 }
 0x126   :  { %2267 = vmatprep.mubr.bf16.mxu0 %v1324_v44  ;;  %2460 = vmatprep.mubr.bf16.mxu1 %v1326_v38  ;;  %v1100_v44 = vmax.f32 %v346_v59, 0.0  ;;  %v1325_v46 = vpack.c.bf16 %v1093_v36, %v1085_v58  ;;  %v6564_v59 = vld [vmem:[#allocation3 + $0x224] ss:$8 sps:$4 sm:$0xff]   ;;  %v6570_v58 = vld [vmem:[#allocation3 + $0x214] ss:$8 sps:$4 sm:$0xff]  }
 0x127   :  { %v7457_v48 = vpop.f32.mrf.mxu0  ;;  %2606 = vmatpush1.bf16.msra.mxu0 %v6544_v32  ;;  %v7459_v49 = vpop.f32.mrf.mxu1  ;;  %2799 = vmatpush1.bf16.msra.mxu1 %v6547_v52  ;;  %v1102_v32 = vmax.f32 %v539_v63, 0.0 }
 0x128   :  { %2607 = vmatprep.subr.bf16.mxu0 %v6552_v15  ;;  %2800 = vmatprep.subr.bf16.mxu1 %v6555_v62  ;;  %v6556_v15 = vld [vmem:[#allocation3 + $0x230] ss:$8 sps:$4 sm:$0xff]   ;;  %v360_v62 = vadd.f32 %v7283_v9, %v7316_v22  ;;  %v1332_v61 = vpack.c.bf16 %v1108_v2, %v1100_v44  ;;  %v356_v9 = vadd.f32 %v7274_v3, %v7316_v22  ;;  %v1109_v2 = vmax.f32 %v541_v42, 0.0  ;;  %v6565_v3 = vld [vmem:[#allocation3 + $0x320] ss:$8 sps:$4 sm:$0xff]  }
 0x129   :  { %v7461_v45 = vpop.f32.mrf.mxu0  ;;  %v7463_v38 = vpop.f32.mrf.mxu1  ;;  %v1101_v44 = vmax.f32 %v537_v60, 0.0  ;;  %v6573_v42 = vld [vmem:[#allocation3 + $0x314] ss:$8 sps:$4 sm:$0xff]   ;;  %v551_v60 = vadd.f32 %v7281_v50, %v7361_v17  ;;  %v547_v50 = vadd.f32 %v7269_v8, %v7361_v17 }
 0x12a   :  { %v1116_v6 = vmax.f32 %v356_v9, 0.0  ;;  %v6571_v9 = vld [vmem:[#allocation3 + $0x310] ss:$8 sps:$4 sm:$0xff]  }
 0x12b   :  { %v7471_v52 = vpop.f32.mrf.mxu0  ;;  %2608 = vmatpush1.bf16.msra.mxu0 %v6550_v4  ;;  %v7475_v51 = vpop.f32.mrf.mxu1  ;;  %2801 = vmatpush1.bf16.msra.mxu1 %v6553_v34  ;;  %v1334_v4 = vpack.c.bf16 %v1110_v28, %v1102_v32  ;;  %v1107_v34 = vmax.f32 %v348_v41, 0.0  ;;  %v1124_v28 = vmax.f32 %v360_v62, 0.0  ;;  %v1126_v32 = vmax.f32 %v553_v47, 0.0 }
 0x12c   :  { %2609 = vmatprep.subr.bf16.mxu0 %v6558_v57  ;;  %2802 = vmatprep.subr.bf16.mxu1 %v6561_v19  ;;  %v6562_v57 = vld [vmem:[#allocation3 + $0x220] ss:$8 sps:$4 sm:$0xff]   ;;  %v370_v47 = vadd.f32 %v7323_v24, %v7316_v22 }
 0x12d   :  { %v7481_v63 = vpop.f32.mrf.mxu0  ;;  %2268 = vmatmul.mubr.bf16.gmra.mxu0 %v1323_v43  ;;  %v7485_v36 = vpop.f32.mrf.mxu1  ;;  %2461 = vmatmul.mubr.bf16.gmra.mxu1 %v1325_v46  ;;  %v1099_v43 = vmax.f32 %v344_v13, 0.0  ;;  %v358_v46 = vadd.f32 %v7279_v7, %v7356_v10  ;;  %v6568_v13 = vld [vmem:[#allocation3 + $0x210] ss:$8 sps:$4 sm:$0xff]   ;;  %v1340_v7 = vpack.c.bf16 %v1124_v28, %v1116_v6  ;;  %v366_v28 = vadd.f32 %v7305_v18, %v7316_v22  ;;  %v6582_v18 = vld [vmem:[#allocation3 + $0x2f4] ss:$8 sps:$4 sm:$0xff]  }
 0x12e   :  { %2277 = vmatprep.mubr.bf16.mxu0 %v1332_v61  ;;  %2470 = vmatprep.mubr.bf16.mxu1 %v1334_v4  ;;  %v1333_v61 = vpack.c.bf16 %v1109_v2, %v1101_v44  ;;  %v6577_v44 = vld [vmem:[#allocation3 + $0x300] ss:$8 sps:$4 sm:$0xff]   ;;  %v1140_v8 = vmax.f32 %v370_v47, 0.0  ;;  %v561_v47 = vadd.f32 %v7318_v14, %v7361_v17  ;;  %v573_v14 = vadd.f32 %v7373_v56, %v7321_v23 }
 0x12f   :  { %v7489_v12 = vpop.f32.mrf.mxu0  ;;  %2610 = vmatpush1.bf16.msra.mxu0 %v6556_v15  ;;  %v7491_v19 = vpop.f32.mrf.mxu1  ;;  %2803 = vmatpush1.bf16.msra.mxu1 %v6559_v55  ;;  %v1331_v62 = vpack.c.bf16 %v1107_v34, %v1099_v43  ;;  %v354_v55 = vadd.f32 %v7265_v0, %v7356_v10  ;;  %v6576_v34 = vld [vmem:[#allocation3 + $0x204] ss:$8 sps:$4 sm:$0xff]   ;;  %v563_v0 = vadd.f32 %v7327_v27, %v7321_v23  ;;  %v1123_v24 = vmax.f32 %v358_v46, 0.0  ;;  %v6574_v43 = vld [vmem:[#allocation3 + $0x200] ss:$8 sps:$4 sm:$0xff]  }
 0x130   :  { %2611 = vmatprep.subr.bf16.mxu0 %v6564_v59  ;;  %2804 = vmatprep.subr.bf16.mxu1 %v6567_v35  ;;  %v1118_v59 = vmax.f32 %v549_v5, 0.0  ;;  %v559_v27 = vadd.f32 %v7308_v53, %v7321_v23  ;;  %v1117_v53 = vmax.f32 %v547_v50, 0.0 }
 0x131   :  { %v7493_v41 = vpop.f32.mrf.mxu0  ;;  %v7497_v15 = vpop.f32.mrf.mxu1  ;;  %v1142_v46 = vmax.f32 %v563_v0, 0.0 }
 0x132   :  { %v1342_v5 = vpack.c.bf16 %v1126_v32, %v1118_v59  ;;  %v1115_v32 = vmax.f32 %v354_v55, 0.0  ;;  %v364_v55 = vadd.f32 %v7290_v11, %v7356_v10  ;;  %v6583_v11 = vld [vmem:[#allocation3 + $0x3f0] ss:$8 sps:$4 sm:$0xff]  }
 0x133   :  { %v7501_v4 = vpop.f32.mrf.mxu0  ;;  %2612 = vmatpush1.bf16.msra.mxu0 %v6562_v57  ;;  %v7507_v35 = vpop.f32.mrf.mxu1  ;;  %2805 = vmatpush1.bf16.msra.mxu1 %v6565_v3  ;;  %v6579_v57 = vld [vmem:[#allocation3 + $0x304] ss:$8 sps:$4 sm:$0xff]  }
 0x134   :  { %2613 = vmatprep.subr.bf16.mxu0 %v6570_v58  ;;  %2806 = vmatprep.subr.bf16.mxu1 %v6573_v42  ;;  %v1125_v42 = vmax.f32 %v551_v60, 0.0  ;;  %v1339_v59 = vpack.c.bf16 %v1123_v24, %v1115_v32  ;;  %v368_v60 = vadd.f32 %v7313_v21, %v7356_v10  ;;  %v9590_v21 = vld [vmem:[#allocation11_spill] sm:$0xff] }
 0x135   :  { %v7511_v2 = vpop.f32.mrf.mxu0  ;;  %2278 = vmatmul.mubr.bf16.gmra.mxu0 %v1331_v62  ;;  %v7517_v3 = vpop.f32.mrf.mxu1  ;;  %2471 = vmatmul.mubr.bf16.gmra.mxu1 %v1333_v61  ;;  %v6585_v61 = vld [vmem:[#allocation3 + $0x3f4] ss:$8 sps:$4 sm:$0xff]  }
 0x136   :  { %9589 = vst [vmem:[#allocation27_spill] sm:$0xff] %v7517_v3  ;;  %2287 = vmatprep.mubr.bf16.mxu0 %v1340_v7  ;;  %2480 = vmatprep.mubr.bf16.mxu1 %v1342_v5  ;;  %v1132_v7 = vmax.f32 %v366_v28, 0.0  ;;  %v1341_v0 = vpack.c.bf16 %v1125_v42, %v1117_v53  ;;  %v6588_v28 = vld [vmem:[#allocation3 + $0x2e4] ss:$8 sps:$4 sm:$0xff]  }
 0x137   :  { %v7521_v58 = vpop.f32.mrf.mxu0  ;;  %2614 = vmatpush1.bf16.msra.mxu0 %v6568_v13  ;;  %v7523_v6 = vpop.f32.mrf.mxu1  ;;  %2807 = vmatpush1.bf16.msra.mxu1 %v6571_v9  ;;  %v1134_v13 = vmax.f32 %v559_v27, 0.0  ;;  %v557_v27 = vadd.f32 %v9590_v21, %v7361_v17  ;;  %v6591_v42 = vld [vmem:[#allocation3 + $0x3e4] ss:$8 sps:$4 sm:$0xff]  }
 0x138   :  { %2615 = vmatprep.subr.bf16.mxu0 %v6576_v34  ;;  %2808 = vmatprep.subr.bf16.mxu1 %v6579_v57  ;;  %v6580_v34 = vld [vmem:[#allocation3 + $0x2f0] ss:$8 sps:$4 sm:$0xff]   ;;  %v380_v57 = vadd.f32 %v7367_v1, %v7316_v22  ;;  %v1348_v24 = vpack.c.bf16 %v1140_v8, %v1132_v7  ;;  %v9592_v1 = vld [vmem:[#allocation17_spill] sm:$0xff] }
 0x139   :  { %v7525_v62 = vpop.f32.mrf.mxu0  ;;  %v7527_v5 = vpop.f32.mrf.mxu1  ;;  %v376_v53 = vadd.f32 %v9592_v1, %v7316_v22  ;;  %v9594_v7 = vld [vmem:[#allocation18_spill] sm:$0xff]  ;;  %v6594_v1 = vld [vmem:[#allocation3 + $0x2d4] ss:$8 sps:$4 sm:$0xff]  }
 0x13a   :  { %v569_v21 = vadd.f32 %v9594_v7, %v7321_v23 }
 0x13b   :  { %v7535_v9 = vpop.f32.mrf.mxu0  ;;  %2616 = vmatpush1.bf16.msra.mxu0 %v6574_v43  ;;  %v7539_v50 = vpop.f32.mrf.mxu1  ;;  %2809 = vmatpush1.bf16.msra.mxu1 %v6577_v44  ;;  %v1350_v43 = vpack.c.bf16 %v1142_v46, %v1134_v13  ;;  %v1139_v44 = vmax.f32 %v368_v60, 0.0  ;;  %v1156_v46 = vmax.f32 %v380_v57, 0.0  ;;  %v6589_v13 = vld [vmem:[#allocation3 + $0x3e0] ss:$8 sps:$4 sm:$0xff]   ;;  %v1148_v7 = vmax.f32 %v376_v53, 0.0 }
 0x13c   :  { %2617 = vmatprep.subr.bf16.mxu0 %v6582_v18  ;;  %2810 = vmatprep.subr.bf16.mxu1 %v6585_v61  ;;  %v1141_v18 = vmax.f32 %v561_v47, 0.0  ;;  %v6597_v47 = vld [vmem:[#allocation3 + $0x3d4] ss:$8 sps:$4 sm:$0xff]  }
 0x13d   :  { %v7545_v32 = vpop.f32.mrf.mxu0  ;;  %2288 = vmatmul.mubr.bf16.gmra.mxu0 %v1339_v59  ;;  %v7549_v8 = vpop.f32.mrf.mxu1  ;;  %2481 = vmatmul.mubr.bf16.gmra.mxu1 %v1341_v0  ;;  %v6586_v59 = vld [vmem:[#allocation3 + $0x2e0] ss:$8 sps:$4 sm:$0xff]   ;;  %v1133_v0 = vmax.f32 %v557_v27, 0.0 }
 0x13e   :  { %9591 = vst [vmem:[#allocation11_spill] sm:$0xff] %v7545_v32  ;;  %9593 = vst [vmem:[#allocation17_spill] sm:$0xff] %v7549_v8  ;;  %2297 = vmatprep.mubr.bf16.mxu0 %v1348_v24  ;;  %2490 = vmatprep.mubr.bf16.mxu1 %v1350_v43  ;;  %v1131_v8 = vmax.f32 %v364_v55, 0.0  ;;  %v1158_v24 = vmax.f32 %v573_v14, 0.0  ;;  %v9597_v43 = vld [vmem:[#allocation19_spill] sm:$0xff]  ;;  %v9599_v27 = vld [vmem:[#allocation20_spill] sm:$0xff] }
 0x13f   :  { %v7553_v56 = vpop.f32.mrf.mxu0  ;;  %2618 = vmatpush2.bf16.msra.mxu0 %v6580_v34  ;;  %v7555_v61 = vpop.f32.mrf.mxu1  ;;  %2811 = vmatpush2.bf16.msra.mxu1 %v6583_v11  ;;  %v378_v32 = vadd.f32 %v9597_v43, %v7356_v10  ;;  %v9598_v11 = vld [vmem:[#allocation14_spill] sm:$0xff]  ;;  %v571_v14 = vadd.f32 %v9599_v27, %v7361_v17  ;;  %v1356_v43 = vpack.c.bf16 %v1156_v46, %v1148_v7 }
 0x140   :  { %9595 = vst [vmem:[#allocation18_spill] sm:$0xff] %v7553_v56  ;;  %9596 = vst [vmem:[#allocation28_spill] sm:$0xff] %v7555_v61  ;;  %2619 = vmatprep.subr.bf16.mxu0 %v6588_v28  ;;  %2812 = vmatprep.subr.bf16.mxu1 %v6591_v42  ;;  %v1347_v57 = vpack.c.bf16 %v1139_v44, %v1131_v8  ;;  %v1349_v56 = vpack.c.bf16 %v1141_v18, %v1133_v0  ;;  %v1150_v61 = vmax.f32 %v569_v21, 0.0  ;;  %v6592_v55 = vld [vmem:[#allocation3 + $0x2d0] ss:$8 sps:$4 sm:$0xff]  }
 0x141   :  { %v7557_v60 = vpop.f32.mrf.mxu0  ;;  %v7561_v34 = vpop.f32.mrf.mxu1  ;;  %v374_v28 = vadd.f32 %v9598_v11, %v7356_v10  ;;  %v390_v42 = vadd.f32 %v7405_v25, %v7316_v22  ;;  %v6595_v8 = vld [vmem:[#allocation3 + $0x3d0] ss:$8 sps:$4 sm:$0xff]   ;;  %v6600_v44 = vld [vmem:[#allocation3 + $0x2c4] ss:$8 sps:$4 sm:$0xff]   ;;  %v583_v18 = vadd.f32 %v7409_v31, %v7321_v23  ;;  %v1155_v25 = vmax.f32 %v378_v32, 0.0 }
 0x142   :  { %v6603_v0 = vld [vmem:[#allocation3 + $0x3c4] ss:$8 sps:$4 sm:$0xff]   ;;  %v9601_v11 = vld [vmem:[#allocation16_spill] sm:$0xff]  ;;  %v386_v46 = vadd.f32 %v7393_v16, %v7316_v22  ;;  %v579_v31 = vadd.f32 %v7395_v33, %v7321_v23  ;;  %v1157_v7 = vmax.f32 %v571_v14, 0.0 }
 0x143   :  { %v7565_v3 = vpop.f32.mrf.mxu0  ;;  %2620 = vmatpush2.bf16.msra.mxu0 %v6586_v59  ;;  %v7571_v53 = vpop.f32.mrf.mxu1  ;;  %2813 = vmatpush2.bf16.msra.mxu1 %v6589_v13  ;;  %v1358_v59 = vpack.c.bf16 %v1158_v24, %v1150_v61  ;;  %v567_v27 = vadd.f32 %v9601_v11, %v7361_v17  ;;  %v6598_v61 = vld [vmem:[#allocation3 + $0x2c0] ss:$8 sps:$4 sm:$0xff]   ;;  %v6606_v16 = vld [vmem:[#allocation3 + $0x2b4] ss:$8 sps:$4 sm:$0xff]   ;;  %v1174_v11 = vmax.f32 %v583_v18, 0.0 }
 0x144   :  { %2621 = vmatprep.subr.bf16.mxu0 %v6594_v1  ;;  %2814 = vmatprep.subr.bf16.mxu1 %v6597_v47  ;;  %v6601_v24 = vld [vmem:[#allocation3 + $0x3c0] ss:$8 sps:$4 sm:$0xff]   ;;  %v1147_v47 = vmax.f32 %v374_v28, 0.0  ;;  %v1166_v14 = vmax.f32 %v579_v31, 0.0  ;;  %v6607_v31 = vld [vmem:[#allocation3 + $0x3b0] ss:$8 sps:$4 sm:$0xff]  }
 0x145   :  { %v7575_v21 = vpop.f32.mrf.mxu0  ;;  %2298 = vmatmul.mubr.bf16.gmra.mxu0 %v1347_v57  ;;  %v7581_v13 = vpop.f32.mrf.mxu1  ;;  %2491 = vmatmul.mubr.bf16.gmra.mxu1 %v1349_v56  ;;  %v1172_v57 = vmax.f32 %v390_v42, 0.0  ;;  %v1149_v33 = vmax.f32 %v567_v27, 0.0  ;;  %v388_v42 = vadd.f32 %v7397_v40, %v7356_v10  ;;  %v400_v27 = vadd.f32 %v7437_v37, %v7316_v22  ;;  %v9607_v40 = vld [vmem:[#allocation22_spill] sm:$0xff] }
 0x146   :  { %9600 = vst [vmem:[#allocation19_spill] sm:$0xff] %v7575_v21  ;;  %9602 = vst [vmem:[#allocation14_spill] sm:$0xff] %v7581_v13  ;;  %2307 = vmatprep.mubr.bf16.mxu0 %v1356_v43  ;;  %2500 = vmatprep.mubr.bf16.mxu1 %v1358_v59  ;;  %v6609_v43 = vld [vmem:[#allocation3 + $0x3b4] ss:$8 sps:$4 sm:$0xff]   ;;  %v1355_v59 = vpack.c.bf16 %v1155_v25, %v1147_v47  ;;  %v1164_v13 = vmax.f32 %v386_v46, 0.0  ;;  %v396_v37 = vadd.f32 %v7425_v54, %v7316_v22 }
 0x147   :  { %v7585_v1 = vpop.f32.mrf.mxu0  ;;  %2622 = vmatpush2.bf16.msra.mxu0 %v6592_v55  ;;  %v7587_v32 = vpop.f32.mrf.mxu1  ;;  %2815 = vmatpush2.bf16.msra.mxu1 %v6595_v8  ;;  %v9605_v55 = vld [vmem:[#allocation21_spill] sm:$0xff]  ;;  %v9606_v8 = vld [vmem:[#allocation23_spill] sm:$0xff] }
 0x148   :  { %2623 = vmatprep.subr.bf16.mxu0 %v6600_v44  ;;  %2816 = vmatprep.subr.bf16.mxu1 %v6603_v0  ;;  %v384_v28 = vadd.f32 %v9605_v55, %v7356_v10  ;;  %v581_v44 = vadd.f32 %v9606_v8, %v7361_v17  ;;  %v6604_v0 = vld [vmem:[#allocation3 + $0x2b0] ss:$8 sps:$4 sm:$0xff]   ;;  %v1364_v46 = vpack.c.bf16 %v1172_v57, %v1164_v13  ;;  %v6612_v47 = vld [vmem:[#allocation3 + $0x2a4] ss:$8 sps:$4 sm:$0xff]   ;;  %v6613_v54 = vld [vmem:[#allocation3 + $0x3a0] ss:$8 sps:$4 sm:$0xff]  }
 0x149   :  { %v7589_v56 = vpop.f32.mrf.mxu0  ;;  %v7591_v21 = vpop.f32.mrf.mxu1  ;;  %v577_v55 = vadd.f32 %v9607_v40, %v7361_v17  ;;  %v593_v8 = vadd.f32 %v7443_v29, %v7321_v23 }
 0x14a   :  { %9603 = vst [vmem:[#allocation20_spill] sm:$0xff] %v7589_v56  ;;  %9604 = vst [vmem:[#allocation16_spill] sm:$0xff] %v7591_v21  ;;  %v1357_v56 = vpack.c.bf16 %v1157_v7, %v1149_v33  ;;  %v6615_v7 = vld [vmem:[#allocation3 + $0x3a4] ss:$8 sps:$4 sm:$0xff]   ;;  %v1173_v57 = vmax.f32 %v581_v44, 0.0  ;;  %v1163_v40 = vmax.f32 %v384_v28, 0.0  ;;  %v591_v28 = vadd.f32 %v7433_v30, %v7361_v17 }
 0x14b   :  { %v7599_v18 = vpop.f32.mrf.mxu0  ;;  %2624 = vmatpush2.bf16.msra.mxu0 %v6598_v61  ;;  %v7603_v25 = vpop.f32.mrf.mxu1  ;;  %2817 = vmatpush2.bf16.msra.mxu1 %v6601_v24  ;;  %v1366_v61 = vpack.c.bf16 %v1174_v11, %v1166_v14  ;;  %v1171_v24 = vmax.f32 %v388_v42, 0.0  ;;  %v1188_v11 = vmax.f32 %v400_v27, 0.0  ;;  %v6618_v14 = vld [vmem:[#allocation3 + $0x294] ss:$8 sps:$4 sm:$0xff]   ;;  %v398_v27 = vadd.f32 %v7429_v39, %v7356_v10 }
 0x14c   :  { %2625 = vmatprep.subr.bf16.mxu0 %v6606_v16  ;;  %2818 = vmatprep.subr.bf16.mxu1 %v6609_v43  ;;  %v9610_v16 = vld [vmem:[#allocation26_spill] sm:$0xff]  ;;  %v6621_v44 = vld [vmem:[#allocation3 + $0x394] ss:$8 sps:$4 sm:$0xff]  }
 0x14d   :  { %v7609_v21 = vpop.f32.mrf.mxu0  ;;  %2308 = vmatmul.mubr.bf16.gmra.mxu0 %v1355_v59  ;;  %v7613_v13 = vpop.f32.mrf.mxu1  ;;  %2501 = vmatmul.mubr.bf16.gmra.mxu1 %v1357_v56  ;;  %v589_v33 = vadd.f32 %v9610_v16, %v7321_v23  ;;  %v6610_v59 = vld [vmem:[#allocation3 + $0x2a0] ss:$8 sps:$4 sm:$0xff]   ;;  %v1165_v56 = vmax.f32 %v577_v55, 0.0  ;;  %v1180_v16 = vmax.f32 %v396_v37, 0.0  ;;  %v410_v55 = vadd.f32 %v7471_v52, %v7316_v22  ;;  %v6619_v37 = vld [vmem:[#allocation3 + $0x390] ss:$8 sps:$4 sm:$0xff]  }
 0x14e   :  { %9608 = vst [vmem:[#allocation21_spill] sm:$0xff] %v7609_v21  ;;  %9609 = vst [vmem:[#allocation23_spill] sm:$0xff] %v7613_v13  ;;  %2317 = vmatprep.mubr.bf16.mxu0 %v1364_v46  ;;  %2510 = vmatprep.mubr.bf16.mxu1 %v1366_v61  ;;  %v1190_v46 = vmax.f32 %v593_v8, 0.0  ;;  %v1363_v13 = vpack.c.bf16 %v1171_v24, %v1163_v40  ;;  %v6624_v24 = vld [vmem:[#allocation3 + $0x284] ss:$8 sps:$4 sm:$0xff]  }
 0x14f   :  { %v7617_v29 = vpop.f32.mrf.mxu0  ;;  %2626 = vmatpush2.bf16.msra.mxu0 %v6604_v0  ;;  %v7619_v43 = vpop.f32.mrf.mxu1  ;;  %2819 = vmatpush2.bf16.msra.mxu1 %v6607_v31  ;;  %v1365_v0 = vpack.c.bf16 %v1173_v57, %v1165_v56  ;;  %v1182_v21 = vmax.f32 %v589_v33, 0.0  ;;  %v9611_v57 = vld [vmem:[#allocation24_spill] sm:$0xff]  ;;  %v603_v33 = vadd.f32 %v7475_v51, %v7321_v23  ;;  %v6627_v40 = vld [vmem:[#allocation3 + $0x384] ss:$8 sps:$4 sm:$0xff]   ;;  %v599_v51 = vadd.f32 %v7459_v49, %v7321_v23 }
 0x150   :  { %2627 = vmatprep.subr.bf16.mxu0 %v6612_v47  ;;  %2820 = vmatprep.subr.bf16.mxu1 %v6615_v7  ;;  %v6616_v47 = vld [vmem:[#allocation3 + $0x290] ss:$8 sps:$4 sm:$0xff]   ;;  %v1372_v7 = vpack.c.bf16 %v1188_v11, %v1180_v16  ;;  %v394_v39 = vadd.f32 %v9611_v57, %v7356_v10  ;;  %v9612_v52 = vld [vmem:[#allocation25_spill] sm:$0xff]  ;;  %v406_v11 = vadd.f32 %v7457_v48, %v7316_v22 }
 0x151   :  { %v7621_v42 = vpop.f32.mrf.mxu0  ;;  %v7623_v61 = vpop.f32.mrf.mxu1  ;;  %v1374_v30 = vpack.c.bf16 %v1190_v46, %v1182_v21  ;;  %v587_v56 = vadd.f32 %v9612_v52, %v7361_v17  ;;  %v6622_v21 = vld [vmem:[#allocation3 + $0x280] ss:$8 sps:$4 sm:$0xff]   ;;  %v1204_v46 = vmax.f32 %v410_v55, 0.0  ;;  %v1206_v52 = vmax.f32 %v603_v33, 0.0 }
 0x152   :  { %v6625_v48 = vld [vmem:[#allocation3 + $0x380] ss:$8 sps:$4 sm:$0xff]   ;;  %v1179_v57 = vmax.f32 %v394_v39, 0.0 }
 0x153   :  { %v7627_v31 = vpop.f32.mrf.mxu0  ;;  %2628 = vmatpush2.bf16.msra.mxu0 %v6610_v59  ;;  %v7633_v8 = vpop.f32.mrf.mxu1  ;;  %2821 = vmatpush2.bf16.msra.mxu1 %v6613_v54 }
 0x154   :  { %2629 = vmatprep.subr.bf16.mxu0 %v6618_v14  ;;  %2822 = vmatprep.subr.bf16.mxu1 %v6621_v44  ;;  %v1187_v14 = vmax.f32 %v398_v27, 0.0  ;;  %v1181_v27 = vmax.f32 %v587_v56, 0.0 }
 0x155   :  { %v7639_v59 = vpop.f32.mrf.mxu0  ;;  %2318 = vmatmul.mubr.bf16.gmra.mxu0 %v1363_v13  ;;  %v7645_v54 = vpop.f32.mrf.mxu1  ;;  %2511 = vmatmul.mubr.bf16.gmra.mxu1 %v1365_v0  ;;  %v1189_v13 = vmax.f32 %v591_v28, 0.0 }
 0x156   :  { %9613 = vst [vmem:[#allocation22_spill] sm:$0xff] %v7645_v54  ;;  %2327 = vmatprep.mubr.bf16.mxu0 %v1372_v7  ;;  %2520 = vmatprep.mubr.bf16.mxu1 %v1374_v30  ;;  %v1196_v7 = vmax.f32 %v406_v11, 0.0  ;;  %v1371_v30 = vpack.c.bf16 %v1187_v14, %v1179_v57  ;;  %v1198_v54 = vmax.f32 %v599_v51, 0.0 }
 0x157   :  { %v7649_v16 = vpop.f32.mrf.mxu0  ;;  %2630 = vmatpush2.bf16.msra.mxu0 %v6616_v47  ;;  %v7651_v44 = vpop.f32.mrf.mxu1  ;;  %2823 = vmatpush2.bf16.msra.mxu1 %v6619_v37  ;;  %v408_v47 = vadd.f32 %v7461_v45, %v7356_v10  ;;  %v1373_v55 = vpack.c.bf16 %v1189_v13, %v1181_v27  ;;  %v601_v37 = vadd.f32 %v7463_v38, %v7361_v17 }
 0x158   :  { %2631 = vmatprep.subr.bf16.mxu0 %v6624_v24  ;;  %2824 = vmatprep.subr.bf16.mxu1 %v6627_v40  ;;  %v420_v24 = vadd.f32 %v7501_v4, %v7316_v22  ;;  %v1380_v33 = vpack.c.bf16 %v1204_v46, %v1196_v7  ;;  %v404_v40 = vadd.f32 %v7447_v26, %v7356_v10 }
 0x159   :  { %v7653_v0 = vpop.f32.mrf.mxu0  ;;  %v7655_v49 = vpop.f32.mrf.mxu1  ;;  %v613_v45 = vadd.f32 %v7507_v35, %v7321_v23  ;;  %v1382_v11 = vpack.c.bf16 %v1206_v52, %v1198_v54  ;;  %v597_v38 = vadd.f32 %v7453_v20, %v7361_v17  ;;  %v416_v4 = vadd.f32 %v7489_v12, %v7316_v22 }
 0x15a   :  { %v1203_v51 = vmax.f32 %v408_v47, 0.0  ;;  %v609_v26 = vadd.f32 %v7491_v19, %v7321_v23  ;;  %v1220_v13 = vmax.f32 %v420_v24, 0.0  ;;  %v1195_v46 = vmax.f32 %v404_v40, 0.0 }
 0x15b   :  { %v7659_v28 = vpop.f32.mrf.mxu0  ;;  %2632 = vmatpush2.bf16.msra.mxu0 %v6622_v21  ;;  %v7665_v39 = vpop.f32.mrf.mxu1  ;;  %2825 = vmatpush2.bf16.msra.mxu1 %v6625_v48  ;;  %v1205_v21 = vmax.f32 %v601_v37, 0.0  ;;  %v1222_v20 = vmax.f32 %v613_v45, 0.0  ;;  %v1197_v12 = vmax.f32 %v597_v38, 0.0  ;;  %v1212_v57 = vmax.f32 %v416_v4, 0.0 }
 0x15c   :  { %v1379_v27 = vpack.c.bf16 %v1203_v51, %v1195_v46  ;;  %v1214_v7 = vmax.f32 %v609_v26, 0.0  ;;  %v418_v19 = vadd.f32 %v7493_v41, %v7356_v10  ;;  %v430_v37 = vadd.f32 %v7535_v9, %v7316_v22 }
 0x15d   :  { %v7671_v56 = vpop.f32.mrf.mxu0  ;;  %2328 = vmatmul.mubr.bf16.gmra.mxu0 %v1371_v30  ;;  %v7677_v14 = vpop.f32.mrf.mxu1  ;;  %2521 = vmatmul.mubr.bf16.gmra.mxu1 %v1373_v55  ;;  %v1381_v47 = vpack.c.bf16 %v1205_v21, %v1197_v12  ;;  %v611_v55 = vadd.f32 %v7497_v15, %v7361_v17  ;;  %v414_v40 = vadd.f32 %v7481_v63, %v7356_v10 }
 0x15e   :  { %2337 = vmatprep.mubr.bf16.mxu0 %v1380_v33  ;;  %2530 = vmatprep.mubr.bf16.mxu1 %v1382_v11  ;;  %v1388_v33 = vpack.c.bf16 %v1220_v13, %v1212_v57  ;;  %v623_v45 = vadd.f32 %v7539_v50, %v7321_v23  ;;  %v1390_v41 = vpack.c.bf16 %v1222_v20, %v1214_v7  ;;  %v1219_v4 = vmax.f32 %v418_v19, 0.0 }
 0x15f   :  { %v7681_v35 = vpop.f32.mrf.mxu0  ;;  %v7683_v54 = vpop.f32.mrf.mxu1  ;;  %v607_v38 = vadd.f32 %v7485_v36, %v7361_v17  ;;  %v426_v15 = vadd.f32 %v7521_v58, %v7316_v22  ;;  %v619_v63 = vadd.f32 %v7523_v6, %v7321_v23  ;;  %v1221_v51 = vmax.f32 %v611_v55, 0.0 }
 0x160   :  { %v1236_v26 = vmax.f32 %v430_v37, 0.0  ;;  %v1211_v13 = vmax.f32 %v414_v40, 0.0  ;;  %v1238_v36 = vmax.f32 %v623_v45, 0.0  ;;  %v428_v6 = vadd.f32 %v7525_v62, %v7356_v10 }
 0x161   :  { %v7685_v48 = vpop.f32.mrf.mxu0  ;;  %v7687_v52 = vpop.f32.mrf.mxu1  ;;  %v1213_v58 = vmax.f32 %v607_v38, 0.0  ;;  %v1228_v20 = vmax.f32 %v426_v15, 0.0  ;;  %v440_v55 = vadd.f32 %v7565_v3, %v7316_v22  ;;  %v424_v40 = vadd.f32 %v7511_v2, %v7356_v10  ;;  %v9614_v38 = vld [vmem:[#allocation27_spill] sm:$0xff]  ;;  %v9616_v2 = vld [vmem:[#allocation28_spill] sm:$0xff] }
 0x162   :  { %v1387_v57 = vpack.c.bf16 %v1219_v4, %v1211_v13  ;;  %v633_v45 = vadd.f32 %v7571_v53, %v7321_v23  ;;  %v617_v15 = vadd.f32 %v9614_v38, %v7361_v17 }
 0x163   :  { %v7691_v30 = vpop.f32.mrf.mxu0  ;;  %v7697_v24 = vpop.f32.mrf.mxu1  ;;  %v1389_v19 = vpack.c.bf16 %v1221_v51, %v1213_v58  ;;  %v629_v51 = vadd.f32 %v9616_v2, %v7321_v23  ;;  %v1252_v13 = vmax.f32 %v440_v55, 0.0  ;;  %v1227_v58 = vmax.f32 %v424_v40, 0.0 }
 0x164   :  { %v450_v55 = vadd.f32 %v7599_v18, %v7316_v22 }
 0x165   :  { %v7703_v11 = vpop.f32.mrf.mxu0  ;;  %2338 = vmatmul.mubr.bf16.gmra.mxu0 %v1379_v27  ;;  %v7709_v9 = vpop.f32.mrf.mxu1  ;;  %2531 = vmatmul.mubr.bf16.gmra.mxu1 %v1381_v47  ;;  %v1230_v27 = vmax.f32 %v619_v63, 0.0  ;;  %v621_v47 = vadd.f32 %v7527_v5, %v7361_v17  ;;  %v9615_v5 = vld [vmem:[#allocation18_spill] sm:$0xff]  ;;  %v1235_v63 = vmax.f32 %v428_v6, 0.0  ;;  %v1246_v6 = vmax.f32 %v629_v51, 0.0 }
 0x166   :  { %2347 = vmatprep.mubr.bf16.mxu0 %v1388_v33  ;;  %2540 = vmatprep.mubr.bf16.mxu1 %v1390_v41  ;;  %v1396_v33 = vpack.c.bf16 %v1236_v26, %v1228_v20  ;;  %v436_v4 = vadd.f32 %v9615_v5, %v7316_v22  ;;  %v1254_v20 = vmax.f32 %v633_v45, 0.0 }
 0x167   :  { %v7713_v50 = vpop.f32.mrf.mxu0  ;;  %v7715_v21 = vpop.f32.mrf.mxu1  ;;  %v1398_v62 = vpack.c.bf16 %v1238_v36, %v1230_v27  ;;  %v1237_v26 = vmax.f32 %v621_v47, 0.0  ;;  %v1229_v27 = vmax.f32 %v617_v15, 0.0  ;;  %v631_v47 = vadd.f32 %v7561_v34, %v7361_v17  ;;  %v9617_v15 = vld [vmem:[#allocation11_spill] sm:$0xff] }
 0x168   :  { %v1244_v38 = vmax.f32 %v436_v4, 0.0  ;;  %v434_v4 = vadd.f32 %v9617_v15, %v7356_v10  ;;  %v446_v34 = vadd.f32 %v7585_v1, %v7316_v22 }
 0x169   :  { %v7717_v46 = vpop.f32.mrf.mxu0  ;;  %v7719_v12 = vpop.f32.mrf.mxu1  ;;  %v1397_v2 = vpack.c.bf16 %v1237_v26, %v1229_v27  ;;  %v9619_v26 = vld [vmem:[#allocation17_spill] sm:$0xff]  ;;  %v639_v27 = vadd.f32 %v7587_v32, %v7321_v23 }
 0x16a   :  { %v1404_v45 = vpack.c.bf16 %v1252_v13, %v1244_v38  ;;  %v1253_v38 = vmax.f32 %v631_v47, 0.0  ;;  %v9624_v47 = vld [vmem:[#allocation16_spill] sm:$0xff] }
 0x16b   :  { %v7723_v7 = vpop.f32.mrf.mxu0  ;;  %v7729_v37 = vpop.f32.mrf.mxu1 }
 0x16d   :  { %v7735_v41 = vpop.f32.mrf.mxu0  ;;  %2348 = vmatmul.mubr.bf16.gmra.mxu0 %v1387_v57  ;;  %v7741_v3 = vpop.f32.mrf.mxu1  ;;  %2541 = vmatmul.mubr.bf16.gmra.mxu1 %v1389_v19  ;;  %v1395_v19 = vpack.c.bf16 %v1235_v63, %v1227_v58  ;;  %v643_v63 = vadd.f32 %v7603_v25, %v7321_v23  ;;  %v627_v58 = vadd.f32 %v9619_v26, %v7361_v17 }
 0x16e   :  { %2357 = vmatprep.mubr.bf16.mxu0 %v1396_v33  ;;  %2550 = vmatprep.mubr.bf16.mxu1 %v1398_v62  ;;  %v438_v33 = vadd.f32 %v7557_v60, %v7356_v10  ;;  %v1406_v60 = vpack.c.bf16 %v1254_v20, %v1246_v6  ;;  %v1243_v6 = vmax.f32 %v434_v4, 0.0  ;;  %v460_v4 = vadd.f32 %v7627_v31, %v7316_v22 }
 0x16f   :  { %v7745_v53 = vpop.f32.mrf.mxu0  ;;  %v7747_v36 = vpop.f32.mrf.mxu1  ;;  %v1270_v15 = vmax.f32 %v643_v63, 0.0  ;;  %v1245_v1 = vmax.f32 %v627_v58, 0.0 }
 0x170   :  { %v1251_v13 = vmax.f32 %v438_v33, 0.0  ;;  %v1262_v33 = vmax.f32 %v639_v27, 0.0 }
 0x171   :  { %v7749_v57 = vpop.f32.mrf.mxu0  ;;  %v7751_v5 = vpop.f32.mrf.mxu1 }
 0x173   :  { %v7755_v62 = vpop.f32.mrf.mxu0  ;;  %v7761_v40 = vpop.f32.mrf.mxu1 }
 0x175   :  { %v7767_v51 = vpop.f32.mrf.mxu0  ;;  %2358 = vmatmul.mubr.bf16.gmra.mxu0 %v1395_v19  ;;  %v7773_v18 = vpop.f32.mrf.mxu1  ;;  %2551 = vmatmul.mubr.bf16.gmra.mxu1 %v1397_v2  ;;  %v1268_v19 = vmax.f32 %v450_v55, 0.0  ;;  %v1403_v2 = vpack.c.bf16 %v1251_v13, %v1243_v6  ;;  %v641_v55 = vadd.f32 %v9624_v47, %v7361_v17  ;;  %v653_v13 = vadd.f32 %v7633_v8, %v7321_v23 }
 0x176   :  { %9618 = vst [vmem:[#allocation26_spill] sm:$0xff] %v7767_v51  ;;  %9620 = vst [vmem:[#allocation24_spill] sm:$0xff] %v7773_v18  ;;  %2367 = vmatprep.mubr.bf16.mxu0 %v1404_v45  ;;  %2560 = vmatprep.mubr.bf16.mxu1 %v1406_v60  ;;  %v1260_v51 = vmax.f32 %v446_v34, 0.0  ;;  %v9623_v45 = vld [vmem:[#allocation20_spill] sm:$0xff]  ;;  %v9625_v34 = vld [vmem:[#allocation19_spill] sm:$0xff]  ;;  %v1414_v6 = vpack.c.bf16 %v1270_v15, %v1262_v33 }
 0x177   :  { %v7777_v25 = vpop.f32.mrf.mxu0  ;;  %v7779_v20 = vpop.f32.mrf.mxu1  ;;  %v448_v32 = vadd.f32 %v9623_v45, %v7356_v10  ;;  %v456_v45 = vadd.f32 %v7617_v29, %v7316_v22  ;;  %v1269_v47 = vmax.f32 %v641_v55, 0.0  ;;  %v651_v55 = vadd.f32 %v7623_v61, %v7361_v17 }
 0x178   :  { %9621 = vst [vmem:[#allocation25_spill] sm:$0xff] %v7777_v25  ;;  %v1405_v25 = vpack.c.bf16 %v1253_v38, %v1245_v1  ;;  %v1412_v58 = vpack.c.bf16 %v1268_v19, %v1260_v51  ;;  %v9627_v38 = vld [vmem:[#allocation14_spill] sm:$0xff]  ;;  %v649_v19 = vadd.f32 %v7619_v43, %v7321_v23  ;;  %v458_v43 = vadd.f32 %v7621_v42, %v7356_v10 }
 0x179   :  { %v7781_v26 = vpop.f32.mrf.mxu0  ;;  %v7783_v18 = vpop.f32.mrf.mxu1  ;;  %v637_v1 = vadd.f32 %v9627_v38, %v7361_v17  ;;  %v1267_v51 = vmax.f32 %v448_v32, 0.0  ;;  %v466_v61 = vadd.f32 %v7649_v16, %v7316_v22 }
 0x17a   :  { %9622 = vst [vmem:[#allocation27_spill] sm:$0xff] %v7783_v18  ;;  %v444_v18 = vadd.f32 %v9625_v34, %v7356_v10  ;;  %v1286_v34 = vmax.f32 %v653_v13, 0.0  ;;  %v1278_v32 = vmax.f32 %v649_v19, 0.0 }
 0x17b   :  { %v7787_v60 = vpop.f32.mrf.mxu0  ;;  %v7793_v63 = vpop.f32.mrf.mxu1  ;;  %v1261_v29 = vmax.f32 %v637_v1, 0.0  ;;  %v9629_v1 = vld [vmem:[#allocation21_spill] sm:$0xff] }
 0x17c   :  { %v1259_v33 = vmax.f32 %v444_v18, 0.0  ;;  %v470_v18 = vadd.f32 %v7659_v28, %v7316_v22  ;;  %v1422_v42 = vpack.c.bf16 %v1286_v34, %v1278_v32  ;;  %v9632_v28 = vld [vmem:[#allocation9_spill] sm:$0xff]  ;;  %v1285_v32 = vmax.f32 %v651_v55, 0.0 }
 0x17d   :  { %v7799_v27 = vpop.f32.mrf.mxu0  ;;  %2368 = vmatmul.mubr.bf16.gmra.mxu0 %v1403_v2  ;;  %v7805_v31 = vpop.f32.mrf.mxu1  ;;  %2561 = vmatmul.mubr.bf16.gmra.mxu1 %v1405_v25  ;;  %v1284_v2 = vmax.f32 %v460_v4, 0.0 }
 0x17e   :  { %9626 = vst [vmem:[#allocation18_spill] sm:$0xff] %v7799_v27  ;;  %9628 = vst [vmem:[#allocation28_spill] sm:$0xff] %v7805_v31  ;;  %2377 = vmatprep.mubr.bf16.mxu0 %v1412_v58  ;;  %2570 = vmatprep.mubr.bf16.mxu1 %v1414_v6  ;;  %v1276_v27 = vmax.f32 %v456_v45, 0.0  ;;  %v1411_v25 = vpack.c.bf16 %v1267_v51, %v1259_v33  ;;  %v1413_v6 = vpack.c.bf16 %v1269_v47, %v1261_v29  ;;  %v9631_v47 = vld [vmem:[#allocation23_spill] sm:$0xff] }
 0x17f   :  { %v7809_v8 = vpop.f32.mrf.mxu0  ;;  %v7811_v15 = vpop.f32.mrf.mxu1  ;;  %v454_v45 = vadd.f32 %v9629_v1, %v7356_v10  ;;  %v663_v51 = vadd.f32 %v7665_v39, %v7321_v23  ;;  %v647_v33 = vadd.f32 %v9631_v47, %v7361_v17  ;;  %v7838_v29 = vsub.s32 5, %v9632_v28 }
 0x180   :  { %v1420_v13 = vpack.c.bf16 %v1284_v2, %v1276_v27  ;;  %v1283_v2 = vmax.f32 %v458_v43, 0.0  ;;  %v659_v39 = vadd.f32 %v7651_v44, %v7321_v23  ;;  %v1300_v1 = vmax.f32 %v470_v18, 0.0  ;;  %v6756_v23 = vld [vmem:[%s9544_s2] sm:$0xff] }
 0x181   :  { %v7813_v38 = vpop.f32.mrf.mxu0  ;;  %v7815_v31 = vpop.f32.mrf.mxu1  ;;  %9633 = vst [vmem:[#allocation17_spill] sm:$0xff] %v7838_v29  ;;  %v1275_v16 = vmax.f32 %v454_v45, 0.0  ;;  %v1302_v47 = vmax.f32 %v663_v51, 0.0  ;;  %v7857_v44 = vrot.slane %v6756_v23, %v7838_v29  ;;  %v468_v18 = vadd.f32 %v7653_v0, %v7356_v10 }
 0x182   :  { %v1294_v55 = vmax.f32 %v659_v39, 0.0  ;;  %v7877_v0 = vsub.s32 4, %v9632_v28 }
 0x183   :  { %v7819_v58 = vpop.f32.mrf.mxu0  ;;  %v7825_v4 = vpop.f32.mrf.mxu1  ;;  %v706_v29 = vadd.f32 %v7691_v30, %v7857_v44  ;;  %v7886_v30 = vsub.s32 6, %v9632_v28 }
 0x184   :  { %9637 = vst [vmem:[#allocation14_spill] sm:$0xff] %v7877_v0 }
 0x185   :  { %v7831_v19 = vpop.f32.mrf.mxu0  ;;  %2378 = vmatmul.mubr.bf16.gmra.mxu0 %v1411_v25  ;;  %v7840_v27 = vpop.f32.mrf.mxu1  ;;  %2571 = vmatmul.mubr.bf16.gmra.mxu1 %v1413_v6  ;;  %v7845_v25 = vsub.s32 7, %v9632_v28  ;;  %v1277_v6 = vmax.f32 %v647_v33, 0.0  ;;  %9639 = vst [vmem:[#allocation21_spill] sm:$0xff] %v7886_v30 }
 0x186   :  { %9630 = vst [vmem:[#allocation11_spill] sm:$0xff] %v7831_v19  ;;  %9634 = vst [vmem:[#allocation20_spill] sm:$0xff] %v7840_v27  ;;  %2387 = vmatprep.mubr.bf16.mxu0 %v1420_v13  ;;  %2580 = vmatprep.mubr.bf16.mxu1 %v1422_v42  ;;  %v1292_v13 = vmax.f32 %v466_v61, 0.0  ;;  %v1419_v42 = vpack.c.bf16 %v1283_v2, %v1275_v16  ;;  %v661_v61 = vadd.f32 %v7655_v49, %v7361_v17  ;;  %v9638_v49 = vld [vmem:[#allocation22_spill] sm:$0xff] }
 0x187   :  { %9635 = vst [vmem:[#allocation16_spill] sm:$0xff] %v7845_v25  ;;  %v7847_v34 = vpop.f32.mrf.mxu0  ;;  %v7849_v22 = vpop.f32.mrf.mxu1  ;;  %v7864_v45 = vrot.slane %v6756_v23, %v7845_v25  ;;  %v1421_v33 = vpack.c.bf16 %v1285_v32, %v1277_v6  ;;  %v464_v2 = vadd.f32 %v7639_v59, %v7356_v10  ;;  %v1430_v32 = vpack.c.bf16 %v1302_v47, %v1294_v55 }
 0x188   :  { %v657_v6 = vadd.f32 %v9638_v49, %v7361_v17  ;;  %v1299_v59 = vmax.f32 %v468_v18, 0.0  ;;  %v1301_v47 = vmax.f32 %v661_v61, 0.0  ;;  %v7899_v49 = vrot.slane %v6756_v23, %v7877_v0 }
 0x189   :  { %v7851_v19 = vpop.f32.mrf.mxu0  ;;  %v7859_v43 = vpop.f32.mrf.mxu1  ;;  %v899_v39 = vadd.f32 %v7697_v24, %v7864_v45  ;;  %v895_v24 = vadd.f32 %v7683_v54, %v7864_v45  ;;  %v1291_v55 = vmax.f32 %v464_v2, 0.0 }
 0x18a   :  { %9636 = vst [vmem:[#allocation19_spill] sm:$0xff] %v7859_v43  ;;  %v1428_v43 = vpack.c.bf16 %v1300_v1, %v1292_v13  ;;  %v702_v1 = vadd.f32 %v7681_v35, %v7857_v44 }
 0x18b   :  { %v7866_v51 = vpop.f32.mrf.mxu0  ;;  %v7872_v27 = vpop.f32.mrf.mxu1  ;;  %v1066_v35 = vmax.f32 %v899_v39, 0.0  ;;  %v1058_v28 = vmax.f32 %v895_v24, 0.0 }
 0x18c   :  { %v1056_v18 = vmax.f32 %v702_v1, 0.0  ;;  %v700_v1 = vadd.f32 %v7671_v56, %v7899_v49  ;;  %v905_v56 = vadd.f32 %v7715_v21, %v7864_v45  ;;  %v714_v21 = vadd.f32 %v7717_v46, %v7899_v49 }
 0x18d   :  { %v7881_v16 = vpop.f32.mrf.mxu0  ;;  %2388 = vmatmul.mubr.bf16.gmra.mxu0 %v1419_v42  ;;  %v7890_v10 = vpop.f32.mrf.mxu1  ;;  %2581 = vmatmul.mubr.bf16.gmra.mxu1 %v1421_v33  ;;  %v1064_v42 = vmax.f32 %v706_v29, 0.0  ;;  %v1293_v33 = vmax.f32 %v657_v6, 0.0  ;;  %v704_v29 = vadd.f32 %v7685_v48, %v7899_v49  ;;  %v716_v6 = vadd.f32 %v7723_v7, %v7857_v44 }
 0x18e   :  { %2397 = vmatprep.mubr.bf16.mxu0 %v1428_v43  ;;  %2590 = vmatprep.mubr.bf16.mxu1 %v1430_v32  ;;  %v7904_v43 = vrot.slane %v6756_v23, %v7886_v30  ;;  %v1427_v32 = vpack.c.bf16 %v1299_v59, %v1291_v55  ;;  %v909_v59 = vadd.f32 %v7729_v37, %v7864_v45 }
 0x18f   :  { %v7894_v13 = vpop.f32.mrf.mxu0  ;;  %v7896_v17 = vpop.f32.mrf.mxu1  ;;  %v1429_v2 = vpack.c.bf16 %v1301_v47, %v1293_v33  ;;  %v1312_v23 = vpack.c.bf16 %v1064_v42, %v1056_v18  ;;  %v1314_v48 = vpack.c.bf16 %v1066_v35, %v1058_v28  ;;  %v1063_v42 = vmax.f32 %v704_v29, 0.0 }
 0x190   :  { %v897_v39 = vadd.f32 %v7687_v52, %v7904_v43  ;;  %v893_v47 = vadd.f32 %v7677_v14, %v7904_v43  ;;  %v712_v52 = vadd.f32 %v7713_v50, %v7857_v44  ;;  %v1080_v33 = vmax.f32 %v716_v6, 0.0 }
 0x191   :  { %v7901_v25 = vpop.f32.mrf.mxu0  ;;  %v7906_v54 = vpop.f32.mrf.mxu1  ;;  %v1055_v35 = vmax.f32 %v700_v1, 0.0  ;;  %v1082_v14 = vmax.f32 %v909_v59, 0.0  ;;  %v1074_v29 = vmax.f32 %v905_v56, 0.0  ;;  %v726_v6 = vadd.f32 %v7755_v62, %v7857_v44 }
 0x192   :  { %v1065_v55 = vmax.f32 %v897_v39, 0.0  ;;  %v1057_v50 = vmax.f32 %v893_v47, 0.0  ;;  %v907_v39 = vadd.f32 %v7719_v12, %v7904_v43  ;;  %v710_v47 = vadd.f32 %v7703_v11, %v7899_v49 }
 0x193   :  { %v7910_v61 = vpop.f32.mrf.mxu0  ;;  %v7916_v0 = vpop.f32.mrf.mxu1  ;;  %v1322_v46 = vpack.c.bf16 %v1082_v14, %v1074_v29  ;;  %v903_v56 = vadd.f32 %v7709_v9, %v7904_v43  ;;  %v722_v12 = vadd.f32 %v7745_v53, %v7857_v44  ;;  %v915_v11 = vadd.f32 %v7747_v36, %v7864_v45 }
 0x194   :  { %v724_v36 = vadd.f32 %v7749_v57, %v7899_v49 }
 0x195   :  { %v7922_v24 = vpop.f32.mrf.mxu0  ;;  %2398 = vmatmul.mubr.bf16.gmra.mxu0 %v1427_v32  ;;  %v7928_v7 = vpop.f32.mrf.mxu1  ;;  %2591 = vmatmul.mubr.bf16.gmra.mxu1 %v1429_v2  ;;  %v1072_v32 = vmax.f32 %v712_v52, 0.0  ;;  %v1311_v2 = vpack.c.bf16 %v1063_v42, %v1055_v35  ;;  %v919_v52 = vadd.f32 %v7761_v40, %v7864_v45  ;;  %v1096_v35 = vmax.f32 %v726_v6, 0.0 }
 0x196   :  { %2633 = vmatprep.mubr.bf16.mxu0 %v1312_v23  ;;  %2826 = vmatprep.mubr.bf16.mxu1 %v1314_v48  ;;  %v1313_v48 = vpack.c.bf16 %v1065_v55, %v1057_v50  ;;  %v1079_v55 = vmax.f32 %v714_v21, 0.0  ;;  %v1071_v50 = vmax.f32 %v710_v47, 0.0  ;;  %v1073_v53 = vmax.f32 %v903_v56, 0.0 }
 0x197   :  { %v7932_v37 = vpop.f32.mrf.mxu0  ;;  %v7934_v28 = vpop.f32.mrf.mxu1  ;;  %v1320_v59 = vpack.c.bf16 %v1080_v33, %v1072_v32  ;;  %v1081_v33 = vmax.f32 %v907_v39, 0.0  ;;  %v1098_v9 = vmax.f32 %v919_v52, 0.0  ;;  %v1090_v21 = vmax.f32 %v915_v11, 0.0 }
 0x198   :  { %v917_v39 = vadd.f32 %v7751_v5, %v7904_v43  ;;  %v736_v6 = vadd.f32 %v7787_v60, %v7857_v44  ;;  %v720_v56 = vadd.f32 %v7735_v41, %v7899_v49  ;;  %v913_v11 = vadd.f32 %v7741_v3, %v7904_v43  ;;  %v9641_v5 = vld [vmem:[#allocation25_spill] sm:$0xff] }
 0x199   :  { %v7936_v18 = vpop.f32.mrf.mxu0  ;;  %v7938_v30 = vpop.f32.mrf.mxu1  ;;  %v1330_v57 = vpack.c.bf16 %v1098_v9, %v1090_v21  ;;  %v925_v41 = vadd.f32 %v7779_v20, %v7864_v45  ;;  %v734_v20 = vadd.f32 %v7781_v26, %v7899_v49 }
 0x19a   :  { %v1089_v21 = vmax.f32 %v913_v11, 0.0 }
 0x19b   :  { %v7942_v23 = vpop.f32.mrf.mxu0  ;;  %v7948_v1 = vpop.f32.mrf.mxu1 }
 0x19d   :  { %v7954_v42 = vpop.f32.mrf.mxu0  ;;  %2634 = vmatmul.mubr.bf16.vlgmr.msra.gmra.mxu0 %v1311_v2  ;;  %v7960_v62 = vpop.f32.mrf.mxu1  ;;  %2827 = vmatmul.mubr.bf16.vlgmr.msra.gmra.mxu1 %v1313_v48  ;;  %v1088_v2 = vmax.f32 %v722_v12, 0.0  ;;  %v1319_v48 = vpack.c.bf16 %v1079_v55, %v1071_v50  ;;  %v929_v12 = vadd.f32 %v7793_v63, %v7864_v45  ;;  %v1097_v50 = vmax.f32 %v917_v39, 0.0  ;;  %v9643_v39 = vld [vmem:[#allocation27_spill] sm:$0xff] }
 0x19e   :  { %2643 = vmatprep.mubr.bf16.mxu0 %v1320_v59  ;;  %2836 = vmatprep.mubr.bf16.mxu1 %v1322_v46  ;;  %v1321_v46 = vpack.c.bf16 %v1081_v33, %v1073_v53  ;;  %v732_v33 = vadd.f32 %v9641_v5, %v7857_v44  ;;  %v1112_v53 = vmax.f32 %v736_v6, 0.0  ;;  %v927_v6 = vadd.f32 %v9643_v39, %v7904_v43 }
 0x19f   :  { %v7964_v40 = vpop.f32.mrf.mxu0  ;;  %v7966_v14 = vpop.f32.mrf.mxu1  ;;  %v1328_v52 = vpack.c.bf16 %v1096_v35, %v1088_v2  ;;  %v1095_v35 = vmax.f32 %v724_v36, 0.0  ;;  %v1087_v2 = vmax.f32 %v720_v56, 0.0  ;;  %v1114_v3 = vmax.f32 %v929_v12, 0.0 }
 0x1a0   :  { %v1104_v5 = vmax.f32 %v732_v33, 0.0  ;;  %v1106_v36 = vmax.f32 %v925_v41, 0.0  ;;  %v746_v56 = vadd.f32 %v7819_v58, %v7857_v44  ;;  %v9644_v33 = vld [vmem:[#allocation26_spill] sm:$0xff]  ;;  %v1113_v39 = vmax.f32 %v927_v6, 0.0 }
 0x1a1   :  { %v7968_v32 = vpop.f32.mrf.mxu0  ;;  %v7970_v29 = vpop.f32.mrf.mxu1  ;;  %v937_v6 = vadd.f32 %v7815_v31, %v7904_v43  ;;  %v752_v31 = vadd.f32 %v7847_v34, %v7857_v44 }
 0x1a2   :  { %v1336_v11 = vpack.c.bf16 %v1112_v53, %v1104_v5  ;;  %v1338_v26 = vpack.c.bf16 %v1114_v3, %v1106_v36  ;;  %v1111_v53 = vmax.f32 %v734_v20, 0.0  ;;  %v935_v5 = vadd.f32 %v7811_v15, %v7864_v45 }
 0x1a3   :  { %v7974_v59 = vpop.f32.mrf.mxu0  ;;  %v7980_v47 = vpop.f32.mrf.mxu1  ;;  %v744_v15 = vadd.f32 %v7813_v38, %v7899_v49 }
 0x1a4   :  { %v1122_v20 = vmax.f32 %v935_v5, 0.0 }
 0x1a5   :  { %v7986_v55 = vpop.f32.mrf.mxu0  ;;  %2644 = vmatmul.mubr.bf16.gmra.mxu0 %v1319_v48  ;;  %v7992_v60 = vpop.f32.mrf.mxu1  ;;  %2837 = vmatmul.mubr.bf16.gmra.mxu1 %v1321_v46  ;;  %v1327_v46 = vpack.c.bf16 %v1095_v35, %v1087_v2  ;;  %v939_v35 = vadd.f32 %v7825_v4, %v7864_v45 }
 0x1a6   :  { %9640 = vst [vmem:[#allocation23_spill] sm:$0xff] %v7986_v55  ;;  %9642 = vst [vmem:[#allocation22_spill] sm:$0xff] %v7992_v60  ;;  %2653 = vmatprep.mubr.bf16.mxu0 %v1328_v52  ;;  %2846 = vmatprep.mubr.bf16.mxu1 %v1330_v57  ;;  %v1329_v57 = vpack.c.bf16 %v1097_v50, %v1089_v21  ;;  %v730_v55 = vadd.f32 %v9644_v33, %v7899_v49  ;;  %v9646_v50 = vld [vmem:[#allocation24_spill] sm:$0xff] }
 0x1a7   :  { %v7996_v63 = vpop.f32.mrf.mxu0  ;;  %v7998_v9 = vpop.f32.mrf.mxu1  ;;  %v923_v2 = vadd.f32 %v9646_v50, %v7904_v43  ;;  %v742_v21 = vadd.f32 %v7809_v8, %v7857_v44  ;;  %v1130_v33 = vmax.f32 %v939_v35, 0.0 }
 0x1a8   :  { %v1103_v36 = vmax.f32 %v730_v55, 0.0  ;;  %v756_v55 = vadd.f32 %v7866_v51, %v7857_v44 }
 0x1a9   :  { %v8000_v48 = vpop.f32.mrf.mxu0  ;;  %v8002_v60 = vpop.f32.mrf.mxu1  ;;  %v1105_v8 = vmax.f32 %v923_v2, 0.0  ;;  %v9648_v2 = vld [vmem:[#allocation18_spill] sm:$0xff]  ;;  %v1346_v38 = vpack.c.bf16 %v1130_v33, %v1122_v20 }
 0x1ab   :  { %v8006_v52 = vpop.f32.mrf.mxu0  ;;  %v8012_v12 = vpop.f32.mrf.mxu1 }
 0x1ad   :  { %v8018_v41 = vpop.f32.mrf.mxu0  ;;  %2654 = vmatmul.mubr.bf16.gmra.mxu0 %v1327_v46  ;;  %v8024_v58 = vpop.f32.mrf.mxu1  ;;  %2847 = vmatmul.mubr.bf16.gmra.mxu1 %v1329_v57  ;;  %v1128_v46 = vmax.f32 %v746_v56, 0.0  ;;  %v1335_v57 = vpack.c.bf16 %v1111_v53, %v1103_v36  ;;  %v949_v53 = vadd.f32 %v7872_v27, %v7864_v45 }
 0x1ae   :  { %9645 = vst [vmem:[#allocation25_spill] sm:$0xff] %v8018_v41  ;;  %9647 = vst [vmem:[#allocation27_spill] sm:$0xff] %v8024_v58  ;;  %2663 = vmatprep.mubr.bf16.mxu0 %v1336_v11  ;;  %2856 = vmatprep.mubr.bf16.mxu1 %v1338_v26  ;;  %v1120_v41 = vmax.f32 %v742_v21, 0.0  ;;  %v1337_v26 = vpack.c.bf16 %v1113_v39, %v1105_v8  ;;  %v740_v21 = vadd.f32 %v9648_v2, %v7899_v49  ;;  %v9650_v39 = vld [vmem:[#allocation28_spill] sm:$0xff] }
 0x1af   :  { %v8028_v4 = vpop.f32.mrf.mxu0  ;;  %v8030_v3 = vpop.f32.mrf.mxu1  ;;  %v933_v36 = vadd.f32 %v9650_v39, %v7904_v43  ;;  %v1129_v8 = vmax.f32 %v937_v6, 0.0  ;;  %v1146_v2 = vmax.f32 %v949_v53, 0.0  ;;  %v9653_v6 = vld [vmem:[#allocation19_spill] sm:$0xff] }
 0x1b0   :  { %v1344_v35 = vpack.c.bf16 %v1128_v46, %v1120_v41  ;;  %v1127_v41 = vmax.f32 %v744_v15, 0.0  ;;  %v945_v46 = vadd.f32 %v7849_v22, %v7864_v45  ;;  %v1119_v20 = vmax.f32 %v740_v21, 0.0 }
 0x1b1   :  { %v8032_v50 = vpop.f32.mrf.mxu0  ;;  %v8034_v58 = vpop.f32.mrf.mxu1  ;;  %v1121_v34 = vmax.f32 %v933_v36, 0.0  ;;  %v754_v22 = vadd.f32 %v7851_v19, %v7899_v49  ;;  %v766_v21 = vadd.f32 %v7910_v61, %v7857_v44 }
 0x1b2   :  { %v1138_v15 = vmax.f32 %v945_v46, 0.0 }
 0x1b3   :  { %v8038_v11 = vpop.f32.mrf.mxu0  ;;  %v8044_v56 = vpop.f32.mrf.mxu1 }
 0x1b4   :  { %v1354_v19 = vpack.c.bf16 %v1146_v2, %v1138_v15 }
 0x1b5   :  { %v8050_v5 = vpop.f32.mrf.mxu0  ;;  %2664 = vmatmul.mubr.bf16.gmra.mxu0 %v1335_v57  ;;  %v8056_v51 = vpop.f32.mrf.mxu1  ;;  %2857 = vmatmul.mubr.bf16.gmra.mxu1 %v1337_v26  ;;  %v1144_v57 = vmax.f32 %v756_v55, 0.0  ;;  %v1343_v26 = vpack.c.bf16 %v1127_v41, %v1119_v20  ;;  %v947_v55 = vadd.f32 %v9653_v6, %v7904_v43  ;;  %v959_v41 = vadd.f32 %v7916_v0, %v7864_v45 }
 0x1b6   :  { %9649 = vst [vmem:[#allocation26_spill] sm:$0xff] %v8050_v5  ;;  %9651 = vst [vmem:[#allocation24_spill] sm:$0xff] %v8056_v51  ;;  %2673 = vmatprep.mubr.bf16.mxu0 %v1344_v35  ;;  %2866 = vmatprep.mubr.bf16.mxu1 %v1346_v38  ;;  %v1136_v5 = vmax.f32 %v752_v31, 0.0  ;;  %v1345_v38 = vpack.c.bf16 %v1129_v8, %v1121_v34  ;;  %v9654_v31 = vld [vmem:[#allocation11_spill] sm:$0xff]  ;;  %v9656_v8 = vld [vmem:[#allocation20_spill] sm:$0xff]  ;;  %v762_v34 = vadd.f32 %v7894_v13, %v7857_v44 }
 0x1b7   :  { %v8060_v27 = vpop.f32.mrf.mxu0  ;;  %v8062_v33 = vpop.f32.mrf.mxu1  ;;  %v943_v20 = vadd.f32 %v9656_v8, %v7904_v43  ;;  %v1145_v6 = vmax.f32 %v947_v55, 0.0  ;;  %v957_v55 = vadd.f32 %v7906_v54, %v7904_v43  ;;  %v772_v54 = vadd.f32 %v7932_v37, %v7857_v44 }
 0x1b8   :  { %v1352_v36 = vpack.c.bf16 %v1144_v57, %v1136_v5  ;;  %v1143_v5 = vmax.f32 %v754_v22, 0.0  ;;  %v955_v57 = vadd.f32 %v7896_v17, %v7864_v45  ;;  %v764_v17 = vadd.f32 %v7901_v25, %v7899_v49 }
 0x1b9   :  { %v8064_v39 = vpop.f32.mrf.mxu0  ;;  %v8066_v51 = vpop.f32.mrf.mxu1  ;;  %v1137_v13 = vmax.f32 %v943_v20, 0.0  ;;  %v760_v20 = vadd.f32 %v7881_v16, %v7899_v49  ;;  %v965_v16 = vadd.f32 %v7934_v28, %v7864_v45  ;;  %v774_v28 = vadd.f32 %v7936_v18, %v7899_v49 }
 0x1ba   :  { %9652 = vst [vmem:[#allocation18_spill] sm:$0xff] %v8066_v51  ;;  %v750_v51 = vadd.f32 %v9654_v31, %v7899_v49  ;;  %v1162_v31 = vmax.f32 %v959_v41, 0.0  ;;  %v1154_v22 = vmax.f32 %v955_v57, 0.0  ;;  %v953_v57 = vadd.f32 %v7890_v10, %v7904_v43 }
 0x1bb   :  { %v8070_v35 = vpop.f32.mrf.mxu0  ;;  %v8076_v53 = vpop.f32.mrf.mxu1 }
 0x1bc   :  { %v1135_v15 = vmax.f32 %v750_v51, 0.0  ;;  %v776_v51 = vadd.f32 %v7942_v23, %v7857_v44  ;;  %v1362_v25 = vpack.c.bf16 %v1162_v31, %v1154_v22  ;;  %v1151_v31 = vmax.f32 %v760_v20, 0.0 }
 0x1bd   :  { %v8082_v46 = vpop.f32.mrf.mxu0  ;;  %2674 = vmatmul.mubr.bf16.gmra.mxu0 %v1343_v26  ;;  %v8088_v61 = vpop.f32.mrf.mxu1  ;;  %2867 = vmatmul.mubr.bf16.gmra.mxu1 %v1345_v38  ;;  %v1160_v26 = vmax.f32 %v766_v21, 0.0  ;;  %v1153_v37 = vmax.f32 %v953_v57, 0.0  ;;  %v770_v57 = vadd.f32 %v7922_v24, %v7899_v49  ;;  %v975_v24 = vadd.f32 %v7966_v14, %v7864_v45 }
 0x1be   :  { %9655 = vst [vmem:[#allocation28_spill] sm:$0xff] %v8082_v46  ;;  %9657 = vst [vmem:[#allocation19_spill] sm:$0xff] %v8088_v61  ;;  %2683 = vmatprep.mubr.bf16.mxu0 %v1352_v36  ;;  %2876 = vmatprep.mubr.bf16.mxu1 %v1354_v19  ;;  %v1152_v46 = vmax.f32 %v762_v34, 0.0  ;;  %v1351_v38 = vpack.c.bf16 %v1143_v5, %v1135_v15  ;;  %v1353_v19 = vpack.c.bf16 %v1145_v6, %v1137_v13 }
 0x1bf   :  { %v8092_v0 = vpop.f32.mrf.mxu0  ;;  %v8094_v2 = vpop.f32.mrf.mxu1  ;;  %v969_v34 = vadd.f32 %v7948_v1, %v7864_v45  ;;  %v1161_v6 = vmax.f32 %v957_v55, 0.0  ;;  %v967_v55 = vadd.f32 %v7938_v30, %v7904_v43  ;;  %v782_v30 = vadd.f32 %v7964_v40, %v7857_v44 }
 0x1c0   :  { %v1360_v41 = vpack.c.bf16 %v1160_v26, %v1152_v46  ;;  %v1159_v46 = vmax.f32 %v764_v17, 0.0  ;;  %v1176_v26 = vmax.f32 %v776_v51, 0.0  ;;  %v1170_v17 = vmax.f32 %v965_v16, 0.0 }
 0x1c1   :  { %v8096_v8 = vpop.f32.mrf.mxu0  ;;  %v8098_v61 = vpop.f32.mrf.mxu1  ;;  %v1178_v10 = vmax.f32 %v969_v34, 0.0  ;;  %v786_v51 = vadd.f32 %v7974_v59, %v7857_v44  ;;  %v963_v16 = vadd.f32 %v7928_v7, %v7904_v43  ;;  %v784_v14 = vadd.f32 %v7968_v32, %v7899_v49 }
 0x1c3   :  { %v8102_v36 = vpop.f32.mrf.mxu0  ;;  %v8108_v21 = vpop.f32.mrf.mxu1  ;;  %v1370_v18 = vpack.c.bf16 %v1178_v10, %v1170_v17  ;;  %v1169_v40 = vmax.f32 %v963_v16, 0.0  ;;  %v780_v16 = vadd.f32 %v7954_v42, %v7899_v49  ;;  %v985_v42 = vadd.f32 %v7998_v9, %v7864_v45 }
 0x1c4   :  { %v794_v9 = vadd.f32 %v8000_v48, %v7899_v49  ;;  %v806_v48 = vadd.f32 %v8038_v11, %v7857_v44 }
 0x1c5   :  { %v8114_v5 = vpop.f32.mrf.mxu0  ;;  %2684 = vmatmul.mubr.bf16.gmra.mxu0 %v1351_v38  ;;  %v8120_v23 = vpop.f32.mrf.mxu1  ;;  %2877 = vmatmul.mubr.bf16.gmra.mxu1 %v1353_v19  ;;  %v1168_v38 = vmax.f32 %v772_v54, 0.0  ;;  %v1359_v19 = vpack.c.bf16 %v1159_v46, %v1151_v31  ;;  %v979_v54 = vadd.f32 %v7980_v47, %v7864_v45  ;;  %v1192_v31 = vmax.f32 %v786_v51, 0.0 }
 0x1c6   :  { %2693 = vmatprep.mubr.bf16.mxu0 %v1360_v41  ;;  %2886 = vmatprep.mubr.bf16.mxu1 %v1362_v25  ;;  %v1361_v25 = vpack.c.bf16 %v1161_v6, %v1153_v37  ;;  %v1175_v6 = vmax.f32 %v774_v28, 0.0  ;;  %v1167_v37 = vmax.f32 %v770_v57, 0.0  ;;  %v1186_v28 = vmax.f32 %v975_v24, 0.0 }
 0x1c7   :  { %v8124_v1 = vpop.f32.mrf.mxu0  ;;  %v8126_v15 = vpop.f32.mrf.mxu1  ;;  %v1368_v34 = vpack.c.bf16 %v1176_v26, %v1168_v38  ;;  %v1177_v26 = vmax.f32 %v967_v55, 0.0  ;;  %v1194_v7 = vmax.f32 %v979_v54, 0.0  ;;  %v977_v55 = vadd.f32 %v7970_v29, %v7904_v43 }
 0x1c8   :  { %v796_v51 = vadd.f32 %v8006_v52, %v7857_v44  ;;  %v973_v24 = vadd.f32 %v7960_v62, %v7904_v43  ;;  %v792_v29 = vadd.f32 %v7996_v63, %v7857_v44  ;;  %v1183_v63 = vmax.f32 %v780_v16, 0.0  ;;  %v9663_v16 = vld [vmem:[#allocation10_spill] sm:$0xff] }
 0x1c9   :  { %v8128_v13 = vpop.f32.mrf.mxu0  ;;  %v8130_v22 = vpop.f32.mrf.mxu1  ;;  %v1378_v32 = vpack.c.bf16 %v1194_v7, %v1186_v28 }
 0x1ca   :  { %v1208_v62 = vmax.f32 %v796_v51, 0.0  ;;  %v1200_v28 = vmax.f32 %v792_v29, 0.0  ;;  %v9664_v29 = vld [vmem:[#allocation23_spill] sm:$0xff] }
 0x1cb   :  { %v8134_v41 = vpop.f32.mrf.mxu0  ;;  %v8140_v20 = vpop.f32.mrf.mxu1 }
 0x1cd   :  { %v8146_v46 = vpop.f32.mrf.mxu0  ;;  %2694 = vmatmul.mubr.bf16.gmra.mxu0 %v1359_v19  ;;  %v8152_v59 = vpop.f32.mrf.mxu1  ;;  %2887 = vmatmul.mubr.bf16.gmra.mxu1 %v1361_v25  ;;  %v1184_v19 = vmax.f32 %v782_v30, 0.0  ;;  %v1367_v25 = vpack.c.bf16 %v1175_v6, %v1167_v37  ;;  %v989_v30 = vadd.f32 %v8012_v12, %v7864_v45  ;;  %v1193_v37 = vmax.f32 %v977_v55, 0.0 }
 0x1ce   :  { %2703 = vmatprep.mubr.bf16.mxu0 %v1368_v34  ;;  %2896 = vmatprep.mubr.bf16.mxu1 %v1370_v18  ;;  %v1369_v18 = vpack.c.bf16 %v1177_v26, %v1169_v40  ;;  %v1191_v26 = vmax.f32 %v784_v14, 0.0  ;;  %v987_v55 = vadd.f32 %v8002_v60, %v7904_v43  ;;  %v999_v60 = vadd.f32 %v8044_v56, %v7864_v45 }
 0x1cf   :  { %v8156_v47 = vpop.f32.mrf.mxu0  ;;  %v8158_v10 = vpop.f32.mrf.mxu1  ;;  %v1376_v54 = vpack.c.bf16 %v1192_v31, %v1184_v19  ;;  %v1563_v31 = vld [vmem:[%s9546_s4] sm:$0x3]  ;;  %v1210_v40 = vmax.f32 %v989_v30, 0.0  ;;  %v1224_v56 = vmax.f32 %v806_v48, 0.0  ;;  %v9666_v48 = vld [vmem:[#allocation25_spill] sm:$0xff] }
 0x1d0   :  { %v8209_v30 = vrot.slane %v1563_v31, %v9663_v16  ;;  %v1207_v16 = vmax.f32 %v794_v9, 0.0  ;;  %v1209_v11 = vmax.f32 %v987_v55, 0.0 }
 0x1d1   :  { %v8160_v38 = vpop.f32.mrf.mxu0  ;;  %v8162_v17 = vpop.f32.mrf.mxu1 }
 0x1d3   :  { %v8166_v34 = vpop.f32.mrf.mxu0  ;;  %v8172_v57 = vpop.f32.mrf.mxu1 }
 0x1d5   :  { %v8178_v6 = vpop.f32.mrf.mxu0  ;;  %2704 = vmatmul.mubr.bf16.gmra.mxu0 %v1367_v25  ;;  %v8184_v52 = vpop.f32.mrf.mxu1  ;;  %2897 = vmatmul.mubr.bf16.gmra.mxu1 %v1369_v18  ;;  %v1185_v25 = vmax.f32 %v973_v24, 0.0  ;;  %v9662_v18 = vld [vmem:[#allocation13_spill] sm:$0xff] }
 0x1d6   :  { %9658 = vst [vmem:[#allocation11_spill] sm:$0xff] %v8178_v6  ;;  %9659 = vst [vmem:[#allocation20_spill] sm:$0xff] %v8184_v52  ;;  %2713 = vmatprep.mubr.bf16.mxu0 %v1376_v54  ;;  %2906 = vmatprep.mubr.bf16.mxu1 %v1378_v32  ;;  %v8202_v54 = vrot.slane %v1563_v31, %v9662_v18  ;;  %v1375_v32 = vpack.c.bf16 %v1191_v26, %v1183_v63  ;;  %v1202_v52 = vmax.f32 %v985_v42, 0.0  ;;  %v9665_v26 = vld [vmem:[#allocation22_spill] sm:$0xff] }
 0x1d7   :  { %v8188_v12 = vpop.f32.mrf.mxu0  ;;  %v8193_v7 = vpop.f32.mrf.mxu1  ;;  %v1377_v24 = vpack.c.bf16 %v1193_v37, %v1185_v25  ;;  %v790_v6 = vadd.f32 %v9664_v29, %v7899_v49  ;;  %v1384_v18 = vpack.c.bf16 %v1208_v62, %v1200_v28  ;;  %v983_v42 = vadd.f32 %v9665_v26, %v7904_v43 }
 0x1d8   :  { %v1386_v31 = vpack.c.bf16 %v1210_v40, %v1202_v52  ;;  %v802_v37 = vadd.f32 %v8028_v4, %v7857_v44  ;;  %v995_v62 = vadd.f32 %v8030_v3, %v7864_v45  ;;  %v804_v4 = vadd.f32 %v8032_v50, %v7899_v49 }
 0x1d9   :  { %v8195_v19 = vpop.f32.mrf.mxu0  ;;  %v8199_v14 = vpop.f32.mrf.mxu1  ;;  %v1199_v26 = vmax.f32 %v790_v6, 0.0  ;;  %v1201_v9 = vmax.f32 %v983_v42, 0.0  ;;  %v997_v42 = vadd.f32 %v8034_v58, %v7904_v43  ;;  %v816_v50 = vadd.f32 %v8070_v35, %v7857_v44 }
 0x1da   :  { %9660 = vst [vmem:[#allocation29_spill] sm:$0xff] %v8195_v19  ;;  %9661 = vst [vmem:[#allocation30_spill] sm:$0xff] %v8199_v14  ;;  %v1216_v55 = vmax.f32 %v802_v37, 0.0 }
 0x1db   :  { %v8206_v51 = vpop.f32.mrf.mxu0  ;;  %v8215_v14 = vpop.f32.mrf.mxu1  ;;  %v1385_v6 = vpack.c.bf16 %v1209_v11, %v1201_v9 }
 0x1dd   :  { %v2249_v63 = vpop.f32.mrf.mxu0  ;;  %2714 = vmatmul.mubr.bf16.gmra.mxu0 %v1375_v32  ;;  %v2442_v29 = vpop.f32.mrf.mxu1  ;;  %2907 = vmatmul.mubr.bf16.gmra.mxu1 %v1377_v24  ;;  %v1226_v32 = vmax.f32 %v999_v60, 0.0 }
 0x1de   :  { %v2250_v25 = vadd.f32 %v2249_v63, %v8202_v54  ;;  %2723 = vmatprep.mubr.bf16.mxu0 %v1384_v18  ;;  %2916 = vmatprep.mubr.bf16.mxu1 %v1386_v31  ;;  %v1383_v18 = vpack.c.bf16 %v1207_v16, %v1199_v26  ;;  %v1392_v26 = vpack.c.bf16 %v1224_v56, %v1216_v55  ;;  %v1225_v55 = vmax.f32 %v997_v42, 0.0 }
 0x1df   :  { %v2251_v28 = vpop.f32.mrf.mxu0  ;;  %v2444_v40 = vpop.f32.mrf.mxu1 }
 0x1e0   :  { %v8226_v19 = vadd.f32 %v2442_v29, %v2250_v25  ;;  %v2252_v52 = vadd.f32 %v2251_v28, %v8209_v30  ;;  %v800_v25 = vadd.f32 %v9666_v48, %v7899_v49  ;;  %v1218_v29 = vmax.f32 %v995_v62, 0.0 }
 0x1e1   :  { %v2253_v24 = vpop.f32.mrf.mxu0  ;;  %v2446_v31 = vpop.f32.mrf.mxu1  ;;  %v1009_v62 = vadd.f32 %v8076_v53, %v7864_v45  ;;  %v1240_v48 = vmax.f32 %v816_v50, 0.0  ;;  %v9668_v50 = vld [vmem:[#allocation26_spill] sm:$0xff] }
 0x1e2   :  { %v8231_v63 = vadd.f32 %v2444_v40, %v2252_v52  ;;  %v2254_v3 = vadd.f32 %v2253_v24, %v8202_v54  ;;  %v9667_v52 = vld [vmem:[#allocation27_spill] sm:$0xff]  ;;  %v1223_v40 = vmax.f32 %v804_v4, 0.0  ;;  %v1394_v58 = vpack.c.bf16 %v1226_v32, %v1218_v29 }
 0x1e3   :  { %v2255_v28 = vpop.f32.mrf.mxu0  ;;  %v2448_v37 = vpop.f32.mrf.mxu1  ;;  %v993_v11 = vadd.f32 %v9667_v52, %v7904_v43  ;;  %v812_v24 = vadd.f32 %v8060_v27, %v7857_v44  ;;  %v1215_v56 = vmax.f32 %v800_v25, 0.0  ;;  %v1005_v4 = vadd.f32 %v8062_v33, %v7864_v45 }
 0x1e4   :  { %v8240_v60 = vadd.f32 %v2446_v31, %v2254_v3  ;;  %v2256_v16 = vadd.f32 %v2255_v28, %v8209_v30 }
 0x1e5   :  { %v2259_v9 = vpop.f32.mrf.mxu0  ;;  %2724 = vmatmul.mubr.bf16.gmra.mxu0 %v1383_v18  ;;  %v2452_v31 = vpop.f32.mrf.mxu1  ;;  %2917 = vmatmul.mubr.bf16.gmra.mxu1 %v1385_v6  ;;  %v1217_v29 = vmax.f32 %v993_v11, 0.0  ;;  %v1391_v28 = vpack.c.bf16 %v1223_v40, %v1215_v56  ;;  %v1232_v52 = vmax.f32 %v812_v24, 0.0  ;;  %v814_v6 = vadd.f32 %v8064_v39, %v7899_v49 }
 0x1e6   :  { %v8249_v35 = vadd.f32 %v2448_v37, %v2256_v16  ;;  %v2260_v3 = vadd.f32 %v2259_v9, %v8202_v54  ;;  %2733 = vmatprep.mubr.bf16.mxu0 %v1392_v26  ;;  %2926 = vmatprep.mubr.bf16.mxu1 %v1394_v58  ;;  %v1242_v16 = vmax.f32 %v1009_v62, 0.0  ;;  %v810_v9 = vadd.f32 %v9668_v50, %v7899_v49 }
 0x1e7   :  { %v2261_v53 = vpop.f32.mrf.mxu0  ;;  %v2454_v27 = vpop.f32.mrf.mxu1  ;;  %v1393_v26 = vpack.c.bf16 %v1225_v55, %v1217_v29  ;;  %v1234_v58 = vmax.f32 %v1005_v4, 0.0  ;;  %v826_v62 = vadd.f32 %v8102_v36, %v7857_v44  ;;  %v1400_v56 = vpack.c.bf16 %v1240_v48, %v1232_v52 }
 0x1e8   :  { %v8254_v18 = vadd.f32 %v2452_v31, %v2260_v3  ;;  %v2262_v32 = vadd.f32 %v2261_v53, %v8209_v30  ;;  %v9669_v3 = vld [vmem:[#allocation18_spill] sm:$0xff]  ;;  %v9670_v53 = vld [vmem:[#allocation24_spill] sm:$0xff]  ;;  %v1239_v29 = vmax.f32 %v814_v6, 0.0  ;;  %v1015_v52 = vadd.f32 %v8094_v2, %v7864_v45 }
 0x1e9   :  { %v2263_v37 = vpop.f32.mrf.mxu0  ;;  %v2456_v42 = vpop.f32.mrf.mxu1  ;;  %v1007_v11 = vadd.f32 %v9669_v3, %v7904_v43  ;;  %v1003_v55 = vadd.f32 %v9670_v53, %v7904_v43  ;;  %v1231_v50 = vmax.f32 %v810_v9, 0.0  ;;  %v824_v3 = vadd.f32 %v8096_v8, %v7899_v49 }
 0x1ea   :  { %v8259_v25 = vadd.f32 %v2454_v27, %v2262_v32  ;;  %v2264_v33 = vadd.f32 %v2263_v37, %v8202_v54  ;;  %v1019_v32 = vadd.f32 %v8108_v21, %v7864_v45  ;;  %v1402_v27 = vpack.c.bf16 %v1242_v16, %v1234_v58 }
 0x1eb   :  { %v2265_v40 = vpop.f32.mrf.mxu0  ;;  %v2458_v31 = vpop.f32.mrf.mxu1  ;;  %v822_v37 = vadd.f32 %v8092_v0, %v7857_v44  ;;  %v1241_v48 = vmax.f32 %v1007_v11, 0.0  ;;  %v1233_v58 = vmax.f32 %v1003_v55, 0.0  ;;  %v1017_v55 = vadd.f32 %v8098_v61, %v7904_v43 }
 0x1ec   :  { %v8268_v24 = vadd.f32 %v2456_v42, %v2264_v33  ;;  %v2266_v39 = vadd.f32 %v2265_v40, %v8209_v30  ;;  %v1258_v40 = vmax.f32 %v1019_v32, 0.0  ;;  %v836_v8 = vadd.f32 %v8134_v41, %v7857_v44 }
 0x1ed   :  { %v2269_v4 = vpop.f32.mrf.mxu0  ;;  %2734 = vmatmul.mubr.bf16.gmra.mxu0 %v1391_v28  ;;  %v2462_v42 = vpop.f32.mrf.mxu1  ;;  %2927 = vmatmul.mubr.bf16.gmra.mxu1 %v1393_v26  ;;  %v1256_v28 = vmax.f32 %v826_v62, 0.0  ;;  %v1248_v11 = vmax.f32 %v822_v37, 0.0  ;;  %v1401_v9 = vpack.c.bf16 %v1241_v48, %v1233_v58  ;;  %v9671_v62 = vld [vmem:[#allocation28_spill] sm:$0xff] }
 0x1ee   :  { %v8277_v36 = vadd.f32 %v2458_v31, %v2266_v39  ;;  %v2270_v33 = vadd.f32 %v2269_v4, %v8202_v54  ;;  %2743 = vmatprep.mubr.bf16.mxu0 %v1400_v56  ;;  %2936 = vmatprep.mubr.bf16.mxu1 %v1402_v27  ;;  %v1399_v39 = vpack.c.bf16 %v1239_v29, %v1231_v50  ;;  %v1250_v4 = vmax.f32 %v1015_v52, 0.0 }
 0x1ef   :  { %v2271_v21 = vpop.f32.mrf.mxu0  ;;  %v2464_v0 = vpop.f32.mrf.mxu1  ;;  %v820_v53 = vadd.f32 %v9671_v62, %v7899_v49  ;;  %v1029_v52 = vadd.f32 %v8140_v20, %v7864_v45 }
 0x1f0   :  { %v8282_v16 = vadd.f32 %v2462_v42, %v2270_v33  ;;  %v2272_v6 = vadd.f32 %v2271_v21, %v8209_v30  ;;  %v1408_v33 = vpack.c.bf16 %v1256_v28, %v1248_v11  ;;  %v9672_v42 = vld [vmem:[#allocation19_spill] sm:$0xff]  ;;  %v1255_v21 = vmax.f32 %v824_v3, 0.0 }
 0x1f1   :  { %v2273_v26 = vpop.f32.mrf.mxu0  ;;  %v2466_v56 = vpop.f32.mrf.mxu1  ;;  %v1013_v48 = vadd.f32 %v9672_v42, %v7904_v43  ;;  %v1410_v61 = vpack.c.bf16 %v1258_v40, %v1250_v4  ;;  %v1247_v28 = vmax.f32 %v820_v53, 0.0  ;;  %v1025_v3 = vadd.f32 %v8126_v15, %v7864_v45 }
 0x1f2   :  { %v8287_v31 = vadd.f32 %v2464_v0, %v2272_v6  ;;  %v2274_v2 = vadd.f32 %v2273_v26, %v8202_v54  ;;  %v832_v6 = vadd.f32 %v8124_v1, %v7857_v44  ;;  %v1257_v26 = vmax.f32 %v1017_v55, 0.0 }
 0x1f3   :  { %v2275_v27 = vpop.f32.mrf.mxu0  ;;  %v2468_v37 = vpop.f32.mrf.mxu1  ;;  %v1272_v11 = vmax.f32 %v836_v8, 0.0  ;;  %v1274_v62 = vmax.f32 %v1029_v52, 0.0  ;;  %v830_v8 = vadd.f32 %v8114_v5, %v7899_v49  ;;  %v1039_v5 = vadd.f32 %v8172_v57, %v7864_v45 }
 0x1f4   :  { %v8296_v32 = vadd.f32 %v2466_v56, %v2274_v2  ;;  %v2276_v29 = vadd.f32 %v2275_v27, %v8209_v30  ;;  %v1249_v2 = vmax.f32 %v1013_v48, 0.0  ;;  %v1407_v56 = vpack.c.bf16 %v1255_v21, %v1247_v28 }
 0x1f5   :  { %v2279_v50 = vpop.f32.mrf.mxu0  ;;  %2744 = vmatmul.mubr.bf16.gmra.mxu0 %v1399_v39  ;;  %v2472_v58 = vpop.f32.mrf.mxu1  ;;  %2937 = vmatmul.mubr.bf16.gmra.mxu1 %v1401_v9  ;;  %v1264_v27 = vmax.f32 %v832_v6, 0.0  ;;  %v834_v9 = vadd.f32 %v8128_v13, %v7899_v49  ;;  %v846_v48 = vadd.f32 %v8166_v34, %v7857_v44 }
 0x1f6   :  { %v8305_v41 = vadd.f32 %v2468_v37, %v2276_v29  ;;  %v2280_v0 = vadd.f32 %v2279_v50, %v8202_v54  ;;  %2753 = vmatprep.mubr.bf16.mxu0 %v1408_v33  ;;  %2946 = vmatprep.mubr.bf16.mxu1 %v1410_v61  ;;  %v1409_v29 = vpack.c.bf16 %v1257_v26, %v1249_v2  ;;  %v1266_v37 = vmax.f32 %v1025_v3, 0.0 }
 0x1f7   :  { %v2281_v20 = vpop.f32.mrf.mxu0  ;;  %v2474_v1 = vpop.f32.mrf.mxu1  ;;  %v1027_v33 = vadd.f32 %v8130_v22, %v7904_v43  ;;  %v1416_v50 = vpack.c.bf16 %v1272_v11, %v1264_v27  ;;  %v1023_v61 = vadd.f32 %v8120_v23, %v7904_v43  ;;  %v1271_v22 = vmax.f32 %v834_v9, 0.0 }
 0x1f8   :  { %v8310_v39 = vadd.f32 %v2472_v58, %v2280_v0  ;;  %v2282_v40 = vadd.f32 %v2281_v20, %v8209_v30  ;;  %v1418_v0 = vpack.c.bf16 %v1274_v62, %v1266_v37  ;;  %v842_v58 = vadd.f32 %v8156_v47, %v7857_v44 }
 0x1f9   :  { %v2283_v4 = vpop.f32.mrf.mxu0  ;;  %v2476_v55 = vpop.f32.mrf.mxu1  ;;  %v1273_v3 = vmax.f32 %v1027_v33, 0.0  ;;  %v1035_v23 = vadd.f32 %v8158_v10, %v7864_v45  ;;  %v1263_v20 = vmax.f32 %v830_v8, 0.0  ;;  %v1288_v11 = vmax.f32 %v846_v48, 0.0 }
 0x1fa   :  { %v8315_v53 = vadd.f32 %v2474_v1, %v2282_v40  ;;  %v2284_v15 = vadd.f32 %v2283_v4, %v8202_v54  ;;  %v1265_v2 = vmax.f32 %v1023_v61, 0.0  ;;  %v1280_v27 = vmax.f32 %v842_v58, 0.0 }
 0x1fb   :  { %v2285_v42 = vpop.f32.mrf.mxu0  ;;  %v2478_v52 = vpop.f32.mrf.mxu1  ;;  %v1415_v4 = vpack.c.bf16 %v1271_v22, %v1263_v20  ;;  %v844_v8 = vadd.f32 %v8160_v38, %v7899_v49  ;;  %v1037_v37 = vadd.f32 %v8162_v17, %v7904_v43  ;;  %v840_v61 = vadd.f32 %v8146_v46, %v7899_v49 }
 0x1fc   :  { %v8324_v21 = vadd.f32 %v2476_v55, %v2284_v15  ;;  %v2286_v13 = vadd.f32 %v2285_v42, %v8209_v30  ;;  %v1417_v10 = vpack.c.bf16 %v1273_v3, %v1265_v2  ;;  %v856_v42 = vadd.f32 %v8206_v51, %v7857_v44 }
 0x1fd   :  { %v2289_v6 = vpop.f32.mrf.mxu0  ;;  %2754 = vmatmul.mubr.bf16.gmra.mxu0 %v1407_v56  ;;  %v2482_v26 = vpop.f32.mrf.mxu1  ;;  %2947 = vmatmul.mubr.bf16.gmra.mxu1 %v1409_v29  ;;  %v1290_v56 = vmax.f32 %v1039_v5, 0.0  ;;  %v1282_v29 = vmax.f32 %v1035_v23, 0.0  ;;  %v1033_v5 = vadd.f32 %v8152_v59, %v7904_v43  ;;  %v1049_v38 = vadd.f32 %v8215_v14, %v7864_v45 }
 0x1fe   :  { %v8333_v34 = vadd.f32 %v2478_v52, %v2286_v13  ;;  %v2290_v28 = vadd.f32 %v2289_v6, %v8202_v54  ;;  %2763 = vmatprep.mubr.bf16.mxu0 %v1416_v50  ;;  %2956 = vmatprep.mubr.bf16.mxu1 %v1418_v0  ;;  %v1424_v50 = vpack.c.bf16 %v1288_v11, %v1280_v27  ;;  %v1287_v46 = vmax.f32 %v844_v8, 0.0 }
 0x1ff   :  { %v2291_v57 = vpop.f32.mrf.mxu0  ;;  %v2484_v47 = vpop.f32.mrf.mxu1  ;;  %v1426_v6 = vpack.c.bf16 %v1290_v56, %v1282_v29  ;;  %v852_v51 = vadd.f32 %v8188_v12, %v7857_v44  ;;  %v1045_v59 = vadd.f32 %v8193_v7, %v7864_v45  ;;  %v1279_v12 = vmax.f32 %v840_v61, 0.0  ;;  %v9676_v61 = vld [vmem:[#allocation20_spill] sm:$0xff] }
 0x200   :  { %v8338_v40 = vadd.f32 %v2482_v26, %v2290_v28  ;;  %v2292_v1 = vadd.f32 %v2291_v57, %v8209_v30  ;;  %v1289_v28 = vmax.f32 %v1037_v37, 0.0  ;;  %v1304_v26 = vmax.f32 %v856_v42, 0.0  ;;  %v9675_v42 = vld [vmem:[#allocation11_spill] sm:$0xff] }
 0x201   :  { %v2293_v62 = vpop.f32.mrf.mxu0  ;;  %v2486_v55 = vpop.f32.mrf.mxu1  ;;  %v1281_v57 = vmax.f32 %v1033_v5, 0.0  ;;  %v1306_v20 = vmax.f32 %v1049_v38, 0.0  ;;  %v1298_v7 = vmax.f32 %v1045_v59, 0.0  ;;  %v1043_v5 = vadd.f32 %v9676_v61, %v7904_v43 }
 0x202   :  { %v8341_v9 = vadd.f32 %v2484_v47, %v2292_v1  ;;  %v2294_v15 = vadd.f32 %v2293_v62, %v8202_v54  ;;  %v1296_v1 = vmax.f32 %v852_v51, 0.0  ;;  %v1423_v62 = vpack.c.bf16 %v1287_v46, %v1279_v12 }
 0x203   :  { %v2295_v33 = vpop.f32.mrf.mxu0  ;;  %v2488_v52 = vpop.f32.mrf.mxu1  ;;  %v1425_v45 = vpack.c.bf16 %v1289_v28, %v1281_v57 }
 0x204   :  { %v8350_v48 = vadd.f32 %v2486_v55, %v2294_v15  ;;  %v2296_v13 = vadd.f32 %v2295_v33, %v8209_v30  ;;  %v9674_v55 = vld [vmem:[#allocation30_spill] sm:$0xff]  ;;  %v1432_v33 = vpack.c.bf16 %v1304_v26, %v1296_v1  ;;  %v1297_v26 = vmax.f32 %v1043_v5, 0.0 }
 0x205   :  { %v2299_v17 = vpop.f32.mrf.mxu0  ;;  %2764 = vmatmul.mubr.bf16.gmra.mxu0 %v1415_v4  ;;  %v2492_v58 = vpop.f32.mrf.mxu1  ;;  %2957 = vmatmul.mubr.bf16.gmra.mxu1 %v1417_v10  ;;  %v9673_v4 = vld [vmem:[#allocation29_spill] sm:$0xff]  ;;  %v1047_v10 = vadd.f32 %v9674_v55, %v7904_v43 }
 0x206   :  { %v8361_v0 = vadd.f32 %v2488_v52, %v2296_v13  ;;  %v2300_v22 = vadd.f32 %v2299_v17, %v8202_v54  ;;  %2773 = vmatprep.mubr.bf16.mxu0 %v1424_v50  ;;  %2966 = vmatprep.mubr.bf16.mxu1 %v1426_v6  ;;  %v854_v27 = vadd.f32 %v9673_v4, %v7899_v49 }
 0x207   :  { %v2301_v14 = vpop.f32.mrf.mxu0  ;;  %v2494_v44 = vpop.f32.mrf.mxu1  ;;  %v850_v13 = vadd.f32 %v9675_v42, %v7899_v49  ;;  %v1434_v50 = vpack.c.bf16 %v1306_v20, %v1298_v7 }
 0x208   :  { %v8366_v3 = vadd.f32 %v2492_v58, %v2300_v22  ;;  %v2302_v23 = vadd.f32 %v2301_v14, %v8209_v30  ;;  %v1303_v51 = vmax.f32 %v854_v27, 0.0  ;;  %v1305_v58 = vmax.f32 %v1047_v10, 0.0 }
 0x209   :  { %v2303_v11 = vpop.f32.mrf.mxu0  ;;  %v2496_v56 = vpop.f32.mrf.mxu1  ;;  %v1295_v59 = vmax.f32 %v850_v13, 0.0 }
 0x20a   :  { %v8369_v47 = vadd.f32 %v2494_v44, %v2302_v23  ;;  %v2304_v2 = vadd.f32 %v2303_v11, %v8202_v54  ;;  %v1433_v20 = vpack.c.bf16 %v1305_v58, %v1297_v26 }
 0x20b   :  { %v2305_v15 = vpop.f32.mrf.mxu0  ;;  %v2498_v37 = vpop.f32.mrf.mxu1  ;;  %v1431_v12 = vpack.c.bf16 %v1303_v51, %v1295_v59 }
 0x20c   :  { %v8376_v29 = vadd.f32 %v2496_v56, %v2304_v2  ;;  %v2306_v8 = vadd.f32 %v2305_v15, %v8209_v30 }
 0x20d   :  { %v2309_v52 = vpop.f32.mrf.mxu0  ;;  %2774 = vmatmul.mubr.bf16.gmra.mxu0 %v1423_v62  ;;  %v2502_v6 = vpop.f32.mrf.mxu1  ;;  %2967 = vmatmul.mubr.bf16.gmra.mxu1 %v1425_v45 }
 0x20e   :  { %v8383_v38 = vadd.f32 %v2498_v37, %v2306_v8  ;;  %v2310_v17 = vadd.f32 %v2309_v52, %v8202_v54  ;;  %2783 = vmatprep.mubr.bf16.mxu0 %v1432_v33  ;;  %2976 = vmatprep.mubr.bf16.mxu1 %v1434_v50 }
 0x20f   :  { %v2311_v22 = vpop.f32.mrf.mxu0  ;;  %v2504_v28 = vpop.f32.mrf.mxu1 }
 0x210   :  { %v8386_v46 = vadd.f32 %v2502_v6, %v2310_v17  ;;  %v2312_v49 = vadd.f32 %v2311_v22, %v8209_v30 }
 0x211   :  { %v2313_v14 = vpop.f32.mrf.mxu0  ;;  %v2506_v44 = vpop.f32.mrf.mxu1 }
 0x212   :  { %v8389_v43 = vadd.f32 %v2504_v28, %v2312_v49  ;;  %v2314_v23 = vadd.f32 %v2313_v14, %v8202_v54 }
 0x213   :  { %v2315_v57 = vpop.f32.mrf.mxu0  ;;  %v2508_v2 = vpop.f32.mrf.mxu1 }
 0x214   :  { %v8392_v11 = vadd.f32 %v2506_v44, %v2314_v23  ;;  %v2316_v1 = vadd.f32 %v2315_v57, %v8209_v30 }
 0x215   :  { %v2319_v56 = vpop.f32.mrf.mxu0  ;;  %2784 = vmatmul.mubr.bf16.gmra.mxu0 %v1431_v12  ;;  %v2512_v7 = vpop.f32.mrf.mxu1  ;;  %2977 = vmatmul.mubr.bf16.gmra.mxu1 %v1433_v20 }
 0x216   :  { %v8395_v62 = vadd.f32 %v2508_v2, %v2316_v1  ;;  %v2320_v45 = vadd.f32 %v2319_v56, %v8202_v54 }
 0x217   :  { %v2321_v4 = vpop.f32.mrf.mxu0  ;;  %v2514_v55 = vpop.f32.mrf.mxu1 }
 0x218   :  { %v8398_v27 = vadd.f32 %v2512_v7, %v2320_v45  ;;  %v2322_v15 = vadd.f32 %v2321_v4, %v8209_v30 }
 0x219   :  { %v2323_v10 = vpop.f32.mrf.mxu0  ;;  %v2516_v33 = vpop.f32.mrf.mxu1 }
 0x21a   :  { %v8401_v8 = vadd.f32 %v2514_v55, %v2322_v15  ;;  %v2324_v37 = vadd.f32 %v2323_v10, %v8202_v54 }
 0x21b   :  { %v2325_v42 = vpop.f32.mrf.mxu0  ;;  %v2518_v50 = vpop.f32.mrf.mxu1 }
 0x21c   :  { %v8404_v13 = vadd.f32 %v2516_v33, %v2324_v37  ;;  %v2326_v52 = vadd.f32 %v2325_v42, %v8209_v30 }
 0x21d   :  { %v2329_v61 = vpop.f32.mrf.mxu0  ;;  %v2522_v6 = vpop.f32.mrf.mxu1 }
 0x21e   :  { %v8407_v5 = vadd.f32 %v2518_v50, %v2326_v52  ;;  %v2330_v17 = vadd.f32 %v2329_v61, %v8202_v54 }
 0x21f   :  { %v2331_v51 = vpop.f32.mrf.mxu0  ;;  %v2524_v49 = vpop.f32.mrf.mxu1 }
 0x220   :  { %v8410_v22 = vadd.f32 %v2522_v6, %v2330_v17  ;;  %v2332_v58 = vadd.f32 %v2331_v51, %v8209_v30 }
 0x221   :  { %v2333_v28 = vpop.f32.mrf.mxu0  ;;  %v2526_v26 = vpop.f32.mrf.mxu1 }
 0x222   :  { %v8413_v59 = vadd.f32 %v2524_v49, %v2332_v58  ;;  %v2334_v14 = vadd.f32 %v2333_v28, %v8202_v54 }
 0x223   :  { %v2335_v23 = vpop.f32.mrf.mxu0  ;;  %v2528_v57 = vpop.f32.mrf.mxu1 }
 0x224   :  { %v8416_v44 = vadd.f32 %v2526_v26, %v2334_v14  ;;  %v2336_v12 = vadd.f32 %v2335_v23, %v8209_v30 }
 0x225   :  { %v2339_v20 = vpop.f32.mrf.mxu0  ;;  %v2532_v56 = vpop.f32.mrf.mxu1 }
 0x226   :  { %v8419_v1 = vadd.f32 %v2528_v57, %v2336_v12  ;;  %v2340_v2 = vadd.f32 %v2339_v20, %v8202_v54 }
 0x227   :  { %v2341_v45 = vpop.f32.mrf.mxu0  ;;  %v2534_v15 = vpop.f32.mrf.mxu1 }
 0x228   :  { %v8422_v7 = vadd.f32 %v2532_v56, %v2340_v2  ;;  %v2342_v4 = vadd.f32 %v2341_v45, %v8209_v30 }
 0x229   :  { %v2343_v55 = vpop.f32.mrf.mxu0  ;;  %v2536_v33 = vpop.f32.mrf.mxu1 }
 0x22a   :  { %v8425_v10 = vadd.f32 %v2534_v15, %v2342_v4  ;;  %v2344_v37 = vadd.f32 %v2343_v55, %v8202_v54 }
 0x22b   :  { %v2345_v42 = vpop.f32.mrf.mxu0  ;;  %v2538_v61 = vpop.f32.mrf.mxu1 }
 0x22c   :  { %v8428_v52 = vadd.f32 %v2536_v33, %v2344_v37  ;;  %v2346_v50 = vadd.f32 %v2345_v42, %v8209_v30 }
 0x22d   :  { %v2349_v17 = vpop.f32.mrf.mxu0  ;;  %v2542_v58 = vpop.f32.mrf.mxu1 }
 0x22e   :  { %v8431_v6 = vadd.f32 %v2538_v61, %v2346_v50  ;;  %v2350_v51 = vadd.f32 %v2349_v17, %v8202_v54 }
 0x22f   :  { %v2351_v49 = vpop.f32.mrf.mxu0  ;;  %v2544_v26 = vpop.f32.mrf.mxu1 }
 0x230   :  { %v8434_v28 = vadd.f32 %v2542_v58, %v2350_v51  ;;  %v2352_v14 = vadd.f32 %v2351_v49, %v8209_v30 }
 0x231   :  { %v2353_v23 = vpop.f32.mrf.mxu0  ;;  %v2546_v20 = vpop.f32.mrf.mxu1 }
 0x232   :  { %v8437_v12 = vadd.f32 %v2544_v26, %v2352_v14  ;;  %v2354_v57 = vadd.f32 %v2353_v23, %v8202_v54 }
 0x233   :  { %v2355_v2 = vpop.f32.mrf.mxu0  ;;  %v2548_v4 = vpop.f32.mrf.mxu1 }
 0x234   :  { %v8440_v56 = vadd.f32 %v2546_v20, %v2354_v57  ;;  %v2356_v45 = vadd.f32 %v2355_v2, %v8209_v30 }
 0x235   :  { %v2359_v15 = vpop.f32.mrf.mxu0  ;;  %v2552_v33 = vpop.f32.mrf.mxu1 }
 0x236   :  { %v8443_v55 = vadd.f32 %v2548_v4, %v2356_v45  ;;  %v2360_v37 = vadd.f32 %v2359_v15, %v8202_v54 }
 0x237   :  { %v2361_v42 = vpop.f32.mrf.mxu0  ;;  %v2554_v17 = vpop.f32.mrf.mxu1 }
 0x238   :  { %v8446_v50 = vadd.f32 %v2552_v33, %v2360_v37  ;;  %v2362_v61 = vadd.f32 %v2361_v42, %v8209_v30 }
 0x239   :  { %v2363_v51 = vpop.f32.mrf.mxu0  ;;  %v2556_v14 = vpop.f32.mrf.mxu1 }
 0x23a   :  { %v8449_v58 = vadd.f32 %v2554_v17, %v2362_v61  ;;  %v2364_v49 = vadd.f32 %v2363_v51, %v8202_v54 }
 0x23b   :  { %v2365_v26 = vpop.f32.mrf.mxu0  ;;  %v2558_v20 = vpop.f32.mrf.mxu1 }
 0x23c   :  { %v8452_v23 = vadd.f32 %v2556_v14, %v2364_v49  ;;  %v2366_v57 = vadd.f32 %v2365_v26, %v8209_v30 }
 0x23d   :  { %v2369_v2 = vpop.f32.mrf.mxu0  ;;  %v2562_v15 = vpop.f32.mrf.mxu1 }
 0x23e   :  { %9677 = vst [vmem:[#allocation23_spill] sm:$0xff] %v8452_v23  ;;  %v8455_v45 = vadd.f32 %v2558_v20, %v2366_v57  ;;  %v2370_v4 = vadd.f32 %v2369_v2, %v8202_v54 }
 0x23f   :  { %v2371_v37 = vpop.f32.mrf.mxu0  ;;  %v2564_v61 = vpop.f32.mrf.mxu1 }
 0x240   :  { %9678 = vst [vmem:[#allocation22_spill] sm:$0xff] %v8455_v45  ;;  %v8458_v33 = vadd.f32 %v2562_v15, %v2370_v4  ;;  %v2372_v42 = vadd.f32 %v2371_v37, %v8209_v30 }
 0x241   :  { %v2373_v17 = vpop.f32.mrf.mxu0  ;;  %v2566_v14 = vpop.f32.mrf.mxu1 }
 0x242   :  { %9679 = vst [vmem:[#allocation25_spill] sm:$0xff] %v8458_v33  ;;  %v8461_v51 = vadd.f32 %v2564_v61, %v2372_v42  ;;  %v2374_v49 = vadd.f32 %v2373_v17, %v8202_v54 }
 0x243   :  { %v2375_v26 = vpop.f32.mrf.mxu0  ;;  %v2568_v20 = vpop.f32.mrf.mxu1 }
 0x244   :  { %9680 = vst [vmem:[#allocation27_spill] sm:$0xff] %v8461_v51  ;;  %v8464_v23 = vadd.f32 %v2566_v14, %v2374_v49  ;;  %v2376_v57 = vadd.f32 %v2375_v26, %v8209_v30 }
 0x245   :  { %v2379_v2 = vpop.f32.mrf.mxu0  ;;  %v2572_v15 = vpop.f32.mrf.mxu1 }
 0x246   :  { %9681 = vst [vmem:[#allocation26_spill] sm:$0xff] %v8464_v23  ;;  %v8467_v45 = vadd.f32 %v2568_v20, %v2376_v57  ;;  %v2380_v4 = vadd.f32 %v2379_v2, %v8202_v54 }
 0x247   :  { %v2381_v37 = vpop.f32.mrf.mxu0  ;;  %v2574_v61 = vpop.f32.mrf.mxu1 }
 0x248   :  { %9682 = vst [vmem:[#allocation18_spill] sm:$0xff] %v8467_v45  ;;  %v8470_v33 = vadd.f32 %v2572_v15, %v2380_v4  ;;  %v2382_v42 = vadd.f32 %v2381_v37, %v8209_v30 }
 0x249   :  { %v2383_v17 = vpop.f32.mrf.mxu0  ;;  %v2576_v14 = vpop.f32.mrf.mxu1 }
 0x24a   :  { %9683 = vst [vmem:[#allocation24_spill] sm:$0xff] %v8470_v33  ;;  %v8473_v51 = vadd.f32 %v2574_v61, %v2382_v42  ;;  %v2384_v49 = vadd.f32 %v2383_v17, %v8202_v54 }
 0x24b   :  { %v2385_v26 = vpop.f32.mrf.mxu0  ;;  %v2578_v20 = vpop.f32.mrf.mxu1 }
 0x24c   :  { %9684 = vst [vmem:[#allocation28_spill] sm:$0xff] %v8473_v51  ;;  %v8476_v23 = vadd.f32 %v2576_v14, %v2384_v49  ;;  %v2386_v57 = vadd.f32 %v2385_v26, %v8209_v30 }
 0x24d   :  { %v2389_v2 = vpop.f32.mrf.mxu0  ;;  %v2582_v15 = vpop.f32.mrf.mxu1 }
 0x24e   :  { %9685 = vst [vmem:[#allocation19_spill] sm:$0xff] %v8476_v23  ;;  %v8479_v45 = vadd.f32 %v2578_v20, %v2386_v57  ;;  %v2390_v4 = vadd.f32 %v2389_v2, %v8202_v54 }
 0x24f   :  { %v2391_v37 = vpop.f32.mrf.mxu0  ;;  %v2584_v61 = vpop.f32.mrf.mxu1 }
 0x250   :  { %9686 = vst [vmem:[#allocation29_spill] sm:$0xff] %v8479_v45  ;;  %v8482_v33 = vadd.f32 %v2582_v15, %v2390_v4  ;;  %v2392_v42 = vadd.f32 %v2391_v37, %v8209_v30 }
 0x251   :  { %v2393_v17 = vpop.f32.mrf.mxu0  ;;  %v2586_v14 = vpop.f32.mrf.mxu1 }
 0x252   :  { %9687 = vst [vmem:[#allocation30_spill] sm:$0xff] %v8482_v33  ;;  %v8485_v51 = vadd.f32 %v2584_v61, %v2392_v42  ;;  %v2394_v49 = vadd.f32 %v2393_v17, %v8202_v54 }
 0x253   :  { %v2395_v26 = vpop.f32.mrf.mxu0  ;;  %v2588_v20 = vpop.f32.mrf.mxu1 }
 0x254   :  { %9688 = vst [vmem:[#allocation11_spill] sm:$0xff] %v8485_v51  ;;  %v8488_v23 = vadd.f32 %v2586_v14, %v2394_v49  ;;  %v2396_v57 = vadd.f32 %v2395_v26, %v8209_v30 }
 0x255   :  { %v2399_v2 = vpop.f32.mrf.mxu0  ;;  %v2592_v15 = vpop.f32.mrf.mxu1 }
 0x256   :  { %9689 = vst [vmem:[#allocation20_spill] sm:$0xff] %v8488_v23  ;;  %v8491_v45 = vadd.f32 %v2588_v20, %v2396_v57  ;;  %v2400_v4 = vadd.f32 %v2399_v2, %v8202_v54 }
 0x257   :  { %v2401_v37 = vpop.f32.mrf.mxu0  ;;  %v2594_v61 = vpop.f32.mrf.mxu1 }
 0x258   :  { %9690 = vst [vmem:[#allocation31_spill] sm:$0xff] %v8491_v45  ;;  %v8494_v33 = vadd.f32 %v2592_v15, %v2400_v4  ;;  %v2402_v42 = vadd.f32 %v2401_v37, %v8209_v30 }
 0x259   :  { %v2403_v17 = vpop.f32.mrf.mxu0  ;;  %v2596_v14 = vpop.f32.mrf.mxu1 }
 0x25a   :  { %9691 = vst [vmem:[#allocation32_spill] sm:$0xff] %v8494_v33  ;;  %v8497_v51 = vadd.f32 %v2594_v61, %v2402_v42  ;;  %v2404_v49 = vadd.f32 %v2403_v17, %v8202_v54 }
 0x25b   :  { %v2405_v26 = vpop.f32.mrf.mxu0  ;;  %v2598_v20 = vpop.f32.mrf.mxu1 }
 0x25c   :  { %9692 = vst [vmem:[#allocation33_spill] sm:$0xff] %v8497_v51  ;;  %v8500_v23 = vadd.f32 %v2596_v14, %v2404_v49  ;;  %v2406_v57 = vadd.f32 %v2405_v26, %v8209_v30  ;;  %v3051_v30 = vld [vmem:[%s9547_s5] sm:$0x3]  ;;  %s6806_s5 = smov [#allocation6]  }
 0x25d   :  { %v2635_v2 = vpop.f32.mrf.mxu0  ;;  %v2828_v15 = vpop.f32.mrf.mxu1  ;;  %s6211_s8 = sshll.u32 %s6806_s5, 4  ;;  %s6212_s8 = int_to_ptr.vmem [resolvable:$true] %s6211_s8 }
 0x25e   :  { %v8503_v45 = vadd.f32 %v2598_v20, %v2406_v57  ;;  %v2636_v4 = vadd.f32 %v2635_v2, %v8226_v19  ;;  %v3052_v2 = vunpack.c.l.bf16 %v3051_v30  ;;  %v9694_v30 = vld [vmem:[#allocation15_spill] sm:$0xff]  ;;  %s6777_s9 = scalar_lea.vmem %s6212_s8, 32  ;;  %p6782_p6 = scmp.lt.s32.totalorder %s6212_s8, %s6212_s8 }
 0x25f   :  { %v2637_v37 = vpop.f32.mrf.mxu0  ;;  %v2830_v61 = vpop.f32.mrf.mxu1  ;;  %p6778_p5 = scmp.ne.s32.totalorder %s6212_s8, %s6777_s9  ;;  %p6783_p7 = scmp.lt.s32.totalorder %s6777_s9, %s6777_s9 }
 0x260   :  { %v2829_v33 = vadd.f32 %v2828_v15, %v2636_v4  ;;  %v2638_v42 = vadd.f32 %v2637_v37, %v8231_v63 }
 0x261   :  { %v2639_v51 = vpop.f32.mrf.mxu0  ;;  %v2832_v49 = vpop.f32.mrf.mxu1  ;;  %p6784_p8 = por %p6783_p7, %p6782_p6 }
 0x262   :  { %6628 = vtanh.f32 %v2829_v33  ;;  %v2831_v54 = vadd.f32 %v2830_v61, %v2638_v42  ;;  %v2640_v17 = vadd.f32 %v2639_v51, %v8240_v60  ;;  %v9693_v61 = vld [vmem:[#allocation13_spill] sm:$0xff] }
 0x263   :  { %v2641_v14 = vpop.f32.mrf.mxu0  ;;  %v2834_v57 = vpop.f32.mrf.mxu1  ;;  %p6785_p9 = pnand %p6784_p8, %p6778_p5 }
 0x264   :  { %6630 = vtanh.f32 %v2831_v54  ;;  %v2833_v26 = vadd.f32 %v2832_v49, %v2640_v17  ;;  %v2642_v19 = vadd.f32 %v2641_v14, %v8249_v35  ;;  %v3057_v54 = vrot.slane %v3052_v2, %v9693_v61 }
 0x265   :  { %v2645_v20 = vpop.f32.mrf.mxu0  ;;  %v2838_v4 = vpop.f32.mrf.mxu1  ;;  %v3061_v14 = vrot.slane %v3052_v2, %v9694_v30 }
 0x266   :  { %6632 = vtanh.f32 %v2833_v26  ;;  %v2835_v63 = vadd.f32 %v2834_v57, %v2642_v19  ;;  %v2646_v33 = vadd.f32 %v2645_v20, %v8254_v18 }
 0x267   :  { %v2647_v15 = vpop.f32.mrf.mxu0  ;;  %v2840_v37 = vpop.f32.mrf.mxu1 }
 0x268   :  { %6634 = vtanh.f32 %v2835_v63  ;;  %v2839_v60 = vadd.f32 %v2838_v4, %v2646_v33  ;;  %v2648_v51 = vadd.f32 %v2647_v15, %v8259_v25  ;;  %v8519_v25 = vrot.slane %v3057_v54, %v9693_v61 }
 0x269   :  { %v2649_v42 = vpop.f32.mrf.mxu0  ;;  %v2842_v49 = vpop.f32.mrf.mxu1 }
 0x26a   :  { %6636 = vtanh.f32 %v2839_v60  ;;  %v2841_v17 = vadd.f32 %v2840_v37, %v2648_v51  ;;  %v2650_v35 = vadd.f32 %v2649_v42, %v8268_v24  ;;  %v8523_v24 = vrot.slane %v3061_v14, %v9693_v61 }
 0x26b   :  { %v2651_v26 = vpop.f32.mrf.mxu0  ;;  %v2844_v57 = vpop.f32.mrf.mxu1 }
 0x26c   :  { %6638 = vtanh.f32 %v2841_v17  ;;  %v2843_v18 = vadd.f32 %v2842_v49, %v2650_v35  ;;  %v2652_v19 = vadd.f32 %v2651_v26, %v8277_v36 }
 0x26d   :  { %v2655_v20 = vpop.f32.mrf.mxu0  ;;  %v2848_v4 = vpop.f32.mrf.mxu1 }
 0x26e   :  { %6640 = vtanh.f32 %v2843_v18  ;;  %v2845_v63 = vadd.f32 %v2844_v57, %v2652_v19  ;;  %v2656_v33 = vadd.f32 %v2655_v20, %v8282_v16 }
 0x26f   :  { %v6629_v15 = vpop.eup %6628  ;;  %v2657_v2 = vpop.f32.mrf.mxu0 }
 0x270   :  { %6642 = vtanh.f32 %v2845_v63  ;;  %v2849_v60 = vadd.f32 %v2848_v4, %v2656_v33  ;;  %v2658_v51 = vadd.f32 %v2657_v2, %v8287_v31  ;;  %v2850_v36 = vpop.f32.mrf.mxu1  ;;  %v3072_v54 = vmul.f32 %v6629_v15, %v8519_v25 }
 0x271   :  { %v6631_v37 = vpop.eup %6630  ;;  %v2659_v42 = vpop.f32.mrf.mxu0 }
 0x272   :  { %6644 = vtanh.f32 %v2849_v60  ;;  %v2851_v17 = vadd.f32 %v2850_v36, %v2658_v51  ;;  %v2660_v35 = vadd.f32 %v2659_v42, %v8296_v32  ;;  %v2852_v16 = vpop.f32.mrf.mxu1  ;;  %v3073_v49 = vmul.f32 %v6631_v37, %v8523_v24 }
 0x273   :  { %v6633_v14 = vpop.eup %6632  ;;  %v2661_v26 = vpop.f32.mrf.mxu0 }
 0x274   :  { %6646 = vtanh.f32 %v2851_v17  ;;  %v2853_v18 = vadd.f32 %v2852_v16, %v2660_v35  ;;  %v2662_v19 = vadd.f32 %v2661_v26, %v8305_v41  ;;  %v2854_v57 = vpop.f32.mrf.mxu1  ;;  %v3136_v31 = vadd.f32 %v3073_v49, %v3072_v54 }
 0x275   :  { %v6635_v20 = vpop.eup %6634  ;;  %v2665_v63 = vpop.f32.mrf.mxu0  ;;  %v3074_v33 = vmul.f32 %v6633_v14, %v8519_v25 }
 0x276   :  { %6648 = vtanh.f32 %v2853_v18  ;;  %v2855_v4 = vadd.f32 %v2854_v57, %v2662_v19  ;;  %v2666_v15 = vadd.f32 %v2665_v63, %v8310_v39  ;;  %v2858_v32 = vpop.f32.mrf.mxu1  ;;  %3137 = vadd.xlane.f32.xlu0 %v3136_v31  ;;  %v3075_v2 = vmul.f32 %v6635_v20, %v8523_v24 }
 0x277   :  { %v6637_v60 = vpop.eup %6636  ;;  %v2667_v51 = vpop.f32.mrf.mxu0 }
 0x278   :  { %6650 = vtanh.f32 %v2855_v4  ;;  %v2859_v36 = vadd.f32 %v2858_v32, %v2666_v15  ;;  %v2668_v41 = vadd.f32 %v2667_v51, %v8315_v53  ;;  %v2860_v37 = vpop.f32.mrf.mxu1  ;;  %v3139_v42 = vadd.f32 %v3075_v2, %v3074_v33 }
 0x279   :  { %v6639_v54 = vpop.eup %6638  ;;  %v2669_v17 = vpop.f32.mrf.mxu0  ;;  %v3076_v35 = vmul.f32 %v6637_v60, %v8519_v25 }
 0x27a   :  { %6652 = vtanh.f32 %v2859_v36  ;;  %v2861_v16 = vadd.f32 %v2860_v37, %v2668_v41  ;;  %v2670_v39 = vadd.f32 %v2669_v17, %v8324_v21  ;;  %v2862_v49 = vpop.f32.mrf.mxu1  ;;  %3140 = vadd.xlane.f32.xlu0 %v3139_v42  ;;  %v3077_v14 = vmul.f32 %v6639_v54, %v8523_v24 }
 0x27b   :  { %v6641_v26 = vpop.eup %6640  ;;  %v2671_v18 = vpop.f32.mrf.mxu0 }
 0x27c   :  { %6654 = vtanh.f32 %v2861_v16  ;;  %v2863_v19 = vadd.f32 %v2862_v49, %v2670_v39  ;;  %v2672_v53 = vadd.f32 %v2671_v18, %v8333_v34  ;;  %v2864_v57 = vpop.f32.mrf.mxu1  ;;  %v3142_v31 = vadd.f32 %v3077_v14, %v3076_v35 }
 0x27d   :  { %v6643_v20 = vpop.eup %6642  ;;  %v2675_v63 = vpop.f32.mrf.mxu0  ;;  %v3078_v33 = vmul.f32 %v6641_v26, %v8519_v25 }
 0x27e   :  { %6656 = vtanh.f32 %v2863_v19  ;;  %v2865_v4 = vadd.f32 %v2864_v57, %v2672_v53  ;;  %v2676_v21 = vadd.f32 %v2675_v63, %v8338_v40  ;;  %v2868_v15 = vpop.f32.mrf.mxu1  ;;  %3143 = vadd.xlane.f32.xlu1 %v3142_v31  ;;  %v3079_v32 = vmul.f32 %v6643_v20, %v8523_v24 }
 0x27f   :  { %v6645_v2 = vpop.eup %6644  ;;  %v2677_v60 = vpop.f32.mrf.mxu0 }
 0x280   :  { %6658 = vtanh.f32 %v2865_v4  ;;  %v2869_v51 = vadd.f32 %v2868_v15, %v2676_v21  ;;  %v2678_v34 = vadd.f32 %v2677_v60, %v8341_v9  ;;  %v2870_v36 = vpop.f32.mrf.mxu1  ;;  %v3145_v41 = vadd.f32 %v3079_v32, %v3078_v33 }
 0x281   :  { %v6647_v37 = vpop.eup %6646  ;;  %v2679_v42 = vpop.f32.mrf.mxu0  ;;  %v3080_v54 = vmul.f32 %v6645_v2, %v8519_v25 }
 0x282   :  { %6660 = vtanh.f32 %v2869_v51  ;;  %v2871_v17 = vadd.f32 %v2870_v36, %v2678_v34  ;;  %v2680_v40 = vadd.f32 %v2679_v42, %v8350_v48  ;;  %v2872_v35 = vpop.f32.mrf.mxu1  ;;  %3146 = vadd.xlane.f32.xlu1 %v3145_v41  ;;  %v3081_v16 = vmul.f32 %v6647_v37, %v8523_v24 }
 0x283   :  { %v6649_v39 = vpop.eup %6648  ;;  %v2681_v49 = vpop.f32.mrf.mxu0 }
 0x284   :  { %6662 = vtanh.f32 %v2871_v17  ;;  %v2873_v14 = vadd.f32 %v2872_v35, %v2680_v40  ;;  %v2682_v9 = vadd.f32 %v2681_v49, %v8361_v0  ;;  %v2874_v26 = vpop.f32.mrf.mxu1  ;;  %v3148_v18 = vadd.f32 %v3081_v16, %v3080_v54 }
 0x285   :  { %v6651_v19 = vpop.eup %6650  ;;  %v2685_v53 = vpop.f32.mrf.mxu0  ;;  %v3082_v57 = vmul.f32 %v6649_v39, %v8519_v25 }
 0x286   :  { %6664 = vtanh.f32 %v2873_v14  ;;  %v2875_v31 = vadd.f32 %v2874_v26, %v2682_v9  ;;  %v2686_v48 = vadd.f32 %v2685_v53, %v8366_v3  ;;  %v2878_v20 = vpop.f32.mrf.mxu1  ;;  %3149 = vadd.xlane.f32.xlu0 %v3148_v18  ;;  %v3083_v63 = vmul.f32 %v6651_v19, %v8523_v24 }
 0x287   :  { %v6653_v33 = vpop.eup %6652  ;;  %v2687_v4 = vpop.f32.mrf.mxu0 }
 0x288   :  { %6666 = vtanh.f32 %v2875_v31  ;;  %v2879_v21 = vadd.f32 %v2878_v20, %v2686_v48  ;;  %v2688_v0 = vadd.f32 %v2687_v4, %v8369_v47  ;;  %v2880_v15 = vpop.f32.mrf.mxu1  ;;  %v3151_v32 = vadd.f32 %v3083_v63, %v3082_v57 }
 0x289   :  { %v6655_v2 = vpop.eup %6654  ;;  %v2689_v60 = vpop.f32.mrf.mxu0  ;;  %v3084_v51 = vmul.f32 %v6653_v33, %v8519_v25 }
 0x28a   :  { %6668 = vtanh.f32 %v2879_v21  ;;  %v2881_v34 = vadd.f32 %v2880_v15, %v2688_v0  ;;  %v2690_v3 = vadd.f32 %v2689_v60, %v8376_v29  ;;  %v2882_v36 = vpop.f32.mrf.mxu1  ;;  %3152 = vadd.xlane.f32.xlu1 %v3151_v32  ;;  %v3085_v41 = vmul.f32 %v6655_v2, %v8523_v24 }
 0x28b   :  { %v6657_v37 = vpop.eup %6656  ;;  %v2691_v42 = vpop.f32.mrf.mxu0 }
 0x28c   :  { %6670 = vtanh.f32 %v2881_v34  ;;  %v2883_v54 = vadd.f32 %v2882_v36, %v2690_v3  ;;  %v2692_v47 = vadd.f32 %v2691_v42, %v8383_v38  ;;  %v2884_v17 = vpop.f32.mrf.mxu1  ;;  %v3154_v40 = vadd.f32 %v3085_v41, %v3084_v51 }
 0x28d   :  { %v6659_v35 = vpop.eup %6658  ;;  %v2695_v16 = vpop.f32.mrf.mxu0  ;;  %v3086_v39 = vmul.f32 %v6657_v37, %v8519_v25 }
 0x28e   :  { %6672 = vtanh.f32 %v2883_v54  ;;  %v2885_v49 = vadd.f32 %v2884_v17, %v2692_v47  ;;  %v2696_v29 = vadd.f32 %v2695_v16, %v8386_v46  ;;  %v2888_v14 = vpop.f32.mrf.mxu1  ;;  %3155 = vadd.xlane.f32.xlu0 %v3154_v40  ;;  %v3087_v9 = vmul.f32 %v6659_v35, %v8523_v24 }
 0x28f   :  { %v6661_v26 = vpop.eup %6660  ;;  %v2697_v18 = vpop.f32.mrf.mxu0 }
 0x290   :  { %6674 = vtanh.f32 %v2885_v49  ;;  %v2889_v19 = vadd.f32 %v2888_v14, %v2696_v29  ;;  %v2698_v38 = vadd.f32 %v2697_v18, %v8389_v43  ;;  %v2890_v53 = vpop.f32.mrf.mxu1  ;;  %v3157_v57 = vadd.f32 %v3087_v9, %v3086_v39 }
 0x291   :  { %v6663_v31 = vpop.eup %6662  ;;  %v2699_v48 = vpop.f32.mrf.mxu0  ;;  %v3088_v20 = vmul.f32 %v6661_v26, %v8519_v25 }
 0x292   :  { %6676 = vtanh.f32 %v2889_v19  ;;  %v2891_v63 = vadd.f32 %v2890_v53, %v2698_v38  ;;  %v2700_v46 = vadd.f32 %v2699_v48, %v8392_v11  ;;  %v2892_v33 = vpop.f32.mrf.mxu1  ;;  %3158 = vadd.xlane.f32.xlu1 %v3157_v57  ;;  %v3089_v4 = vmul.f32 %v6663_v31, %v8523_v24 }
 0x293   :  { %v6665_v21 = vpop.eup %6664  ;;  %v2701_v0 = vpop.f32.mrf.mxu0 }
 0x294   :  { %6678 = vtanh.f32 %v2891_v63  ;;  %v2893_v15 = vadd.f32 %v2892_v33, %v2700_v46  ;;  %v2702_v43 = vadd.f32 %v2701_v0, %v8395_v62  ;;  %v2894_v32 = vpop.f32.mrf.mxu1  ;;  %v3160_v2 = vadd.f32 %v3089_v4, %v3088_v20 }
 0x295   :  { %v6667_v60 = vpop.eup %6666  ;;  %v2705_v51 = vpop.f32.mrf.mxu0  ;;  %v3090_v34 = vmul.f32 %v6665_v21, %v8519_v25 }
 0x296   :  { %6680 = vtanh.f32 %v2893_v15  ;;  %v2895_v3 = vadd.f32 %v2894_v32, %v2702_v43  ;;  %v2706_v11 = vadd.f32 %v2705_v51, %v8398_v27  ;;  %v2898_v36 = vpop.f32.mrf.mxu1  ;;  %3161 = vadd.xlane.f32.xlu0 %v3160_v2  ;;  %v3091_v41 = vmul.f32 %v6667_v60, %v8523_v24 }
 0x297   :  { %v6669_v37 = vpop.eup %6668  ;;  %v2707_v42 = vpop.f32.mrf.mxu0 }
 0x298   :  { %6682 = vtanh.f32 %v2895_v3  ;;  %v2899_v54 = vadd.f32 %v2898_v36, %v2706_v11  ;;  %v2708_v62 = vadd.f32 %v2707_v42, %v8401_v8  ;;  %v2900_v47 = vpop.f32.mrf.mxu1  ;;  %v3163_v17 = vadd.f32 %v3091_v41, %v3090_v34 }
 0x299   :  { %v6671_v40 = vpop.eup %6670  ;;  %v2709_v35 = vpop.f32.mrf.mxu0  ;;  %v3092_v16 = vmul.f32 %v6669_v37, %v8519_v25 }
 0x29a   :  { %6684 = vtanh.f32 %v2899_v54  ;;  %v2901_v39 = vadd.f32 %v2900_v47, %v2708_v62  ;;  %v2710_v27 = vadd.f32 %v2709_v35, %v8404_v13  ;;  %v2902_v49 = vpop.f32.mrf.mxu1  ;;  %3164 = vadd.xlane.f32.xlu1 %v3163_v17  ;;  %v3093_v29 = vmul.f32 %v6671_v40, %v8523_v24 }
 0x29b   :  { %v6673_v14 = vpop.eup %6672  ;;  %v2711_v9 = vpop.f32.mrf.mxu0 }
 0x29c   :  { %6686 = vtanh.f32 %v2901_v39  ;;  %v2903_v26 = vadd.f32 %v2902_v49, %v2710_v27  ;;  %v2712_v8 = vadd.f32 %v2711_v9, %v8407_v5  ;;  %v2904_v18 = vpop.f32.mrf.mxu1  ;;  %v3166_v19 = vadd.f32 %v3093_v29, %v3092_v16 }
 0x29d   :  { %v6675_v38 = vpop.eup %6674  ;;  %v2715_v53 = vpop.f32.mrf.mxu0  ;;  %v3094_v57 = vmul.f32 %v6673_v14, %v8519_v25 }
 0x29e   :  { %6688 = vtanh.f32 %v2903_v26  ;;  %v2905_v31 = vadd.f32 %v2904_v18, %v2712_v8  ;;  %v2716_v13 = vadd.f32 %v2715_v53, %v8410_v22  ;;  %v2908_v48 = vpop.f32.mrf.mxu1  ;;  %3167 = vadd.xlane.f32.xlu0 %v3166_v19  ;;  %v3095_v20 = vmul.f32 %v6675_v38, %v8523_v24 }
 0x29f   :  { %v6677_v63 = vpop.eup %6676  ;;  %v2717_v46 = vpop.f32.mrf.mxu0 }
 0x2a0   :  { %6690 = vtanh.f32 %v2905_v31  ;;  %v2909_v33 = vadd.f32 %v2908_v48, %v2716_v13  ;;  %v2718_v5 = vadd.f32 %v2717_v46, %v8413_v59  ;;  %v2910_v4 = vpop.f32.mrf.mxu1  ;;  %v3169_v21 = vadd.f32 %v3095_v20, %v3094_v57 }
 0x2a1   :  { %v6679_v0 = vpop.eup %6678  ;;  %v2719_v15 = vpop.f32.mrf.mxu0  ;;  %v3096_v43 = vmul.f32 %v6677_v63, %v8519_v25 }
 0x2a2   :  { %6692 = vtanh.f32 %v2909_v33  ;;  %v2911_v32 = vadd.f32 %v2910_v4, %v2718_v5  ;;  %v2720_v22 = vadd.f32 %v2719_v15, %v8416_v44  ;;  %v2912_v2 = vpop.f32.mrf.mxu1  ;;  %3170 = vadd.xlane.f32.xlu1 %v3169_v21  ;;  %v3097_v60 = vmul.f32 %v6679_v0, %v8523_v24 }
 0x2a3   :  { %v6681_v51 = vpop.eup %6680  ;;  %v2721_v34 = vpop.f32.mrf.mxu0 }
 0x2a4   :  { %6694 = vtanh.f32 %v2911_v32  ;;  %v2913_v3 = vadd.f32 %v2912_v2, %v2720_v22  ;;  %v2722_v59 = vadd.f32 %v2721_v34, %v8419_v1  ;;  %v2914_v11 = vpop.f32.mrf.mxu1  ;;  %v3172_v36 = vadd.f32 %v3097_v60, %v3096_v43 }
 0x2a5   :  { %v6683_v41 = vpop.eup %6682  ;;  %v2725_v37 = vpop.f32.mrf.mxu0  ;;  %v3098_v42 = vmul.f32 %v6681_v51, %v8519_v25 }
 0x2a6   :  { %6696 = vtanh.f32 %v2913_v3  ;;  %v2915_v54 = vadd.f32 %v2914_v11, %v2722_v59  ;;  %v2726_v44 = vadd.f32 %v2725_v37, %v8422_v7  ;;  %v2918_v62 = vpop.f32.mrf.mxu1  ;;  %3173 = vadd.xlane.f32.xlu0 %v3172_v36  ;;  %v3099_v47 = vmul.f32 %v6683_v41, %v8523_v24 }
 0x2a7   :  { %v6685_v17 = vpop.eup %6684  ;;  %v2727_v40 = vpop.f32.mrf.mxu0 }
 0x2a8   :  { %6698 = vtanh.f32 %v2915_v54  ;;  %v2919_v35 = vadd.f32 %v2918_v62, %v2726_v44  ;;  %v2728_v1 = vadd.f32 %v2727_v40, %v8425_v10  ;;  %v2920_v16 = vpop.f32.mrf.mxu1  ;;  %v3175_v39 = vadd.f32 %v3099_v47, %v3098_v42 }
 0x2a9   :  { %v6687_v27 = vpop.eup %6686  ;;  %v2729_v49 = vpop.f32.mrf.mxu0  ;;  %v3100_v29 = vmul.f32 %v6685_v17, %v8519_v25 }
 0x2aa   :  { %6700 = vtanh.f32 %v2919_v35  ;;  %v2921_v14 = vadd.f32 %v2920_v16, %v2728_v1  ;;  %v2730_v7 = vadd.f32 %v2729_v49, %v8428_v52  ;;  %v2922_v9 = vpop.f32.mrf.mxu1  ;;  %3176 = vadd.xlane.f32.xlu1 %v3175_v39  ;;  %v3101_v26 = vmul.f32 %v6687_v27, %v8523_v24  ;;  %v9695_v27 = vld [vmem:[#allocation23_spill] sm:$0xff] }
 0x2ab   :  { %v6689_v8 = vpop.eup %6688  ;;  %v2731_v18 = vpop.f32.mrf.mxu0 }
 0x2ac   :  { %6702 = vtanh.f32 %v2921_v14  ;;  %v2923_v19 = vadd.f32 %v2922_v9, %v2730_v7  ;;  %v2732_v10 = vadd.f32 %v2731_v18, %v8431_v6  ;;  %v2924_v38 = vpop.f32.mrf.mxu1  ;;  %v3178_v53 = vadd.f32 %v3101_v26, %v3100_v29  ;;  %v9696_v26 = vld [vmem:[#allocation22_spill] sm:$0xff] }
 0x2ad   :  { %v6691_v57 = vpop.eup %6690  ;;  %v2735_v31 = vpop.f32.mrf.mxu0  ;;  %v3102_v13 = vmul.f32 %v6689_v8, %v8519_v25 }
 0x2ae   :  { %6704 = vtanh.f32 %v2923_v19  ;;  %v2925_v48 = vadd.f32 %v2924_v38, %v2732_v10  ;;  %v2736_v52 = vadd.f32 %v2735_v31, %v8434_v28  ;;  %v2928_v20 = vpop.f32.mrf.mxu1  ;;  %3179 = vadd.xlane.f32.xlu0 %v3178_v53  ;;  %v3103_v63 = vmul.f32 %v6691_v57, %v8523_v24  ;;  %v9697_v57 = vld [vmem:[#allocation25_spill] sm:$0xff] }
 0x2af   :  { %v6693_v46 = vpop.eup %6692  ;;  %v2737_v33 = vpop.f32.mrf.mxu0 }
 0x2b0   :  { %6706 = vtanh.f32 %v2925_v48  ;;  %v2929_v5 = vadd.f32 %v2928_v20, %v2736_v52  ;;  %v2738_v6 = vadd.f32 %v2737_v33, %v8437_v12  ;;  %v2930_v4 = vpop.f32.mrf.mxu1  ;;  %v3181_v21 = vadd.f32 %v3103_v63, %v3102_v13 }
 0x2b1   :  { %v6695_v0 = vpop.eup %6694  ;;  %v2739_v15 = vpop.f32.mrf.mxu0  ;;  %v3104_v43 = vmul.f32 %v6693_v46, %v8519_v25  ;;  %v9698_v46 = vld [vmem:[#allocation27_spill] sm:$0xff] }
 0x2b2   :  { %6708 = vtanh.f32 %v2929_v5  ;;  %v2931_v32 = vadd.f32 %v2930_v4, %v2738_v6  ;;  %v2740_v28 = vadd.f32 %v2739_v15, %v8440_v56  ;;  %v2932_v22 = vpop.f32.mrf.mxu1  ;;  %3182 = vadd.xlane.f32.xlu1 %v3181_v21  ;;  %v3105_v2 = vmul.f32 %v6695_v0, %v8523_v24 }
 0x2b3   :  { %v6697_v60 = vpop.eup %6696  ;;  %v2741_v51 = vpop.f32.mrf.mxu0 }
 0x2b4   :  { %6710 = vtanh.f32 %v2931_v32  ;;  %v2933_v34 = vadd.f32 %v2932_v22, %v2740_v28  ;;  %v2742_v12 = vadd.f32 %v2741_v51, %v8443_v55  ;;  %v2934_v3 = vpop.f32.mrf.mxu1  ;;  %v3184_v59 = vadd.f32 %v3105_v2, %v3104_v43  ;;  %v9699_v43 = vld [vmem:[#allocation26_spill] sm:$0xff] }
 0x2b5   :  { %v6699_v11 = vpop.eup %6698  ;;  %v2745_v36 = vpop.f32.mrf.mxu0  ;;  %v3106_v41 = vmul.f32 %v6697_v60, %v8519_v25 }
 0x2b6   :  { %6712 = vtanh.f32 %v2933_v34  ;;  %v2935_v37 = vadd.f32 %v2934_v3, %v2742_v12  ;;  %v2746_v56 = vadd.f32 %v2745_v36, %v8446_v50  ;;  %v2938_v42 = vpop.f32.mrf.mxu1  ;;  %3185 = vadd.xlane.f32.xlu0 %v3184_v59  ;;  %v3107_v54 = vmul.f32 %v6699_v11, %v8523_v24  ;;  %v9700_v34 = vld [vmem:[#allocation18_spill] sm:$0xff] }
 0x2b7   :  { %v6701_v44 = vpop.eup %6700  ;;  %v2747_v62 = vpop.f32.mrf.mxu0 }
 0x2b8   :  { %6714 = vtanh.f32 %v2935_v37  ;;  %v2939_v47 = vadd.f32 %v2938_v42, %v2746_v56  ;;  %v2748_v55 = vadd.f32 %v2747_v62, %v8449_v58  ;;  %v2940_v17 = vpop.f32.mrf.mxu1  ;;  %v3187_v40 = vadd.f32 %v3107_v54, %v3106_v41  ;;  %v9701_v56 = vld [vmem:[#allocation24_spill] sm:$0xff] }
 0x2b9   :  { %v6703_v35 = vpop.eup %6702  ;;  %v2749_v1 = vpop.f32.mrf.mxu0  ;;  %v3108_v16 = vmul.f32 %v6701_v44, %v8519_v25 }
 0x2ba   :  { %6716 = vtanh.f32 %v2939_v47  ;;  %v2941_v39 = vadd.f32 %v2940_v17, %v2748_v55  ;;  %v2750_v50 = vadd.f32 %v2749_v1, %v9695_v27  ;;  %v2942_v49 = vpop.f32.mrf.mxu1  ;;  %3188 = vadd.xlane.f32.xlu1 %v3187_v40  ;;  %v3109_v29 = vmul.f32 %v6703_v35, %v8523_v24  ;;  %v9702_v17 = vld [vmem:[#allocation28_spill] sm:$0xff] }
 0x2bb   :  { %v6705_v14 = vpop.eup %6704  ;;  %v2751_v7 = vpop.f32.mrf.mxu0 }
 0x2bc   :  { %6718 = vtanh.f32 %v2941_v39  ;;  %v2943_v9 = vadd.f32 %v2942_v49, %v2750_v50  ;;  %v2752_v58 = vadd.f32 %v2751_v7, %v9696_v26  ;;  %v2944_v8 = vpop.f32.mrf.mxu1  ;;  %v3190_v18 = vadd.f32 %v3109_v29, %v3108_v16  ;;  %v9703_v49 = vld [vmem:[#allocation19_spill] sm:$0xff] }
 0x2bd   :  { %v6707_v19 = vpop.eup %6706  ;;  %v2755_v10 = vpop.f32.mrf.mxu0  ;;  %v3110_v38 = vmul.f32 %v6705_v14, %v8519_v25 }
 0x2be   :  { %6720 = vtanh.f32 %v2943_v9  ;;  %v2945_v53 = vadd.f32 %v2944_v8, %v2752_v58  ;;  %v2756_v31 = vadd.f32 %v2755_v10, %v9697_v57  ;;  %v2948_v13 = vpop.f32.mrf.mxu1  ;;  %3191 = vadd.xlane.f32.xlu0 %v3190_v18  ;;  %v3111_v48 = vmul.f32 %v6707_v19, %v8523_v24  ;;  %v9704_v8 = vld [vmem:[#allocation29_spill] sm:$0xff] }
 0x2bf   :  { %v6709_v52 = vpop.eup %6708  ;;  %v2757_v20 = vpop.f32.mrf.mxu0 }
 0x2c0   :  { %6722 = vtanh.f32 %v2945_v53  ;;  %v2949_v63 = vadd.f32 %v2948_v13, %v2756_v31  ;;  %v2758_v33 = vadd.f32 %v2757_v20, %v9698_v46  ;;  %v2950_v5 = vpop.f32.mrf.mxu1  ;;  %v3193_v6 = vadd.f32 %v3111_v48, %v3110_v38  ;;  %v9705_v13 = vld [vmem:[#allocation30_spill] sm:$0xff] }
 0x2c1   :  { %v6711_v4 = vpop.eup %6710  ;;  %v2759_v21 = vpop.f32.mrf.mxu0  ;;  %v3112_v0 = vmul.f32 %v6709_v52, %v8519_v25 }
 0x2c2   :  { %6724 = vtanh.f32 %v2949_v63  ;;  %v2951_v15 = vadd.f32 %v2950_v5, %v2758_v33  ;;  %v2760_v32 = vadd.f32 %v2759_v21, %v9699_v43  ;;  %v2952_v28 = vpop.f32.mrf.mxu1  ;;  %3194 = vadd.xlane.f32.xlu1 %v3193_v6  ;;  %v3113_v22 = vmul.f32 %v6711_v4, %v8523_v24  ;;  %v9706_v5 = vld [vmem:[#allocation11_spill] sm:$0xff] }
 0x2c3   :  { %v6713_v2 = vpop.eup %6712  ;;  %v2761_v60 = vpop.f32.mrf.mxu0 }
 0x2c4   :  { %6726 = vtanh.f32 %v2951_v15  ;;  %v2953_v51 = vadd.f32 %v2952_v28, %v2760_v32  ;;  %v2762_v12 = vadd.f32 %v2761_v60, %v9700_v34  ;;  %v2954_v3 = vpop.f32.mrf.mxu1  ;;  %v3196_v59 = vadd.f32 %v3113_v22, %v3112_v0  ;;  %v9707_v28 = vld [vmem:[#allocation20_spill] sm:$0xff] }
 0x2c5   :  { %v6715_v11 = vpop.eup %6714  ;;  %v2765_v36 = vpop.f32.mrf.mxu0  ;;  %v3114_v41 = vmul.f32 %v6713_v2, %v8519_v25 }
 0x2c6   :  { %6728 = vtanh.f32 %v2953_v51  ;;  %v2955_v37 = vadd.f32 %v2954_v3, %v2762_v12  ;;  %v2766_v42 = vadd.f32 %v2765_v36, %v9701_v56  ;;  %v2958_v54 = vpop.f32.mrf.mxu1  ;;  %3197 = vadd.xlane.f32.xlu0 %v3196_v59  ;;  %v3115_v44 = vmul.f32 %v6715_v11, %v8523_v24  ;;  %v9708_v3 = vld [vmem:[#allocation31_spill] sm:$0xff] }
 0x2c7   :  { %v6717_v62 = vpop.eup %6716  ;;  %v2767_v47 = vpop.f32.mrf.mxu0 }
 0x2c8   :  { %6730 = vtanh.f32 %v2955_v37  ;;  %v2959_v55 = vadd.f32 %v2958_v54, %v2766_v42  ;;  %v2768_v40 = vadd.f32 %v2767_v47, %v9702_v17  ;;  %v2960_v35 = vpop.f32.mrf.mxu1  ;;  %v3199_v1 = vadd.f32 %v3115_v44, %v3114_v41  ;;  %v9709_v54 = vld [vmem:[#allocation32_spill] sm:$0xff] }
 0x2c9   :  { %v6719_v16 = vpop.eup %6718  ;;  %v2769_v39 = vpop.f32.mrf.mxu0  ;;  %v3116_v27 = vmul.f32 %v6717_v62, %v8519_v25 }
 0x2ca   :  { %6732 = vtanh.f32 %v2959_v55  ;;  %v2961_v50 = vadd.f32 %v2960_v35, %v2768_v40  ;;  %v2770_v29 = vadd.f32 %v2769_v39, %v9703_v49  ;;  %v2962_v14 = vpop.f32.mrf.mxu1  ;;  %3200 = vadd.xlane.f32.xlu1 %v3199_v1  ;;  %v3117_v7 = vmul.f32 %v6719_v16, %v8523_v24  ;;  %v9710_v35 = vld [vmem:[#allocation33_spill] sm:$0xff] }
 0x2cb   :  { %v6721_v9 = vpop.eup %6720  ;;  %v2771_v26 = vpop.f32.mrf.mxu0 }
 0x2cc   :  { %6734 = vtanh.f32 %v2961_v50  ;;  %v2963_v58 = vadd.f32 %v2962_v14, %v2770_v29  ;;  %v2772_v18 = vadd.f32 %v2771_v26, %v9704_v8  ;;  %v2964_v19 = vpop.f32.mrf.mxu1  ;;  %v3202_v10 = vadd.f32 %v3117_v7, %v3116_v27 }
 0x2cd   :  { %v6723_v38 = vpop.eup %6722  ;;  %v2775_v53 = vpop.f32.mrf.mxu0  ;;  %v3118_v57 = vmul.f32 %v6721_v9, %v8519_v25 }
 0x2ce   :  { %6736 = vtanh.f32 %v2963_v58  ;;  %v2965_v31 = vadd.f32 %v2964_v19, %v2772_v18  ;;  %v2776_v48 = vadd.f32 %v2775_v53, %v9705_v13  ;;  %v2968_v52 = vpop.f32.mrf.mxu1  ;;  %3203 = vadd.xlane.f32.xlu0 %v3202_v10  ;;  %v3119_v20 = vmul.f32 %v6723_v38, %v8523_v24 }
 0x2cf   :  { %v6725_v63 = vpop.eup %6724  ;;  %v2777_v46 = vpop.f32.mrf.mxu0 }
 0x2d0   :  { %6738 = vtanh.f32 %v2965_v31  ;;  %v2969_v33 = vadd.f32 %v2968_v52, %v2776_v48  ;;  %v2778_v6 = vadd.f32 %v2777_v46, %v9706_v5  ;;  %v2970_v4 = vpop.f32.mrf.mxu1  ;;  %v3205_v21 = vadd.f32 %v3119_v20, %v3118_v57  ;;  %v3232_v52 = vld [vmem:[#allocation2] sm:$0x1] }
 0x2d1   :  { %v6727_v0 = vpop.eup %6726  ;;  %v2779_v15 = vpop.f32.mrf.mxu0  ;;  %v3120_v43 = vmul.f32 %v6725_v63, %v8519_v25 }
 0x2d2   :  { %6740 = vtanh.f32 %v2969_v33  ;;  %v2971_v32 = vadd.f32 %v2970_v4, %v2778_v6  ;;  %v2780_v22 = vadd.f32 %v2779_v15, %v9707_v28  ;;  %v2972_v2 = vpop.f32.mrf.mxu1  ;;  %3206 = vadd.xlane.f32.xlu1 %v3205_v21  ;;  %v3121_v60 = vmul.f32 %v6727_v0, %v8523_v24 }
 0x2d3   :  { %v6729_v51 = vpop.eup %6728  ;;  %v2781_v34 = vpop.f32.mrf.mxu0 }
 0x2d4   :  { %6742 = vtanh.f32 %v2971_v32  ;;  %v2973_v12 = vadd.f32 %v2972_v2, %v2780_v22  ;;  %v2782_v59 = vadd.f32 %v2781_v34, %v9708_v3  ;;  %v2974_v11 = vpop.f32.mrf.mxu1  ;;  %v3208_v36 = vadd.f32 %v3121_v60, %v3120_v43 }
 0x2d5   :  { %v6731_v41 = vpop.eup %6730  ;;  %v2785_v37 = vpop.f32.mrf.mxu0  ;;  %v3122_v56 = vmul.f32 %v6729_v51, %v8519_v25 }
 0x2d6   :  { %6744 = vtanh.f32 %v2973_v12  ;;  %v2975_v42 = vadd.f32 %v2974_v11, %v2782_v59  ;;  %v2786_v44 = vadd.f32 %v2785_v37, %v9709_v54  ;;  %v2978_v62 = vpop.f32.mrf.mxu1  ;;  %3209 = vadd.xlane.f32.xlu1 %v3208_v36  ;;  %v3123_v47 = vmul.f32 %v6731_v41, %v8523_v24 }
 0x2d7   :  { %v6733_v55 = vpop.eup %6732  ;;  %v2787_v17 = vpop.f32.mrf.mxu0 }
 0x2d8   :  { %6746 = vtanh.f32 %v2975_v42  ;;  %v2979_v40 = vadd.f32 %v2978_v62, %v2786_v44  ;;  %v2788_v1 = vadd.f32 %v2787_v17, %v9710_v35  ;;  %v2980_v16 = vpop.f32.mrf.mxu1  ;;  %v3211_v39 = vadd.f32 %v3123_v47, %v3122_v56 }
 0x2d9   :  { %v6735_v27 = vpop.eup %6734  ;;  %v2789_v50 = vpop.f32.mrf.mxu0  ;;  %v3124_v49 = vmul.f32 %v6733_v55, %v8519_v25 }
 0x2da   :  { %6748 = vtanh.f32 %v2979_v40  ;;  %v2981_v29 = vadd.f32 %v2980_v16, %v2788_v1  ;;  %v2790_v14 = vadd.f32 %v2789_v50, %v8500_v23  ;;  %v2982_v7 = vpop.f32.mrf.mxu1  ;;  %3212 = vadd.xlane.f32.xlu1 %v3211_v39  ;;  %v3125_v9 = vmul.f32 %v6735_v27, %v8523_v24 }
 0x2db   :  { %v6737_v26 = vpop.eup %6736  ;;  %v2791_v58 = vpop.f32.mrf.mxu0  ;;  %v6805_v39 = vmov 1966171168  }
 0x2dc   :  { %6750 = vtanh.f32 %v2981_v29  ;;  %v2983_v8 = vadd.f32 %v2982_v7, %v2790_v14  ;;  %v2792_v18 = vadd.f32 %v2791_v58, %v8503_v45  ;;  %v3214_v19 = vadd.f32 %v3125_v9, %v3124_v49  ;;  %v2984_v38 = vpop.f32.mrf.mxu1 }
 0x2dd   :  { %v6739_v10 = vpop.eup %6738  ;;  %v3126_v57 = vmul.f32 %v6737_v26, %v8519_v25  ;;  %v4335_v27 = vunpack.c.l.s4 %v6805_v39  ;;  %v9711_v26 = vld [vmem:[#allocation9_spill] sm:$0xff] }
 0x2de   :  { %6752 = vtanh.f32 %v2983_v8  ;;  %v2985_v53 = vadd.f32 %v2984_v38, %v2792_v18  ;;  %3215 = vadd.xlane.f32.xlu1 %v3214_v19  ;;  %v3127_v23 = vmul.f32 %v6739_v10, %v8523_v24 }
 0x2df   :  { %v6741_v31 = vpop.eup %6740  ;;  %v4336_v29 = vunpack.c.0.s8 %v4335_v27 }
 0x2e0   :  { %6754 = vtanh.f32 %v2985_v53  ;;  %v3217_v13 = vadd.f32 %v3127_v23, %v3126_v57  ;;  %v3128_v20 = vmul.f32 %v6741_v31, %v8519_v25 }
 0x2e1   :  { %v6743_v48 = vpop.eup %6742  ;;  %v8648_v58 = vsub.s32 %v4336_v29, %v9711_v26 }
 0x2e2   :  { %3218 = vadd.xlane.f32.xlu1 %v3217_v13  ;;  %v3129_v45 = vmul.f32 %v6743_v48, %v8523_v24 }
 0x2e3   :  { %v6745_v63 = vpop.eup %6744 }
 0x2e4   :  { %3235 = vperm.xlu0 %6434, %v3232_v52   ;;  %v3220_v46 = vadd.f32 %v3129_v45, %v3128_v20  ;;  %v3130_v5 = vmul.f32 %v6745_v63, %v8519_v25 }
 0x2e5   :  { %v6747_v33 = vpop.eup %6746 }
 0x2e6   :  { %3221 = vadd.xlane.f32.xlu1 %v3220_v46  ;;  %v3131_v6 = vmul.f32 %v6747_v33, %v8523_v24 }
 0x2e7   :  { %v6749_v4 = vpop.eup %6748 }
 0x2e8   :  { %v3223_v21 = vadd.f32 %v3131_v6, %v3130_v5  ;;  %v3132_v15 = vmul.f32 %v6749_v4, %v8519_v25 }
 0x2e9   :  { %v6751_v0 = vpop.eup %6750 }
 0x2ea   :  { %3224 = vadd.xlane.f32.xlu1 %v3223_v21  ;;  %v3133_v43 = vmul.f32 %v6751_v0, %v8523_v24 }
 0x2eb   :  { %v6753_v32 = vpop.eup %6752 }
 0x2ec   :  { %v3226_v28 = vadd.f32 %v3133_v43, %v3132_v15  ;;  %v3134_v2 = vmul.f32 %v6753_v32, %v8519_v25 }
 0x2ed   :  { %v6755_v22 = vpop.eup %6754 }
 0x2ee   :  { %3227 = vadd.xlane.f32.xlu1 %v3226_v28  ;;  %v3135_v60 = vmul.f32 %v6755_v22, %v8523_v24 }
 0x2f0   :  { %v3229_v51 = vadd.f32 %v3135_v60, %v3134_v2 }
 0x2f2   :  { %3230 = vadd.xlane.f32.xlu1 %v3229_v51 }
 0x2ff   :  { %v3138_v34 = vpop.xlane.xlu0 %3137 }
 0x303   :  { %v3141_v3 = vpop.xlane.xlu0 %3140 }
 0x307   :  { %v3144_v12 = vpop.xlane.xlu1 %3143 }
 0x30b   :  { %v3147_v59 = vpop.xlane.xlu1 %3146 }
 0x30f   :  { %v3150_v11 = vpop.xlane.xlu0 %3149 }
 0x313   :  { %v3153_v36 = vpop.xlane.xlu1 %3152 }
 0x317   :  { %v3156_v41 = vpop.xlane.xlu0 %3155 }
 0x31b   :  { %v3159_v37 = vpop.xlane.xlu1 %3158 }
 0x31f   :  { %v3162_v56 = vpop.xlane.xlu0 %3161 }
 0x323   :  { %v3165_v42 = vpop.xlane.xlu1 %3164 }
 0x327   :  { %v3168_v54 = vpop.xlane.xlu0 %3167 }
 0x32b   :  { %v3171_v44 = vpop.xlane.xlu1 %3170 }
 0x32f   :  { %v3174_v62 = vpop.xlane.xlu0 %3173 }
 0x333   :  { %v3177_v47 = vpop.xlane.xlu1 %3176 }
 0x337   :  { %v3180_v55 = vpop.xlane.xlu0 %3179 }
 0x33b   :  { %v3183_v25 = vpop.xlane.xlu1 %3182 }
 0x33f   :  { %v3186_v17 = vpop.xlane.xlu0 %3185 }
 0x343   :  { %v3189_v24 = vpop.xlane.xlu1 %3188 }
 0x347   :  { %v3192_v40 = vpop.xlane.xlu0 %3191 }
 0x34b   :  { %v3195_v35 = vpop.xlane.xlu1 %3194 }
 0x34f   :  { %v3198_v1 = vpop.xlane.xlu0 %3197 }
 0x353   :  { %v3201_v16 = vpop.xlane.xlu1 %3200 }
 0x357   :  { %v3204_v50 = vpop.xlane.xlu0 %3203 }
 0x35b   :  { %v3207_v49 = vpop.xlane.xlu1 %3206 }
 0x35f   :  { %v3210_v14 = vpop.xlane.xlu1 %3209  ;;  %v3236_v7 = vpop.permute.xlu0 %3235 }
 0x360   :  { %v8645_v9 = vrot.slane %v3236_v7, %v9693_v61 }
 0x362   :  { %v8651_v8 = vadd.f32 %v8645_v9, %v3138_v34  ;;  %v3243_v18 = vadd.f32 %v8645_v9, %v3141_v3  ;;  %v8655_v19 = vadd.f32 %v8645_v9, %v3144_v12  ;;  %v8658_v10 = vadd.f32 %v8645_v9, %v3147_v59  ;;  %v9712_v34 = vld [vmem:[#allocation10_spill] sm:$0xff]  ;;  %v9713_v59 = vld [vmem:[#allocation12_spill] sm:$0xff] }
 0x363   :  { %v8661_v38 = vadd.f32 %v8645_v9, %v3150_v11  ;;  %v8664_v53 = vadd.f32 %v8645_v9, %v3153_v36  ;;  %v8667_v57 = vadd.f32 %v8645_v9, %v3156_v41  ;;  %v8670_v23 = vadd.f32 %v8645_v9, %v3159_v37  ;;  %v3213_v31 = vpop.xlane.xlu1 %3212  ;;  %v9714_v36 = vld [vmem:[#allocation14_spill] sm:$0xff]  ;;  %v9715_v37 = vld [vmem:[#allocation17_spill] sm:$0xff] }
 0x364   :  { %v8673_v13 = vadd.f32 %v8645_v9, %v3162_v56  ;;  %v8676_v48 = vadd.f32 %v8645_v9, %v3165_v42  ;;  %v8679_v52 = vadd.f32 %v8645_v9, %v3168_v54  ;;  %v8682_v20 = vadd.f32 %v8645_v9, %v3171_v44  ;;  %v9716_v42 = vld [vmem:[#allocation21_spill] sm:$0xff]  ;;  %v9717_v44 = vld [vmem:[#allocation16_spill] sm:$0xff] }
 0x365   :  { %v8685_v45 = vadd.f32 %v8645_v9, %v3174_v62  ;;  %v8688_v63 = vadd.f32 %v8645_v9, %v3177_v47  ;;  %v8691_v46 = vadd.f32 %v8645_v9, %v3180_v55  ;;  %v8694_v33 = vadd.f32 %v8645_v9, %v3183_v25 }
 0x366   :  { %v8697_v5 = vadd.f32 %v8645_v9, %v3186_v17  ;;  %v8700_v6 = vadd.f32 %v8645_v9, %v3189_v24  ;;  %v8703_v4 = vadd.f32 %v8645_v9, %v3192_v40  ;;  %v8706_v21 = vadd.f32 %v8645_v9, %v3195_v35 }
 0x367   :  { %v8709_v0 = vadd.f32 %v8645_v9, %v3198_v1  ;;  %v8712_v15 = vadd.f32 %v8645_v9, %v3201_v16  ;;  %v8715_v43 = vadd.f32 %v8645_v9, %v3204_v50  ;;  %v8718_v32 = vadd.f32 %v8645_v9, %v3207_v49  ;;  %v3216_v28 = vpop.xlane.xlu1 %3215 }
 0x368   :  { %v8721_v22 = vadd.f32 %v8645_v9, %v3210_v14  ;;  %v8724_v2 = vadd.f32 %v8645_v9, %v3213_v31  ;;  %v8727_v60 = vadd.f32 %v8645_v9, %v3216_v28  ;;  %v3341_v51 = vrot.slane %v3243_v18, %v9693_v61 }
 0x369   :  { %v3345_v12 = vrot.slane %v3243_v18, %v9712_v34  ;;  %v3349_v3 = vrot.slane %v3243_v18, %v9694_v30  ;;  %v3353_v11 = vrot.slane %v3243_v18, %v9713_v59  ;;  %v3357_v41 = vrot.slane %v3243_v18, %v9714_v36 }
 0x36a   :  { %v3361_v56 = vrot.slane %v3243_v18, %v9715_v37  ;;  %v3365_v54 = vrot.slane %v3243_v18, %v9716_v42  ;;  %v3369_v62 = vrot.slane %v3243_v18, %v9717_v44  ;;  %v3309_v47 = vrot.slane %v8651_v8, %v9693_v61 }
 0x36b   :  { %v3219_v55 = vpop.xlane.xlu1 %3218  ;;  %v4379_v25 = vcombine.low %v3341_v51, %v3345_v12  ;;  %v4380_v17 = vcombine.low %v3349_v3, %v3353_v11  ;;  %v3313_v24 = vrot.slane %v8651_v8, %v9712_v34  ;;  %v3317_v40 = vrot.slane %v8651_v8, %v9694_v30 }
 0x36c   :  { %v8744_v35 = vadd.f32 %v8645_v9, %v3219_v55  ;;  %v4381_v1 = vcombine.low %v3357_v41, %v3361_v56  ;;  %v4382_v16 = vcombine.low %v3365_v54, %v3369_v62  ;;  %v3321_v39 = vrot.slane %v8651_v8, %v9713_v59 }
 0x36d   :  { %v4389_v27 = vrot.slane %v4379_v25, %v8648_v58  ;;  %v4396_v50 = vrot.slane %v4380_v17, %v8648_v58  ;;  %v3325_v49 = vrot.slane %v8651_v8, %v9714_v36  ;;  %v3329_v29 = vrot.slane %v8651_v8, %v9715_v37 }
 0x36e   :  { %v4403_v14 = vrot.slane %v4381_v1, %v8648_v58  ;;  %v4410_v7 = vrot.slane %v4382_v16, %v8648_v58  ;;  %v3333_v18 = vrot.slane %v8651_v8, %v9716_v42  ;;  %v3337_v31 = vrot.slane %v8651_v8, %v9717_v44 }
 0x36f   :  { %v3222_v28 = vpop.xlane.xlu1 %3221  ;;  %v4411_v51 = vcombine.low %v4389_v27, %v4396_v50  ;;  %v4330_v12 = vcombine.low %v3309_v47, %v3313_v24  ;;  %v4331_v3 = vcombine.low %v3317_v40, %v3321_v39  ;;  %v4332_v11 = vcombine.low %v3325_v49, %v3329_v29 }
 0x370   :  { %v8761_v41 = vadd.f32 %v8645_v9, %v3222_v28  ;;  %v4412_v56 = vcombine.low %v4403_v14, %v4410_v7  ;;  %v4333_v54 = vcombine.low %v3333_v18, %v3337_v31  ;;  %v3373_v62 = vrot.slane %v8655_v19, %v9693_v61 }
 0x371   :  { %v4419_v55 = vrot.slane %v4411_v51, %v8648_v58  ;;  %v4340_v25 = vrot.slane %v4330_v12, %v8648_v58  ;;  %v4347_v17 = vrot.slane %v4331_v3, %v8648_v58  ;;  %v4354_v8 = vrot.slane %v4332_v11, %v8648_v58 }
 0x372   :  { %v4426_v47 = vrot.slane %v4412_v56, %v8648_v58  ;;  %v4361_v24 = vrot.slane %v4333_v54, %v8648_v58  ;;  %v3377_v40 = vrot.slane %v8655_v19, %v9712_v34  ;;  %v3381_v1 = vrot.slane %v8655_v19, %v9694_v30 }
 0x373   :  { %v4362_v16 = vcombine.low %v4340_v25, %v4347_v17  ;;  %v3225_v39 = vpop.xlane.xlu1 %3224  ;;  %v3385_v27 = vrot.slane %v8655_v19, %v9713_v59  ;;  %v3389_v50 = vrot.slane %v8655_v19, %v9714_v36  ;;  %v3393_v49 = vrot.slane %v8655_v19, %v9715_v37 }
 0x374   :  { %v4427_v29 = vcombine.low %v4419_v55, %v4426_v47  ;;  %v4363_v14 = vcombine.low %v4354_v8, %v4361_v24  ;;  %v8782_v7 = vadd.f32 %v8645_v9, %v3225_v39  ;;  %v3397_v18 = vrot.slane %v8655_v19, %v9716_v42 }
 0x375   :  { %v4370_v31 = vrot.slane %v4362_v16, %v8648_v58  ;;  %v3401_v28 = vrot.slane %v8655_v19, %v9717_v44  ;;  %v4428_v51 = vcombine.low %v3373_v62, %v3377_v40  ;;  %v4429_v12 = vcombine.low %v3381_v1, %v3385_v27 }
 0x376   :  { %5902 = vperm.xlu0 %6434, %v4427_v29   ;;  %v4377_v3 = vrot.slane %v4363_v14, %v8648_v58  ;;  %v4430_v11 = vcombine.low %v3389_v50, %v3393_v49  ;;  %v3821_v56 = vrot.slane %v8697_v5, %v9693_v61  ;;  %v3825_v54 = vrot.slane %v8697_v5, %v9712_v34 }
 0x377   :  { %v4431_v55 = vcombine.low %v3397_v18, %v3401_v28  ;;  %v4438_v25 = vrot.slane %v4428_v51, %v8648_v58  ;;  %v4445_v17 = vrot.slane %v4429_v12, %v8648_v58  ;;  %v3829_v19 = vrot.slane %v8697_v5, %v9694_v30  ;;  %v3228_v62 = vpop.xlane.xlu1 %3227 }
 0x378   :  { %v4378_v8 = vcombine.low %v4370_v31, %v4377_v3  ;;  %v4452_v47 = vrot.slane %v4430_v11, %v8648_v58  ;;  %v3833_v24 = vrot.slane %v8697_v5, %v9713_v59  ;;  %v3837_v40 = vrot.slane %v8697_v5, %v9714_v36 }
 0x379   :  { %v4459_v1 = vrot.slane %v4431_v55, %v8648_v58  ;;  %v4460_v16 = vcombine.low %v4438_v25, %v4445_v17  ;;  %v3841_v39 = vrot.slane %v8697_v5, %v9715_v37  ;;  %v3845_v27 = vrot.slane %v8697_v5, %v9716_v42 }
 0x37a   :  { %5899 = vperm.xlu1 %6435, %v4378_v8   ;;  %v3849_v50 = vrot.slane %v8697_v5, %v9717_v44  ;;  %v5114_v49 = vcombine.low %v3821_v56, %v3825_v54  ;;  %v5115_v29 = vcombine.low %v3829_v19, %v3833_v24  ;;  %v8811_v14 = vadd.f32 %v8645_v9, %v3228_v62 }
 0x37b   :  { %v4461_v18 = vcombine.low %v4452_v47, %v4459_v1  ;;  %v4468_v31 = vrot.slane %v4460_v16, %v8648_v58  ;;  %v5116_v28 = vcombine.low %v3837_v40, %v3841_v39  ;;  %v3405_v51 = vrot.slane %v8658_v10, %v9693_v61 }
 0x37c   :  { %v5117_v12 = vcombine.low %v3845_v27, %v3849_v50  ;;  %v5124_v3 = vrot.slane %v5114_v49, %v8648_v58  ;;  %v5131_v11 = vrot.slane %v5115_v29, %v8648_v58  ;;  %v3409_v5 = vrot.slane %v8658_v10, %v9712_v34 }
 0x37d   :  { %v4475_v56 = vrot.slane %v4461_v18, %v8648_v58  ;;  %v5138_v54 = vrot.slane %v5116_v28, %v8648_v58  ;;  %v3413_v55 = vrot.slane %v8658_v10, %v9694_v30  ;;  %v3417_v25 = vrot.slane %v8658_v10, %v9713_v59 }
 0x37e   :  { %v5145_v17 = vrot.slane %v5117_v12, %v8648_v58  ;;  %v5146_v19 = vcombine.low %v5124_v3, %v5131_v11  ;;  %v3421_v62 = vrot.slane %v8658_v10, %v9714_v36  ;;  %v3425_v8 = vrot.slane %v8658_v10, %v9715_v37 }
 0x37f   :  { %v4476_v47 = vcombine.low %v4468_v31, %v4475_v56  ;;  %v3429_v24 = vrot.slane %v8658_v10, %v9716_v42  ;;  %v3433_v40 = vrot.slane %v8658_v10, %v9717_v44  ;;  %v4477_v1 = vcombine.low %v3405_v51, %v3409_v5 }
 0x380   :  { %v5147_v16 = vcombine.low %v5138_v54, %v5145_v17  ;;  %v5154_v39 = vrot.slane %v5146_v19, %v8648_v58  ;;  %v4478_v27 = vcombine.low %v3413_v55, %v3417_v25  ;;  %v4479_v50 = vcombine.low %v3421_v62, %v3425_v8  ;;  %v3231_v54 = vpop.xlane.xlu1 %3230 }
 0x381   :  { %5905 = vperm.xlu0 %6434, %v4476_v47   ;;  %v4480_v49 = vcombine.low %v3429_v24, %v3433_v40  ;;  %v4487_v29 = vrot.slane %v4477_v1, %v8648_v58  ;;  %v3885_v18 = vrot.slane %v8703_v4, %v9693_v61  ;;  %v3889_v31 = vrot.slane %v8703_v4, %v9712_v34 }
 0x382   :  { %v5161_v28 = vrot.slane %v5147_v16, %v8648_v58  ;;  %v4494_v10 = vrot.slane %v4478_v27, %v8648_v58  ;;  %v4501_v51 = vrot.slane %v4479_v50, %v8648_v58  ;;  %v3893_v12 = vrot.slane %v8703_v4, %v9694_v30 }
 0x383   :  { %v4508_v3 = vrot.slane %v4480_v49, %v8648_v58  ;;  %v3897_v11 = vrot.slane %v8703_v4, %v9713_v59  ;;  %v3901_v5 = vrot.slane %v8703_v4, %v9714_v36  ;;  %v3905_v56 = vrot.slane %v8703_v4, %v9715_v37 }
 0x384   :  { %v5162_v55 = vcombine.low %v5154_v39, %v5161_v28  ;;  %v4509_v25 = vcombine.low %v4487_v29, %v4494_v10  ;;  %v3909_v17 = vrot.slane %v8703_v4, %v9716_v42  ;;  %v3913_v19 = vrot.slane %v8703_v4, %v9717_v44 }
 0x385   :  { %v4510_v62 = vcombine.low %v4501_v51, %v4508_v3  ;;  %v5212_v8 = vcombine.low %v3885_v18, %v3889_v31  ;;  %v5213_v47 = vcombine.low %v3893_v12, %v3897_v11  ;;  %v5214_v24 = vcombine.low %v3901_v5, %v3905_v56 }
 0x386   :  { %5947 = vperm.xlu1 %6435, %v5162_v55   ;;  %v4517_v40 = vrot.slane %v4509_v25, %v8648_v58  ;;  %v5215_v1 = vcombine.low %v3909_v17, %v3913_v19  ;;  %v8859_v16 = vadd.f32 %v8645_v9, %v3231_v54  ;;  %v3437_v39 = vrot.slane %v8661_v38, %v9693_v61 }
 0x387   :  { %v4524_v27 = vrot.slane %v4510_v62, %v8648_v58  ;;  %v5222_v50 = vrot.slane %v5212_v8, %v8648_v58  ;;  %v5229_v4 = vrot.slane %v5213_v47, %v8648_v58  ;;  %v5236_v49 = vrot.slane %v5214_v24, %v8648_v58 }
 0x388   :  { %v5243_v29 = vrot.slane %v5215_v1, %v8648_v58  ;;  %v3441_v18 = vrot.slane %v8661_v38, %v9712_v34  ;;  %v3445_v9 = vrot.slane %v8661_v38, %v9694_v30  ;;  %v3449_v31 = vrot.slane %v8661_v38, %v9713_v59 }
 0x389   :  { %v4525_v28 = vcombine.low %v4517_v40, %v4524_v27  ;;  %v5244_v10 = vcombine.low %v5222_v50, %v5229_v4  ;;  %v3453_v51 = vrot.slane %v8661_v38, %v9714_v36  ;;  %v3457_v12 = vrot.slane %v8661_v38, %v9715_v37 }
 0x38a   :  { %v5245_v3 = vcombine.low %v5236_v49, %v5243_v29  ;;  %v3461_v11 = vrot.slane %v8661_v38, %v9716_v42  ;;  %v3465_v5 = vrot.slane %v8661_v38, %v9717_v44  ;;  %v4526_v56 = vcombine.low %v3437_v39, %v3441_v18 }
 0x38b   :  { %5908 = vperm.xlu0 %6434, %v4525_v28   ;;  %v5252_v54 = vrot.slane %v5244_v10, %v8648_v58  ;;  %v4527_v55 = vcombine.low %v3445_v9, %v3449_v31  ;;  %v4528_v25 = vcombine.low %v3453_v51, %v3457_v12  ;;  %v3917_v17 = vrot.slane %v8706_v21, %v9693_v61 }
 0x38c   :  { %v5259_v19 = vrot.slane %v5245_v3, %v8648_v58  ;;  %v4529_v62 = vcombine.low %v3461_v11, %v3465_v5  ;;  %v4536_v8 = vrot.slane %v4526_v56, %v8648_v58  ;;  %v3921_v47 = vrot.slane %v8706_v21, %v9712_v34 }
 0x38d   :  { %v4543_v24 = vrot.slane %v4527_v55, %v8648_v58  ;;  %v4550_v38 = vrot.slane %v4528_v25, %v8648_v58  ;;  %v3925_v40 = vrot.slane %v8706_v21, %v9694_v30  ;;  %v3929_v1 = vrot.slane %v8706_v21, %v9713_v59 }
 0x38e   :  { %v5260_v39 = vcombine.low %v5252_v54, %v5259_v19  ;;  %v4557_v27 = vrot.slane %v4529_v62, %v8648_v58  ;;  %v3933_v50 = vrot.slane %v8706_v21, %v9714_v36  ;;  %v3937_v4 = vrot.slane %v8706_v21, %v9715_v37 }
 0x38f   :  { %v4558_v49 = vcombine.low %v4536_v8, %v4543_v24  ;;  %v3941_v29 = vrot.slane %v8706_v21, %v9716_v42  ;;  %v3945_v18 = vrot.slane %v8706_v21, %v9717_v44  ;;  %v5261_v9 = vcombine.low %v3917_v17, %v3921_v47 }
 0x390   :  { %5953 = vperm.xlu1 %6435, %v5260_v39   ;;  %v4559_v31 = vcombine.low %v4550_v38, %v4557_v27  ;;  %v5262_v28 = vcombine.low %v3925_v40, %v3929_v1  ;;  %v5263_v10 = vcombine.low %v3933_v50, %v3937_v4  ;;  %v3469_v51 = vrot.slane %v8664_v53, %v9693_v61 }
 0x391   :  { %v4566_v12 = vrot.slane %v4558_v49, %v8648_v58  ;;  %v5264_v3 = vcombine.low %v3941_v29, %v3945_v18  ;;  %v5271_v11 = vrot.slane %v5261_v9, %v8648_v58  ;;  %v3473_v5 = vrot.slane %v8664_v53, %v9712_v34 }
 0x392   :  { %v4573_v56 = vrot.slane %v4559_v31, %v8648_v58  ;;  %v5278_v21 = vrot.slane %v5262_v28, %v8648_v58  ;;  %v5285_v54 = vrot.slane %v5263_v10, %v8648_v58  ;;  %v3477_v55 = vrot.slane %v8664_v53, %v9694_v30 }
 0x393   :  { %v5292_v25 = vrot.slane %v5264_v3, %v8648_v58  ;;  %v3481_v17 = vrot.slane %v8664_v53, %v9713_v59  ;;  %v3485_v19 = vrot.slane %v8664_v53, %v9714_v36  ;;  %v3489_v62 = vrot.slane %v8664_v53, %v9715_v37 }
 0x394   :  { %v4574_v8 = vcombine.low %v4566_v12, %v4573_v56  ;;  %v5293_v47 = vcombine.low %v5271_v11, %v5278_v21  ;;  %v3493_v24 = vrot.slane %v8664_v53, %v9716_v42  ;;  %v3497_v38 = vrot.slane %v8664_v53, %v9717_v44 }
 0x395   :  { %v5294_v40 = vcombine.low %v5285_v54, %v5292_v25  ;;  %v4575_v1 = vcombine.low %v3469_v51, %v3473_v5  ;;  %v4576_v39 = vcombine.low %v3477_v55, %v3481_v17  ;;  %v4577_v27 = vcombine.low %v3485_v19, %v3489_v62 }
 0x396   :  { %5911 = vperm.xlu0 %6434, %v4574_v8   ;;  %v5301_v50 = vrot.slane %v5293_v47, %v8648_v58  ;;  %v4578_v4 = vcombine.low %v3493_v24, %v3497_v38  ;;  %v3949_v49 = vrot.slane %v8709_v0, %v9693_v61  ;;  %v3953_v29 = vrot.slane %v8709_v0, %v9712_v34 }
 0x397   :  { %v5308_v18 = vrot.slane %v5294_v40, %v8648_v58  ;;  %v4585_v9 = vrot.slane %v4575_v1, %v8648_v58  ;;  %v4592_v53 = vrot.slane %v4576_v39, %v8648_v58  ;;  %v4599_v31 = vrot.slane %v4577_v27, %v8648_v58 }
 0x398   :  { %v4606_v28 = vrot.slane %v4578_v4, %v8648_v58  ;;  %v3957_v10 = vrot.slane %v8709_v0, %v9694_v30  ;;  %v3961_v51 = vrot.slane %v8709_v0, %v9713_v59  ;;  %v3965_v12 = vrot.slane %v8709_v0, %v9714_v36 }
 0x399   :  { %v5309_v3 = vcombine.low %v5301_v50, %v5308_v18  ;;  %v4607_v11 = vcombine.low %v4585_v9, %v4592_v53  ;;  %v3969_v5 = vrot.slane %v8709_v0, %v9715_v37  ;;  %v3973_v56 = vrot.slane %v8709_v0, %v9716_v42 }
 0x39a   :  { %v4608_v21 = vcombine.low %v4599_v31, %v4606_v28  ;;  %v3977_v54 = vrot.slane %v8709_v0, %v9717_v44  ;;  %v5310_v55 = vcombine.low %v3949_v49, %v3953_v29  ;;  %v5311_v25 = vcombine.low %v3957_v10, %v3961_v51 }
 0x39b   :  { %5956 = vperm.xlu1 %6435, %v5309_v3   ;;  %v4615_v17 = vrot.slane %v4607_v11, %v8648_v58  ;;  %v5312_v19 = vcombine.low %v3965_v12, %v3969_v5  ;;  %v3501_v62 = vrot.slane %v8667_v57, %v9693_v61  ;;  %v3505_v8 = vrot.slane %v8667_v57, %v9712_v34 }
 0x39c   :  { %v4622_v47 = vrot.slane %v4608_v21, %v8648_v58  ;;  %v5313_v24 = vcombine.low %v3973_v56, %v3977_v54  ;;  %v5320_v38 = vrot.slane %v5310_v55, %v8648_v58  ;;  %v5327_v40 = vrot.slane %v5311_v25, %v8648_v58 }
 0x39d   :  { %v5334_v0 = vrot.slane %v5312_v19, %v8648_v58  ;;  %v3509_v1 = vrot.slane %v8667_v57, %v9694_v30  ;;  %v3513_v39 = vrot.slane %v8667_v57, %v9713_v59  ;;  %v3517_v27 = vrot.slane %v8667_v57, %v9714_v36 }
 0x39e   :  { %v4623_v50 = vcombine.low %v4615_v17, %v4622_v47  ;;  %v5341_v4 = vrot.slane %v5313_v24, %v8648_v58  ;;  %v5342_v49 = vcombine.low %v5320_v38, %v5327_v40  ;;  %v3521_v29 = vrot.slane %v8667_v57, %v9715_v37 }
 0x39f   :  { %v3525_v18 = vrot.slane %v8667_v57, %v9716_v42  ;;  %v3529_v9 = vrot.slane %v8667_v57, %v9717_v44  ;;  %v4624_v53 = vcombine.low %v3501_v62, %v3505_v8  ;;  %v4625_v31 = vcombine.low %v3509_v1, %v3513_v39 }
 0x3a0   :  { %5914 = vperm.xlu0 %6434, %v4623_v50   ;;  %v5343_v28 = vcombine.low %v5334_v0, %v5341_v4  ;;  %v5350_v10 = vrot.slane %v5342_v49, %v8648_v58  ;;  %v4626_v51 = vcombine.low %v3517_v27, %v3521_v29  ;;  %v3981_v12 = vrot.slane %v8712_v15, %v9693_v61 }
 0x3a1   :  { %v4627_v3 = vcombine.low %v3525_v18, %v3529_v9  ;;  %v4634_v11 = vrot.slane %v4624_v53, %v8648_v58  ;;  %v4641_v5 = vrot.slane %v4625_v31, %v8648_v58  ;;  %v3985_v56 = vrot.slane %v8712_v15, %v9712_v34 }
 0x3a2   :  { %v5357_v57 = vrot.slane %v5343_v28, %v8648_v58  ;;  %v4648_v21 = vrot.slane %v4626_v51, %v8648_v58  ;;  %v3989_v54 = vrot.slane %v8712_v15, %v9694_v30  ;;  %v3993_v55 = vrot.slane %v8712_v15, %v9713_v59 }
 0x3a3   :  { %v4655_v25 = vrot.slane %v4627_v3, %v8648_v58  ;;  %v4656_v17 = vcombine.low %v4634_v11, %v4641_v5  ;;  %v3997_v19 = vrot.slane %v8712_v15, %v9714_v36  ;;  %v4001_v62 = vrot.slane %v8712_v15, %v9715_v37 }
 0x3a4   :  { %v5358_v8 = vcombine.low %v5350_v10, %v5357_v57  ;;  %v4005_v47 = vrot.slane %v8712_v15, %v9716_v42  ;;  %v4009_v24 = vrot.slane %v8712_v15, %v9717_v44  ;;  %v5359_v38 = vcombine.low %v3981_v12, %v3985_v56 }
 0x3a5   :  { %v4657_v40 = vcombine.low %v4648_v21, %v4655_v25  ;;  %v4664_v0 = vrot.slane %v4656_v17, %v8648_v58  ;;  %v5360_v1 = vcombine.low %v3989_v54, %v3993_v55  ;;  %v5361_v39 = vcombine.low %v3997_v19, %v4001_v62 }
 0x3a6   :  { %5959 = vperm.xlu1 %6435, %v5358_v8   ;;  %v5362_v27 = vcombine.low %v4005_v47, %v4009_v24  ;;  %v5369_v50 = vrot.slane %v5359_v38, %v8648_v58  ;;  %v3533_v4 = vrot.slane %v8670_v23, %v9693_v61  ;;  %v3537_v49 = vrot.slane %v8670_v23, %v9712_v34 }
 0x3a7   :  { %v4671_v29 = vrot.slane %v4657_v40, %v8648_v58  ;;  %v5376_v15 = vrot.slane %v5360_v1, %v8648_v58  ;;  %v5383_v18 = vrot.slane %v5361_v39, %v8648_v58  ;;  %v3541_v9 = vrot.slane %v8670_v23, %v9694_v30 }
 0x3a8   :  { %v5390_v53 = vrot.slane %v5362_v27, %v8648_v58  ;;  %v3545_v31 = vrot.slane %v8670_v23, %v9713_v59  ;;  %v3549_v28 = vrot.slane %v8670_v23, %v9714_v36  ;;  %v3553_v10 = vrot.slane %v8670_v23, %v9715_v37 }
 0x3a9   :  { %v4672_v51 = vcombine.low %v4664_v0, %v4671_v29  ;;  %v5391_v12 = vcombine.low %v5369_v50, %v5376_v15  ;;  %v3557_v3 = vrot.slane %v8670_v23, %v9716_v42  ;;  %v3561_v11 = vrot.slane %v8670_v23, %v9717_v44 }
 0x3aa   :  { %v5392_v5 = vcombine.low %v5383_v18, %v5390_v53  ;;  %v4673_v56 = vcombine.low %v3533_v4, %v3537_v49  ;;  %v4674_v57 = vcombine.low %v3541_v9, %v3545_v31  ;;  %v4675_v21 = vcombine.low %v3549_v28, %v3553_v10 }
 0x3ab   :  { %5917 = vperm.xlu0 %6434, %v4672_v51   ;;  %v5399_v54 = vrot.slane %v5391_v12, %v8648_v58  ;;  %v4676_v55 = vcombine.low %v3557_v3, %v3561_v11  ;;  %v4013_v25 = vrot.slane %v8715_v43, %v9693_v61  ;;  %v4017_v17 = vrot.slane %v8715_v43, %v9712_v34 }
 0x3ac   :  { %v5406_v19 = vrot.slane %v5392_v5, %v8648_v58  ;;  %v4683_v62 = vrot.slane %v4673_v56, %v8648_v58  ;;  %v4690_v23 = vrot.slane %v4674_v57, %v8648_v58  ;;  %v4697_v8 = vrot.slane %v4675_v21, %v8648_v58 }
 0x3ad   :  { %v4704_v47 = vrot.slane %v4676_v55, %v8648_v58  ;;  %v4021_v24 = vrot.slane %v8715_v43, %v9694_v30  ;;  %v4025_v38 = vrot.slane %v8715_v43, %v9713_v59  ;;  %v4029_v40 = vrot.slane %v8715_v43, %v9714_v36 }
 0x3ae   :  { %v5407_v0 = vcombine.low %v5399_v54, %v5406_v19  ;;  %v4705_v1 = vcombine.low %v4683_v62, %v4690_v23  ;;  %v4033_v39 = vrot.slane %v8715_v43, %v9715_v37  ;;  %v4037_v27 = vrot.slane %v8715_v43, %v9716_v42 }
 0x3af   :  { %v4706_v50 = vcombine.low %v4697_v8, %v4704_v47  ;;  %v4041_v4 = vrot.slane %v8715_v43, %v9717_v44  ;;  %v5408_v49 = vcombine.low %v4013_v25, %v4017_v17  ;;  %v5409_v29 = vcombine.low %v4021_v24, %v4025_v38 }
 0x3b0   :  { %5962 = vperm.xlu1 %6435, %v5407_v0   ;;  %v4713_v15 = vrot.slane %v4705_v1, %v8648_v58  ;;  %v5410_v18 = vcombine.low %v4029_v40, %v4033_v39  ;;  %v3565_v9 = vrot.slane %v8673_v13, %v9693_v61  ;;  %v3569_v53 = vrot.slane %v8673_v13, %v9712_v34 }
 0x3b1   :  { %v4720_v31 = vrot.slane %v4706_v50, %v8648_v58  ;;  %v5411_v28 = vcombine.low %v4037_v27, %v4041_v4  ;;  %v5418_v10 = vrot.slane %v5408_v49, %v8648_v58  ;;  %v5425_v51 = vrot.slane %v5409_v29, %v8648_v58 }
 0x3b2   :  { %v5432_v43 = vrot.slane %v5410_v18, %v8648_v58  ;;  %v3573_v12 = vrot.slane %v8673_v13, %v9694_v30  ;;  %v3577_v3 = vrot.slane %v8673_v13, %v9713_v59  ;;  %v3581_v11 = vrot.slane %v8673_v13, %v9714_v36 }
 0x3b3   :  { %v4721_v5 = vcombine.low %v4713_v15, %v4720_v31  ;;  %v5439_v56 = vrot.slane %v5411_v28, %v8648_v58  ;;  %v5440_v57 = vcombine.low %v5418_v10, %v5425_v51  ;;  %v3585_v21 = vrot.slane %v8673_v13, %v9715_v37 }
 0x3b4   :  { %v3589_v54 = vrot.slane %v8673_v13, %v9716_v42  ;;  %v3593_v55 = vrot.slane %v8673_v13, %v9717_v44  ;;  %v4722_v25 = vcombine.low %v3565_v9, %v3569_v53  ;;  %v4723_v17 = vcombine.low %v3573_v12, %v3577_v3 }
 0x3b5   :  { %5920 = vperm.xlu0 %6434, %v4721_v5   ;;  %v5441_v19 = vcombine.low %v5432_v43, %v5439_v56  ;;  %v5448_v62 = vrot.slane %v5440_v57, %v8648_v58  ;;  %v4724_v23 = vcombine.low %v3581_v11, %v3585_v21  ;;  %v4045_v8 = vrot.slane %v8718_v32, %v9693_v61 }
 0x3b6   :  { %v4725_v47 = vcombine.low %v3589_v54, %v3593_v55  ;;  %v4732_v24 = vrot.slane %v4722_v25, %v8648_v58  ;;  %v4739_v38 = vrot.slane %v4723_v17, %v8648_v58  ;;  %v4049_v40 = vrot.slane %v8718_v32, %v9712_v34 }
 0x3b7   :  { %v5455_v13 = vrot.slane %v5441_v19, %v8648_v58  ;;  %v4746_v0 = vrot.slane %v4724_v23, %v8648_v58  ;;  %v4053_v1 = vrot.slane %v8718_v32, %v9694_v30  ;;  %v4057_v39 = vrot.slane %v8718_v32, %v9713_v59 }
 0x3b8   :  { %v4753_v27 = vrot.slane %v4725_v47, %v8648_v58  ;;  %v4754_v50 = vcombine.low %v4732_v24, %v4739_v38  ;;  %v4061_v4 = vrot.slane %v8718_v32, %v9714_v36  ;;  %v4065_v49 = vrot.slane %v8718_v32, %v9715_v37 }
 0x3b9   :  { %v5456_v29 = vcombine.low %v5448_v62, %v5455_v13  ;;  %v4069_v15 = vrot.slane %v8718_v32, %v9716_v42  ;;  %v4073_v18 = vrot.slane %v8718_v32, %v9717_v44  ;;  %v5457_v9 = vcombine.low %v4045_v8, %v4049_v40 }
 0x3ba   :  { %v4755_v53 = vcombine.low %v4746_v0, %v4753_v27  ;;  %v4762_v31 = vrot.slane %v4754_v50, %v8648_v58  ;;  %v5458_v28 = vcombine.low %v4053_v1, %v4057_v39  ;;  %v5459_v10 = vcombine.low %v4061_v4, %v4065_v49 }
 0x3bb   :  { %5965 = vperm.xlu1 %6435, %v5456_v29   ;;  %v5460_v51 = vcombine.low %v4069_v15, %v4073_v18  ;;  %v5467_v43 = vrot.slane %v5457_v9, %v8648_v58  ;;  %v3597_v12 = vrot.slane %v8676_v48, %v9693_v61  ;;  %v3601_v3 = vrot.slane %v8676_v48, %v9712_v34 }
 0x3bc   :  { %v4769_v11 = vrot.slane %v4755_v53, %v8648_v58  ;;  %v5474_v32 = vrot.slane %v5458_v28, %v8648_v58  ;;  %v5481_v5 = vrot.slane %v5459_v10, %v8648_v58  ;;  %v3605_v56 = vrot.slane %v8676_v48, %v9694_v30 }
 0x3bd   :  { %v5488_v57 = vrot.slane %v5460_v51, %v8648_v58  ;;  %v3609_v21 = vrot.slane %v8676_v48, %v9713_v59  ;;  %v3613_v54 = vrot.slane %v8676_v48, %v9714_v36  ;;  %v3617_v55 = vrot.slane %v8676_v48, %v9715_v37 }
 0x3be   :  { %v4770_v25 = vcombine.low %v4762_v31, %v4769_v11  ;;  %v5489_v17 = vcombine.low %v5467_v43, %v5474_v32  ;;  %v3621_v19 = vrot.slane %v8676_v48, %v9716_v42  ;;  %v3625_v62 = vrot.slane %v8676_v48, %v9717_v44 }
 0x3bf   :  { %v5490_v23 = vcombine.low %v5481_v5, %v5488_v57  ;;  %v4771_v8 = vcombine.low %v3597_v12, %v3601_v3  ;;  %v4772_v47 = vcombine.low %v3605_v56, %v3609_v21  ;;  %v4773_v24 = vcombine.low %v3613_v54, %v3617_v55 }
 0x3c0   :  { %5923 = vperm.xlu0 %6434, %v4770_v25   ;;  %v5497_v38 = vrot.slane %v5489_v17, %v8648_v58  ;;  %v4774_v40 = vcombine.low %v3621_v19, %v3625_v62  ;;  %v4077_v13 = vrot.slane %v8721_v22, %v9693_v61  ;;  %v4081_v0 = vrot.slane %v8721_v22, %v9712_v34 }
 0x3c1   :  { %v5504_v1 = vrot.slane %v5490_v23, %v8648_v58  ;;  %v4781_v39 = vrot.slane %v4771_v8, %v8648_v58  ;;  %v4788_v48 = vrot.slane %v4772_v47, %v8648_v58  ;;  %v4795_v27 = vrot.slane %v4773_v24, %v8648_v58 }
 0x3c2   :  { %v4802_v50 = vrot.slane %v4774_v40, %v8648_v58  ;;  %v4085_v4 = vrot.slane %v8721_v22, %v9694_v30  ;;  %v4089_v49 = vrot.slane %v8721_v22, %v9713_v59  ;;  %v4093_v29 = vrot.slane %v8721_v22, %v9714_v36 }
 0x3c3   :  { %v5505_v15 = vcombine.low %v5497_v38, %v5504_v1  ;;  %v4803_v18 = vcombine.low %v4781_v39, %v4788_v48  ;;  %v4097_v9 = vrot.slane %v8721_v22, %v9715_v37  ;;  %v4101_v53 = vrot.slane %v8721_v22, %v9716_v42 }
 0x3c4   :  { %v4804_v31 = vcombine.low %v4795_v27, %v4802_v50  ;;  %v4105_v28 = vrot.slane %v8721_v22, %v9717_v44  ;;  %v5506_v10 = vcombine.low %v4077_v13, %v4081_v0  ;;  %v5507_v51 = vcombine.low %v4085_v4, %v4089_v49 }
 0x3c5   :  { %5968 = vperm.xlu1 %6435, %v5505_v15   ;;  %v4811_v43 = vrot.slane %v4803_v18, %v8648_v58  ;;  %v5508_v12 = vcombine.low %v4093_v29, %v4097_v9  ;;  %v3629_v3 = vrot.slane %v8679_v52, %v9693_v61  ;;  %v3633_v11 = vrot.slane %v8679_v52, %v9712_v34 }
 0x3c6   :  { %v4818_v32 = vrot.slane %v4804_v31, %v8648_v58  ;;  %v5509_v5 = vcombine.low %v4101_v53, %v4105_v28  ;;  %v5516_v56 = vrot.slane %v5506_v10, %v8648_v58  ;;  %v5523_v57 = vrot.slane %v5507_v51, %v8648_v58 }
 0x3c7   :  { %v5530_v22 = vrot.slane %v5508_v12, %v8648_v58  ;;  %v3637_v21 = vrot.slane %v8679_v52, %v9694_v30  ;;  %v3641_v54 = vrot.slane %v8679_v52, %v9713_v59  ;;  %v3645_v55 = vrot.slane %v8679_v52, %v9714_v36 }
 0x3c8   :  { %v4819_v25 = vcombine.low %v4811_v43, %v4818_v32  ;;  %v5537_v17 = vrot.slane %v5509_v5, %v8648_v58  ;;  %v5538_v19 = vcombine.low %v5516_v56, %v5523_v57  ;;  %v3649_v62 = vrot.slane %v8679_v52, %v9715_v37 }
 0x3c9   :  { %v3653_v23 = vrot.slane %v8679_v52, %v9716_v42  ;;  %v3657_v8 = vrot.slane %v8679_v52, %v9717_v44  ;;  %v4820_v47 = vcombine.low %v3629_v3, %v3633_v11  ;;  %v4821_v24 = vcombine.low %v3637_v21, %v3641_v54 }
 0x3ca   :  { %5926 = vperm.xlu0 %6434, %v4819_v25   ;;  %v5539_v38 = vcombine.low %v5530_v22, %v5537_v17  ;;  %v5546_v40 = vrot.slane %v5538_v19, %v8648_v58  ;;  %v4822_v13 = vcombine.low %v3645_v55, %v3649_v62  ;;  %v4109_v0 = vrot.slane %v8724_v2, %v9693_v61 }
 0x3cb   :  { %v4823_v1 = vcombine.low %v3653_v23, %v3657_v8  ;;  %v4830_v39 = vrot.slane %v4820_v47, %v8648_v58  ;;  %v4837_v48 = vrot.slane %v4821_v24, %v8648_v58  ;;  %v4113_v27 = vrot.slane %v8724_v2, %v9712_v34 }
 0x3cc   :  { %v5553_v52 = vrot.slane %v5539_v38, %v8648_v58  ;;  %v4844_v50 = vrot.slane %v4822_v13, %v8648_v58  ;;  %v4117_v4 = vrot.slane %v8724_v2, %v9694_v30  ;;  %v4121_v49 = vrot.slane %v8724_v2, %v9713_v59 }
 0x3cd   :  { %v4851_v29 = vrot.slane %v4823_v1, %v8648_v58  ;;  %v4852_v15 = vcombine.low %v4830_v39, %v4837_v48  ;;  %v4125_v18 = vrot.slane %v8724_v2, %v9714_v36  ;;  %v4129_v9 = vrot.slane %v8724_v2, %v9715_v37 }
 0x3ce   :  { %v5554_v53 = vcombine.low %v5546_v40, %v5553_v52  ;;  %v4133_v31 = vrot.slane %v8724_v2, %v9716_v42  ;;  %v4137_v28 = vrot.slane %v8724_v2, %v9717_v44  ;;  %v5555_v10 = vcombine.low %v4109_v0, %v4113_v27 }
 0x3cf   :  { %v4853_v51 = vcombine.low %v4844_v50, %v4851_v29  ;;  %v4860_v43 = vrot.slane %v4852_v15, %v8648_v58  ;;  %v5556_v12 = vcombine.low %v4117_v4, %v4121_v49  ;;  %v5557_v3 = vcombine.low %v4125_v18, %v4129_v9 }
 0x3d0   :  { %5971 = vperm.xlu1 %6435, %v5554_v53   ;;  %v5558_v11 = vcombine.low %v4133_v31, %v4137_v28  ;;  %v5565_v32 = vrot.slane %v5555_v10, %v8648_v58  ;;  %v3661_v5 = vrot.slane %v8682_v20, %v9693_v61  ;;  %v3665_v56 = vrot.slane %v8682_v20, %v9712_v34 }
 0x3d1   :  { %v4867_v57 = vrot.slane %v4853_v51, %v8648_v58  ;;  %v5572_v2 = vrot.slane %v5556_v12, %v8648_v58  ;;  %v5579_v22 = vrot.slane %v5557_v3, %v8648_v58  ;;  %v3669_v21 = vrot.slane %v8682_v20, %v9694_v30 }
 0x3d2   :  { %v5586_v54 = vrot.slane %v5558_v11, %v8648_v58  ;;  %v3673_v55 = vrot.slane %v8682_v20, %v9713_v59  ;;  %v3677_v25 = vrot.slane %v8682_v20, %v9714_v36  ;;  %v3681_v17 = vrot.slane %v8682_v20, %v9715_v37 }
 0x3d3   :  { %v4868_v19 = vcombine.low %v4860_v43, %v4867_v57  ;;  %v5587_v62 = vcombine.low %v5565_v32, %v5572_v2  ;;  %v3685_v23 = vrot.slane %v8682_v20, %v9716_v42  ;;  %v3689_v8 = vrot.slane %v8682_v20, %v9717_v44 }
 0x3d4   :  { %v5588_v47 = vcombine.low %v5579_v22, %v5586_v54  ;;  %v4869_v24 = vcombine.low %v3661_v5, %v3665_v56  ;;  %v4870_v38 = vcombine.low %v3669_v21, %v3673_v55  ;;  %v4871_v40 = vcombine.low %v3677_v25, %v3681_v17 }
 0x3d5   :  { %5929 = vperm.xlu0 %6434, %v4868_v19   ;;  %v5595_v13 = vrot.slane %v5587_v62, %v8648_v58  ;;  %v4872_v0 = vcombine.low %v3685_v23, %v3689_v8  ;;  %v4141_v1 = vrot.slane %v8727_v60, %v9693_v61  ;;  %v4145_v39 = vrot.slane %v8727_v60, %v9712_v34 }
 0x3d6   :  { %v5602_v48 = vrot.slane %v5588_v47, %v8648_v58  ;;  %v4879_v27 = vrot.slane %v4869_v24, %v8648_v58  ;;  %v4886_v20 = vrot.slane %v4870_v38, %v8648_v58  ;;  %v4893_v52 = vrot.slane %v4871_v40, %v8648_v58 }
 0x3d7   :  { %v4900_v50 = vrot.slane %v4872_v0, %v8648_v58  ;;  %v4149_v4 = vrot.slane %v8727_v60, %v9694_v30  ;;  %v4153_v49 = vrot.slane %v8727_v60, %v9713_v59  ;;  %v4157_v29 = vrot.slane %v8727_v60, %v9714_v36 }
 0x3d8   :  { %v5603_v15 = vcombine.low %v5595_v13, %v5602_v48  ;;  %v4901_v18 = vcombine.low %v4879_v27, %v4886_v20  ;;  %v4161_v9 = vrot.slane %v8727_v60, %v9715_v37  ;;  %v4165_v53 = vrot.slane %v8727_v60, %v9716_v42 }
 0x3d9   :  { %v4902_v31 = vcombine.low %v4893_v52, %v4900_v50  ;;  %v4169_v28 = vrot.slane %v8727_v60, %v9717_v44  ;;  %v5604_v10 = vcombine.low %v4141_v1, %v4145_v39  ;;  %v5605_v51 = vcombine.low %v4149_v4, %v4153_v49 }
 0x3da   :  { %5974 = vperm.xlu1 %6435, %v5603_v15   ;;  %v4909_v43 = vrot.slane %v4901_v18, %v8648_v58  ;;  %v5606_v12 = vcombine.low %v4157_v29, %v4161_v9  ;;  %v3853_v3 = vrot.slane %v8700_v6, %v9693_v61  ;;  %v3857_v11 = vrot.slane %v8700_v6, %v9712_v34 }
 0x3db   :  { %v4916_v32 = vrot.slane %v4902_v31, %v8648_v58  ;;  %v5607_v5 = vcombine.low %v4165_v53, %v4169_v28  ;;  %v5614_v56 = vrot.slane %v5604_v10, %v8648_v58  ;;  %v5621_v57 = vrot.slane %v5605_v51, %v8648_v58 }
 0x3dc   :  { %v5628_v60 = vrot.slane %v5606_v12, %v8648_v58  ;;  %v3861_v2 = vrot.slane %v8700_v6, %v9694_v30  ;;  %v3865_v22 = vrot.slane %v8700_v6, %v9713_v59  ;;  %v3869_v21 = vrot.slane %v8700_v6, %v9714_v36 }
 0x3dd   :  { %v4917_v54 = vcombine.low %v4909_v43, %v4916_v32  ;;  %v5635_v55 = vrot.slane %v5607_v5, %v8648_v58  ;;  %v5636_v25 = vcombine.low %v5614_v56, %v5621_v57  ;;  %v3873_v17 = vrot.slane %v8700_v6, %v9715_v37 }
 0x3de   :  { %v3877_v19 = vrot.slane %v8700_v6, %v9716_v42  ;;  %v3881_v62 = vrot.slane %v8700_v6, %v9717_v44  ;;  %v5163_v23 = vcombine.low %v3853_v3, %v3857_v11  ;;  %v5164_v8 = vcombine.low %v3861_v2, %v3865_v22 }
 0x3df   :  { %5932 = vperm.xlu0 %6434, %v4917_v54   ;;  %v5637_v47 = vcombine.low %v5628_v60, %v5635_v55  ;;  %v5644_v24 = vrot.slane %v5636_v25, %v8648_v58  ;;  %v5165_v38 = vcombine.low %v3869_v21, %v3873_v17  ;;  %v4173_v40 = vrot.slane %v8744_v35, %v9693_v61 }
 0x3e0   :  { %v5166_v13 = vcombine.low %v3877_v19, %v3881_v62  ;;  %v5173_v0 = vrot.slane %v5163_v23, %v8648_v58  ;;  %v5180_v1 = vrot.slane %v5164_v8, %v8648_v58  ;;  %v4177_v39 = vrot.slane %v8744_v35, %v9712_v34 }
 0x3e1   :  { %v5651_v6 = vrot.slane %v5637_v47, %v8648_v58  ;;  %v5187_v48 = vrot.slane %v5165_v38, %v8648_v58  ;;  %v4181_v27 = vrot.slane %v8744_v35, %v9694_v30  ;;  %v4185_v20 = vrot.slane %v8744_v35, %v9713_v59 }
 0x3e2   :  { %v5194_v52 = vrot.slane %v5166_v13, %v8648_v58  ;;  %v5195_v50 = vcombine.low %v5173_v0, %v5180_v1  ;;  %v4189_v4 = vrot.slane %v8744_v35, %v9714_v36  ;;  %v4193_v49 = vrot.slane %v8744_v35, %v9715_v37 }
 0x3e3   :  { %v5652_v29 = vcombine.low %v5644_v24, %v5651_v6  ;;  %v4197_v15 = vrot.slane %v8744_v35, %v9716_v42  ;;  %v4201_v18 = vrot.slane %v8744_v35, %v9717_v44  ;;  %v5653_v9 = vcombine.low %v4173_v40, %v4177_v39 }
 0x3e4   :  { %v5196_v53 = vcombine.low %v5187_v48, %v5194_v52  ;;  %v5203_v31 = vrot.slane %v5195_v50, %v8648_v58  ;;  %v5654_v28 = vcombine.low %v4181_v27, %v4185_v20  ;;  %v5655_v10 = vcombine.low %v4189_v4, %v4193_v49 }
 0x3e5   :  { %5977 = vperm.xlu1 %6435, %v5652_v29   ;;  %v5656_v51 = vcombine.low %v4197_v15, %v4201_v18  ;;  %v5663_v43 = vrot.slane %v5653_v9, %v8648_v58  ;;  %v3693_v12 = vrot.slane %v8685_v45, %v9693_v61  ;;  %v3697_v3 = vrot.slane %v8685_v45, %v9712_v34 }
 0x3e6   :  { %v5210_v11 = vrot.slane %v5196_v53, %v8648_v58  ;;  %v5670_v35 = vrot.slane %v5654_v28, %v8648_v58  ;;  %v5677_v32 = vrot.slane %v5655_v10, %v8648_v58  ;;  %v3701_v5 = vrot.slane %v8685_v45, %v9694_v30 }
 0x3e7   :  { %v5684_v56 = vrot.slane %v5656_v51, %v8648_v58  ;;  %v3705_v57 = vrot.slane %v8685_v45, %v9713_v59  ;;  %v3709_v60 = vrot.slane %v8685_v45, %v9714_v36  ;;  %v3713_v2 = vrot.slane %v8685_v45, %v9715_v37 }
 0x3e8   :  { %v5211_v22 = vcombine.low %v5203_v31, %v5210_v11  ;;  %v5685_v21 = vcombine.low %v5663_v43, %v5670_v35  ;;  %v3717_v54 = vrot.slane %v8685_v45, %v9716_v42  ;;  %v3721_v55 = vrot.slane %v8685_v45, %v9717_v44 }
 0x3e9   :  { %v5686_v25 = vcombine.low %v5677_v32, %v5684_v56  ;;  %v4918_v17 = vcombine.low %v3693_v12, %v3697_v3  ;;  %v4919_v19 = vcombine.low %v3701_v5, %v3705_v57  ;;  %v4920_v62 = vcombine.low %v3709_v60, %v3713_v2 }
 0x3ea   :  { %5950 = vperm.xlu0 %6434, %v5211_v22   ;;  %v5693_v23 = vrot.slane %v5685_v21, %v8648_v58  ;;  %v4921_v8 = vcombine.low %v3717_v54, %v3721_v55  ;;  %v4205_v47 = vrot.slane %v8761_v41, %v9693_v61  ;;  %v4209_v24 = vrot.slane %v8761_v41, %v9712_v34 }
 0x3eb   :  { %v5700_v38 = vrot.slane %v5686_v25, %v8648_v58  ;;  %v4928_v40 = vrot.slane %v4918_v17, %v8648_v58  ;;  %v4935_v45 = vrot.slane %v4919_v19, %v8648_v58  ;;  %v4942_v13 = vrot.slane %v4920_v62, %v8648_v58 }
 0x3ec   :  { %v4949_v0 = vrot.slane %v4921_v8, %v8648_v58  ;;  %v4213_v1 = vrot.slane %v8761_v41, %v9694_v30  ;;  %v4217_v39 = vrot.slane %v8761_v41, %v9713_v59  ;;  %v4221_v6 = vrot.slane %v8761_v41, %v9714_v36 }
 0x3ed   :  { %v5701_v48 = vcombine.low %v5693_v23, %v5700_v38  ;;  %v4950_v27 = vcombine.low %v4928_v40, %v4935_v45  ;;  %v4225_v20 = vrot.slane %v8761_v41, %v9715_v37  ;;  %v4229_v52 = vrot.slane %v8761_v41, %v9716_v42 }
 0x3ee   :  { %v4951_v50 = vcombine.low %v4942_v13, %v4949_v0  ;;  %v4233_v4 = vrot.slane %v8761_v41, %v9717_v44  ;;  %v5702_v49 = vcombine.low %v4205_v47, %v4209_v24  ;;  %v5703_v29 = vcombine.low %v4213_v1, %v4217_v39 }
 0x3ef   :  { %5980 = vperm.xlu1 %6435, %v5701_v48   ;;  %v4958_v15 = vrot.slane %v4950_v27, %v8648_v58  ;;  %v5704_v18 = vcombine.low %v4221_v6, %v4225_v20  ;;  %v3725_v9 = vrot.slane %v8688_v63, %v9693_v61  ;;  %v3729_v53 = vrot.slane %v8688_v63, %v9712_v34 }
 0x3f0   :  { %v4965_v31 = vrot.slane %v4951_v50, %v8648_v58  ;;  %v5705_v28 = vcombine.low %v4229_v52, %v4233_v4  ;;  %v5712_v10 = vrot.slane %v5702_v49, %v8648_v58  ;;  %v5719_v51 = vrot.slane %v5703_v29, %v8648_v58 }
 0x3f1   :  { %v5726_v41 = vrot.slane %v5704_v18, %v8648_v58  ;;  %v3733_v43 = vrot.slane %v8688_v63, %v9694_v30  ;;  %v3737_v12 = vrot.slane %v8688_v63, %v9713_v59  ;;  %v3741_v3 = vrot.slane %v8688_v63, %v9714_v36 }
 0x3f2   :  { %v4966_v11 = vcombine.low %v4958_v15, %v4965_v31  ;;  %v5733_v35 = vrot.slane %v5705_v28, %v8648_v58  ;;  %v5734_v32 = vcombine.low %v5712_v10, %v5719_v51  ;;  %v3745_v5 = vrot.slane %v8688_v63, %v9715_v37 }
 0x3f3   :  { %v3749_v56 = vrot.slane %v8688_v63, %v9716_v42  ;;  %v3753_v57 = vrot.slane %v8688_v63, %v9717_v44  ;;  %v4967_v60 = vcombine.low %v3725_v9, %v3729_v53  ;;  %v4968_v2 = vcombine.low %v3733_v43, %v3737_v12 }
 0x3f4   :  { %5935 = vperm.xlu0 %6434, %v4966_v11   ;;  %v5735_v22 = vcombine.low %v5726_v41, %v5733_v35  ;;  %v5742_v21 = vrot.slane %v5734_v32, %v8648_v58  ;;  %v4969_v54 = vcombine.low %v3741_v3, %v3745_v5  ;;  %v4237_v55 = vrot.slane %v8782_v7, %v9693_v61 }
 0x3f5   :  { %v4970_v25 = vcombine.low %v3749_v56, %v3753_v57  ;;  %v4977_v17 = vrot.slane %v4967_v60, %v8648_v58  ;;  %v4984_v19 = vrot.slane %v4968_v2, %v8648_v58  ;;  %v4241_v62 = vrot.slane %v8782_v7, %v9712_v34 }
 0x3f6   :  { %v5749_v63 = vrot.slane %v5735_v22, %v8648_v58  ;;  %v4991_v23 = vrot.slane %v4969_v54, %v8648_v58  ;;  %v4245_v8 = vrot.slane %v8782_v7, %v9694_v30  ;;  %v4249_v47 = vrot.slane %v8782_v7, %v9713_v59 }
 0x3f7   :  { %v4998_v24 = vrot.slane %v4970_v25, %v8648_v58  ;;  %v4999_v38 = vcombine.low %v4977_v17, %v4984_v19  ;;  %v4253_v40 = vrot.slane %v8782_v7, %v9714_v36  ;;  %v4257_v45 = vrot.slane %v8782_v7, %v9715_v37 }
 0x3f8   :  { %v5750_v13 = vcombine.low %v5742_v21, %v5749_v63  ;;  %v4261_v0 = vrot.slane %v8782_v7, %v9716_v42  ;;  %v4265_v1 = vrot.slane %v8782_v7, %v9717_v44  ;;  %v5751_v39 = vcombine.low %v4237_v55, %v4241_v62 }
 0x3f9   :  { %v5000_v6 = vcombine.low %v4991_v23, %v4998_v24  ;;  %v5007_v48 = vrot.slane %v4999_v38, %v8648_v58  ;;  %v5752_v27 = vcombine.low %v4245_v8, %v4249_v47  ;;  %v5753_v20 = vcombine.low %v4253_v40, %v4257_v45 }
 0x3fa   :  { %5983 = vperm.xlu1 %6435, %v5750_v13   ;;  %v5754_v52 = vcombine.low %v4261_v0, %v4265_v1  ;;  %v5761_v50 = vrot.slane %v5751_v39, %v8648_v58  ;;  %v3757_v4 = vrot.slane %v8691_v46, %v9693_v61  ;;  %v3761_v49 = vrot.slane %v8691_v46, %v9712_v34 }
 0x3fb   :  { %v5014_v29 = vrot.slane %v5000_v6, %v8648_v58  ;;  %v5768_v7 = vrot.slane %v5752_v27, %v8648_v58  ;;  %v5775_v15 = vrot.slane %v5753_v20, %v8648_v58  ;;  %v3765_v18 = vrot.slane %v8691_v46, %v9694_v30 }
 0x3fc   :  { %v5782_v9 = vrot.slane %v5754_v52, %v8648_v58  ;;  %v3769_v53 = vrot.slane %v8691_v46, %v9713_v59  ;;  %v3773_v31 = vrot.slane %v8691_v46, %v9714_v36  ;;  %v3777_v28 = vrot.slane %v8691_v46, %v9715_v37 }
 0x3fd   :  { %v5015_v10 = vcombine.low %v5007_v48, %v5014_v29  ;;  %v5783_v51 = vcombine.low %v5761_v50, %v5768_v7  ;;  %v3781_v41 = vrot.slane %v8691_v46, %v9716_v42  ;;  %v3785_v43 = vrot.slane %v8691_v46, %v9717_v44 }
 0x3fe   :  { %v5784_v12 = vcombine.low %v5775_v15, %v5782_v9  ;;  %v5016_v3 = vcombine.low %v3757_v4, %v3761_v49  ;;  %v5017_v11 = vcombine.low %v3765_v18, %v3769_v53  ;;  %v5018_v35 = vcombine.low %v3773_v31, %v3777_v28 }
 0x3ff   :  { %5938 = vperm.xlu0 %6434, %v5015_v10   ;;  %v5791_v32 = vrot.slane %v5783_v51, %v8648_v58  ;;  %v5019_v5 = vcombine.low %v3781_v41, %v3785_v43  ;;  %v4269_v56 = vrot.slane %v8811_v14, %v9693_v61  ;;  %v4273_v57 = vrot.slane %v8811_v14, %v9712_v34 }
 0x400   :  { %v5798_v60 = vrot.slane %v5784_v12, %v8648_v58  ;;  %v5026_v2 = vrot.slane %v5016_v3, %v8648_v58  ;;  %v5033_v46 = vrot.slane %v5017_v11, %v8648_v58  ;;  %v5040_v22 = vrot.slane %v5018_v35, %v8648_v58 }
 0x401   :  { %v5047_v21 = vrot.slane %v5019_v5, %v8648_v58  ;;  %v4277_v54 = vrot.slane %v8811_v14, %v9694_v30  ;;  %v4281_v55 = vrot.slane %v8811_v14, %v9713_v59  ;;  %v4285_v25 = vrot.slane %v8811_v14, %v9714_v36 }
 0x402   :  { %v5799_v17 = vcombine.low %v5791_v32, %v5798_v60  ;;  %v5048_v19 = vcombine.low %v5026_v2, %v5033_v46  ;;  %v4289_v62 = vrot.slane %v8811_v14, %v9715_v37  ;;  %v4293_v63 = vrot.slane %v8811_v14, %v9716_v42 }
 0x403   :  { %v5049_v23 = vcombine.low %v5040_v22, %v5047_v21  ;;  %v4297_v8 = vrot.slane %v8811_v14, %v9717_v44  ;;  %v5800_v47 = vcombine.low %v4269_v56, %v4273_v57  ;;  %v5801_v24 = vcombine.low %v4277_v54, %v4281_v55 }
 0x404   :  { %5986 = vperm.xlu1 %6435, %v5799_v17   ;;  %v5056_v38 = vrot.slane %v5048_v19, %v8648_v58  ;;  %v5802_v40 = vcombine.low %v4285_v25, %v4289_v62  ;;  %v3789_v45 = vrot.slane %v8694_v33, %v9693_v61  ;;  %v3793_v13 = vrot.slane %v8694_v33, %v9712_v34  ;;  %v9440_v62 = vpop.permute.xlu0 %5902 }
 0x405   :  { %v5063_v0 = vrot.slane %v5049_v23, %v8648_v58  ;;  %v5803_v1 = vcombine.low %v4293_v63, %v4297_v8  ;;  %v5810_v39 = vrot.slane %v5800_v47, %v8648_v58  ;;  %v5817_v6 = vrot.slane %v5801_v24, %v8648_v58  ;;  %v9448_v47 = vpop.permute.xlu1 %5899 }
 0x406   :  { %v5824_v14 = vrot.slane %v5802_v40, %v8648_v58  ;;  %v3797_v48 = vrot.slane %v8694_v33, %v9694_v30  ;;  %v3801_v27 = vrot.slane %v8694_v33, %v9713_v59  ;;  %v3805_v20 = vrot.slane %v8694_v33, %v9714_v36 }
 0x407   :  { %v5064_v52 = vcombine.low %v5056_v38, %v5063_v0  ;;  %v5831_v50 = vrot.slane %v5803_v1, %v8648_v58  ;;  %v5832_v4 = vcombine.low %v5810_v39, %v5817_v6  ;;  %v3809_v49 = vrot.slane %v8694_v33, %v9715_v37 }
 0x408   :  { %v3813_v29 = vrot.slane %v8694_v33, %v9716_v42  ;;  %v3817_v7 = vrot.slane %v8694_v33, %v9717_v44  ;;  %v5065_v15 = vcombine.low %v3789_v45, %v3793_v13  ;;  %v5066_v18 = vcombine.low %v3797_v48, %v3801_v27  ;;  %v9442_v63 = vpop.permute.xlu0 %5905 }
 0x409   :  { %5941 = vperm.xlu0 %6434, %v5064_v52   ;;  %v5833_v9 = vcombine.low %v5824_v14, %v5831_v50  ;;  %v5840_v53 = vrot.slane %v5832_v4, %v8648_v58  ;;  %v5067_v31 = vcombine.low %v3805_v20, %v3809_v49  ;;  %v4301_v28 = vrot.slane %v8859_v16, %v9693_v61  ;;  %v5948_v38 = vpop.permute.xlu1 %5947 }
 0x40a   :  { %v5068_v10 = vcombine.low %v3813_v29, %v3817_v7  ;;  %v5075_v51 = vrot.slane %v5065_v15, %v8648_v58  ;;  %v5082_v41 = vrot.slane %v5066_v18, %v8648_v58  ;;  %v4305_v43 = vrot.slane %v8859_v16, %v9712_v34 }
 0x40b   :  { %v5847_v33 = vrot.slane %v5833_v9, %v8648_v58  ;;  %v5089_v12 = vrot.slane %v5067_v31, %v8648_v58  ;;  %v4309_v3 = vrot.slane %v8859_v16, %v9694_v30  ;;  %v4313_v11 = vrot.slane %v8859_v16, %v9713_v59 }
 0x40c   :  { %v5096_v61 = vrot.slane %v5068_v10, %v8648_v58  ;;  %v5097_v35 = vcombine.low %v5075_v51, %v5082_v41  ;;  %v4317_v32 = vrot.slane %v8859_v16, %v9714_v36  ;;  %v4321_v5 = vrot.slane %v8859_v16, %v9715_v37  ;;  %v9444_v23 = vpop.permute.xlu0 %5908 }
 0x40d   :  { %v5848_v34 = vcombine.low %v5840_v53, %v5847_v33  ;;  %v4325_v56 = vrot.slane %v8859_v16, %v9716_v42  ;;  %v4329_v57 = vrot.slane %v8859_v16, %v9717_v44  ;;  %v5849_v30 = vcombine.low %v4301_v28, %v4305_v43  ;;  %v5954_v45 = vpop.permute.xlu1 %5953 }
 0x40e   :  { %v5098_v60 = vcombine.low %v5089_v12, %v5096_v61  ;;  %v5105_v59 = vrot.slane %v5097_v35, %v8648_v58  ;;  %v5850_v2 = vcombine.low %v4309_v3, %v4313_v11  ;;  %v5851_v46 = vcombine.low %v4317_v32, %v4321_v5 }
 0x40f   :  { %5989 = vperm.xlu1 %6435, %v5848_v34   ;;  %v5852_v22 = vcombine.low %v4325_v56, %v4329_v57  ;;  %v5859_v36 = vrot.slane %v5849_v30, %v8648_v58  ;;  %v9718_v20 = vlaneseq }
 0x410   :  { %v5112_v21 = vrot.slane %v5098_v60, %v8648_v58  ;;  %v5866_v37 = vrot.slane %v5850_v2, %v8648_v58  ;;  %v5873_v54 = vrot.slane %v5851_v46, %v8648_v58 }
 0x411   :  { %v5880_v42 = vrot.slane %v5852_v22, %v8648_v58  ;;  %v9446_v8 = vpop.permute.xlu0 %5911  ;;  %v9463_v52 = vand.u32 127, %v9718_v20  ;;  %vm6202_vm0 = vcmp.lt.s32.totalorder %v9718_v20, 256 }
 0x412   :  { %v5113_v55 = vcombine.low %v5105_v59, %v5112_v21  ;;  %v5881_v44 = vcombine.low %v5859_v36, %v5866_v37 }
 0x413   :  { %v5882_v16 = vcombine.low %v5873_v54, %v5880_v42  ;;  %v6000_v49 = vadd.s32 4294967288, %v9463_v52  ;;  %v6007_v15 = vadd.s32 4294967280, %v9463_v52  ;;  %v5998_v9 = vsub.s32 %v9463_v52, %v9711_v26 }
 0x414   :  { %5944 = vperm.xlu0 %6434, %v5113_v55   ;;  %v5889_v25 = vrot.slane %v5881_v44, %v8648_v58  ;;  %v6014_v28 = vadd.s32 4294967272, %v9463_v52  ;;  %v6021_v43 = vadd.s32 4294967264, %v9463_v52  ;;  %v6028_v61 = vadd.s32 4294967256, %v9463_v52 }
 0x415   :  { %v5896_v17 = vrot.slane %v5882_v16, %v8648_v58  ;;  %v6003_v7 = vsub.s32 %v6000_v49, %v9711_v26  ;;  %v6108_v31 = vrot.slane %v5948_v38, %v5998_v9  ;;  %v6010_v10 = vsub.s32 %v6007_v15, %v9711_v26 }
 0x416   :  { %v5957_v0 = vpop.permute.xlu1 %5956  ;;  %v6017_v12 = vsub.s32 %v6014_v28, %v9711_v26  ;;  %v6024_v35 = vsub.s32 %v6021_v43, %v9711_v26  ;;  %v6035_v34 = vadd.s32 4294967248, %v9463_v52  ;;  %v6031_v57 = vsub.s32 %v6028_v61, %v9711_v26 }
 0x417   :  { %v5897_v19 = vcombine.low %v5889_v25, %v5896_v17  ;;  %v6117_v41 = vrot.slane %v5954_v45, %v6010_v10  ;;  %v6042_v59 = vadd.s32 4294967240, %v9463_v52  ;;  %v6049_v36 = vadd.s32 4294967232, %v9463_v52 }
 0x418   :  { %v6122_v11 = vrot.slane %v5957_v0, %v6017_v12  ;;  %v6038_v2 = vsub.s32 %v6035_v34, %v9711_v26  ;;  %v6056_v44 = vadd.s32 4294967224, %v9463_v52  ;;  %v6004_v25 = vrot.slane %v9440_v62, %v6003_v7 }
 0x419   :  { %5992 = vperm.xlu1 %6435, %v5897_v19   ;;  %v6045_v37 = vsub.s32 %v6042_v59, %v9711_v26  ;;  %v6052_v16 = vsub.s32 %v6049_v36, %v9711_v26  ;;  %v5999_v17 = vrot.slane %v9448_v47, %v5998_v9  ;;  %v6063_v45 = vadd.s32 4294967216, %v9463_v52 }
 0x41a   :  { %v6070_v47 = vadd.s32 4294967208, %v9463_v52 }
 0x41b   :  { %v9450_v24 = vpop.permute.xlu0 %5914  ;;  %v6006_v62 = vsel %vm6005_vm1, %v6004_v25, %v5999_v17  ;;  %v6066_v15 = vsub.s32 %v6063_v45, %v9711_v26 }
 0x41c   :  { %v6032_v9 = vrot.slane %v9450_v24, %v6031_v57  ;;  %v6073_v43 = vsub.s32 %v6070_v47, %v9711_v26  ;;  %v6098_v24 = vadd.s32 4294967176, %v9463_v52 }
 0x421   :  { %v5960_v39 = vpop.permute.xlu1 %5959 }
 0x422   :  { %v6127_v5 = vrot.slane %v5960_v39, %v6024_v35  ;;  %v6011_v39 = vrot.slane %v9442_v63, %v6010_v10  ;;  %v6077_v63 = vadd.s32 4294967200, %v9463_v52 }
 0x426   :  { %v9452_v40 = vpop.permute.xlu0 %5917 }
 0x427   :  { %v6039_v28 = vrot.slane %v9452_v40, %v6038_v2  ;;  %v6080_v40 = vsub.s32 %v6077_v63, %v9711_v26 }
 0x42b   :  { %v5963_v14 = vpop.permute.xlu1 %5962 }
 0x42c   :  { %v6132_v60 = vrot.slane %v5963_v14, %v6031_v57  ;;  %v6059_v14 = vsub.s32 %v6056_v44, %v9711_v26 }
 0x430   :  { %v9454_v13 = vpop.permute.xlu0 %5920 }
 0x436   :  { %v5966_v27 = vpop.permute.xlu1 %5965 }
 0x437   :  { %v6137_v22 = vrot.slane %v5966_v27, %v6038_v2 }
 0x43b   :  { %v9456_v1 = vpop.permute.xlu0 %5923 }
 0x440   :  { %v5969_v4 = vpop.permute.xlu1 %5968 }
 0x441   :  { %v6142_v55 = vrot.slane %v5969_v4, %v6045_v37  ;;  %v6018_v4 = vrot.slane %v9444_v23, %v6017_v12 }
 0x445   :  { %v9458_v6 = vpop.permute.xlu0 %5926 }
 0x44b   :  { %v5972_v18 = vpop.permute.xlu1 %5971 }
 0x44c   :  { %v6147_v38 = vrot.slane %v5972_v18, %v6052_v16  ;;  %v6013_v18 = vsel %vm6012_vm2, %v6011_v39, %v6006_v62 }
 0x450   :  { %v9460_v48 = vpop.permute.xlu0 %5929 }
 0x451   :  { %v6067_v34 = vrot.slane %v9460_v48, %v6066_v15 }
 0x455   :  { %v5975_v33 = vpop.permute.xlu1 %5974 }
 0x45a   :  { %v9465_v50 = vpop.permute.xlu0 %5932 }
 0x460   :  { %v5978_v56 = vpop.permute.xlu1 %5977 }
 0x461   :  { %v6157_v10 = vrot.slane %v5978_v56, %v6066_v15  ;;  %v6074_v56 = vrot.slane %v9465_v50, %v6073_v43 }
 0x465   :  { %v5951_v29 = vpop.permute.xlu0 %5950 }
 0x466   :  { %v6112_v53 = vrot.slane %v5951_v29, %v6003_v7  ;;  %v6152_v29 = vrot.slane %v5975_v33, %v6059_v14  ;;  %v6025_v7 = vrot.slane %v9446_v8, %v6024_v35  ;;  %v6091_v8 = vadd.s32 4294967184, %v9463_v52 }
 0x467   :  { %v6060_v35 = vrot.slane %v9458_v6, %v6059_v14 }
 0x468   :  { %v6113_v51 = vsel %vm6005_vm1, %v6112_v53, %v6108_v31  ;;  %v6084_v53 = vadd.s32 4294967192, %v9463_v52  ;;  %v6020_v31 = vsel %vm6019_vm3, %v6018_v4, %v6013_v18  ;;  %v6094_v52 = vsub.s32 %v6091_v8, %v9711_v26 }
 0x469   :  { %v6118_v3 = vsel %vm6012_vm2, %v6117_v41, %v6113_v51  ;;  %v6046_v41 = vrot.slane %v9454_v13, %v6045_v37  ;;  %v6027_v12 = vsel %vm6026_vm4, %v6025_v7, %v6020_v31 }
 0x46a   :  { %v6123_v32 = vsel %vm6019_vm3, %v6122_v11, %v6118_v3  ;;  %v5981_v21 = vpop.permute.xlu1 %5980  ;;  %v6053_v3 = vrot.slane %v9456_v1, %v6052_v16  ;;  %v6034_v61 = vsel %vm6033_vm5, %v6032_v9, %v6027_v12  ;;  %v6087_v13 = vsub.s32 %v6084_v53, %v9711_v26 }
 0x46b   :  { %v6128_v30 = vsel %vm6026_vm4, %v6127_v5, %v6123_v32  ;;  %v6162_v32 = vrot.slane %v5981_v21, %v6073_v43  ;;  %v6041_v5 = vsel %vm6040_vm6, %v6039_v28, %v6034_v61 }
 0x46c   :  { %v6133_v46 = vsel %vm6033_vm5, %v6132_v60, %v6128_v30  ;;  %v6048_v1 = vsel %vm6047_vm7, %v6046_v41, %v6041_v5  ;;  %v6101_v30 = vsub.s32 %v6098_v24, %v9711_v26 }
 0x46d   :  { %v6138_v42 = vsel %vm6040_vm6, %v6137_v22, %v6133_v46  ;;  %v6055_v6 = vsel %vm6054_vm8, %v6053_v3, %v6048_v1 }
 0x46e   :  { %v6143_v19 = vsel %vm6047_vm7, %v6142_v55, %v6138_v42  ;;  %v6062_v46 = vsel %vm6061_vm9, %v6060_v35, %v6055_v6 }
 0x46f   :  { %v9489_v54 = vpop.permute.xlu0 %5935  ;;  %v6148_v49 = vsel %vm6054_vm8, %v6147_v38, %v6143_v19  ;;  %v6069_v36 = vsel %vm6068_vm10, %v6067_v34, %v6062_v46 }
 0x470   :  { %v6153_v23 = vsel %vm6061_vm9, %v6152_v29, %v6148_v49  ;;  %v6081_v60 = vrot.slane %v9489_v54, %v6080_v40  ;;  %v6076_v37 = vsel %vm6075_vm11, %v6074_v56, %v6069_v36 }
 0x471   :  { %v6158_v11 = vsel %vm6068_vm10, %v6157_v10, %v6153_v23 }
 0x472   :  { %v6163_v57 = vsel %vm6075_vm11, %v6162_v32, %v6158_v11  ;;  %v6083_v55 = vsel %vm6082_vm12, %v6081_v60, %v6076_v37 }
 0x475   :  { %v5984_v0 = vpop.permute.xlu1 %5983 }
 0x476   :  { %v6167_v59 = vrot.slane %v5984_v0, %v6080_v40 }
 0x478   :  { %v6168_v21 = vsel %vm6082_vm12, %v6167_v59, %v6163_v57 }
 0x47a   :  { %v5939_v27 = vpop.permute.xlu0 %5938 }
 0x47b   :  { %v6088_v48 = vrot.slane %v5939_v27, %v6087_v13 }
 0x47d   :  { %v6090_v54 = vsel %vm6089_vm13, %v6088_v48, %v6083_v55 }
 0x47f   :  { %v5987_v51 = vpop.permute.xlu1 %5986 }
 0x480   :  { %v6172_v42 = vrot.slane %v5987_v51, %v6087_v13 }
 0x482   :  { %v6173_v16 = vsel %vm6089_vm13, %v6172_v42, %v6168_v21 }
 0x484   :  { %v5942_v33 = vpop.permute.xlu0 %5941 }
 0x485   :  { %v6095_v50 = vrot.slane %v5942_v33, %v6094_v52 }
 0x487   :  { %v6097_v25 = vsel %vm6096_vm14, %v6095_v50, %v6090_v54 }
 0x48a   :  { %v5990_v2 = vpop.permute.xlu1 %5989 }
 0x48b   :  { %v6177_v44 = vrot.slane %v5990_v2, %v6094_v52 }
 0x48d   :  { %v6178_v45 = vsel %vm6096_vm14, %v6177_v44, %v6173_v16 }
 0x48f   :  { %v5945_v22 = vpop.permute.xlu0 %5944 }
 0x490   :  { %v6102_v26 = vrot.slane %v5945_v22, %v6101_v30 }
 0x492   :  { %v6104_v19 = vsel %vm6103_vm15, %v6102_v26, %v6097_v25 }
 0x494   :  { %v5993_v17 = vpop.permute.xlu1 %5992 }
 0x495   :  { %v6182_v38 = vrot.slane %v5993_v17, %v6101_v30 }
 0x497   :  { %v6183_v0 = vsel %vm6103_vm15, %v6182_v38, %v6178_v45 }
 0x498   :  { %v6184_v39 = vcombine.low %v6104_v19, %v6183_v0 }
 0x49a   :  { %v6191_v14 = vrot.slane %v6184_v39, %v8648_v58 }
 0x49c   :  { %v6198_v27 = vrot.slane %v6191_v14, %v8648_v58 }
 0x49e   :  { %6204 = vst.msk [vmem:[#allocation6] sm:$0x3] %vm6202_vm0, %v6198_v27 }
 0x49f   :  { %6788 = shalt.err (!%p6785_p9)
}
 0x4a0   :  { %6214 = dma.vmem_to_hbm [thread:$0]  %s6212_s8, 32, %s9549_s7, [#allocation5]  }
 0x4a1   :  { %6799 = dma.done.wait [#allocation5], 32  }
 0x4a2   :  { %6800 = vsyncadd [#allocation5], 4294967264 }
 0x4a3   :  { %6218 = vsyncpa [#allocation4], 1 }
 0x4a4   :  { %6219 = vsyncpa [#allocation5], 1 }

// kernel: tpu_custom_call.1
= control target key start
LH: loop header
LB: loop body
LE: loop exit
PB: predicated region body
PF: predicated region fallthrough
CT: control target
= control target key end

     0   :  { %s9542_s0 = inlined_call_operand.vmem [shape: f32[256,32], index: 0, kind: input, shape index: {}]   ;;  %s9543_s1 = inlined_call_operand.vmem [shape: bf16[32,1024], index: 1, kind: input, shape index: {}]   ;;  %s9544_s2 = inlined_call_operand.vmem [shape: f32[1,1024], index: 2, kind: input, shape index: {}]   ;;  %s9545_s3 = inlined_call_operand.hbm [shape: bf16[1024,256], index: 3, kind: input, shape index: {}]   ;;  %s9546_s4 = inlined_call_operand.vmem [shape: f32[1,256], index: 4, kind: input, shape index: {}]   ;;  %s9547_s5 = inlined_call_operand.vmem [shape: bf16[1,256], index: 5, kind: input, shape index: {}]   ;;  %s9548_s6 = inlined_call_operand.<no memory space> [shape: f32[1,1], index: 6, kind: input, shape index: {}]   ;;  %s9549_s7 = inlined_call_operand.hbm [shape: f32[1,256], index: 7, kind: output, shape index: {}]  }
   0x1   :  { %v12_v0 = vstv %s9548_s6 }
   0x2   :  { %13 = vst [vmem:[#allocation2] sm:$0x1] %v12_v0 }
   0x3   :  { %14 = vsyncpa [#allocation4], 0 }
   0x4   :  { %15 = vsyncpa [#allocation5], 0  ;;  %s6801_s26 = smov [#allocation3]  }
   0x5   :  { %s27_s27 = sshll.u32 %s6801_s26, 4  ;;  %s28_s27 = int_to_ptr.vmem [resolvable:$true] %s27_s27 }
   0x6   :  { %s6765_s28 = scalar_lea.vmem %s28_s27, 16384  ;;  %p6770_p1 = scmp.lt.s32.totalorder %s28_s27, %s28_s27 }
   0x7   :  { %p6766_p0 = scmp.ne.s32.totalorder %s28_s27, %s6765_s28  ;;  %p6771_p2 = scmp.lt.s32.totalorder %s6765_s28, %s6765_s28 }
   0x9   :  { %p6772_p3 = por %p6771_p2, %p6770_p1 }
   0xb   :  { %p6773_p4 = pnand %p6772_p3, %p6766_p0 }
   0xd   :  { %6776 = shalt.err (!%p6773_p4)
}
   0xe   :  { %s6802_s29 = smov 128   ;;  %s6803_s30 = smov 8  }
   0xf   :  { %33 = dma.hbm_to_vmem [thread:$0]  %s9545_s3, 16384, %s28_s27, [#allocation4], %s6802_s29, %s6802_s29, %s6803_s30  }
  0x10   :  { %6797 = dma.done.wait [#allocation4], 16384  }
  0x11   :  { %6798 = vsyncadd [#allocation4], 4294950912  ;;  %v6804_v1 = vmov 0   ;;  %v100_v2 = vld [vmem:[%s9543_s1 + $0x40] sm:$0xff]  ;;  %v101_v4 = vld [vmem:[%s9543_s1 + $0x48] sm:$0xff]  ;;  %vm230_vm0 = vcmask 261120  }
  0x12   :  { %311 = vmatprep.mubr.bf16.mxu0 %v6804_v1  ;;  %504 = vmatprep.mubr.bf16.mxu1 %v6804_v1  ;;  %v104_v3 = vld [vmem:[%s9543_s1 + $0x60] sm:$0xff]  ;;  %v105_v6 = vld [vmem:[%s9543_s1 + $0x68] sm:$0xff]  ;;  %v102_v17 = vld [vmem:[%s9543_s1 + $0x50] sm:$0xff]  ;;  %vm6005_vm1 = vcmask 130112   ;;  %vm6012_vm2 = vcmask 195712   ;;  %vm6019_vm3 = vcmask 261312  }
  0x13   :  { %6434 = vset.pattern.permute.xlu0 %v6804_v1  ;;  %6435 = vset.pattern.permute.xlu1 %v6804_v1  ;;  %v6229_v5 = vcombine.high %v100_v2, %v104_v3  ;;  %v6228_v7 = vcombine.low %v100_v2, %v104_v3  ;;  %v92_v8 = vld [vmem:[%s9543_s1] sm:$0xff]  ;;  %v6231_v10 = vcombine.high %v101_v4, %v105_v6  ;;  %v93_v13 = vld [vmem:[%s9543_s1 + $0x8] sm:$0xff]  ;;  %v106_v18 = vld [vmem:[%s9543_s1 + $0x70] sm:$0xff]  ;;  %vm6026_vm4 = vcmask 326912  }
  0x14   :  { %v96_v9 = vld [vmem:[%s9543_s1 + $0x20] sm:$0xff]  ;;  %v6230_v11 = vcombine.low %v101_v4, %v105_v6  ;;  %v97_v14 = vld [vmem:[%s9543_s1 + $0x28] sm:$0xff]  ;;  %v103_v21 = vld [vmem:[%s9543_s1 + $0x58] sm:$0xff]  ;;  %v6233_v24 = vcombine.high %v102_v17, %v106_v18  ;;  %v6232_v27 = vcombine.low %v102_v17, %v106_v18  ;;  %vm6033_vm5 = vcmask 392512  }
  0x15   :  { %v6221_v12 = vcombine.high %v92_v8, %v96_v9  ;;  %291 = vmatprep.subr.bf16.mxu0 %v6229_v5  ;;  %v6223_v15 = vcombine.high %v93_v13, %v97_v14  ;;  %v44_v16 = vld [vmem:[%s9542_s0] sm:$0xff]  ;;  %484 = vmatprep.subr.bf16.mxu1 %v6231_v10  ;;  %v6220_v19 = vcombine.low %v92_v8, %v96_v9  ;;  %v45_v20 = vld [vmem:[%s9542_s0 + $0x8] sm:$0xff]  ;;  %v107_v22 = vld [vmem:[%s9543_s1 + $0x78] sm:$0xff]  ;;  %vm6040_vm6 = vcmask 458112  }
  0x16   :  { %292 = vmatpush1.bf16.msra.mxu0 %v6228_v7  ;;  %485 = vmatpush1.bf16.msra.mxu1 %v6230_v11  ;;  %v6222_v23 = vcombine.low %v93_v13, %v97_v14  ;;  %v6235_v25 = vcombine.high %v103_v21, %v107_v22  ;;  %v6899_v26 = vpack.c.bf16 %v45_v20, %v44_v16  ;;  %v94_v29 = vld [vmem:[%s9543_s1 + $0x10] sm:$0xff]  ;;  %v95_v31 = vld [vmem:[%s9543_s1 + $0x18] sm:$0xff]  ;;  %v48_v42 = vld [vmem:[%s9542_s0 + $0x20] sm:$0xff]  ;;  %vm6047_vm7 = vcmask 523712  }
  0x17   :  { %293 = vmatprep.subr.bf16.mxu0 %v6221_v12  ;;  %486 = vmatprep.subr.bf16.mxu1 %v6223_v15  ;;  %v6234_v28 = vcombine.low %v103_v21, %v107_v22  ;;  %v98_v30 = vld [vmem:[%s9543_s1 + $0x30] sm:$0xff]  ;;  %v99_v33 = vld [vmem:[%s9543_s1 + $0x38] sm:$0xff]  ;;  %v49_v43 = vld [vmem:[%s9542_s0 + $0x28] sm:$0xff]  ;;  %vm6054_vm8 = vcmask 589312   ;;  %vm6061_vm9 = vcmask 654912   ;;  %vm6068_vm10 = vcmask 720512  }
  0x18   :  { %v6225_v32 = vcombine.high %v94_v29, %v98_v30  ;;  %v46_v34 = vld [vmem:[%s9542_s0 + $0x10] sm:$0xff]  ;;  %v47_v35 = vld [vmem:[%s9542_s0 + $0x18] sm:$0xff]  ;;  %v6224_v36 = vcombine.low %v94_v29, %v98_v30  ;;  %v6227_v37 = vcombine.high %v95_v31, %v99_v33  ;;  %v6226_v38 = vcombine.low %v95_v31, %v99_v33  ;;  %v52_v48 = vld [vmem:[%s9542_s0 + $0x40] sm:$0xff] }
  0x19   :  { %v6925_v39 = vpack.c.bf16 %v47_v35, %v46_v34  ;;  %v6438_v40 = vld [vmem:[#allocation3 + $0x74] ss:$8 sps:$4 sm:$0xff]   ;;  %v6939_v44 = vpack.c.bf16 %v49_v43, %v48_v42  ;;  %v53_v49 = vld [vmem:[%s9542_s0 + $0x48] sm:$0xff]  ;;  %v6436_v21 = vld [vmem:[#allocation3 + $0x70] ss:$8 sps:$4 sm:$0xff]   ;;  %vm6075_vm11 = vcmask 786112  }
  0x1a   :  { %294 = vmatpush1.bf16.msra.mxu0 %v6220_v19  ;;  %487 = vmatpush1.bf16.msra.mxu1 %v6222_v23  ;;  %v6441_v41 = vld [vmem:[#allocation3 + $0x174] ss:$8 sps:$4 sm:$0xff]   ;;  %v6967_v50 = vpack.c.bf16 %v53_v49, %v52_v48  ;;  %v57_v55 = vld [vmem:[%s9542_s0 + $0x68] sm:$0xff]  ;;  %v6439_v22 = vld [vmem:[#allocation3 + $0x170] ss:$8 sps:$4 sm:$0xff]   ;;  %vm6082_vm12 = vcmask 851712  }
  0x1b   :  { %677 = vmatprep.subr.bf16.mxu0 %v6233_v24  ;;  %870 = vmatprep.subr.bf16.mxu1 %v6235_v25  ;;  %v50_v45 = vld [vmem:[%s9542_s0 + $0x30] sm:$0xff]  ;;  %v51_v46 = vld [vmem:[%s9542_s0 + $0x38] sm:$0xff]  ;;  %v56_v54 = vld [vmem:[%s9542_s0 + $0x60] sm:$0xff]  ;;  %vm6089_vm13 = vcmask 917312   ;;  %vm6096_vm14 = vcmask 982912   ;;  %vm6103_vm15 = vcmask 1048512  }
  0x1c   :  { %v6953_v47 = vpack.c.bf16 %v51_v46, %v50_v45  ;;  %v54_v51 = vld [vmem:[%s9542_s0 + $0x50] sm:$0xff]  ;;  %v55_v52 = vld [vmem:[%s9542_s0 + $0x58] sm:$0xff]  ;;  %v6995_v56 = vpack.c.bf16 %v57_v55, %v56_v54  ;;  %v60_v60 = vld [vmem:[%s9542_s0 + $0x80] sm:$0xff] }
  0x1d   :  { %6236 = vmatmul.mubr.msk.bf16.vlgmr.msra.gmra.mxu0 %vm230_vm0, %v6899_v26  ;;  %6252 = vmatmul.mubr.msk.bf16.vlgmr.msra.gmra.mxu1 %vm230_vm0, %v6899_v26  ;;  %v6981_v53 = vpack.c.bf16 %v55_v52, %v54_v51  ;;  %v58_v57 = vld [vmem:[%s9542_s0 + $0x70] sm:$0xff]  ;;  %v59_v58 = vld [vmem:[%s9542_s0 + $0x78] sm:$0xff]  ;;  %v61_v61 = vld [vmem:[%s9542_s0 + $0x88] sm:$0xff] }
  0x1e   :  { %678 = vmatpush1.bf16.msra.mxu0 %v6232_v27  ;;  %871 = vmatpush1.bf16.msra.mxu1 %v6234_v28  ;;  %v7009_v59 = vpack.c.bf16 %v59_v58, %v58_v57  ;;  %v7023_v62 = vpack.c.bf16 %v61_v61, %v60_v60  ;;  %v62_v63 = vld [vmem:[%s9542_s0 + $0x90] sm:$0xff]  ;;  %v63_v0 = vld [vmem:[%s9542_s0 + $0x98] sm:$0xff]  ;;  %v64_v3 = vld [vmem:[%s9542_s0 + $0xa0] sm:$0xff] }
  0x1f   :  { %321 = vmatprep.mubr.bf16.mxu0 %v6804_v1  ;;  %514 = vmatprep.mubr.bf16.mxu1 %v6804_v1  ;;  %v7037_v2 = vpack.c.bf16 %v63_v0, %v62_v63  ;;  %v65_v4 = vld [vmem:[%s9542_s0 + $0xa8] sm:$0xff]  ;;  %v66_v6 = vld [vmem:[%s9542_s0 + $0xb0] sm:$0xff]  ;;  %v67_v7 = vld [vmem:[%s9542_s0 + $0xb8] sm:$0xff] }
  0x20   :  { %679 = vmatprep.subr.bf16.mxu0 %v6225_v32  ;;  %872 = vmatprep.subr.bf16.mxu1 %v6227_v37  ;;  %v7051_v5 = vpack.c.bf16 %v65_v4, %v64_v3  ;;  %v7065_v8 = vpack.c.bf16 %v67_v7, %v66_v6  ;;  %v68_v9 = vld [vmem:[%s9542_s0 + $0xc0] sm:$0xff]  ;;  %v69_v10 = vld [vmem:[%s9542_s0 + $0xc8] sm:$0xff]  ;;  %v70_v12 = vld [vmem:[%s9542_s0 + $0xd0] sm:$0xff] }
  0x21   :  { %v7079_v11 = vpack.c.bf16 %v69_v10, %v68_v9  ;;  %v71_v13 = vld [vmem:[%s9542_s0 + $0xd8] sm:$0xff]  ;;  %v72_v15 = vld [vmem:[%s9542_s0 + $0xe0] sm:$0xff]  ;;  %v73_v16 = vld [vmem:[%s9542_s0 + $0xe8] sm:$0xff] }
  0x22   :  { %680 = vmatpush1.bf16.msra.mxu0 %v6224_v36  ;;  %873 = vmatpush1.bf16.msra.mxu1 %v6226_v38  ;;  %v7093_v14 = vpack.c.bf16 %v71_v13, %v70_v12  ;;  %v7107_v17 = vpack.c.bf16 %v73_v16, %v72_v15  ;;  %v74_v18 = vld [vmem:[%s9542_s0 + $0xf0] sm:$0xff]  ;;  %v75_v19 = vld [vmem:[%s9542_s0 + $0xf8] sm:$0xff]  ;;  %v6442_v25 = vld [vmem:[#allocation3 + $0x60] ss:$8 sps:$4 sm:$0xff]  }
  0x23   :  { %2215 = vmatprep.subr.bf16.mxu0 %v6438_v40  ;;  %2408 = vmatprep.subr.bf16.mxu1 %v6441_v41  ;;  %v7121_v20 = vpack.c.bf16 %v75_v19, %v74_v18  ;;  %v6444_v23 = vld [vmem:[#allocation3 + $0x64] ss:$8 sps:$4 sm:$0xff]   ;;  %v6445_v27 = vld [vmem:[#allocation3 + $0x160] ss:$8 sps:$4 sm:$0xff]   ;;  %v6450_v28 = vld [vmem:[#allocation3 + $0x54] ss:$8 sps:$4 sm:$0xff]  }
  0x24   :  { %v6447_v24 = vld [vmem:[#allocation3 + $0x164] ss:$8 sps:$4 sm:$0xff]   ;;  %v6453_v29 = vld [vmem:[#allocation3 + $0x154] ss:$8 sps:$4 sm:$0xff]   ;;  %v6448_v30 = vld [vmem:[#allocation3 + $0x50] ss:$8 sps:$4 sm:$0xff]  }
  0x25   :  { %6237 = vmatmul.mubr.msk.bf16.gmra.mxu0 %vm230_vm0, %v6925_v39  ;;  %6253 = vmatmul.mubr.msk.bf16.gmra.mxu1 %vm230_vm0, %v6925_v39  ;;  %v6451_v31 = vld [vmem:[#allocation3 + $0x150] ss:$8 sps:$4 sm:$0xff]   ;;  %v6456_v32 = vld [vmem:[#allocation3 + $0x44] ss:$8 sps:$4 sm:$0xff]   ;;  %v6454_v33 = vld [vmem:[#allocation3 + $0x40] ss:$8 sps:$4 sm:$0xff]  }
  0x26   :  { %331 = vmatprep.mubr.bf16.mxu0 %v6804_v1  ;;  %524 = vmatprep.mubr.bf16.mxu1 %v6804_v1  ;;  %v6457_v34 = vld [vmem:[#allocation3 + $0x140] ss:$8 sps:$4 sm:$0xff]   ;;  %v6462_v35 = vld [vmem:[#allocation3 + $0x34] ss:$8 sps:$4 sm:$0xff]   ;;  %v6460_v37 = vld [vmem:[#allocation3 + $0x30] ss:$8 sps:$4 sm:$0xff]  }
  0x27   :  { %v6465_v36 = vld [vmem:[#allocation3 + $0x134] ss:$8 sps:$4 sm:$0xff]   ;;  %v6463_v38 = vld [vmem:[#allocation3 + $0x130] ss:$8 sps:$4 sm:$0xff]   ;;  %v6468_v40 = vld [vmem:[#allocation3 + $0x24] ss:$8 sps:$4 sm:$0xff]  }
  0x28   :  { %v6466_v41 = vld [vmem:[#allocation3 + $0x20] ss:$8 sps:$4 sm:$0xff]   ;;  %v6474_v43 = vld [vmem:[#allocation3 + $0x14] ss:$8 sps:$4 sm:$0xff]   ;;  %v6472_v46 = vld [vmem:[#allocation3 + $0x10] ss:$8 sps:$4 sm:$0xff]  }
  0x29   :  { %v6469_v42 = vld [vmem:[#allocation3 + $0x120] ss:$8 sps:$4 sm:$0xff]   ;;  %v6477_v45 = vld [vmem:[#allocation3 + $0x114] ss:$8 sps:$4 sm:$0xff]   ;;  %v6475_v48 = vld [vmem:[#allocation3 + $0x110] ss:$8 sps:$4 sm:$0xff]  }
  0x2a   :  { %v6480_v49 = vld [vmem:[#allocation3 + $0x4] ss:$8 sps:$4 sm:$0xff]   ;;  %v6478_v51 = vld [vmem:[#allocation3] ss:$8 sps:$4 sm:$0xff]   ;;  %v6486_v54 = vld [vmem:[#allocation3 + $0xf4] ss:$8 sps:$4 sm:$0xff]  }
  0x2b   :  { %v6481_v52 = vld [vmem:[#allocation3 + $0x100] ss:$8 sps:$4 sm:$0xff]   ;;  %v6489_v55 = vld [vmem:[#allocation3 + $0x1f4] ss:$8 sps:$4 sm:$0xff]   ;;  %v6484_v57 = vld [vmem:[#allocation3 + $0xf0] ss:$8 sps:$4 sm:$0xff]  }
  0x2c   :  { %v6487_v58 = vld [vmem:[#allocation3 + $0x1f0] ss:$8 sps:$4 sm:$0xff]   ;;  %v6492_v60 = vld [vmem:[#allocation3 + $0xe4] ss:$8 sps:$4 sm:$0xff]   ;;  %v6490_v61 = vld [vmem:[#allocation3 + $0xe0] ss:$8 sps:$4 sm:$0xff]  }
  0x2d   :  { %6238 = vmatmul.mubr.msk.bf16.gmra.mxu0 %vm230_vm0, %v6939_v44  ;;  %6254 = vmatmul.mubr.msk.bf16.gmra.mxu1 %vm230_vm0, %v6939_v44  ;;  %v6493_v63 = vld [vmem:[#allocation3 + $0x1e0] ss:$8 sps:$4 sm:$0xff]   ;;  %v6498_v0 = vld [vmem:[#allocation3 + $0xd4] ss:$8 sps:$4 sm:$0xff]   ;;  %v6496_v4 = vld [vmem:[#allocation3 + $0xd0] ss:$8 sps:$4 sm:$0xff]  }
  0x2e   :  { %341 = vmatprep.mubr.bf16.mxu0 %v6804_v1  ;;  %534 = vmatprep.mubr.bf16.mxu1 %v6804_v1  ;;  %v6501_v3 = vld [vmem:[#allocation3 + $0x1d4] ss:$8 sps:$4 sm:$0xff]   ;;  %v6499_v6 = vld [vmem:[#allocation3 + $0x1d0] ss:$8 sps:$4 sm:$0xff]   ;;  %v6504_v7 = vld [vmem:[#allocation3 + $0xc4] ss:$8 sps:$4 sm:$0xff]  }
  0x2f   :  { %v6502_v9 = vld [vmem:[#allocation3 + $0xc0] ss:$8 sps:$4 sm:$0xff]   ;;  %v6510_v12 = vld [vmem:[#allocation3 + $0xb4] ss:$8 sps:$4 sm:$0xff]   ;;  %v6508_v15 = vld [vmem:[#allocation3 + $0xb0] ss:$8 sps:$4 sm:$0xff]  }
  0x30   :  { %v6505_v10 = vld [vmem:[#allocation3 + $0x1c0] ss:$8 sps:$4 sm:$0xff]   ;;  %v6513_v13 = vld [vmem:[#allocation3 + $0x1b4] ss:$8 sps:$4 sm:$0xff]   ;;  %v6511_v16 = vld [vmem:[#allocation3 + $0x1b0] ss:$8 sps:$4 sm:$0xff]  }
  0x31   :  { %v6516_v18 = vld [vmem:[#allocation3 + $0xa4] ss:$8 sps:$4 sm:$0xff]   ;;  %v6514_v19 = vld [vmem:[#allocation3 + $0xa0] ss:$8 sps:$4 sm:$0xff]  }
  0x35   :  { %6239 = vmatmul.mubr.msk.bf16.gmra.mxu0 %vm230_vm0, %v6953_v47  ;;  %6255 = vmatmul.mubr.msk.bf16.gmra.mxu1 %vm230_vm0, %v6953_v47 }
  0x36   :  { %351 = vmatprep.mubr.bf16.mxu0 %v6804_v1  ;;  %544 = vmatprep.mubr.bf16.mxu1 %v6804_v1 }
  0x3d   :  { %6240 = vmatmul.mubr.msk.bf16.gmra.mxu0 %vm230_vm0, %v6967_v50  ;;  %6256 = vmatmul.mubr.msk.bf16.gmra.mxu1 %vm230_vm0, %v6967_v50 }
  0x3e   :  { %361 = vmatprep.mubr.bf16.mxu0 %v6804_v1  ;;  %554 = vmatprep.mubr.bf16.mxu1 %v6804_v1 }
  0x45   :  { %6241 = vmatmul.mubr.msk.bf16.gmra.mxu0 %vm230_vm0, %v6981_v53  ;;  %6257 = vmatmul.mubr.msk.bf16.gmra.mxu1 %vm230_vm0, %v6981_v53 }
  0x46   :  { %371 = vmatprep.mubr.bf16.mxu0 %v6804_v1  ;;  %564 = vmatprep.mubr.bf16.mxu1 %v6804_v1 }
  0x4d   :  { %6242 = vmatmul.mubr.msk.bf16.gmra.mxu0 %vm230_vm0, %v6995_v56  ;;  %6258 = vmatmul.mubr.msk.bf16.gmra.mxu1 %vm230_vm0, %v6995_v56 }
  0x4e   :  { %381 = vmatprep.mubr.bf16.mxu0 %v6804_v1  ;;  %574 = vmatprep.mubr.bf16.mxu1 %v6804_v1 }
  0x55   :  { %6243 = vmatmul.mubr.msk.bf16.gmra.mxu0 %vm230_vm0, %v7009_v59  ;;  %6259 = vmatmul.mubr.msk.bf16.gmra.mxu1 %vm230_vm0, %v7009_v59 }
  0x56   :  { %391 = vmatprep.mubr.bf16.mxu0 %v6804_v1  ;;  %584 = vmatprep.mubr.bf16.mxu1 %v6804_v1 }
  0x5d   :  { %6244 = vmatmul.mubr.msk.bf16.gmra.mxu0 %vm230_vm0, %v7023_v62  ;;  %6260 = vmatmul.mubr.msk.bf16.gmra.mxu1 %vm230_vm0, %v7023_v62 }
  0x5e   :  { %401 = vmatprep.mubr.bf16.mxu0 %v6804_v1  ;;  %594 = vmatprep.mubr.bf16.mxu1 %v6804_v1 }
  0x65   :  { %6245 = vmatmul.mubr.msk.bf16.gmra.mxu0 %vm230_vm0, %v7037_v2  ;;  %6261 = vmatmul.mubr.msk.bf16.gmra.mxu1 %vm230_vm0, %v7037_v2 }
  0x66   :  { %411 = vmatprep.mubr.bf16.mxu0 %v6804_v1  ;;  %604 = vmatprep.mubr.bf16.mxu1 %v6804_v1 }
  0x6d   :  { %6246 = vmatmul.mubr.msk.bf16.gmra.mxu0 %vm230_vm0, %v7051_v5  ;;  %6262 = vmatmul.mubr.msk.bf16.gmra.mxu1 %vm230_vm0, %v7051_v5 }
  0x6e   :  { %421 = vmatprep.mubr.bf16.mxu0 %v6804_v1  ;;  %614 = vmatprep.mubr.bf16.mxu1 %v6804_v1 }
  0x75   :  { %6247 = vmatmul.mubr.msk.bf16.gmra.mxu0 %vm230_vm0, %v7065_v8  ;;  %6263 = vmatmul.mubr.msk.bf16.gmra.mxu1 %vm230_vm0, %v7065_v8 }
  0x76   :  { %431 = vmatprep.mubr.bf16.mxu0 %v6804_v1  ;;  %624 = vmatprep.mubr.bf16.mxu1 %v6804_v1 }
  0x7d   :  { %6248 = vmatmul.mubr.msk.bf16.gmra.mxu0 %vm230_vm0, %v7079_v11  ;;  %6264 = vmatmul.mubr.msk.bf16.gmra.mxu1 %vm230_vm0, %v7079_v11 }
  0x7e   :  { %441 = vmatprep.mubr.bf16.mxu0 %v6804_v1  ;;  %634 = vmatprep.mubr.bf16.mxu1 %v6804_v1 }
  0x85   :  { %6249 = vmatmul.mubr.msk.bf16.gmra.mxu0 %vm230_vm0, %v7093_v14  ;;  %6265 = vmatmul.mubr.msk.bf16.gmra.mxu1 %vm230_vm0, %v7093_v14 }
  0x86   :  { %451 = vmatprep.mubr.bf16.mxu0 %v6804_v1  ;;  %644 = vmatprep.mubr.bf16.mxu1 %v6804_v1 }
  0x8d   :  { %6250 = vmatmul.mubr.msk.bf16.gmra.mxu0 %vm230_vm0, %v7107_v17  ;;  %6266 = vmatmul.mubr.msk.bf16.gmra.mxu1 %vm230_vm0, %v7107_v17 }
  0x8e   :  { %461 = vmatprep.mubr.bf16.mxu0 %v6804_v1  ;;  %654 = vmatprep.mubr.bf16.mxu1 %v6804_v1 }
  0x95   :  { %6251 = vmatmul.mubr.msk.bf16.gmra.mxu0 %vm230_vm0, %v7121_v20  ;;  %6267 = vmatmul.mubr.msk.bf16.gmra.mxu1 %vm230_vm0, %v7121_v20 }
  0x96   :  { %697 = vmatprep.mubr.bf16.mxu0 %v6804_v1  ;;  %890 = vmatprep.mubr.bf16.mxu1 %v6804_v1 }
  0x9d   :  { %6268 = vmatmul.mubr.msk.bf16.vlgmr.msra.gmra.mxu0 %vm230_vm0, %v6899_v26  ;;  %6284 = vmatmul.mubr.msk.bf16.vlgmr.msra.gmra.mxu1 %vm230_vm0, %v6899_v26  ;;  %v6459_v26 = vld [vmem:[#allocation3 + $0x144] ss:$8 sps:$4 sm:$0xff]  }
  0x9e   :  { %2216 = vmatpush1.bf16.msra.mxu0 %v6436_v21  ;;  %2409 = vmatpush1.bf16.msra.mxu1 %v6439_v22  ;;  %v6517_v21 = vld [vmem:[#allocation3 + $0x1a0] ss:$8 sps:$4 sm:$0xff]   ;;  %v6522_v22 = vld [vmem:[#allocation3 + $0x94] ss:$8 sps:$4 sm:$0xff]  }
  0x9f   :  { %707 = vmatprep.mubr.bf16.mxu0 %v6804_v1  ;;  %900 = vmatprep.mubr.bf16.mxu1 %v6804_v1 }
  0xa0   :  { %2217 = vmatprep.subr.bf16.mxu0 %v6444_v23  ;;  %2410 = vmatprep.subr.bf16.mxu1 %v6447_v24  ;;  %v6525_v23 = vld [vmem:[#allocation3 + $0x194] ss:$8 sps:$4 sm:$0xff]   ;;  %v6520_v24 = vld [vmem:[#allocation3 + $0x90] ss:$8 sps:$4 sm:$0xff]  }
  0xa2   :  { %2218 = vmatpush1.bf16.msra.mxu0 %v6442_v25  ;;  %2411 = vmatpush1.bf16.msra.mxu1 %v6445_v27  ;;  %v6523_v25 = vld [vmem:[#allocation3 + $0x190] ss:$8 sps:$4 sm:$0xff]   ;;  %v6528_v27 = vld [vmem:[#allocation3 + $0x84] ss:$8 sps:$4 sm:$0xff]  }
  0xa3   :  { %2219 = vmatprep.subr.bf16.mxu0 %v6450_v28  ;;  %2412 = vmatprep.subr.bf16.mxu1 %v6453_v29  ;;  %v6526_v28 = vld [vmem:[#allocation3 + $0x80] ss:$8 sps:$4 sm:$0xff]  }
  0xa4   :  { %v6529_v29 = vld [vmem:[#allocation3 + $0x180] ss:$8 sps:$4 sm:$0xff]  }
  0xa5   :  { %6269 = vmatmul.mubr.msk.bf16.gmra.mxu0 %vm230_vm0, %v6925_v39  ;;  %6285 = vmatmul.mubr.msk.bf16.gmra.mxu1 %vm230_vm0, %v6925_v39  ;;  %v6471_v39 = vld [vmem:[#allocation3 + $0x124] ss:$8 sps:$4 sm:$0xff]  }
  0xa6   :  { %717 = vmatprep.mubr.bf16.mxu0 %v6804_v1  ;;  %910 = vmatprep.mubr.bf16.mxu1 %v6804_v1 }
  0xa7   :  { %2220 = vmatpush1.bf16.msra.mxu0 %v6448_v30  ;;  %2413 = vmatpush1.bf16.msra.mxu1 %v6451_v31  ;;  %v6534_v30 = vld [vmem:[#allocation3 + $0x274] ss:$8 sps:$4 sm:$0xff]  }
  0xa8   :  { %2221 = vmatprep.subr.bf16.mxu0 %v6456_v32  ;;  %2414 = vmatprep.subr.bf16.mxu1 %v6459_v26  ;;  %v6537_v31 = vld [vmem:[#allocation3 + $0x374] ss:$8 sps:$4 sm:$0xff]  }
  0xab   :  { %2222 = vmatpush1.bf16.msra.mxu0 %v6454_v33  ;;  %2415 = vmatpush1.bf16.msra.mxu1 %v6457_v34 }
  0xac   :  { %2223 = vmatprep.subr.bf16.mxu0 %v6462_v35  ;;  %2416 = vmatprep.subr.bf16.mxu1 %v6465_v36 }
  0xad   :  { %6270 = vmatmul.mubr.msk.bf16.gmra.mxu0 %vm230_vm0, %v6939_v44  ;;  %6286 = vmatmul.mubr.msk.bf16.gmra.mxu1 %vm230_vm0, %v6939_v44  ;;  %v6483_v44 = vld [vmem:[#allocation3 + $0x104] ss:$8 sps:$4 sm:$0xff]  }
  0xae   :  { %727 = vmatprep.mubr.bf16.mxu0 %v6804_v1  ;;  %920 = vmatprep.mubr.bf16.mxu1 %v6804_v1 }
  0xaf   :  { %2224 = vmatpush1.bf16.msra.mxu0 %v6460_v37  ;;  %2417 = vmatpush1.bf16.msra.mxu1 %v6463_v38 }
  0xb0   :  { %2225 = vmatprep.subr.bf16.mxu0 %v6468_v40  ;;  %2418 = vmatprep.subr.bf16.mxu1 %v6471_v39 }
  0xb3   :  { %2226 = vmatpush1.bf16.msra.mxu0 %v6466_v41  ;;  %2419 = vmatpush1.bf16.msra.mxu1 %v6469_v42 }
  0xb4   :  { %2227 = vmatprep.subr.bf16.mxu0 %v6474_v43  ;;  %2420 = vmatprep.subr.bf16.mxu1 %v6477_v45 }
  0xb5   :  { %6271 = vmatmul.mubr.msk.bf16.gmra.mxu0 %vm230_vm0, %v6953_v47  ;;  %6287 = vmatmul.mubr.msk.bf16.gmra.mxu1 %vm230_vm0, %v6953_v47  ;;  %v6495_v47 = vld [vmem:[#allocation3 + $0x1e4] ss:$8 sps:$4 sm:$0xff]  }
  0xb6   :  { %737 = vmatprep.mubr.bf16.mxu0 %v6804_v1  ;;  %930 = vmatprep.mubr.bf16.mxu1 %v6804_v1 }
  0xb7   :  { %2228 = vmatpush1.bf16.msra.mxu0 %v6472_v46  ;;  %2421 = vmatpush1.bf16.msra.mxu1 %v6475_v48 }
  0xb8   :  { %2229 = vmatprep.subr.bf16.mxu0 %v6480_v49  ;;  %2422 = vmatprep.subr.bf16.mxu1 %v6483_v44 }
  0xbb   :  { %2230 = vmatpush1.bf16.msra.mxu0 %v6478_v51  ;;  %2423 = vmatpush1.bf16.msra.mxu1 %v6481_v52 }
  0xbc   :  { %2231 = vmatprep.subr.bf16.mxu0 %v6486_v54  ;;  %2424 = vmatprep.subr.bf16.mxu1 %v6489_v55 }
  0xbd   :  { %6272 = vmatmul.mubr.msk.bf16.gmra.mxu0 %vm230_vm0, %v6967_v50  ;;  %6288 = vmatmul.mubr.msk.bf16.gmra.mxu1 %vm230_vm0, %v6967_v50  ;;  %v6507_v50 = vld [vmem:[#allocation3 + $0x1c4] ss:$8 sps:$4 sm:$0xff]  }
  0xbe   :  { %747 = vmatprep.mubr.bf16.mxu0 %v6804_v1  ;;  %940 = vmatprep.mubr.bf16.mxu1 %v6804_v1 }
  0xbf   :  { %2232 = vmatpush2.bf16.msra.mxu0 %v6484_v57  ;;  %2425 = vmatpush2.bf16.msra.mxu1 %v6487_v58 }
  0xc0   :  { %2233 = vmatprep.subr.bf16.mxu0 %v6492_v60  ;;  %2426 = vmatprep.subr.bf16.mxu1 %v6495_v47 }
  0xc3   :  { %2234 = vmatpush2.bf16.msra.mxu0 %v6490_v61  ;;  %2427 = vmatpush2.bf16.msra.mxu1 %v6493_v63 }
  0xc4   :  { %2235 = vmatprep.subr.bf16.mxu0 %v6498_v0  ;;  %2428 = vmatprep.subr.bf16.mxu1 %v6501_v3 }
  0xc5   :  { %6273 = vmatmul.mubr.msk.bf16.gmra.mxu0 %vm230_vm0, %v6981_v53  ;;  %6289 = vmatmul.mubr.msk.bf16.gmra.mxu1 %vm230_vm0, %v6981_v53  ;;  %v6519_v53 = vld [vmem:[#allocation3 + $0x1a4] ss:$8 sps:$4 sm:$0xff]  }
  0xc6   :  { %757 = vmatprep.mubr.bf16.mxu0 %v6804_v1  ;;  %950 = vmatprep.mubr.bf16.mxu1 %v6804_v1 }
  0xc7   :  { %2236 = vmatpush2.bf16.msra.mxu0 %v6496_v4  ;;  %2429 = vmatpush2.bf16.msra.mxu1 %v6499_v6  ;;  %v9550_v4 = vlaneseq }
  0xc8   :  { %2237 = vmatprep.subr.bf16.mxu0 %v6504_v7  ;;  %2430 = vmatprep.subr.bf16.mxu1 %v6507_v50 }
  0xcb   :  { %2238 = vmatpush2.bf16.msra.mxu0 %v6502_v9  ;;  %2431 = vmatpush2.bf16.msra.mxu1 %v6505_v10  ;;  %v7286_v10 = vshrl.u32 %v9550_v4, 7 }
  0xcc   :  { %2239 = vmatprep.subr.bf16.mxu0 %v6510_v12  ;;  %2432 = vmatprep.subr.bf16.mxu1 %v6513_v13 }
  0xcd   :  { %6274 = vmatmul.mubr.msk.bf16.gmra.mxu0 %vm230_vm0, %v6995_v56  ;;  %6290 = vmatmul.mubr.msk.bf16.gmra.mxu1 %vm230_vm0, %v6995_v56  ;;  %v6531_v56 = vld [vmem:[#allocation3 + $0x184] ss:$8 sps:$4 sm:$0xff]   ;;  %9571 = vst [vmem:[#allocation9_spill] sm:$0xff] %v7286_v10  ;;  %v7295_v13 = vsub.s32 1, %v7286_v10 }
  0xce   :  { %767 = vmatprep.mubr.bf16.mxu0 %v6804_v1  ;;  %960 = vmatprep.mubr.bf16.mxu1 %v6804_v1 }
  0xcf   :  { %2240 = vmatpush2.bf16.msra.mxu0 %v6508_v15  ;;  %2433 = vmatpush2.bf16.msra.mxu1 %v6511_v16  ;;  %9572 = vst [vmem:[#allocation10_spill] sm:$0xff] %v7295_v13  ;;  %v7303_v16 = vsub.s32 3, %v7286_v10 }
  0xd0   :  { %2241 = vmatprep.subr.bf16.mxu0 %v6516_v18  ;;  %2434 = vmatprep.subr.bf16.mxu1 %v6519_v53 }
  0xd1   :  { %9574 = vst [vmem:[#allocation12_spill] sm:$0xff] %v7303_v16 }
  0xd3   :  { %2242 = vmatpush2.bf16.msra.mxu0 %v6514_v19  ;;  %2435 = vmatpush2.bf16.msra.mxu1 %v6517_v21  ;;  %v108_v19 = vld [vmem:[%s9544_s2] sm:$0xff] }
  0xd4   :  { %2243 = vmatprep.subr.bf16.mxu0 %v6522_v22  ;;  %2436 = vmatprep.subr.bf16.mxu1 %v6525_v23  ;;  %v7316_v22 = vrot.slane %v108_v19, %v7295_v13  ;;  %v7321_v23 = vrot.slane %v108_v19, %v7303_v16 }
  0xd5   :  { %6275 = vmatmul.mubr.msk.bf16.gmra.mxu0 %vm230_vm0, %v7009_v59  ;;  %6291 = vmatmul.mubr.msk.bf16.gmra.mxu1 %vm230_vm0, %v7009_v59 }
  0xd6   :  { %777 = vmatprep.mubr.bf16.mxu0 %v6804_v1  ;;  %970 = vmatprep.mubr.bf16.mxu1 %v6804_v1 }
  0xd7   :  { %2244 = vmatpush2.bf16.msra.mxu0 %v6520_v24  ;;  %2437 = vmatpush2.bf16.msra.mxu1 %v6523_v25 }
  0xd8   :  { %2245 = vmatprep.subr.bf16.mxu0 %v6528_v27  ;;  %2438 = vmatprep.subr.bf16.mxu1 %v6531_v56  ;;  %v7330_v56 = vsub.s32 0, %v7286_v10 }
  0xda   :  { %9575 = vst [vmem:[#allocation13_spill] sm:$0xff] %v7330_v56 }
  0xdb   :  { %2246 = vmatpush2.bf16.msra.mxu0 %v6526_v28  ;;  %2439 = vmatpush2.bf16.msra.mxu1 %v6529_v29 }
  0xdc   :  { %2601 = vmatprep.subr.bf16.mxu0 %v6534_v30  ;;  %2794 = vmatprep.subr.bf16.mxu1 %v6537_v31  ;;  %v7339_v30 = vsub.s32 2, %v7286_v10  ;;  %v7356_v10 = vrot.slane %v108_v19, %v7330_v56 }
  0xdd   :  { %v7177_v32 = vpop.f32.mrf.mxu0  ;;  %6276 = vmatmul.mubr.msk.bf16.gmra.mxu0 %vm230_vm0, %v7023_v62  ;;  %v7181_v59 = vpop.f32.mrf.mxu1  ;;  %6292 = vmatmul.mubr.msk.bf16.gmra.mxu1 %vm230_vm0, %v7023_v62 }
  0xde   :  { %787 = vmatprep.mubr.bf16.mxu0 %v6804_v1  ;;  %980 = vmatprep.mubr.bf16.mxu1 %v6804_v1  ;;  %9577 = vst [vmem:[#allocation15_spill] sm:$0xff] %v7339_v30 }
  0xdf   :  { %v7186_v26 = vpop.f32.mrf.mxu0  ;;  %v7189_v33 = vpop.f32.mrf.mxu1 }
  0xe0   :  { %v316_v31 = vadd.f32 %v7186_v26, %v7316_v22 }
  0xe1   :  { %v7191_v34 = vpop.f32.mrf.mxu0  ;;  %v7193_v35 = vpop.f32.mrf.mxu1 }
  0xe3   :  { %v7195_v36 = vpop.f32.mrf.mxu0  ;;  %v7197_v37 = vpop.f32.mrf.mxu1 }
  0xe4   :  { %v320_v25 = vadd.f32 %v7195_v36, %v7316_v22  ;;  %v513_v28 = vadd.f32 %v7197_v37, %v7321_v23  ;;  %v509_v37 = vadd.f32 %v7189_v33, %v7321_v23 }
  0xe5   :  { %v7199_v38 = vpop.f32.mrf.mxu0  ;;  %6277 = vmatmul.mubr.msk.bf16.gmra.mxu0 %vm230_vm0, %v7037_v2  ;;  %v7203_v62 = vpop.f32.mrf.mxu1  ;;  %6293 = vmatmul.mubr.msk.bf16.gmra.mxu1 %vm230_vm0, %v7037_v2 }
  0xe6   :  { %797 = vmatprep.mubr.bf16.mxu0 %v6804_v1  ;;  %990 = vmatprep.mubr.bf16.mxu1 %v6804_v1  ;;  %v1060_v16 = vmax.f32 %v320_v25, 0.0  ;;  %v1062_v26 = vmax.f32 %v513_v28, 0.0  ;;  %v1054_v33 = vmax.f32 %v509_v37, 0.0 }
  0xe7   :  { %v7208_v40 = vpop.f32.mrf.mxu0  ;;  %v7211_v39 = vpop.f32.mrf.mxu1 }
  0xe9   :  { %v7213_v41 = vpop.f32.mrf.mxu0  ;;  %v7215_v42 = vpop.f32.mrf.mxu1 }
  0xeb   :  { %v7217_v43 = vpop.f32.mrf.mxu0  ;;  %v7219_v45 = vpop.f32.mrf.mxu1 }
  0xec   :  { %v330_v28 = vadd.f32 %v7217_v43, %v7316_v22  ;;  %v326_v43 = vadd.f32 %v7208_v40, %v7316_v22 }
  0xed   :  { %v7221_v46 = vpop.f32.mrf.mxu0  ;;  %6278 = vmatmul.mubr.msk.bf16.gmra.mxu0 %vm230_vm0, %v7051_v5  ;;  %v7225_v2 = vpop.f32.mrf.mxu1  ;;  %6294 = vmatmul.mubr.msk.bf16.gmra.mxu1 %vm230_vm0, %v7051_v5 }
  0xee   :  { %807 = vmatprep.mubr.bf16.mxu0 %v6804_v1  ;;  %1000 = vmatprep.mubr.bf16.mxu1 %v6804_v1 }
  0xef   :  { %v7230_v48 = vpop.f32.mrf.mxu0  ;;  %v7233_v49 = vpop.f32.mrf.mxu1 }
  0xf1   :  { %v7235_v44 = vpop.f32.mrf.mxu0  ;;  %v7237_v51 = vpop.f32.mrf.mxu1 }
  0xf3   :  { %v7239_v52 = vpop.f32.mrf.mxu0  ;;  %v7241_v54 = vpop.f32.mrf.mxu1 }
  0xf5   :  { %v7243_v55 = vpop.f32.mrf.mxu0  ;;  %6279 = vmatmul.mubr.msk.bf16.gmra.mxu0 %vm230_vm0, %v7065_v8  ;;  %v7247_v5 = vpop.f32.mrf.mxu1  ;;  %6295 = vmatmul.mubr.msk.bf16.gmra.mxu1 %vm230_vm0, %v7065_v8 }
  0xf6   :  { %817 = vmatprep.mubr.bf16.mxu0 %v6804_v1  ;;  %1010 = vmatprep.mubr.bf16.mxu1 %v6804_v1 }
  0xf7   :  { %v7252_v57 = vpop.f32.mrf.mxu0  ;;  %v7255_v58 = vpop.f32.mrf.mxu1 }
  0xf9   :  { %v7257_v60 = vpop.f32.mrf.mxu0  ;;  %v7259_v47 = vpop.f32.mrf.mxu1 }
  0xfb   :  { %v7261_v61 = vpop.f32.mrf.mxu0  ;;  %v7263_v63 = vpop.f32.mrf.mxu1 }
  0xfd   :  { %v7265_v0 = vpop.f32.mrf.mxu0  ;;  %6280 = vmatmul.mubr.msk.bf16.gmra.mxu0 %vm230_vm0, %v7079_v11  ;;  %v7269_v8 = vpop.f32.mrf.mxu1  ;;  %6296 = vmatmul.mubr.msk.bf16.gmra.mxu1 %vm230_vm0, %v7079_v11 }
  0xfe   :  { %827 = vmatprep.mubr.bf16.mxu0 %v6804_v1  ;;  %1020 = vmatprep.mubr.bf16.mxu1 %v6804_v1 }
  0xff   :  { %v7274_v3 = vpop.f32.mrf.mxu0  ;;  %v7277_v6 = vpop.f32.mrf.mxu1 }
 0x101   :  { %v7279_v7 = vpop.f32.mrf.mxu0  ;;  %v7281_v50 = vpop.f32.mrf.mxu1 }
 0x103   :  { %v7283_v9 = vpop.f32.mrf.mxu0  ;;  %v7288_v12 = vpop.f32.mrf.mxu1 }
 0x105   :  { %v7290_v11 = vpop.f32.mrf.mxu0  ;;  %6281 = vmatmul.mubr.msk.bf16.gmra.mxu0 %vm230_vm0, %v7093_v14  ;;  %v7297_v15 = vpop.f32.mrf.mxu1  ;;  %6297 = vmatmul.mubr.msk.bf16.gmra.mxu1 %vm230_vm0, %v7093_v14 }
 0x106   :  { %9573 = vst [vmem:[#allocation11_spill] sm:$0xff] %v7297_v15  ;;  %837 = vmatprep.mubr.bf16.mxu0 %v6804_v1  ;;  %1030 = vmatprep.mubr.bf16.mxu1 %v6804_v1 }
 0x107   :  { %v7305_v18 = vpop.f32.mrf.mxu0  ;;  %v7308_v53 = vpop.f32.mrf.mxu1 }
 0x109   :  { %v7313_v21 = vpop.f32.mrf.mxu0  ;;  %v7318_v14 = vpop.f32.mrf.mxu1 }
 0x10b   :  { %v7323_v24 = vpop.f32.mrf.mxu0  ;;  %v7327_v27 = vpop.f32.mrf.mxu1 }
 0x10d   :  { %v7334_v29 = vpop.f32.mrf.mxu0  ;;  %6282 = vmatmul.mubr.msk.bf16.gmra.mxu0 %vm230_vm0, %v7107_v17  ;;  %v7343_v36 = vpop.f32.mrf.mxu1  ;;  %6298 = vmatmul.mubr.msk.bf16.gmra.mxu1 %vm230_vm0, %v7107_v17  ;;  %v7361_v17 = vrot.slane %v108_v19, %v7339_v30  ;;  %v314_v19 = vadd.f32 %v7177_v32, %v7356_v10 }
 0x10e   :  { %9576 = vst [vmem:[#allocation14_spill] sm:$0xff] %v7334_v29  ;;  %9578 = vst [vmem:[#allocation16_spill] sm:$0xff] %v7343_v36  ;;  %847 = vmatprep.mubr.bf16.mxu0 %v6804_v1  ;;  %1040 = vmatprep.mubr.bf16.mxu1 %v6804_v1  ;;  %v1052_v29 = vmax.f32 %v316_v31, 0.0  ;;  %v523_v31 = vadd.f32 %v7219_v45, %v7321_v23  ;;  %v519_v45 = vadd.f32 %v7211_v39, %v7321_v23 }
 0x10f   :  { %v7350_v4 = vpop.f32.mrf.mxu0  ;;  %v7353_v13 = vpop.f32.mrf.mxu1  ;;  %v511_v25 = vadd.f32 %v7193_v35, %v7361_v17  ;;  %v507_v35 = vadd.f32 %v7181_v59, %v7361_v17  ;;  %v1051_v59 = vmax.f32 %v314_v19, 0.0  ;;  %v328_v39 = vadd.f32 %v7213_v41, %v7356_v10 }
 0x110   :  { %9579 = vst [vmem:[#allocation17_spill] sm:$0xff] %v7350_v4  ;;  %9580 = vst [vmem:[#allocation18_spill] sm:$0xff] %v7353_v13  ;;  %v318_v4 = vadd.f32 %v7191_v34, %v7356_v10  ;;  %v1310_v34 = vpack.c.bf16 %v1062_v26, %v1054_v33  ;;  %v1076_v26 = vmax.f32 %v330_v28, 0.0  ;;  %v6532_v28 = vld [vmem:[#allocation3 + $0x270] ss:$8 sps:$4 sm:$0xff]   ;;  %v340_v19 = vadd.f32 %v7239_v52, %v7316_v22 }
 0x111   :  { %v7358_v36 = vpop.f32.mrf.mxu0  ;;  %v7363_v15 = vpop.f32.mrf.mxu1  ;;  %v517_v41 = vadd.f32 %v7203_v62, %v7361_v17  ;;  %v336_v52 = vadd.f32 %v7230_v48, %v7316_v22  ;;  %v529_v62 = vadd.f32 %v7233_v49, %v7321_v23  ;;  %v6541_v48 = vld [vmem:[#allocation3 + $0x360] ss:$8 sps:$4 sm:$0xff]  }
 0x112   :  { %9581 = vst [vmem:[#allocation19_spill] sm:$0xff] %v7358_v36  ;;  %9582 = vst [vmem:[#allocation20_spill] sm:$0xff] %v7363_v15  ;;  %v1308_v36 = vpack.c.bf16 %v1060_v16, %v1052_v29  ;;  %v1059_v32 = vmax.f32 %v318_v4, 0.0  ;;  %v1061_v29 = vmax.f32 %v511_v25, 0.0  ;;  %v1068_v15 = vmax.f32 %v326_v43, 0.0 }
 0x113   :  { %v7367_v1 = vpop.f32.mrf.mxu0  ;;  %v7373_v56 = vpop.f32.mrf.mxu1  ;;  %v1070_v4 = vmax.f32 %v519_v45, 0.0  ;;  %v6535_v43 = vld [vmem:[#allocation3 + $0x370] ss:$8 sps:$4 sm:$0xff]   ;;  %v1084_v49 = vmax.f32 %v336_v52, 0.0 }
 0x114   :  { %v6547_v52 = vld [vmem:[#allocation3 + $0x350] ss:$8 sps:$4 sm:$0xff]  }
 0x115   :  { %v7379_v37 = vpop.f32.mrf.mxu0  ;;  %6283 = vmatmul.mubr.msk.bf16.gmra.mxu0 %vm230_vm0, %v7121_v20  ;;  %v7387_v30 = vpop.f32.mrf.mxu1  ;;  %6299 = vmatmul.mubr.msk.bf16.gmra.mxu1 %vm230_vm0, %v7121_v20  ;;  %v1307_v20 = vpack.c.bf16 %v1059_v32, %v1051_v59  ;;  %v324_v32 = vadd.f32 %v7199_v38, %v7356_v10  ;;  %v6538_v59 = vld [vmem:[#allocation3 + $0x260] ss:$8 sps:$4 sm:$0xff]  }
 0x116   :  { %9583 = vst [vmem:[#allocation21_spill] sm:$0xff] %v7379_v37  ;;  %9584 = vst [vmem:[#allocation22_spill] sm:$0xff] %v7387_v30  ;;  %2247 = vmatprep.mubr.bf16.mxu0 %v1308_v36  ;;  %2440 = vmatprep.mubr.bf16.mxu1 %v1310_v34  ;;  %v1078_v37 = vmax.f32 %v523_v31, 0.0  ;;  %v1053_v30 = vmax.f32 %v507_v35, 0.0  ;;  %v521_v36 = vadd.f32 %v7215_v42, %v7361_v17 }
 0x117   :  { %v7393_v16 = vpop.f32.mrf.mxu0  ;;  %v7395_v33 = vpop.f32.mrf.mxu1  ;;  %v1316_v35 = vpack.c.bf16 %v1076_v26, %v1068_v15  ;;  %v533_v42 = vadd.f32 %v7241_v54, %v7321_v23  ;;  %v1075_v26 = vmax.f32 %v328_v39, 0.0 }
 0x118   :  { %v1309_v34 = vpack.c.bf16 %v1061_v29, %v1053_v30  ;;  %v1318_v30 = vpack.c.bf16 %v1078_v37, %v1070_v4  ;;  %v6543_v29 = vld [vmem:[#allocation3 + $0x364] ss:$8 sps:$4 sm:$0xff]   ;;  %v1077_v38 = vmax.f32 %v521_v36, 0.0  ;;  %v6546_v4 = vld [vmem:[#allocation3 + $0x254] ss:$8 sps:$4 sm:$0xff]  }
 0x119   :  { %v7397_v40 = vpop.f32.mrf.mxu0  ;;  %v7399_v13 = vpop.f32.mrf.mxu1  ;;  %v6549_v36 = vld [vmem:[#allocation3 + $0x354] ss:$8 sps:$4 sm:$0xff]  }
 0x11a   :  { %9585 = vst [vmem:[#allocation23_spill] sm:$0xff] %v7399_v13  ;;  %v6540_v13 = vld [vmem:[#allocation3 + $0x264] ss:$8 sps:$4 sm:$0xff]  }
 0x11b   :  { %v7405_v25 = vpop.f32.mrf.mxu0  ;;  %v7409_v31 = vpop.f32.mrf.mxu1 }
 0x11d   :  { %v7417_v45 = vpop.f32.mrf.mxu0  ;;  %2248 = vmatmul.mubr.bf16.vlgmr.msra.gmra.mxu0 %v1307_v20  ;;  %v7421_v15 = vpop.f32.mrf.mxu1  ;;  %2441 = vmatmul.mubr.bf16.vlgmr.msra.gmra.mxu1 %v1309_v34  ;;  %v1092_v20 = vmax.f32 %v340_v19, 0.0  ;;  %v1069_v34 = vmax.f32 %v517_v41, 0.0  ;;  %v531_v41 = vadd.f32 %v7237_v51, %v7361_v17  ;;  %v527_v51 = vadd.f32 %v7225_v2, %v7361_v17 }
 0x11e   :  { %9586 = vst [vmem:[#allocation24_spill] sm:$0xff] %v7417_v45  ;;  %9587 = vst [vmem:[#allocation25_spill] sm:$0xff] %v7421_v15  ;;  %2257 = vmatprep.mubr.bf16.mxu0 %v1316_v35  ;;  %2450 = vmatprep.mubr.bf16.mxu1 %v1318_v30  ;;  %v1067_v15 = vmax.f32 %v324_v32, 0.0  ;;  %v1094_v35 = vmax.f32 %v533_v42, 0.0  ;;  %v6544_v32 = vld [vmem:[#allocation3 + $0x250] ss:$8 sps:$4 sm:$0xff]   ;;  %v350_v42 = vadd.f32 %v7261_v61, %v7316_v22 }
 0x11f   :  { %2602 = vmatpush1.bf16.msra.mxu0 %v6532_v28  ;;  %v7425_v54 = vpop.f32.mrf.mxu0  ;;  %v7427_v37 = vpop.f32.mrf.mxu1  ;;  %2795 = vmatpush1.bf16.msra.mxu1 %v6535_v43  ;;  %v338_v28 = vadd.f32 %v7235_v44, %v7356_v10  ;;  %v1317_v45 = vpack.c.bf16 %v1077_v38, %v1069_v34  ;;  %v1086_v43 = vmax.f32 %v529_v62, 0.0  ;;  %v1324_v44 = vpack.c.bf16 %v1092_v20, %v1084_v49  ;;  %v6555_v62 = vld [vmem:[#allocation3 + $0x344] ss:$8 sps:$4 sm:$0xff]   ;;  %v6553_v34 = vld [vmem:[#allocation3 + $0x340] ss:$8 sps:$4 sm:$0xff]  }
 0x120   :  { %9588 = vst [vmem:[#allocation26_spill] sm:$0xff] %v7427_v37  ;;  %2603 = vmatprep.subr.bf16.mxu0 %v6540_v13  ;;  %2796 = vmatprep.subr.bf16.mxu1 %v6543_v29  ;;  %v1315_v19 = vpack.c.bf16 %v1075_v26, %v1067_v15  ;;  %v334_v13 = vadd.f32 %v7221_v46, %v7356_v10  ;;  %v6552_v15 = vld [vmem:[#allocation3 + $0x244] ss:$8 sps:$4 sm:$0xff]   ;;  %v1108_v2 = vmax.f32 %v350_v42, 0.0 }
 0x121   :  { %v7429_v39 = vpop.f32.mrf.mxu0  ;;  %v7433_v30 = vpop.f32.mrf.mxu1  ;;  %v543_v46 = vadd.f32 %v7263_v63, %v7321_v23  ;;  %v1326_v38 = vpack.c.bf16 %v1094_v35, %v1086_v43  ;;  %v1091_v61 = vmax.f32 %v338_v28, 0.0  ;;  %v539_v63 = vadd.f32 %v7255_v58, %v7321_v23 }
 0x122   :  { %v1083_v35 = vmax.f32 %v334_v13, 0.0  ;;  %v1085_v58 = vmax.f32 %v527_v51, 0.0  ;;  %v344_v13 = vadd.f32 %v7243_v55, %v7356_v10  ;;  %v541_v42 = vadd.f32 %v7259_v47, %v7361_v17  ;;  %v6559_v55 = vld [vmem:[#allocation3 + $0x330] ss:$8 sps:$4 sm:$0xff]  }
 0x123   :  { %v7437_v37 = vpop.f32.mrf.mxu0  ;;  %2604 = vmatpush1.bf16.msra.mxu0 %v6538_v59  ;;  %v7443_v29 = vpop.f32.mrf.mxu1  ;;  %2797 = vmatpush1.bf16.msra.mxu1 %v6541_v48  ;;  %v346_v59 = vadd.f32 %v7252_v57, %v7316_v22  ;;  %v6558_v57 = vld [vmem:[#allocation3 + $0x234] ss:$8 sps:$4 sm:$0xff]   ;;  %v1110_v28 = vmax.f32 %v543_v46, 0.0  ;;  %v553_v47 = vadd.f32 %v7288_v12, %v7321_v23 }
 0x124   :  { %2605 = vmatprep.subr.bf16.mxu0 %v6546_v4  ;;  %2798 = vmatprep.subr.bf16.mxu1 %v6549_v36  ;;  %v6550_v4 = vld [vmem:[#allocation3 + $0x240] ss:$8 sps:$4 sm:$0xff]   ;;  %v1093_v36 = vmax.f32 %v531_v41, 0.0  ;;  %v1323_v43 = vpack.c.bf16 %v1091_v61, %v1083_v35  ;;  %v348_v41 = vadd.f32 %v7257_v60, %v7356_v10  ;;  %v537_v60 = vadd.f32 %v7247_v5, %v7361_v17  ;;  %v6567_v35 = vld [vmem:[#allocation3 + $0x324] ss:$8 sps:$4 sm:$0xff]  }
 0x125   :  { %v7447_v26 = vpop.f32.mrf.mxu0  ;;  %2258 = vmatmul.mubr.bf16.gmra.mxu0 %v1315_v19  ;;  %v7453_v20 = vpop.f32.mrf.mxu1  ;;  %2451 = vmatmul.mubr.bf16.gmra.mxu1 %v1317_v45  ;;  %v6561_v19 = vld [vmem:[#allocation3 + $0x334] ss:$8 sps:$4 sm:$0xff]   ;;  %v549_v5 = vadd.f32 %v7277_v6, %v7321_v23 }
 0x126   :  { %2267 = vmatprep.mubr.bf16.mxu0 %v1324_v44  ;;  %2460 = vmatprep.mubr.bf16.mxu1 %v1326_v38  ;;  %v1100_v44 = vmax.f32 %v346_v59, 0.0  ;;  %v1325_v46 = vpack.c.bf16 %v1093_v36, %v1085_v58  ;;  %v6564_v59 = vld [vmem:[#allocation3 + $0x224] ss:$8 sps:$4 sm:$0xff]   ;;  %v6570_v58 = vld [vmem:[#allocation3 + $0x214] ss:$8 sps:$4 sm:$0xff]  }
 0x127   :  { %v7457_v48 = vpop.f32.mrf.mxu0  ;;  %2606 = vmatpush1.bf16.msra.mxu0 %v6544_v32  ;;  %v7459_v49 = vpop.f32.mrf.mxu1  ;;  %2799 = vmatpush1.bf16.msra.mxu1 %v6547_v52  ;;  %v1102_v32 = vmax.f32 %v539_v63, 0.0 }
 0x128   :  { %2607 = vmatprep.subr.bf16.mxu0 %v6552_v15  ;;  %2800 = vmatprep.subr.bf16.mxu1 %v6555_v62  ;;  %v6556_v15 = vld [vmem:[#allocation3 + $0x230] ss:$8 sps:$4 sm:$0xff]   ;;  %v360_v62 = vadd.f32 %v7283_v9, %v7316_v22  ;;  %v1332_v61 = vpack.c.bf16 %v1108_v2, %v1100_v44  ;;  %v356_v9 = vadd.f32 %v7274_v3, %v7316_v22  ;;  %v1109_v2 = vmax.f32 %v541_v42, 0.0  ;;  %v6565_v3 = vld [vmem:[#allocation3 + $0x320] ss:$8 sps:$4 sm:$0xff]  }
 0x129   :  { %v7461_v45 = vpop.f32.mrf.mxu0  ;;  %v7463_v38 = vpop.f32.mrf.mxu1  ;;  %v1101_v44 = vmax.f32 %v537_v60, 0.0  ;;  %v6573_v42 = vld [vmem:[#allocation3 + $0x314] ss:$8 sps:$4 sm:$0xff]   ;;  %v551_v60 = vadd.f32 %v7281_v50, %v7361_v17  ;;  %v547_v50 = vadd.f32 %v7269_v8, %v7361_v17 }
 0x12a   :  { %v1116_v6 = vmax.f32 %v356_v9, 0.0  ;;  %v6571_v9 = vld [vmem:[#allocation3 + $0x310] ss:$8 sps:$4 sm:$0xff]  }
 0x12b   :  { %v7471_v52 = vpop.f32.mrf.mxu0  ;;  %2608 = vmatpush1.bf16.msra.mxu0 %v6550_v4  ;;  %v7475_v51 = vpop.f32.mrf.mxu1  ;;  %2801 = vmatpush1.bf16.msra.mxu1 %v6553_v34  ;;  %v1334_v4 = vpack.c.bf16 %v1110_v28, %v1102_v32  ;;  %v1107_v34 = vmax.f32 %v348_v41, 0.0  ;;  %v1124_v28 = vmax.f32 %v360_v62, 0.0  ;;  %v1126_v32 = vmax.f32 %v553_v47, 0.0 }
 0x12c   :  { %2609 = vmatprep.subr.bf16.mxu0 %v6558_v57  ;;  %2802 = vmatprep.subr.bf16.mxu1 %v6561_v19  ;;  %v6562_v57 = vld [vmem:[#allocation3 + $0x220] ss:$8 sps:$4 sm:$0xff]   ;;  %v370_v47 = vadd.f32 %v7323_v24, %v7316_v22 }
 0x12d   :  { %v7481_v63 = vpop.f32.mrf.mxu0  ;;  %2268 = vmatmul.mubr.bf16.gmra.mxu0 %v1323_v43  ;;  %v7485_v36 = vpop.f32.mrf.mxu1  ;;  %2461 = vmatmul.mubr.bf16.gmra.mxu1 %v1325_v46  ;;  %v1099_v43 = vmax.f32 %v344_v13, 0.0  ;;  %v358_v46 = vadd.f32 %v7279_v7, %v7356_v10  ;;  %v6568_v13 = vld [vmem:[#allocation3 + $0x210] ss:$8 sps:$4 sm:$0xff]   ;;  %v1340_v7 = vpack.c.bf16 %v1124_v28, %v1116_v6  ;;  %v366_v28 = vadd.f32 %v7305_v18, %v7316_v22  ;;  %v6582_v18 = vld [vmem:[#allocation3 + $0x2f4] ss:$8 sps:$4 sm:$0xff]  }
 0x12e   :  { %2277 = vmatprep.mubr.bf16.mxu0 %v1332_v61  ;;  %2470 = vmatprep.mubr.bf16.mxu1 %v1334_v4  ;;  %v1333_v61 = vpack.c.bf16 %v1109_v2, %v1101_v44  ;;  %v6577_v44 = vld [vmem:[#allocation3 + $0x300] ss:$8 sps:$4 sm:$0xff]   ;;  %v1140_v8 = vmax.f32 %v370_v47, 0.0  ;;  %v561_v47 = vadd.f32 %v7318_v14, %v7361_v17  ;;  %v573_v14 = vadd.f32 %v7373_v56, %v7321_v23 }
 0x12f   :  { %v7489_v12 = vpop.f32.mrf.mxu0  ;;  %2610 = vmatpush1.bf16.msra.mxu0 %v6556_v15  ;;  %v7491_v19 = vpop.f32.mrf.mxu1  ;;  %2803 = vmatpush1.bf16.msra.mxu1 %v6559_v55  ;;  %v1331_v62 = vpack.c.bf16 %v1107_v34, %v1099_v43  ;;  %v354_v55 = vadd.f32 %v7265_v0, %v7356_v10  ;;  %v6576_v34 = vld [vmem:[#allocation3 + $0x204] ss:$8 sps:$4 sm:$0xff]   ;;  %v563_v0 = vadd.f32 %v7327_v27, %v7321_v23  ;;  %v1123_v24 = vmax.f32 %v358_v46, 0.0  ;;  %v6574_v43 = vld [vmem:[#allocation3 + $0x200] ss:$8 sps:$4 sm:$0xff]  }
 0x130   :  { %2611 = vmatprep.subr.bf16.mxu0 %v6564_v59  ;;  %2804 = vmatprep.subr.bf16.mxu1 %v6567_v35  ;;  %v1118_v59 = vmax.f32 %v549_v5, 0.0  ;;  %v559_v27 = vadd.f32 %v7308_v53, %v7321_v23  ;;  %v1117_v53 = vmax.f32 %v547_v50, 0.0 }
 0x131   :  { %v7493_v41 = vpop.f32.mrf.mxu0  ;;  %v7497_v15 = vpop.f32.mrf.mxu1  ;;  %v1142_v46 = vmax.f32 %v563_v0, 0.0 }
 0x132   :  { %v1342_v5 = vpack.c.bf16 %v1126_v32, %v1118_v59  ;;  %v1115_v32 = vmax.f32 %v354_v55, 0.0  ;;  %v364_v55 = vadd.f32 %v7290_v11, %v7356_v10  ;;  %v6583_v11 = vld [vmem:[#allocation3 + $0x3f0] ss:$8 sps:$4 sm:$0xff]  }
 0x133   :  { %v7501_v4 = vpop.f32.mrf.mxu0  ;;  %2612 = vmatpush1.bf16.msra.mxu0 %v6562_v57  ;;  %v7507_v35 = vpop.f32.mrf.mxu1  ;;  %2805 = vmatpush1.bf16.msra.mxu1 %v6565_v3  ;;  %v6579_v57 = vld [vmem:[#allocation3 + $0x304] ss:$8 sps:$4 sm:$0xff]  }
 0x134   :  { %2613 = vmatprep.subr.bf16.mxu0 %v6570_v58  ;;  %2806 = vmatprep.subr.bf16.mxu1 %v6573_v42  ;;  %v1125_v42 = vmax.f32 %v551_v60, 0.0  ;;  %v1339_v59 = vpack.c.bf16 %v1123_v24, %v1115_v32  ;;  %v368_v60 = vadd.f32 %v7313_v21, %v7356_v10  ;;  %v9590_v21 = vld [vmem:[#allocation11_spill] sm:$0xff] }
 0x135   :  { %v7511_v2 = vpop.f32.mrf.mxu0  ;;  %2278 = vmatmul.mubr.bf16.gmra.mxu0 %v1331_v62  ;;  %v7517_v3 = vpop.f32.mrf.mxu1  ;;  %2471 = vmatmul.mubr.bf16.gmra.mxu1 %v1333_v61  ;;  %v6585_v61 = vld [vmem:[#allocation3 + $0x3f4] ss:$8 sps:$4 sm:$0xff]  }
 0x136   :  { %9589 = vst [vmem:[#allocation27_spill] sm:$0xff] %v7517_v3  ;;  %2287 = vmatprep.mubr.bf16.mxu0 %v1340_v7  ;;  %2480 = vmatprep.mubr.bf16.mxu1 %v1342_v5  ;;  %v1132_v7 = vmax.f32 %v366_v28, 0.0  ;;  %v1341_v0 = vpack.c.bf16 %v1125_v42, %v1117_v53  ;;  %v6588_v28 = vld [vmem:[#allocation3 + $0x2e4] ss:$8 sps:$4 sm:$0xff]  }
 0x137   :  { %v7521_v58 = vpop.f32.mrf.mxu0  ;;  %2614 = vmatpush1.bf16.msra.mxu0 %v6568_v13  ;;  %v7523_v6 = vpop.f32.mrf.mxu1  ;;  %2807 = vmatpush1.bf16.msra.mxu1 %v6571_v9  ;;  %v1134_v13 = vmax.f32 %v559_v27, 0.0  ;;  %v557_v27 = vadd.f32 %v9590_v21, %v7361_v17  ;;  %v6591_v42 = vld [vmem:[#allocation3 + $0x3e4] ss:$8 sps:$4 sm:$0xff]  }
 0x138   :  { %2615 = vmatprep.subr.bf16.mxu0 %v6576_v34  ;;  %2808 = vmatprep.subr.bf16.mxu1 %v6579_v57  ;;  %v6580_v34 = vld [vmem:[#allocation3 + $0x2f0] ss:$8 sps:$4 sm:$0xff]   ;;  %v380_v57 = vadd.f32 %v7367_v1, %v7316_v22  ;;  %v1348_v24 = vpack.c.bf16 %v1140_v8, %v1132_v7  ;;  %v9592_v1 = vld [vmem:[#allocation17_spill] sm:$0xff] }
 0x139   :  { %v7525_v62 = vpop.f32.mrf.mxu0  ;;  %v7527_v5 = vpop.f32.mrf.mxu1  ;;  %v376_v53 = vadd.f32 %v9592_v1, %v7316_v22  ;;  %v9594_v7 = vld [vmem:[#allocation18_spill] sm:$0xff]  ;;  %v6594_v1 = vld [vmem:[#allocation3 + $0x2d4] ss:$8 sps:$4 sm:$0xff]  }
 0x13a   :  { %v569_v21 = vadd.f32 %v9594_v7, %v7321_v23 }
 0x13b   :  { %v7535_v9 = vpop.f32.mrf.mxu0  ;;  %2616 = vmatpush1.bf16.msra.mxu0 %v6574_v43  ;;  %v7539_v50 = vpop.f32.mrf.mxu1  ;;  %2809 = vmatpush1.bf16.msra.mxu1 %v6577_v44  ;;  %v1350_v43 = vpack.c.bf16 %v1142_v46, %v1134_v13  ;;  %v1139_v44 = vmax.f32 %v368_v60, 0.0  ;;  %v1156_v46 = vmax.f32 %v380_v57, 0.0  ;;  %v6589_v13 = vld [vmem:[#allocation3 + $0x3e0] ss:$8 sps:$4 sm:$0xff]   ;;  %v1148_v7 = vmax.f32 %v376_v53, 0.0 }
 0x13c   :  { %2617 = vmatprep.subr.bf16.mxu0 %v6582_v18  ;;  %2810 = vmatprep.subr.bf16.mxu1 %v6585_v61  ;;  %v1141_v18 = vmax.f32 %v561_v47, 0.0  ;;  %v6597_v47 = vld [vmem:[#allocation3 + $0x3d4] ss:$8 sps:$4 sm:$0xff]  }
 0x13d   :  { %v7545_v32 = vpop.f32.mrf.mxu0  ;;  %2288 = vmatmul.mubr.bf16.gmra.mxu0 %v1339_v59  ;;  %v7549_v8 = vpop.f32.mrf.mxu1  ;;  %2481 = vmatmul.mubr.bf16.gmra.mxu1 %v1341_v0  ;;  %v6586_v59 = vld [vmem:[#allocation3 + $0x2e0] ss:$8 sps:$4 sm:$0xff]   ;;  %v1133_v0 = vmax.f32 %v557_v27, 0.0 }
 0x13e   :  { %9591 = vst [vmem:[#allocation11_spill] sm:$0xff] %v7545_v32  ;;  %9593 = vst [vmem:[#allocation17_spill] sm:$0xff] %v7549_v8  ;;  %2297 = vmatprep.mubr.bf16.mxu0 %v1348_v24  ;;  %2490 = vmatprep.mubr.bf16.mxu1 %v1350_v43  ;;  %v1131_v8 = vmax.f32 %v364_v55, 0.0  ;;  %v1158_v24 = vmax.f32 %v573_v14, 0.0  ;;  %v9597_v43 = vld [vmem:[#allocation19_spill] sm:$0xff]  ;;  %v9599_v27 = vld [vmem:[#allocation20_spill] sm:$0xff] }
 0x13f   :  { %v7553_v56 = vpop.f32.mrf.mxu0  ;;  %2618 = vmatpush2.bf16.msra.mxu0 %v6580_v34  ;;  %v7555_v61 = vpop.f32.mrf.mxu1  ;;  %2811 = vmatpush2.bf16.msra.mxu1 %v6583_v11  ;;  %v378_v32 = vadd.f32 %v9597_v43, %v7356_v10  ;;  %v9598_v11 = vld [vmem:[#allocation14_spill] sm:$0xff]  ;;  %v571_v14 = vadd.f32 %v9599_v27, %v7361_v17  ;;  %v1356_v43 = vpack.c.bf16 %v1156_v46, %v1148_v7 }
 0x140   :  { %9595 = vst [vmem:[#allocation18_spill] sm:$0xff] %v7553_v56  ;;  %9596 = vst [vmem:[#allocation28_spill] sm:$0xff] %v7555_v61  ;;  %2619 = vmatprep.subr.bf16.mxu0 %v6588_v28  ;;  %2812 = vmatprep.subr.bf16.mxu1 %v6591_v42  ;;  %v1347_v57 = vpack.c.bf16 %v1139_v44, %v1131_v8  ;;  %v1349_v56 = vpack.c.bf16 %v1141_v18, %v1133_v0  ;;  %v1150_v61 = vmax.f32 %v569_v21, 0.0  ;;  %v6592_v55 = vld [vmem:[#allocation3 + $0x2d0] ss:$8 sps:$4 sm:$0xff]  }
 0x141   :  { %v7557_v60 = vpop.f32.mrf.mxu0  ;;  %v7561_v34 = vpop.f32.mrf.mxu1  ;;  %v374_v28 = vadd.f32 %v9598_v11, %v7356_v10  ;;  %v390_v42 = vadd.f32 %v7405_v25, %v7316_v22  ;;  %v6595_v8 = vld [vmem:[#allocation3 + $0x3d0] ss:$8 sps:$4 sm:$0xff]   ;;  %v6600_v44 = vld [vmem:[#allocation3 + $0x2c4] ss:$8 sps:$4 sm:$0xff]   ;;  %v583_v18 = vadd.f32 %v7409_v31, %v7321_v23  ;;  %v1155_v25 = vmax.f32 %v378_v32, 0.0 }
 0x142   :  { %v6603_v0 = vld [vmem:[#allocation3 + $0x3c4] ss:$8 sps:$4 sm:$0xff]   ;;  %v9601_v11 = vld [vmem:[#allocation16_spill] sm:$0xff]  ;;  %v386_v46 = vadd.f32 %v7393_v16, %v7316_v22  ;;  %v579_v31 = vadd.f32 %v7395_v33, %v7321_v23  ;;  %v1157_v7 = vmax.f32 %v571_v14, 0.0 }
 0x143   :  { %v7565_v3 = vpop.f32.mrf.mxu0  ;;  %2620 = vmatpush2.bf16.msra.mxu0 %v6586_v59  ;;  %v7571_v53 = vpop.f32.mrf.mxu1  ;;  %2813 = vmatpush2.bf16.msra.mxu1 %v6589_v13  ;;  %v1358_v59 = vpack.c.bf16 %v1158_v24, %v1150_v61  ;;  %v567_v27 = vadd.f32 %v9601_v11, %v7361_v17  ;;  %v6598_v61 = vld [vmem:[#allocation3 + $0x2c0] ss:$8 sps:$4 sm:$0xff]   ;;  %v6606_v16 = vld [vmem:[#allocation3 + $0x2b4] ss:$8 sps:$4 sm:$0xff]   ;;  %v1174_v11 = vmax.f32 %v583_v18, 0.0 }
 0x144   :  { %2621 = vmatprep.subr.bf16.mxu0 %v6594_v1  ;;  %2814 = vmatprep.subr.bf16.mxu1 %v6597_v47  ;;  %v6601_v24 = vld [vmem:[#allocation3 + $0x3c0] ss:$8 sps:$4 sm:$0xff]   ;;  %v1147_v47 = vmax.f32 %v374_v28, 0.0  ;;  %v1166_v14 = vmax.f32 %v579_v31, 0.0  ;;  %v6607_v31 = vld [vmem:[#allocation3 + $0x3b0] ss:$8 sps:$4 sm:$0xff]  }
 0x145   :  { %v7575_v21 = vpop.f32.mrf.mxu0  ;;  %2298 = vmatmul.mubr.bf16.gmra.mxu0 %v1347_v57  ;;  %v7581_v13 = vpop.f32.mrf.mxu1  ;;  %2491 = vmatmul.mubr.bf16.gmra.mxu1 %v1349_v56  ;;  %v1172_v57 = vmax.f32 %v390_v42, 0.0  ;;  %v1149_v33 = vmax.f32 %v567_v27, 0.0  ;;  %v388_v42 = vadd.f32 %v7397_v40, %v7356_v10  ;;  %v400_v27 = vadd.f32 %v7437_v37, %v7316_v22  ;;  %v9607_v40 = vld [vmem:[#allocation22_spill] sm:$0xff] }
 0x146   :  { %9600 = vst [vmem:[#allocation19_spill] sm:$0xff] %v7575_v21  ;;  %9602 = vst [vmem:[#allocation14_spill] sm:$0xff] %v7581_v13  ;;  %2307 = vmatprep.mubr.bf16.mxu0 %v1356_v43  ;;  %2500 = vmatprep.mubr.bf16.mxu1 %v1358_v59  ;;  %v6609_v43 = vld [vmem:[#allocation3 + $0x3b4] ss:$8 sps:$4 sm:$0xff]   ;;  %v1355_v59 = vpack.c.bf16 %v1155_v25, %v1147_v47  ;;  %v1164_v13 = vmax.f32 %v386_v46, 0.0  ;;  %v396_v37 = vadd.f32 %v7425_v54, %v7316_v22 }
 0x147   :  { %v7585_v1 = vpop.f32.mrf.mxu0  ;;  %2622 = vmatpush2.bf16.msra.mxu0 %v6592_v55  ;;  %v7587_v32 = vpop.f32.mrf.mxu1  ;;  %2815 = vmatpush2.bf16.msra.mxu1 %v6595_v8  ;;  %v9605_v55 = vld [vmem:[#allocation21_spill] sm:$0xff]  ;;  %v9606_v8 = vld [vmem:[#allocation23_spill] sm:$0xff] }
 0x148   :  { %2623 = vmatprep.subr.bf16.mxu0 %v6600_v44  ;;  %2816 = vmatprep.subr.bf16.mxu1 %v6603_v0  ;;  %v384_v28 = vadd.f32 %v9605_v55, %v7356_v10  ;;  %v581_v44 = vadd.f32 %v9606_v8, %v7361_v17  ;;  %v6604_v0 = vld [vmem:[#allocation3 + $0x2b0] ss:$8 sps:$4 sm:$0xff]   ;;  %v1364_v46 = vpack.c.bf16 %v1172_v57, %v1164_v13  ;;  %v6612_v47 = vld [vmem:[#allocation3 + $0x2a4] ss:$8 sps:$4 sm:$0xff]   ;;  %v6613_v54 = vld [vmem:[#allocation3 + $0x3a0] ss:$8 sps:$4 sm:$0xff]  }
 0x149   :  { %v7589_v56 = vpop.f32.mrf.mxu0  ;;  %v7591_v21 = vpop.f32.mrf.mxu1  ;;  %v577_v55 = vadd.f32 %v9607_v40, %v7361_v17  ;;  %v593_v8 = vadd.f32 %v7443_v29, %v7321_v23 }
 0x14a   :  { %9603 = vst [vmem:[#allocation20_spill] sm:$0xff] %v7589_v56  ;;  %9604 = vst [vmem:[#allocation16_spill] sm:$0xff] %v7591_v21  ;;  %v1357_v56 = vpack.c.bf16 %v1157_v7, %v1149_v33  ;;  %v6615_v7 = vld [vmem:[#allocation3 + $0x3a4] ss:$8 sps:$4 sm:$0xff]   ;;  %v1173_v57 = vmax.f32 %v581_v44, 0.0  ;;  %v1163_v40 = vmax.f32 %v384_v28, 0.0  ;;  %v591_v28 = vadd.f32 %v7433_v30, %v7361_v17 }
 0x14b   :  { %v7599_v18 = vpop.f32.mrf.mxu0  ;;  %2624 = vmatpush2.bf16.msra.mxu0 %v6598_v61  ;;  %v7603_v25 = vpop.f32.mrf.mxu1  ;;  %2817 = vmatpush2.bf16.msra.mxu1 %v6601_v24  ;;  %v1366_v61 = vpack.c.bf16 %v1174_v11, %v1166_v14  ;;  %v1171_v24 = vmax.f32 %v388_v42, 0.0  ;;  %v1188_v11 = vmax.f32 %v400_v27, 0.0  ;;  %v6618_v14 = vld [vmem:[#allocation3 + $0x294] ss:$8 sps:$4 sm:$0xff]   ;;  %v398_v27 = vadd.f32 %v7429_v39, %v7356_v10 }
 0x14c   :  { %2625 = vmatprep.subr.bf16.mxu0 %v6606_v16  ;;  %2818 = vmatprep.subr.bf16.mxu1 %v6609_v43  ;;  %v9610_v16 = vld [vmem:[#allocation26_spill] sm:$0xff]  ;;  %v6621_v44 = vld [vmem:[#allocation3 + $0x394] ss:$8 sps:$4 sm:$0xff]  }
 0x14d   :  { %v7609_v21 = vpop.f32.mrf.mxu0  ;;  %2308 = vmatmul.mubr.bf16.gmra.mxu0 %v1355_v59  ;;  %v7613_v13 = vpop.f32.mrf.mxu1  ;;  %2501 = vmatmul.mubr.bf16.gmra.mxu1 %v1357_v56  ;;  %v589_v33 = vadd.f32 %v9610_v16, %v7321_v23  ;;  %v6610_v59 = vld [vmem:[#allocation3 + $0x2a0] ss:$8 sps:$4 sm:$0xff]   ;;  %v1165_v56 = vmax.f32 %v577_v55, 0.0  ;;  %v1180_v16 = vmax.f32 %v396_v37, 0.0  ;;  %v410_v55 = vadd.f32 %v7471_v52, %v7316_v22  ;;  %v6619_v37 = vld [vmem:[#allocation3 + $0x390] ss:$8 sps:$4 sm:$0xff]  }
 0x14e   :  { %9608 = vst [vmem:[#allocation21_spill] sm:$0xff] %v7609_v21  ;;  %9609 = vst [vmem:[#allocation23_spill] sm:$0xff] %v7613_v13  ;;  %2317 = vmatprep.mubr.bf16.mxu0 %v1364_v46  ;;  %2510 = vmatprep.mubr.bf16.mxu1 %v1366_v61  ;;  %v1190_v46 = vmax.f32 %v593_v8, 0.0  ;;  %v1363_v13 = vpack.c.bf16 %v1171_v24, %v1163_v40  ;;  %v6624_v24 = vld [vmem:[#allocation3 + $0x284] ss:$8 sps:$4 sm:$0xff]  }
 0x14f   :  { %v7617_v29 = vpop.f32.mrf.mxu0  ;;  %2626 = vmatpush2.bf16.msra.mxu0 %v6604_v0  ;;  %v7619_v43 = vpop.f32.mrf.mxu1  ;;  %2819 = vmatpush2.bf16.msra.mxu1 %v6607_v31  ;;  %v1365_v0 = vpack.c.bf16 %v1173_v57, %v1165_v56  ;;  %v1182_v21 = vmax.f32 %v589_v33, 0.0  ;;  %v9611_v57 = vld [vmem:[#allocation24_spill] sm:$0xff]  ;;  %v603_v33 = vadd.f32 %v7475_v51, %v7321_v23  ;;  %v6627_v40 = vld [vmem:[#allocation3 + $0x384] ss:$8 sps:$4 sm:$0xff]   ;;  %v599_v51 = vadd.f32 %v7459_v49, %v7321_v23 }
 0x150   :  { %2627 = vmatprep.subr.bf16.mxu0 %v6612_v47  ;;  %2820 = vmatprep.subr.bf16.mxu1 %v6615_v7  ;;  %v6616_v47 = vld [vmem:[#allocation3 + $0x290] ss:$8 sps:$4 sm:$0xff]   ;;  %v1372_v7 = vpack.c.bf16 %v1188_v11, %v1180_v16  ;;  %v394_v39 = vadd.f32 %v9611_v57, %v7356_v10  ;;  %v9612_v52 = vld [vmem:[#allocation25_spill] sm:$0xff]  ;;  %v406_v11 = vadd.f32 %v7457_v48, %v7316_v22 }
 0x151   :  { %v7621_v42 = vpop.f32.mrf.mxu0  ;;  %v7623_v61 = vpop.f32.mrf.mxu1  ;;  %v1374_v30 = vpack.c.bf16 %v1190_v46, %v1182_v21  ;;  %v587_v56 = vadd.f32 %v9612_v52, %v7361_v17  ;;  %v6622_v21 = vld [vmem:[#allocation3 + $0x280] ss:$8 sps:$4 sm:$0xff]   ;;  %v1204_v46 = vmax.f32 %v410_v55, 0.0  ;;  %v1206_v52 = vmax.f32 %v603_v33, 0.0 }
 0x152   :  { %v6625_v48 = vld [vmem:[#allocation3 + $0x380] ss:$8 sps:$4 sm:$0xff]   ;;  %v1179_v57 = vmax.f32 %v394_v39, 0.0 }
 0x153   :  { %v7627_v31 = vpop.f32.mrf.mxu0  ;;  %2628 = vmatpush2.bf16.msra.mxu0 %v6610_v59  ;;  %v7633_v8 = vpop.f32.mrf.mxu1  ;;  %2821 = vmatpush2.bf16.msra.mxu1 %v6613_v54 }
 0x154   :  { %2629 = vmatprep.subr.bf16.mxu0 %v6618_v14  ;;  %2822 = vmatprep.subr.bf16.mxu1 %v6621_v44  ;;  %v1187_v14 = vmax.f32 %v398_v27, 0.0  ;;  %v1181_v27 = vmax.f32 %v587_v56, 0.0 }
 0x155   :  { %v7639_v59 = vpop.f32.mrf.mxu0  ;;  %2318 = vmatmul.mubr.bf16.gmra.mxu0 %v1363_v13  ;;  %v7645_v54 = vpop.f32.mrf.mxu1  ;;  %2511 = vmatmul.mubr.bf16.gmra.mxu1 %v1365_v0  ;;  %v1189_v13 = vmax.f32 %v591_v28, 0.0 }
 0x156   :  { %9613 = vst [vmem:[#allocation22_spill] sm:$0xff] %v7645_v54  ;;  %2327 = vmatprep.mubr.bf16.mxu0 %v1372_v7  ;;  %2520 = vmatprep.mubr.bf16.mxu1 %v1374_v30  ;;  %v1196_v7 = vmax.f32 %v406_v11, 0.0  ;;  %v1371_v30 = vpack.c.bf16 %v1187_v14, %v1179_v57  ;;  %v1198_v54 = vmax.f32 %v599_v51, 0.0 }
 0x157   :  { %v7649_v16 = vpop.f32.mrf.mxu0  ;;  %2630 = vmatpush2.bf16.msra.mxu0 %v6616_v47  ;;  %v7651_v44 = vpop.f32.mrf.mxu1  ;;  %2823 = vmatpush2.bf16.msra.mxu1 %v6619_v37  ;;  %v408_v47 = vadd.f32 %v7461_v45, %v7356_v10  ;;  %v1373_v55 = vpack.c.bf16 %v1189_v13, %v1181_v27  ;;  %v601_v37 = vadd.f32 %v7463_v38, %v7361_v17 }
 0x158   :  { %2631 = vmatprep.subr.bf16.mxu0 %v6624_v24  ;;  %2824 = vmatprep.subr.bf16.mxu1 %v6627_v40  ;;  %v420_v24 = vadd.f32 %v7501_v4, %v7316_v22  ;;  %v1380_v33 = vpack.c.bf16 %v1204_v46, %v1196_v7  ;;  %v404_v40 = vadd.f32 %v7447_v26, %v7356_v10 }
 0x159   :  { %v7653_v0 = vpop.f32.mrf.mxu0  ;;  %v7655_v49 = vpop.f32.mrf.mxu1  ;;  %v613_v45 = vadd.f32 %v7507_v35, %v7321_v23  ;;  %v1382_v11 = vpack.c.bf16 %v1206_v52, %v1198_v54  ;;  %v597_v38 = vadd.f32 %v7453_v20, %v7361_v17  ;;  %v416_v4 = vadd.f32 %v7489_v12, %v7316_v22 }
 0x15a   :  { %v1203_v51 = vmax.f32 %v408_v47, 0.0  ;;  %v609_v26 = vadd.f32 %v7491_v19, %v7321_v23  ;;  %v1220_v13 = vmax.f32 %v420_v24, 0.0  ;;  %v1195_v46 = vmax.f32 %v404_v40, 0.0 }
 0x15b   :  { %v7659_v28 = vpop.f32.mrf.mxu0  ;;  %2632 = vmatpush2.bf16.msra.mxu0 %v6622_v21  ;;  %v7665_v39 = vpop.f32.mrf.mxu1  ;;  %2825 = vmatpush2.bf16.msra.mxu1 %v6625_v48  ;;  %v1205_v21 = vmax.f32 %v601_v37, 0.0  ;;  %v1222_v20 = vmax.f32 %v613_v45, 0.0  ;;  %v1197_v12 = vmax.f32 %v597_v38, 0.0  ;;  %v1212_v57 = vmax.f32 %v416_v4, 0.0 }
 0x15c   :  { %v1379_v27 = vpack.c.bf16 %v1203_v51, %v1195_v46  ;;  %v1214_v7 = vmax.f32 %v609_v26, 0.0  ;;  %v418_v19 = vadd.f32 %v7493_v41, %v7356_v10  ;;  %v430_v37 = vadd.f32 %v7535_v9, %v7316_v22 }
 0x15d   :  { %v7671_v56 = vpop.f32.mrf.mxu0  ;;  %2328 = vmatmul.mubr.bf16.gmra.mxu0 %v1371_v30  ;;  %v7677_v14 = vpop.f32.mrf.mxu1  ;;  %2521 = vmatmul.mubr.bf16.gmra.mxu1 %v1373_v55  ;;  %v1381_v47 = vpack.c.bf16 %v1205_v21, %v1197_v12  ;;  %v611_v55 = vadd.f32 %v7497_v15, %v7361_v17  ;;  %v414_v40 = vadd.f32 %v7481_v63, %v7356_v10 }
 0x15e   :  { %2337 = vmatprep.mubr.bf16.mxu0 %v1380_v33  ;;  %2530 = vmatprep.mubr.bf16.mxu1 %v1382_v11  ;;  %v1388_v33 = vpack.c.bf16 %v1220_v13, %v1212_v57  ;;  %v623_v45 = vadd.f32 %v7539_v50, %v7321_v23  ;;  %v1390_v41 = vpack.c.bf16 %v1222_v20, %v1214_v7  ;;  %v1219_v4 = vmax.f32 %v418_v19, 0.0 }
 0x15f   :  { %v7681_v35 = vpop.f32.mrf.mxu0  ;;  %v7683_v54 = vpop.f32.mrf.mxu1  ;;  %v607_v38 = vadd.f32 %v7485_v36, %v7361_v17  ;;  %v426_v15 = vadd.f32 %v7521_v58, %v7316_v22  ;;  %v619_v63 = vadd.f32 %v7523_v6, %v7321_v23  ;;  %v1221_v51 = vmax.f32 %v611_v55, 0.0 }
 0x160   :  { %v1236_v26 = vmax.f32 %v430_v37, 0.0  ;;  %v1211_v13 = vmax.f32 %v414_v40, 0.0  ;;  %v1238_v36 = vmax.f32 %v623_v45, 0.0  ;;  %v428_v6 = vadd.f32 %v7525_v62, %v7356_v10 }
 0x161   :  { %v7685_v48 = vpop.f32.mrf.mxu0  ;;  %v7687_v52 = vpop.f32.mrf.mxu1  ;;  %v1213_v58 = vmax.f32 %v607_v38, 0.0  ;;  %v1228_v20 = vmax.f32 %v426_v15, 0.0  ;;  %v440_v55 = vadd.f32 %v7565_v3, %v7316_v22  ;;  %v424_v40 = vadd.f32 %v7511_v2, %v7356_v10  ;;  %v9614_v38 = vld [vmem:[#allocation27_spill] sm:$0xff]  ;;  %v9616_v2 = vld [vmem:[#allocation28_spill] sm:$0xff] }
 0x162   :  { %v1387_v57 = vpack.c.bf16 %v1219_v4, %v1211_v13  ;;  %v633_v45 = vadd.f32 %v7571_v53, %v7321_v23  ;;  %v617_v15 = vadd.f32 %v9614_v38, %v7361_v17 }
 0x163   :  { %v7691_v30 = vpop.f32.mrf.mxu0  ;;  %v7697_v24 = vpop.f32.mrf.mxu1  ;;  %v1389_v19 = vpack.c.bf16 %v1221_v51, %v1213_v58  ;;  %v629_v51 = vadd.f32 %v9616_v2, %v7321_v23  ;;  %v1252_v13 = vmax.f32 %v440_v55, 0.0  ;;  %v1227_v58 = vmax.f32 %v424_v40, 0.0 }
 0x164   :  { %v450_v55 = vadd.f32 %v7599_v18, %v7316_v22 }
 0x165   :  { %v7703_v11 = vpop.f32.mrf.mxu0  ;;  %2338 = vmatmul.mubr.bf16.gmra.mxu0 %v1379_v27  ;;  %v7709_v9 = vpop.f32.mrf.mxu1  ;;  %2531 = vmatmul.mubr.bf16.gmra.mxu1 %v1381_v47  ;;  %v1230_v27 = vmax.f32 %v619_v63, 0.0  ;;  %v621_v47 = vadd.f32 %v7527_v5, %v7361_v17  ;;  %v9615_v5 = vld [vmem:[#allocation18_spill] sm:$0xff]  ;;  %v1235_v63 = vmax.f32 %v428_v6, 0.0  ;;  %v1246_v6 = vmax.f32 %v629_v51, 0.0 }
 0x166   :  { %2347 = vmatprep.mubr.bf16.mxu0 %v1388_v33  ;;  %2540 = vmatprep.mubr.bf16.mxu1 %v1390_v41  ;;  %v1396_v33 = vpack.c.bf16 %v1236_v26, %v1228_v20  ;;  %v436_v4 = vadd.f32 %v9615_v5, %v7316_v22  ;;  %v1254_v20 = vmax.f32 %v633_v45, 0.0 }
 0x167   :  { %v7713_v50 = vpop.f32.mrf.mxu0  ;;  %v7715_v21 = vpop.f32.mrf.mxu1  ;;  %v1398_v62 = vpack.c.bf16 %v1238_v36, %v1230_v27  ;;  %v1237_v26 = vmax.f32 %v621_v47, 0.0  ;;  %v1229_v27 = vmax.f32 %v617_v15, 0.0  ;;  %v631_v47 = vadd.f32 %v7561_v34, %v7361_v17  ;;  %v9617_v15 = vld [vmem:[#allocation11_spill] sm:$0xff] }
 0x168   :  { %v1244_v38 = vmax.f32 %v436_v4, 0.0  ;;  %v434_v4 = vadd.f32 %v9617_v15, %v7356_v10  ;;  %v446_v34 = vadd.f32 %v7585_v1, %v7316_v22 }
 0x169   :  { %v7717_v46 = vpop.f32.mrf.mxu0  ;;  %v7719_v12 = vpop.f32.mrf.mxu1  ;;  %v1397_v2 = vpack.c.bf16 %v1237_v26, %v1229_v27  ;;  %v9619_v26 = vld [vmem:[#allocation17_spill] sm:$0xff]  ;;  %v639_v27 = vadd.f32 %v7587_v32, %v7321_v23 }
 0x16a   :  { %v1404_v45 = vpack.c.bf16 %v1252_v13, %v1244_v38  ;;  %v1253_v38 = vmax.f32 %v631_v47, 0.0  ;;  %v9624_v47 = vld [vmem:[#allocation16_spill] sm:$0xff] }
 0x16b   :  { %v7723_v7 = vpop.f32.mrf.mxu0  ;;  %v7729_v37 = vpop.f32.mrf.mxu1 }
 0x16d   :  { %v7735_v41 = vpop.f32.mrf.mxu0  ;;  %2348 = vmatmul.mubr.bf16.gmra.mxu0 %v1387_v57  ;;  %v7741_v3 = vpop.f32.mrf.mxu1  ;;  %2541 = vmatmul.mubr.bf16.gmra.mxu1 %v1389_v19  ;;  %v1395_v19 = vpack.c.bf16 %v1235_v63, %v1227_v58  ;;  %v643_v63 = vadd.f32 %v7603_v25, %v7321_v23  ;;  %v627_v58 = vadd.f32 %v9619_v26, %v7361_v17 }
 0x16e   :  { %2357 = vmatprep.mubr.bf16.mxu0 %v1396_v33  ;;  %2550 = vmatprep.mubr.bf16.mxu1 %v1398_v62  ;;  %v438_v33 = vadd.f32 %v7557_v60, %v7356_v10  ;;  %v1406_v60 = vpack.c.bf16 %v1254_v20, %v1246_v6  ;;  %v1243_v6 = vmax.f32 %v434_v4, 0.0  ;;  %v460_v4 = vadd.f32 %v7627_v31, %v7316_v22 }
 0x16f   :  { %v7745_v53 = vpop.f32.mrf.mxu0  ;;  %v7747_v36 = vpop.f32.mrf.mxu1  ;;  %v1270_v15 = vmax.f32 %v643_v63, 0.0  ;;  %v1245_v1 = vmax.f32 %v627_v58, 0.0 }
 0x170   :  { %v1251_v13 = vmax.f32 %v438_v33, 0.0  ;;  %v1262_v33 = vmax.f32 %v639_v27, 0.0 }
 0x171   :  { %v7749_v57 = vpop.f32.mrf.mxu0  ;;  %v7751_v5 = vpop.f32.mrf.mxu1 }
 0x173   :  { %v7755_v62 = vpop.f32.mrf.mxu0  ;;  %v7761_v40 = vpop.f32.mrf.mxu1 }
 0x175   :  { %v7767_v51 = vpop.f32.mrf.mxu0  ;;  %2358 = vmatmul.mubr.bf16.gmra.mxu0 %v1395_v19  ;;  %v7773_v18 = vpop.f32.mrf.mxu1  ;;  %2551 = vmatmul.mubr.bf16.gmra.mxu1 %v1397_v2  ;;  %v1268_v19 = vmax.f32 %v450_v55, 0.0  ;;  %v1403_v2 = vpack.c.bf16 %v1251_v13, %v1243_v6  ;;  %v641_v55 = vadd.f32 %v9624_v47, %v7361_v17  ;;  %v653_v13 = vadd.f32 %v7633_v8, %v7321_v23 }
 0x176   :  { %9618 = vst [vmem:[#allocation26_spill] sm:$0xff] %v7767_v51  ;;  %9620 = vst [vmem:[#allocation24_spill] sm:$0xff] %v7773_v18  ;;  %2367 = vmatprep.mubr.bf16.mxu0 %v1404_v45  ;;  %2560 = vmatprep.mubr.bf16.mxu1 %v1406_v60  ;;  %v1260_v51 = vmax.f32 %v446_v34, 0.0  ;;  %v9623_v45 = vld [vmem:[#allocation20_spill] sm:$0xff]  ;;  %v9625_v34 = vld [vmem:[#allocation19_spill] sm:$0xff]  ;;  %v1414_v6 = vpack.c.bf16 %v1270_v15, %v1262_v33 }
 0x177   :  { %v7777_v25 = vpop.f32.mrf.mxu0  ;;  %v7779_v20 = vpop.f32.mrf.mxu1  ;;  %v448_v32 = vadd.f32 %v9623_v45, %v7356_v10  ;;  %v456_v45 = vadd.f32 %v7617_v29, %v7316_v22  ;;  %v1269_v47 = vmax.f32 %v641_v55, 0.0  ;;  %v651_v55 = vadd.f32 %v7623_v61, %v7361_v17 }
 0x178   :  { %9621 = vst [vmem:[#allocation25_spill] sm:$0xff] %v7777_v25  ;;  %v1405_v25 = vpack.c.bf16 %v1253_v38, %v1245_v1  ;;  %v1412_v58 = vpack.c.bf16 %v1268_v19, %v1260_v51  ;;  %v9627_v38 = vld [vmem:[#allocation14_spill] sm:$0xff]  ;;  %v649_v19 = vadd.f32 %v7619_v43, %v7321_v23  ;;  %v458_v43 = vadd.f32 %v7621_v42, %v7356_v10 }
 0x179   :  { %v7781_v26 = vpop.f32.mrf.mxu0  ;;  %v7783_v18 = vpop.f32.mrf.mxu1  ;;  %v637_v1 = vadd.f32 %v9627_v38, %v7361_v17  ;;  %v1267_v51 = vmax.f32 %v448_v32, 0.0  ;;  %v466_v61 = vadd.f32 %v7649_v16, %v7316_v22 }
 0x17a   :  { %9622 = vst [vmem:[#allocation27_spill] sm:$0xff] %v7783_v18  ;;  %v444_v18 = vadd.f32 %v9625_v34, %v7356_v10  ;;  %v1286_v34 = vmax.f32 %v653_v13, 0.0  ;;  %v1278_v32 = vmax.f32 %v649_v19, 0.0 }
 0x17b   :  { %v7787_v60 = vpop.f32.mrf.mxu0  ;;  %v7793_v63 = vpop.f32.mrf.mxu1  ;;  %v1261_v29 = vmax.f32 %v637_v1, 0.0  ;;  %v9629_v1 = vld [vmem:[#allocation21_spill] sm:$0xff] }
 0x17c   :  { %v1259_v33 = vmax.f32 %v444_v18, 0.0  ;;  %v470_v18 = vadd.f32 %v7659_v28, %v7316_v22  ;;  %v1422_v42 = vpack.c.bf16 %v1286_v34, %v1278_v32  ;;  %v9632_v28 = vld [vmem:[#allocation9_spill] sm:$0xff]  ;;  %v1285_v32 = vmax.f32 %v651_v55, 0.0 }
 0x17d   :  { %v7799_v27 = vpop.f32.mrf.mxu0  ;;  %2368 = vmatmul.mubr.bf16.gmra.mxu0 %v1403_v2  ;;  %v7805_v31 = vpop.f32.mrf.mxu1  ;;  %2561 = vmatmul.mubr.bf16.gmra.mxu1 %v1405_v25  ;;  %v1284_v2 = vmax.f32 %v460_v4, 0.0 }
 0x17e   :  { %9626 = vst [vmem:[#allocation18_spill] sm:$0xff] %v7799_v27  ;;  %9628 = vst [vmem:[#allocation28_spill] sm:$0xff] %v7805_v31  ;;  %2377 = vmatprep.mubr.bf16.mxu0 %v1412_v58  ;;  %2570 = vmatprep.mubr.bf16.mxu1 %v1414_v6  ;;  %v1276_v27 = vmax.f32 %v456_v45, 0.0  ;;  %v1411_v25 = vpack.c.bf16 %v1267_v51, %v1259_v33  ;;  %v1413_v6 = vpack.c.bf16 %v1269_v47, %v1261_v29  ;;  %v9631_v47 = vld [vmem:[#allocation23_spill] sm:$0xff] }
 0x17f   :  { %v7809_v8 = vpop.f32.mrf.mxu0  ;;  %v7811_v15 = vpop.f32.mrf.mxu1  ;;  %v454_v45 = vadd.f32 %v9629_v1, %v7356_v10  ;;  %v663_v51 = vadd.f32 %v7665_v39, %v7321_v23  ;;  %v647_v33 = vadd.f32 %v9631_v47, %v7361_v17  ;;  %v7838_v29 = vsub.s32 5, %v9632_v28 }
 0x180   :  { %v1420_v13 = vpack.c.bf16 %v1284_v2, %v1276_v27  ;;  %v1283_v2 = vmax.f32 %v458_v43, 0.0  ;;  %v659_v39 = vadd.f32 %v7651_v44, %v7321_v23  ;;  %v1300_v1 = vmax.f32 %v470_v18, 0.0  ;;  %v6756_v23 = vld [vmem:[%s9544_s2] sm:$0xff] }
 0x181   :  { %v7813_v38 = vpop.f32.mrf.mxu0  ;;  %v7815_v31 = vpop.f32.mrf.mxu1  ;;  %9633 = vst [vmem:[#allocation17_spill] sm:$0xff] %v7838_v29  ;;  %v1275_v16 = vmax.f32 %v454_v45, 0.0  ;;  %v1302_v47 = vmax.f32 %v663_v51, 0.0  ;;  %v7857_v44 = vrot.slane %v6756_v23, %v7838_v29  ;;  %v468_v18 = vadd.f32 %v7653_v0, %v7356_v10 }
 0x182   :  { %v1294_v55 = vmax.f32 %v659_v39, 0.0  ;;  %v7877_v0 = vsub.s32 4, %v9632_v28 }
 0x183   :  { %v7819_v58 = vpop.f32.mrf.mxu0  ;;  %v7825_v4 = vpop.f32.mrf.mxu1  ;;  %v706_v29 = vadd.f32 %v7691_v30, %v7857_v44  ;;  %v7886_v30 = vsub.s32 6, %v9632_v28 }
 0x184   :  { %9637 = vst [vmem:[#allocation14_spill] sm:$0xff] %v7877_v0 }
 0x185   :  { %v7831_v19 = vpop.f32.mrf.mxu0  ;;  %2378 = vmatmul.mubr.bf16.gmra.mxu0 %v1411_v25  ;;  %v7840_v27 = vpop.f32.mrf.mxu1  ;;  %2571 = vmatmul.mubr.bf16.gmra.mxu1 %v1413_v6  ;;  %v7845_v25 = vsub.s32 7, %v9632_v28  ;;  %v1277_v6 = vmax.f32 %v647_v33, 0.0  ;;  %9639 = vst [vmem:[#allocation21_spill] sm:$0xff] %v7886_v30 }
 0x186   :  { %9630 = vst [vmem:[#allocation11_spill] sm:$0xff] %v7831_v19  ;;  %9634 = vst [vmem:[#allocation20_spill] sm:$0xff] %v7840_v27  ;;  %2387 = vmatprep.mubr.bf16.mxu0 %v1420_v13  ;;  %2580 = vmatprep.mubr.bf16.mxu1 %v1422_v42  ;;  %v1292_v13 = vmax.f32 %v466_v61, 0.0  ;;  %v1419_v42 = vpack.c.bf16 %v1283_v2, %v1275_v16  ;;  %v661_v61 = vadd.f32 %v7655_v49, %v7361_v17  ;;  %v9638_v49 = vld [vmem:[#allocation22_spill] sm:$0xff] }
 0x187   :  { %9635 = vst [vmem:[#allocation16_spill] sm:$0xff] %v7845_v25  ;;  %v7847_v34 = vpop.f32.mrf.mxu0  ;;  %v7849_v22 = vpop.f32.mrf.mxu1  ;;  %v7864_v45 = vrot.slane %v6756_v23, %v7845_v25  ;;  %v1421_v33 = vpack.c.bf16 %v1285_v32, %v1277_v6  ;;  %v464_v2 = vadd.f32 %v7639_v59, %v7356_v10  ;;  %v1430_v32 = vpack.c.bf16 %v1302_v47, %v1294_v55 }
 0x188   :  { %v657_v6 = vadd.f32 %v9638_v49, %v7361_v17  ;;  %v1299_v59 = vmax.f32 %v468_v18, 0.0  ;;  %v1301_v47 = vmax.f32 %v661_v61, 0.0  ;;  %v7899_v49 = vrot.slane %v6756_v23, %v7877_v0 }
 0x189   :  { %v7851_v19 = vpop.f32.mrf.mxu0  ;;  %v7859_v43 = vpop.f32.mrf.mxu1  ;;  %v899_v39 = vadd.f32 %v7697_v24, %v7864_v45  ;;  %v895_v24 = vadd.f32 %v7683_v54, %v7864_v45  ;;  %v1291_v55 = vmax.f32 %v464_v2, 0.0 }
 0x18a   :  { %9636 = vst [vmem:[#allocation19_spill] sm:$0xff] %v7859_v43  ;;  %v1428_v43 = vpack.c.bf16 %v1300_v1, %v1292_v13  ;;  %v702_v1 = vadd.f32 %v7681_v35, %v7857_v44 }
 0x18b   :  { %v7866_v51 = vpop.f32.mrf.mxu0  ;;  %v7872_v27 = vpop.f32.mrf.mxu1  ;;  %v1066_v35 = vmax.f32 %v899_v39, 0.0  ;;  %v1058_v28 = vmax.f32 %v895_v24, 0.0 }
 0x18c   :  { %v1056_v18 = vmax.f32 %v702_v1, 0.0  ;;  %v700_v1 = vadd.f32 %v7671_v56, %v7899_v49  ;;  %v905_v56 = vadd.f32 %v7715_v21, %v7864_v45  ;;  %v714_v21 = vadd.f32 %v7717_v46, %v7899_v49 }
 0x18d   :  { %v7881_v16 = vpop.f32.mrf.mxu0  ;;  %2388 = vmatmul.mubr.bf16.gmra.mxu0 %v1419_v42  ;;  %v7890_v10 = vpop.f32.mrf.mxu1  ;;  %2581 = vmatmul.mubr.bf16.gmra.mxu1 %v1421_v33  ;;  %v1064_v42 = vmax.f32 %v706_v29, 0.0  ;;  %v1293_v33 = vmax.f32 %v657_v6, 0.0  ;;  %v704_v29 = vadd.f32 %v7685_v48, %v7899_v49  ;;  %v716_v6 = vadd.f32 %v7723_v7, %v7857_v44 }
 0x18e   :  { %2397 = vmatprep.mubr.bf16.mxu0 %v1428_v43  ;;  %2590 = vmatprep.mubr.bf16.mxu1 %v1430_v32  ;;  %v7904_v43 = vrot.slane %v6756_v23, %v7886_v30  ;;  %v1427_v32 = vpack.c.bf16 %v1299_v59, %v1291_v55  ;;  %v909_v59 = vadd.f32 %v7729_v37, %v7864_v45 }
 0x18f   :  { %v7894_v13 = vpop.f32.mrf.mxu0  ;;  %v7896_v17 = vpop.f32.mrf.mxu1  ;;  %v1429_v2 = vpack.c.bf16 %v1301_v47, %v1293_v33  ;;  %v1312_v23 = vpack.c.bf16 %v1064_v42, %v1056_v18  ;;  %v1314_v48 = vpack.c.bf16 %v1066_v35, %v1058_v28  ;;  %v1063_v42 = vmax.f32 %v704_v29, 0.0 }
 0x190   :  { %v897_v39 = vadd.f32 %v7687_v52, %v7904_v43  ;;  %v893_v47 = vadd.f32 %v7677_v14, %v7904_v43  ;;  %v712_v52 = vadd.f32 %v7713_v50, %v7857_v44  ;;  %v1080_v33 = vmax.f32 %v716_v6, 0.0 }
 0x191   :  { %v7901_v25 = vpop.f32.mrf.mxu0  ;;  %v7906_v54 = vpop.f32.mrf.mxu1  ;;  %v1055_v35 = vmax.f32 %v700_v1, 0.0  ;;  %v1082_v14 = vmax.f32 %v909_v59, 0.0  ;;  %v1074_v29 = vmax.f32 %v905_v56, 0.0  ;;  %v726_v6 = vadd.f32 %v7755_v62, %v7857_v44 }
 0x192   :  { %v1065_v55 = vmax.f32 %v897_v39, 0.0  ;;  %v1057_v50 = vmax.f32 %v893_v47, 0.0  ;;  %v907_v39 = vadd.f32 %v7719_v12, %v7904_v43  ;;  %v710_v47 = vadd.f32 %v7703_v11, %v7899_v49 }
 0x193   :  { %v7910_v61 = vpop.f32.mrf.mxu0  ;;  %v7916_v0 = vpop.f32.mrf.mxu1  ;;  %v1322_v46 = vpack.c.bf16 %v1082_v14, %v1074_v29  ;;  %v903_v56 = vadd.f32 %v7709_v9, %v7904_v43  ;;  %v722_v12 = vadd.f32 %v7745_v53, %v7857_v44  ;;  %v915_v11 = vadd.f32 %v7747_v36, %v7864_v45 }
 0x194   :  { %v724_v36 = vadd.f32 %v7749_v57, %v7899_v49 }
 0x195   :  { %v7922_v24 = vpop.f32.mrf.mxu0  ;;  %2398 = vmatmul.mubr.bf16.gmra.mxu0 %v1427_v32  ;;  %v7928_v7 = vpop.f32.mrf.mxu1  ;;  %2591 = vmatmul.mubr.bf16.gmra.mxu1 %v1429_v2  ;;  %v1072_v32 = vmax.f32 %v712_v52, 0.0  ;;  %v1311_v2 = vpack.c.bf16 %v1063_v42, %v1055_v35  ;;  %v919_v52 = vadd.f32 %v7761_v40, %v7864_v45  ;;  %v1096_v35 = vmax.f32 %v726_v6, 0.0 }
 0x196   :  { %2633 = vmatprep.mubr.bf16.mxu0 %v1312_v23  ;;  %2826 = vmatprep.mubr.bf16.mxu1 %v1314_v48  ;;  %v1313_v48 = vpack.c.bf16 %v1065_v55, %v1057_v50  ;;  %v1079_v55 = vmax.f32 %v714_v21, 0.0  ;;  %v1071_v50 = vmax.f32 %v710_v47, 0.0  ;;  %v1073_v53 = vmax.f32 %v903_v56, 0.0 }
 0x197   :  { %v7932_v37 = vpop.f32.mrf.mxu0  ;;  %v7934_v28 = vpop.f32.mrf.mxu1  ;;  %v1320_v59 = vpack.c.bf16 %v1080_v33, %v1072_v32  ;;  %v1081_v33 = vmax.f32 %v907_v39, 0.0  ;;  %v1098_v9 = vmax.f32 %v919_v52, 0.0  ;;  %v1090_v21 = vmax.f32 %v915_v11, 0.0 }
 0x198   :  { %v917_v39 = vadd.f32 %v7751_v5, %v7904_v43  ;;  %v736_v6 = vadd.f32 %v7787_v60, %v7857_v44  ;;  %v720_v56 = vadd.f32 %v7735_v41, %v7899_v49  ;;  %v913_v11 = vadd.f32 %v7741_v3, %v7904_v43  ;;  %v9641_v5 = vld [vmem:[#allocation25_spill] sm:$0xff] }
 0x199   :  { %v7936_v18 = vpop.f32.mrf.mxu0  ;;  %v7938_v30 = vpop.f32.mrf.mxu1  ;;  %v1330_v57 = vpack.c.bf16 %v1098_v9, %v1090_v21  ;;  %v925_v41 = vadd.f32 %v7779_v20, %v7864_v45  ;;  %v734_v20 = vadd.f32 %v7781_v26, %v7899_v49 }
 0x19a   :  { %v1089_v21 = vmax.f32 %v913_v11, 0.0 }
 0x19b   :  { %v7942_v23 = vpop.f32.mrf.mxu0  ;;  %v7948_v1 = vpop.f32.mrf.mxu1 }
 0x19d   :  { %v7954_v42 = vpop.f32.mrf.mxu0  ;;  %2634 = vmatmul.mubr.bf16.vlgmr.msra.gmra.mxu0 %v1311_v2  ;;  %v7960_v62 = vpop.f32.mrf.mxu1  ;;  %2827 = vmatmul.mubr.bf16.vlgmr.msra.gmra.mxu1 %v1313_v48  ;;  %v1088_v2 = vmax.f32 %v722_v12, 0.0  ;;  %v1319_v48 = vpack.c.bf16 %v1079_v55, %v1071_v50  ;;  %v929_v12 = vadd.f32 %v7793_v63, %v7864_v45  ;;  %v1097_v50 = vmax.f32 %v917_v39, 0.0  ;;  %v9643_v39 = vld [vmem:[#allocation27_spill] sm:$0xff] }
 0x19e   :  { %2643 = vmatprep.mubr.bf16.mxu0 %v1320_v59  ;;  %2836 = vmatprep.mubr.bf16.mxu1 %v1322_v46  ;;  %v1321_v46 = vpack.c.bf16 %v1081_v33, %v1073_v53  ;;  %v732_v33 = vadd.f32 %v9641_v5, %v7857_v44  ;;  %v1112_v53 = vmax.f32 %v736_v6, 0.0  ;;  %v927_v6 = vadd.f32 %v9643_v39, %v7904_v43 }
 0x19f   :  { %v7964_v40 = vpop.f32.mrf.mxu0  ;;  %v7966_v14 = vpop.f32.mrf.mxu1  ;;  %v1328_v52 = vpack.c.bf16 %v1096_v35, %v1088_v2  ;;  %v1095_v35 = vmax.f32 %v724_v36, 0.0  ;;  %v1087_v2 = vmax.f32 %v720_v56, 0.0  ;;  %v1114_v3 = vmax.f32 %v929_v12, 0.0 }
 0x1a0   :  { %v1104_v5 = vmax.f32 %v732_v33, 0.0  ;;  %v1106_v36 = vmax.f32 %v925_v41, 0.0  ;;  %v746_v56 = vadd.f32 %v7819_v58, %v7857_v44  ;;  %v9644_v33 = vld [vmem:[#allocation26_spill] sm:$0xff]  ;;  %v1113_v39 = vmax.f32 %v927_v6, 0.0 }
 0x1a1   :  { %v7968_v32 = vpop.f32.mrf.mxu0  ;;  %v7970_v29 = vpop.f32.mrf.mxu1  ;;  %v937_v6 = vadd.f32 %v7815_v31, %v7904_v43  ;;  %v752_v31 = vadd.f32 %v7847_v34, %v7857_v44 }
 0x1a2   :  { %v1336_v11 = vpack.c.bf16 %v1112_v53, %v1104_v5  ;;  %v1338_v26 = vpack.c.bf16 %v1114_v3, %v1106_v36  ;;  %v1111_v53 = vmax.f32 %v734_v20, 0.0  ;;  %v935_v5 = vadd.f32 %v7811_v15, %v7864_v45 }
 0x1a3   :  { %v7974_v59 = vpop.f32.mrf.mxu0  ;;  %v7980_v47 = vpop.f32.mrf.mxu1  ;;  %v744_v15 = vadd.f32 %v7813_v38, %v7899_v49 }
 0x1a4   :  { %v1122_v20 = vmax.f32 %v935_v5, 0.0 }
 0x1a5   :  { %v7986_v55 = vpop.f32.mrf.mxu0  ;;  %2644 = vmatmul.mubr.bf16.gmra.mxu0 %v1319_v48  ;;  %v7992_v60 = vpop.f32.mrf.mxu1  ;;  %2837 = vmatmul.mubr.bf16.gmra.mxu1 %v1321_v46  ;;  %v1327_v46 = vpack.c.bf16 %v1095_v35, %v1087_v2  ;;  %v939_v35 = vadd.f32 %v7825_v4, %v7864_v45 }
 0x1a6   :  { %9640 = vst [vmem:[#allocation23_spill] sm:$0xff] %v7986_v55  ;;  %9642 = vst [vmem:[#allocation22_spill] sm:$0xff] %v7992_v60  ;;  %2653 = vmatprep.mubr.bf16.mxu0 %v1328_v52  ;;  %2846 = vmatprep.mubr.bf16.mxu1 %v1330_v57  ;;  %v1329_v57 = vpack.c.bf16 %v1097_v50, %v1089_v21  ;;  %v730_v55 = vadd.f32 %v9644_v33, %v7899_v49  ;;  %v9646_v50 = vld [vmem:[#allocation24_spill] sm:$0xff] }
 0x1a7   :  { %v7996_v63 = vpop.f32.mrf.mxu0  ;;  %v7998_v9 = vpop.f32.mrf.mxu1  ;;  %v923_v2 = vadd.f32 %v9646_v50, %v7904_v43  ;;  %v742_v21 = vadd.f32 %v7809_v8, %v7857_v44  ;;  %v1130_v33 = vmax.f32 %v939_v35, 0.0 }
 0x1a8   :  { %v1103_v36 = vmax.f32 %v730_v55, 0.0  ;;  %v756_v55 = vadd.f32 %v7866_v51, %v7857_v44 }
 0x1a9   :  { %v8000_v48 = vpop.f32.mrf.mxu0  ;;  %v8002_v60 = vpop.f32.mrf.mxu1  ;;  %v1105_v8 = vmax.f32 %v923_v2, 0.0  ;;  %v9648_v2 = vld [vmem:[#allocation18_spill] sm:$0xff]  ;;  %v1346_v38 = vpack.c.bf16 %v1130_v33, %v1122_v20 }
 0x1ab   :  { %v8006_v52 = vpop.f32.mrf.mxu0  ;;  %v8012_v12 = vpop.f32.mrf.mxu1 }
 0x1ad   :  { %v8018_v41 = vpop.f32.mrf.mxu0  ;;  %2654 = vmatmul.mubr.bf16.gmra.mxu0 %v1327_v46  ;;  %v8024_v58 = vpop.f32.mrf.mxu1  ;;  %2847 = vmatmul.mubr.bf16.gmra.mxu1 %v1329_v57  ;;  %v1128_v46 = vmax.f32 %v746_v56, 0.0  ;;  %v1335_v57 = vpack.c.bf16 %v1111_v53, %v1103_v36  ;;  %v949_v53 = vadd.f32 %v7872_v27, %v7864_v45 }
 0x1ae   :  { %9645 = vst [vmem:[#allocation25_spill] sm:$0xff] %v8018_v41  ;;  %9647 = vst [vmem:[#allocation27_spill] sm:$0xff] %v8024_v58  ;;  %2663 = vmatprep.mubr.bf16.mxu0 %v1336_v11  ;;  %2856 = vmatprep.mubr.bf16.mxu1 %v1338_v26  ;;  %v1120_v41 = vmax.f32 %v742_v21, 0.0  ;;  %v1337_v26 = vpack.c.bf16 %v1113_v39, %v1105_v8  ;;  %v740_v21 = vadd.f32 %v9648_v2, %v7899_v49  ;;  %v9650_v39 = vld [vmem:[#allocation28_spill] sm:$0xff] }
 0x1af   :  { %v8028_v4 = vpop.f32.mrf.mxu0  ;;  %v8030_v3 = vpop.f32.mrf.mxu1  ;;  %v933_v36 = vadd.f32 %v9650_v39, %v7904_v43  ;;  %v1129_v8 = vmax.f32 %v937_v6, 0.0  ;;  %v1146_v2 = vmax.f32 %v949_v53, 0.0  ;;  %v9653_v6 = vld [vmem:[#allocation19_spill] sm:$0xff] }
 0x1b0   :  { %v1344_v35 = vpack.c.bf16 %v1128_v46, %v1120_v41  ;;  %v1127_v41 = vmax.f32 %v744_v15, 0.0  ;;  %v945_v46 = vadd.f32 %v7849_v22, %v7864_v45  ;;  %v1119_v20 = vmax.f32 %v740_v21, 0.0 }
 0x1b1   :  { %v8032_v50 = vpop.f32.mrf.mxu0  ;;  %v8034_v58 = vpop.f32.mrf.mxu1  ;;  %v1121_v34 = vmax.f32 %v933_v36, 0.0  ;;  %v754_v22 = vadd.f32 %v7851_v19, %v7899_v49  ;;  %v766_v21 = vadd.f32 %v7910_v61, %v7857_v44 }
 0x1b2   :  { %v1138_v15 = vmax.f32 %v945_v46, 0.0 }
 0x1b3   :  { %v8038_v11 = vpop.f32.mrf.mxu0  ;;  %v8044_v56 = vpop.f32.mrf.mxu1 }
 0x1b4   :  { %v1354_v19 = vpack.c.bf16 %v1146_v2, %v1138_v15 }
 0x1b5   :  { %v8050_v5 = vpop.f32.mrf.mxu0  ;;  %2664 = vmatmul.mubr.bf16.gmra.mxu0 %v1335_v57  ;;  %v8056_v51 = vpop.f32.mrf.mxu1  ;;  %2857 = vmatmul.mubr.bf16.gmra.mxu1 %v1337_v26  ;;  %v1144_v57 = vmax.f32 %v756_v55, 0.0  ;;  %v1343_v26 = vpack.c.bf16 %v1127_v41, %v1119_v20  ;;  %v947_v55 = vadd.f32 %v9653_v6, %v7904_v43  ;;  %v959_v41 = vadd.f32 %v7916_v0, %v7864_v45 }
 0x1b6   :  { %9649 = vst [vmem:[#allocation26_spill] sm:$0xff] %v8050_v5  ;;  %9651 = vst [vmem:[#allocation24_spill] sm:$0xff] %v8056_v51  ;;  %2673 = vmatprep.mubr.bf16.mxu0 %v1344_v35  ;;  %2866 = vmatprep.mubr.bf16.mxu1 %v1346_v38  ;;  %v1136_v5 = vmax.f32 %v752_v31, 0.0  ;;  %v1345_v38 = vpack.c.bf16 %v1129_v8, %v1121_v34  ;;  %v9654_v31 = vld [vmem:[#allocation11_spill] sm:$0xff]  ;;  %v9656_v8 = vld [vmem:[#allocation20_spill] sm:$0xff]  ;;  %v762_v34 = vadd.f32 %v7894_v13, %v7857_v44 }
 0x1b7   :  { %v8060_v27 = vpop.f32.mrf.mxu0  ;;  %v8062_v33 = vpop.f32.mrf.mxu1  ;;  %v943_v20 = vadd.f32 %v9656_v8, %v7904_v43  ;;  %v1145_v6 = vmax.f32 %v947_v55, 0.0  ;;  %v957_v55 = vadd.f32 %v7906_v54, %v7904_v43  ;;  %v772_v54 = vadd.f32 %v7932_v37, %v7857_v44 }
 0x1b8   :  { %v1352_v36 = vpack.c.bf16 %v1144_v57, %v1136_v5  ;;  %v1143_v5 = vmax.f32 %v754_v22, 0.0  ;;  %v955_v57 = vadd.f32 %v7896_v17, %v7864_v45  ;;  %v764_v17 = vadd.f32 %v7901_v25, %v7899_v49 }
 0x1b9   :  { %v8064_v39 = vpop.f32.mrf.mxu0  ;;  %v8066_v51 = vpop.f32.mrf.mxu1  ;;  %v1137_v13 = vmax.f32 %v943_v20, 0.0  ;;  %v760_v20 = vadd.f32 %v7881_v16, %v7899_v49  ;;  %v965_v16 = vadd.f32 %v7934_v28, %v7864_v45  ;;  %v774_v28 = vadd.f32 %v7936_v18, %v7899_v49 }
 0x1ba   :  { %9652 = vst [vmem:[#allocation18_spill] sm:$0xff] %v8066_v51  ;;  %v750_v51 = vadd.f32 %v9654_v31, %v7899_v49  ;;  %v1162_v31 = vmax.f32 %v959_v41, 0.0  ;;  %v1154_v22 = vmax.f32 %v955_v57, 0.0  ;;  %v953_v57 = vadd.f32 %v7890_v10, %v7904_v43 }
 0x1bb   :  { %v8070_v35 = vpop.f32.mrf.mxu0  ;;  %v8076_v53 = vpop.f32.mrf.mxu1 }
 0x1bc   :  { %v1135_v15 = vmax.f32 %v750_v51, 0.0  ;;  %v776_v51 = vadd.f32 %v7942_v23, %v7857_v44  ;;  %v1362_v25 = vpack.c.bf16 %v1162_v31, %v1154_v22  ;;  %v1151_v31 = vmax.f32 %v760_v20, 0.0 }
 0x1bd   :  { %v8082_v46 = vpop.f32.mrf.mxu0  ;;  %2674 = vmatmul.mubr.bf16.gmra.mxu0 %v1343_v26  ;;  %v8088_v61 = vpop.f32.mrf.mxu1  ;;  %2867 = vmatmul.mubr.bf16.gmra.mxu1 %v1345_v38  ;;  %v1160_v26 = vmax.f32 %v766_v21, 0.0  ;;  %v1153_v37 = vmax.f32 %v953_v57, 0.0  ;;  %v770_v57 = vadd.f32 %v7922_v24, %v7899_v49  ;;  %v975_v24 = vadd.f32 %v7966_v14, %v7864_v45 }
 0x1be   :  { %9655 = vst [vmem:[#allocation28_spill] sm:$0xff] %v8082_v46  ;;  %9657 = vst [vmem:[#allocation19_spill] sm:$0xff] %v8088_v61  ;;  %2683 = vmatprep.mubr.bf16.mxu0 %v1352_v36  ;;  %2876 = vmatprep.mubr.bf16.mxu1 %v1354_v19  ;;  %v1152_v46 = vmax.f32 %v762_v34, 0.0  ;;  %v1351_v38 = vpack.c.bf16 %v1143_v5, %v1135_v15  ;;  %v1353_v19 = vpack.c.bf16 %v1145_v6, %v1137_v13 }
 0x1bf   :  { %v8092_v0 = vpop.f32.mrf.mxu0  ;;  %v8094_v2 = vpop.f32.mrf.mxu1  ;;  %v969_v34 = vadd.f32 %v7948_v1, %v7864_v45  ;;  %v1161_v6 = vmax.f32 %v957_v55, 0.0  ;;  %v967_v55 = vadd.f32 %v7938_v30, %v7904_v43  ;;  %v782_v30 = vadd.f32 %v7964_v40, %v7857_v44 }
 0x1c0   :  { %v1360_v41 = vpack.c.bf16 %v1160_v26, %v1152_v46  ;;  %v1159_v46 = vmax.f32 %v764_v17, 0.0  ;;  %v1176_v26 = vmax.f32 %v776_v51, 0.0  ;;  %v1170_v17 = vmax.f32 %v965_v16, 0.0 }
 0x1c1   :  { %v8096_v8 = vpop.f32.mrf.mxu0  ;;  %v8098_v61 = vpop.f32.mrf.mxu1  ;;  %v1178_v10 = vmax.f32 %v969_v34, 0.0  ;;  %v786_v51 = vadd.f32 %v7974_v59, %v7857_v44  ;;  %v963_v16 = vadd.f32 %v7928_v7, %v7904_v43  ;;  %v784_v14 = vadd.f32 %v7968_v32, %v7899_v49 }
 0x1c3   :  { %v8102_v36 = vpop.f32.mrf.mxu0  ;;  %v8108_v21 = vpop.f32.mrf.mxu1  ;;  %v1370_v18 = vpack.c.bf16 %v1178_v10, %v1170_v17  ;;  %v1169_v40 = vmax.f32 %v963_v16, 0.0  ;;  %v780_v16 = vadd.f32 %v7954_v42, %v7899_v49  ;;  %v985_v42 = vadd.f32 %v7998_v9, %v7864_v45 }
 0x1c4   :  { %v794_v9 = vadd.f32 %v8000_v48, %v7899_v49  ;;  %v806_v48 = vadd.f32 %v8038_v11, %v7857_v44 }
 0x1c5   :  { %v8114_v5 = vpop.f32.mrf.mxu0  ;;  %2684 = vmatmul.mubr.bf16.gmra.mxu0 %v1351_v38  ;;  %v8120_v23 = vpop.f32.mrf.mxu1  ;;  %2877 = vmatmul.mubr.bf16.gmra.mxu1 %v1353_v19  ;;  %v1168_v38 = vmax.f32 %v772_v54, 0.0  ;;  %v1359_v19 = vpack.c.bf16 %v1159_v46, %v1151_v31  ;;  %v979_v54 = vadd.f32 %v7980_v47, %v7864_v45  ;;  %v1192_v31 = vmax.f32 %v786_v51, 0.0 }
 0x1c6   :  { %2693 = vmatprep.mubr.bf16.mxu0 %v1360_v41  ;;  %2886 = vmatprep.mubr.bf16.mxu1 %v1362_v25  ;;  %v1361_v25 = vpack.c.bf16 %v1161_v6, %v1153_v37  ;;  %v1175_v6 = vmax.f32 %v774_v28, 0.0  ;;  %v1167_v37 = vmax.f32 %v770_v57, 0.0  ;;  %v1186_v28 = vmax.f32 %v975_v24, 0.0 }
 0x1c7   :  { %v8124_v1 = vpop.f32.mrf.mxu0  ;;  %v8126_v15 = vpop.f32.mrf.mxu1  ;;  %v1368_v34 = vpack.c.bf16 %v1176_v26, %v1168_v38  ;;  %v1177_v26 = vmax.f32 %v967_v55, 0.0  ;;  %v1194_v7 = vmax.f32 %v979_v54, 0.0  ;;  %v977_v55 = vadd.f32 %v7970_v29, %v7904_v43 }
 0x1c8   :  { %v796_v51 = vadd.f32 %v8006_v52, %v7857_v44  ;;  %v973_v24 = vadd.f32 %v7960_v62, %v7904_v43  ;;  %v792_v29 = vadd.f32 %v7996_v63, %v7857_v44  ;;  %v1183_v63 = vmax.f32 %v780_v16, 0.0  ;;  %v9663_v16 = vld [vmem:[#allocation10_spill] sm:$0xff] }
 0x1c9   :  { %v8128_v13 = vpop.f32.mrf.mxu0  ;;  %v8130_v22 = vpop.f32.mrf.mxu1  ;;  %v1378_v32 = vpack.c.bf16 %v1194_v7, %v1186_v28 }
 0x1ca   :  { %v1208_v62 = vmax.f32 %v796_v51, 0.0  ;;  %v1200_v28 = vmax.f32 %v792_v29, 0.0  ;;  %v9664_v29 = vld [vmem:[#allocation23_spill] sm:$0xff] }
 0x1cb   :  { %v8134_v41 = vpop.f32.mrf.mxu0  ;;  %v8140_v20 = vpop.f32.mrf.mxu1 }
 0x1cd   :  { %v8146_v46 = vpop.f32.mrf.mxu0  ;;  %2694 = vmatmul.mubr.bf16.gmra.mxu0 %v1359_v19  ;;  %v8152_v59 = vpop.f32.mrf.mxu1  ;;  %2887 = vmatmul.mubr.bf16.gmra.mxu1 %v1361_v25  ;;  %v1184_v19 = vmax.f32 %v782_v30, 0.0  ;;  %v1367_v25 = vpack.c.bf16 %v1175_v6, %v1167_v37  ;;  %v989_v30 = vadd.f32 %v8012_v12, %v7864_v45  ;;  %v1193_v37 = vmax.f32 %v977_v55, 0.0 }
 0x1ce   :  { %2703 = vmatprep.mubr.bf16.mxu0 %v1368_v34  ;;  %2896 = vmatprep.mubr.bf16.mxu1 %v1370_v18  ;;  %v1369_v18 = vpack.c.bf16 %v1177_v26, %v1169_v40  ;;  %v1191_v26 = vmax.f32 %v784_v14, 0.0  ;;  %v987_v55 = vadd.f32 %v8002_v60, %v7904_v43  ;;  %v999_v60 = vadd.f32 %v8044_v56, %v7864_v45 }
 0x1cf   :  { %v8156_v47 = vpop.f32.mrf.mxu0  ;;  %v8158_v10 = vpop.f32.mrf.mxu1  ;;  %v1376_v54 = vpack.c.bf16 %v1192_v31, %v1184_v19  ;;  %v1563_v31 = vld [vmem:[%s9546_s4] sm:$0x3]  ;;  %v1210_v40 = vmax.f32 %v989_v30, 0.0  ;;  %v1224_v56 = vmax.f32 %v806_v48, 0.0  ;;  %v9666_v48 = vld [vmem:[#allocation25_spill] sm:$0xff] }
 0x1d0   :  { %v8209_v30 = vrot.slane %v1563_v31, %v9663_v16  ;;  %v1207_v16 = vmax.f32 %v794_v9, 0.0  ;;  %v1209_v11 = vmax.f32 %v987_v55, 0.0 }
 0x1d1   :  { %v8160_v38 = vpop.f32.mrf.mxu0  ;;  %v8162_v17 = vpop.f32.mrf.mxu1 }
 0x1d3   :  { %v8166_v34 = vpop.f32.mrf.mxu0  ;;  %v8172_v57 = vpop.f32.mrf.mxu1 }
 0x1d5   :  { %v8178_v6 = vpop.f32.mrf.mxu0  ;;  %2704 = vmatmul.mubr.bf16.gmra.mxu0 %v1367_v25  ;;  %v8184_v52 = vpop.f32.mrf.mxu1  ;;  %2897 = vmatmul.mubr.bf16.gmra.mxu1 %v1369_v18  ;;  %v1185_v25 = vmax.f32 %v973_v24, 0.0  ;;  %v9662_v18 = vld [vmem:[#allocation13_spill] sm:$0xff] }
 0x1d6   :  { %9658 = vst [vmem:[#allocation11_spill] sm:$0xff] %v8178_v6  ;;  %9659 = vst [vmem:[#allocation20_spill] sm:$0xff] %v8184_v52  ;;  %2713 = vmatprep.mubr.bf16.mxu0 %v1376_v54  ;;  %2906 = vmatprep.mubr.bf16.mxu1 %v1378_v32  ;;  %v8202_v54 = vrot.slane %v1563_v31, %v9662_v18  ;;  %v1375_v32 = vpack.c.bf16 %v1191_v26, %v1183_v63  ;;  %v1202_v52 = vmax.f32 %v985_v42, 0.0  ;;  %v9665_v26 = vld [vmem:[#allocation22_spill] sm:$0xff] }
 0x1d7   :  { %v8188_v12 = vpop.f32.mrf.mxu0  ;;  %v8193_v7 = vpop.f32.mrf.mxu1  ;;  %v1377_v24 = vpack.c.bf16 %v1193_v37, %v1185_v25  ;;  %v790_v6 = vadd.f32 %v9664_v29, %v7899_v49  ;;  %v1384_v18 = vpack.c.bf16 %v1208_v62, %v1200_v28  ;;  %v983_v42 = vadd.f32 %v9665_v26, %v7904_v43 }
 0x1d8   :  { %v1386_v31 = vpack.c.bf16 %v1210_v40, %v1202_v52  ;;  %v802_v37 = vadd.f32 %v8028_v4, %v7857_v44  ;;  %v995_v62 = vadd.f32 %v8030_v3, %v7864_v45  ;;  %v804_v4 = vadd.f32 %v8032_v50, %v7899_v49 }
 0x1d9   :  { %v8195_v19 = vpop.f32.mrf.mxu0  ;;  %v8199_v14 = vpop.f32.mrf.mxu1  ;;  %v1199_v26 = vmax.f32 %v790_v6, 0.0  ;;  %v1201_v9 = vmax.f32 %v983_v42, 0.0  ;;  %v997_v42 = vadd.f32 %v8034_v58, %v7904_v43  ;;  %v816_v50 = vadd.f32 %v8070_v35, %v7857_v44 }
 0x1da   :  { %9660 = vst [vmem:[#allocation29_spill] sm:$0xff] %v8195_v19  ;;  %9661 = vst [vmem:[#allocation30_spill] sm:$0xff] %v8199_v14  ;;  %v1216_v55 = vmax.f32 %v802_v37, 0.0 }
 0x1db   :  { %v8206_v51 = vpop.f32.mrf.mxu0  ;;  %v8215_v14 = vpop.f32.mrf.mxu1  ;;  %v1385_v6 = vpack.c.bf16 %v1209_v11, %v1201_v9 }
 0x1dd   :  { %v2249_v63 = vpop.f32.mrf.mxu0  ;;  %2714 = vmatmul.mubr.bf16.gmra.mxu0 %v1375_v32  ;;  %v2442_v29 = vpop.f32.mrf.mxu1  ;;  %2907 = vmatmul.mubr.bf16.gmra.mxu1 %v1377_v24  ;;  %v1226_v32 = vmax.f32 %v999_v60, 0.0 }
 0x1de   :  { %v2250_v25 = vadd.f32 %v2249_v63, %v8202_v54  ;;  %2723 = vmatprep.mubr.bf16.mxu0 %v1384_v18  ;;  %2916 = vmatprep.mubr.bf16.mxu1 %v1386_v31  ;;  %v1383_v18 = vpack.c.bf16 %v1207_v16, %v1199_v26  ;;  %v1392_v26 = vpack.c.bf16 %v1224_v56, %v1216_v55  ;;  %v1225_v55 = vmax.f32 %v997_v42, 0.0 }
 0x1df   :  { %v2251_v28 = vpop.f32.mrf.mxu0  ;;  %v2444_v40 = vpop.f32.mrf.mxu1 }
 0x1e0   :  { %v8226_v19 = vadd.f32 %v2442_v29, %v2250_v25  ;;  %v2252_v52 = vadd.f32 %v2251_v28, %v8209_v30  ;;  %v800_v25 = vadd.f32 %v9666_v48, %v7899_v49  ;;  %v1218_v29 = vmax.f32 %v995_v62, 0.0 }
 0x1e1   :  { %v2253_v24 = vpop.f32.mrf.mxu0  ;;  %v2446_v31 = vpop.f32.mrf.mxu1  ;;  %v1009_v62 = vadd.f32 %v8076_v53, %v7864_v45  ;;  %v1240_v48 = vmax.f32 %v816_v50, 0.0  ;;  %v9668_v50 = vld [vmem:[#allocation26_spill] sm:$0xff] }
 0x1e2   :  { %v8231_v63 = vadd.f32 %v2444_v40, %v2252_v52  ;;  %v2254_v3 = vadd.f32 %v2253_v24, %v8202_v54  ;;  %v9667_v52 = vld [vmem:[#allocation27_spill] sm:$0xff]  ;;  %v1223_v40 = vmax.f32 %v804_v4, 0.0  ;;  %v1394_v58 = vpack.c.bf16 %v1226_v32, %v1218_v29 }
 0x1e3   :  { %v2255_v28 = vpop.f32.mrf.mxu0  ;;  %v2448_v37 = vpop.f32.mrf.mxu1  ;;  %v993_v11 = vadd.f32 %v9667_v52, %v7904_v43  ;;  %v812_v24 = vadd.f32 %v8060_v27, %v7857_v44  ;;  %v1215_v56 = vmax.f32 %v800_v25, 0.0  ;;  %v1005_v4 = vadd.f32 %v8062_v33, %v7864_v45 }
 0x1e4   :  { %v8240_v60 = vadd.f32 %v2446_v31, %v2254_v3  ;;  %v2256_v16 = vadd.f32 %v2255_v28, %v8209_v30 }
 0x1e5   :  { %v2259_v9 = vpop.f32.mrf.mxu0  ;;  %2724 = vmatmul.mubr.bf16.gmra.mxu0 %v1383_v18  ;;  %v2452_v31 = vpop.f32.mrf.mxu1  ;;  %2917 = vmatmul.mubr.bf16.gmra.mxu1 %v1385_v6  ;;  %v1217_v29 = vmax.f32 %v993_v11, 0.0  ;;  %v1391_v28 = vpack.c.bf16 %v1223_v40, %v1215_v56  ;;  %v1232_v52 = vmax.f32 %v812_v24, 0.0  ;;  %v814_v6 = vadd.f32 %v8064_v39, %v7899_v49 }
 0x1e6   :  { %v8249_v35 = vadd.f32 %v2448_v37, %v2256_v16  ;;  %v2260_v3 = vadd.f32 %v2259_v9, %v8202_v54  ;;  %2733 = vmatprep.mubr.bf16.mxu0 %v1392_v26  ;;  %2926 = vmatprep.mubr.bf16.mxu1 %v1394_v58  ;;  %v1242_v16 = vmax.f32 %v1009_v62, 0.0  ;;  %v810_v9 = vadd.f32 %v9668_v50, %v7899_v49 }
 0x1e7   :  { %v2261_v53 = vpop.f32.mrf.mxu0  ;;  %v2454_v27 = vpop.f32.mrf.mxu1  ;;  %v1393_v26 = vpack.c.bf16 %v1225_v55, %v1217_v29  ;;  %v1234_v58 = vmax.f32 %v1005_v4, 0.0  ;;  %v826_v62 = vadd.f32 %v8102_v36, %v7857_v44  ;;  %v1400_v56 = vpack.c.bf16 %v1240_v48, %v1232_v52 }
 0x1e8   :  { %v8254_v18 = vadd.f32 %v2452_v31, %v2260_v3  ;;  %v2262_v32 = vadd.f32 %v2261_v53, %v8209_v30  ;;  %v9669_v3 = vld [vmem:[#allocation18_spill] sm:$0xff]  ;;  %v9670_v53 = vld [vmem:[#allocation24_spill] sm:$0xff]  ;;  %v1239_v29 = vmax.f32 %v814_v6, 0.0  ;;  %v1015_v52 = vadd.f32 %v8094_v2, %v7864_v45 }
 0x1e9   :  { %v2263_v37 = vpop.f32.mrf.mxu0  ;;  %v2456_v42 = vpop.f32.mrf.mxu1  ;;  %v1007_v11 = vadd.f32 %v9669_v3, %v7904_v43  ;;  %v1003_v55 = vadd.f32 %v9670_v53, %v7904_v43  ;;  %v1231_v50 = vmax.f32 %v810_v9, 0.0  ;;  %v824_v3 = vadd.f32 %v8096_v8, %v7899_v49 }
 0x1ea   :  { %v8259_v25 = vadd.f32 %v2454_v27, %v2262_v32  ;;  %v2264_v33 = vadd.f32 %v2263_v37, %v8202_v54  ;;  %v1019_v32 = vadd.f32 %v8108_v21, %v7864_v45  ;;  %v1402_v27 = vpack.c.bf16 %v1242_v16, %v1234_v58 }
 0x1eb   :  { %v2265_v40 = vpop.f32.mrf.mxu0  ;;  %v2458_v31 = vpop.f32.mrf.mxu1  ;;  %v822_v37 = vadd.f32 %v8092_v0, %v7857_v44  ;;  %v1241_v48 = vmax.f32 %v1007_v11, 0.0  ;;  %v1233_v58 = vmax.f32 %v1003_v55, 0.0  ;;  %v1017_v55 = vadd.f32 %v8098_v61, %v7904_v43 }
 0x1ec   :  { %v8268_v24 = vadd.f32 %v2456_v42, %v2264_v33  ;;  %v2266_v39 = vadd.f32 %v2265_v40, %v8209_v30  ;;  %v1258_v40 = vmax.f32 %v1019_v32, 0.0  ;;  %v836_v8 = vadd.f32 %v8134_v41, %v7857_v44 }
 0x1ed   :  { %v2269_v4 = vpop.f32.mrf.mxu0  ;;  %2734 = vmatmul.mubr.bf16.gmra.mxu0 %v1391_v28  ;;  %v2462_v42 = vpop.f32.mrf.mxu1  ;;  %2927 = vmatmul.mubr.bf16.gmra.mxu1 %v1393_v26  ;;  %v1256_v28 = vmax.f32 %v826_v62, 0.0  ;;  %v1248_v11 = vmax.f32 %v822_v37, 0.0  ;;  %v1401_v9 = vpack.c.bf16 %v1241_v48, %v1233_v58  ;;  %v9671_v62 = vld [vmem:[#allocation28_spill] sm:$0xff] }
 0x1ee   :  { %v8277_v36 = vadd.f32 %v2458_v31, %v2266_v39  ;;  %v2270_v33 = vadd.f32 %v2269_v4, %v8202_v54  ;;  %2743 = vmatprep.mubr.bf16.mxu0 %v1400_v56  ;;  %2936 = vmatprep.mubr.bf16.mxu1 %v1402_v27  ;;  %v1399_v39 = vpack.c.bf16 %v1239_v29, %v1231_v50  ;;  %v1250_v4 = vmax.f32 %v1015_v52, 0.0 }
 0x1ef   :  { %v2271_v21 = vpop.f32.mrf.mxu0  ;;  %v2464_v0 = vpop.f32.mrf.mxu1  ;;  %v820_v53 = vadd.f32 %v9671_v62, %v7899_v49  ;;  %v1029_v52 = vadd.f32 %v8140_v20, %v7864_v45 }
 0x1f0   :  { %v8282_v16 = vadd.f32 %v2462_v42, %v2270_v33  ;;  %v2272_v6 = vadd.f32 %v2271_v21, %v8209_v30  ;;  %v1408_v33 = vpack.c.bf16 %v1256_v28, %v1248_v11  ;;  %v9672_v42 = vld [vmem:[#allocation19_spill] sm:$0xff]  ;;  %v1255_v21 = vmax.f32 %v824_v3, 0.0 }
 0x1f1   :  { %v2273_v26 = vpop.f32.mrf.mxu0  ;;  %v2466_v56 = vpop.f32.mrf.mxu1  ;;  %v1013_v48 = vadd.f32 %v9672_v42, %v7904_v43  ;;  %v1410_v61 = vpack.c.bf16 %v1258_v40, %v1250_v4  ;;  %v1247_v28 = vmax.f32 %v820_v53, 0.0  ;;  %v1025_v3 = vadd.f32 %v8126_v15, %v7864_v45 }
 0x1f2   :  { %v8287_v31 = vadd.f32 %v2464_v0, %v2272_v6  ;;  %v2274_v2 = vadd.f32 %v2273_v26, %v8202_v54  ;;  %v832_v6 = vadd.f32 %v8124_v1, %v7857_v44  ;;  %v1257_v26 = vmax.f32 %v1017_v55, 0.0 }
 0x1f3   :  { %v2275_v27 = vpop.f32.mrf.mxu0  ;;  %v2468_v37 = vpop.f32.mrf.mxu1  ;;  %v1272_v11 = vmax.f32 %v836_v8, 0.0  ;;  %v1274_v62 = vmax.f32 %v1029_v52, 0.0  ;;  %v830_v8 = vadd.f32 %v8114_v5, %v7899_v49  ;;  %v1039_v5 = vadd.f32 %v8172_v57, %v7864_v45 }
 0x1f4   :  { %v8296_v32 = vadd.f32 %v2466_v56, %v2274_v2  ;;  %v2276_v29 = vadd.f32 %v2275_v27, %v8209_v30  ;;  %v1249_v2 = vmax.f32 %v1013_v48, 0.0  ;;  %v1407_v56 = vpack.c.bf16 %v1255_v21, %v1247_v28 }
 0x1f5   :  { %v2279_v50 = vpop.f32.mrf.mxu0  ;;  %2744 = vmatmul.mubr.bf16.gmra.mxu0 %v1399_v39  ;;  %v2472_v58 = vpop.f32.mrf.mxu1  ;;  %2937 = vmatmul.mubr.bf16.gmra.mxu1 %v1401_v9  ;;  %v1264_v27 = vmax.f32 %v832_v6, 0.0  ;;  %v834_v9 = vadd.f32 %v8128_v13, %v7899_v49  ;;  %v846_v48 = vadd.f32 %v8166_v34, %v7857_v44 }
 0x1f6   :  { %v8305_v41 = vadd.f32 %v2468_v37, %v2276_v29  ;;  %v2280_v0 = vadd.f32 %v2279_v50, %v8202_v54  ;;  %2753 = vmatprep.mubr.bf16.mxu0 %v1408_v33  ;;  %2946 = vmatprep.mubr.bf16.mxu1 %v1410_v61  ;;  %v1409_v29 = vpack.c.bf16 %v1257_v26, %v1249_v2  ;;  %v1266_v37 = vmax.f32 %v1025_v3, 0.0 }
 0x1f7   :  { %v2281_v20 = vpop.f32.mrf.mxu0  ;;  %v2474_v1 = vpop.f32.mrf.mxu1  ;;  %v1027_v33 = vadd.f32 %v8130_v22, %v7904_v43  ;;  %v1416_v50 = vpack.c.bf16 %v1272_v11, %v1264_v27  ;;  %v1023_v61 = vadd.f32 %v8120_v23, %v7904_v43  ;;  %v1271_v22 = vmax.f32 %v834_v9, 0.0 }
 0x1f8   :  { %v8310_v39 = vadd.f32 %v2472_v58, %v2280_v0  ;;  %v2282_v40 = vadd.f32 %v2281_v20, %v8209_v30  ;;  %v1418_v0 = vpack.c.bf16 %v1274_v62, %v1266_v37  ;;  %v842_v58 = vadd.f32 %v8156_v47, %v7857_v44 }
 0x1f9   :  { %v2283_v4 = vpop.f32.mrf.mxu0  ;;  %v2476_v55 = vpop.f32.mrf.mxu1  ;;  %v1273_v3 = vmax.f32 %v1027_v33, 0.0  ;;  %v1035_v23 = vadd.f32 %v8158_v10, %v7864_v45  ;;  %v1263_v20 = vmax.f32 %v830_v8, 0.0  ;;  %v1288_v11 = vmax.f32 %v846_v48, 0.0 }
 0x1fa   :  { %v8315_v53 = vadd.f32 %v2474_v1, %v2282_v40  ;;  %v2284_v15 = vadd.f32 %v2283_v4, %v8202_v54  ;;  %v1265_v2 = vmax.f32 %v1023_v61, 0.0  ;;  %v1280_v27 = vmax.f32 %v842_v58, 0.0 }
 0x1fb   :  { %v2285_v42 = vpop.f32.mrf.mxu0  ;;  %v2478_v52 = vpop.f32.mrf.mxu1  ;;  %v1415_v4 = vpack.c.bf16 %v1271_v22, %v1263_v20  ;;  %v844_v8 = vadd.f32 %v8160_v38, %v7899_v49  ;;  %v1037_v37 = vadd.f32 %v8162_v17, %v7904_v43  ;;  %v840_v61 = vadd.f32 %v8146_v46, %v7899_v49 }
 0x1fc   :  { %v8324_v21 = vadd.f32 %v2476_v55, %v2284_v15  ;;  %v2286_v13 = vadd.f32 %v2285_v42, %v8209_v30  ;;  %v1417_v10 = vpack.c.bf16 %v1273_v3, %v1265_v2  ;;  %v856_v42 = vadd.f32 %v8206_v51, %v7857_v44 }
 0x1fd   :  { %v2289_v6 = vpop.f32.mrf.mxu0  ;;  %2754 = vmatmul.mubr.bf16.gmra.mxu0 %v1407_v56  ;;  %v2482_v26 = vpop.f32.mrf.mxu1  ;;  %2947 = vmatmul.mubr.bf16.gmra.mxu1 %v1409_v29  ;;  %v1290_v56 = vmax.f32 %v1039_v5, 0.0  ;;  %v1282_v29 = vmax.f32 %v1035_v23, 0.0  ;;  %v1033_v5 = vadd.f32 %v8152_v59, %v7904_v43  ;;  %v1049_v38 = vadd.f32 %v8215_v14, %v7864_v45 }
 0x1fe   :  { %v8333_v34 = vadd.f32 %v2478_v52, %v2286_v13  ;;  %v2290_v28 = vadd.f32 %v2289_v6, %v8202_v54  ;;  %2763 = vmatprep.mubr.bf16.mxu0 %v1416_v50  ;;  %2956 = vmatprep.mubr.bf16.mxu1 %v1418_v0  ;;  %v1424_v50 = vpack.c.bf16 %v1288_v11, %v1280_v27  ;;  %v1287_v46 = vmax.f32 %v844_v8, 0.0 }
 0x1ff   :  { %v2291_v57 = vpop.f32.mrf.mxu0  ;;  %v2484_v47 = vpop.f32.mrf.mxu1  ;;  %v1426_v6 = vpack.c.bf16 %v1290_v56, %v1282_v29  ;;  %v852_v51 = vadd.f32 %v8188_v12, %v7857_v44  ;;  %v1045_v59 = vadd.f32 %v8193_v7, %v7864_v45  ;;  %v1279_v12 = vmax.f32 %v840_v61, 0.0  ;;  %v9676_v61 = vld [vmem:[#allocation20_spill] sm:$0xff] }
 0x200   :  { %v8338_v40 = vadd.f32 %v2482_v26, %v2290_v28  ;;  %v2292_v1 = vadd.f32 %v2291_v57, %v8209_v30  ;;  %v1289_v28 = vmax.f32 %v1037_v37, 0.0  ;;  %v1304_v26 = vmax.f32 %v856_v42, 0.0  ;;  %v9675_v42 = vld [vmem:[#allocation11_spill] sm:$0xff] }
 0x201   :  { %v2293_v62 = vpop.f32.mrf.mxu0  ;;  %v2486_v55 = vpop.f32.mrf.mxu1  ;;  %v1281_v57 = vmax.f32 %v1033_v5, 0.0  ;;  %v1306_v20 = vmax.f32 %v1049_v38, 0.0  ;;  %v1298_v7 = vmax.f32 %v1045_v59, 0.0  ;;  %v1043_v5 = vadd.f32 %v9676_v61, %v7904_v43 }
 0x202   :  { %v8341_v9 = vadd.f32 %v2484_v47, %v2292_v1  ;;  %v2294_v15 = vadd.f32 %v2293_v62, %v8202_v54  ;;  %v1296_v1 = vmax.f32 %v852_v51, 0.0  ;;  %v1423_v62 = vpack.c.bf16 %v1287_v46, %v1279_v12 }
 0x203   :  { %v2295_v33 = vpop.f32.mrf.mxu0  ;;  %v2488_v52 = vpop.f32.mrf.mxu1  ;;  %v1425_v45 = vpack.c.bf16 %v1289_v28, %v1281_v57 }
 0x204   :  { %v8350_v48 = vadd.f32 %v2486_v55, %v2294_v15  ;;  %v2296_v13 = vadd.f32 %v2295_v33, %v8209_v30  ;;  %v9674_v55 = vld [vmem:[#allocation30_spill] sm:$0xff]  ;;  %v1432_v33 = vpack.c.bf16 %v1304_v26, %v1296_v1  ;;  %v1297_v26 = vmax.f32 %v1043_v5, 0.0 }
 0x205   :  { %v2299_v17 = vpop.f32.mrf.mxu0  ;;  %2764 = vmatmul.mubr.bf16.gmra.mxu0 %v1415_v4  ;;  %v2492_v58 = vpop.f32.mrf.mxu1  ;;  %2957 = vmatmul.mubr.bf16.gmra.mxu1 %v1417_v10  ;;  %v9673_v4 = vld [vmem:[#allocation29_spill] sm:$0xff]  ;;  %v1047_v10 = vadd.f32 %v9674_v55, %v7904_v43 }
 0x206   :  { %v8361_v0 = vadd.f32 %v2488_v52, %v2296_v13  ;;  %v2300_v22 = vadd.f32 %v2299_v17, %v8202_v54  ;;  %2773 = vmatprep.mubr.bf16.mxu0 %v1424_v50  ;;  %2966 = vmatprep.mubr.bf16.mxu1 %v1426_v6  ;;  %v854_v27 = vadd.f32 %v9673_v4, %v7899_v49 }
 0x207   :  { %v2301_v14 = vpop.f32.mrf.mxu0  ;;  %v2494_v44 = vpop.f32.mrf.mxu1  ;;  %v850_v13 = vadd.f32 %v9675_v42, %v7899_v49  ;;  %v1434_v50 = vpack.c.bf16 %v1306_v20, %v1298_v7 }
 0x208   :  { %v8366_v3 = vadd.f32 %v2492_v58, %v2300_v22  ;;  %v2302_v23 = vadd.f32 %v2301_v14, %v8209_v30  ;;  %v1303_v51 = vmax.f32 %v854_v27, 0.0  ;;  %v1305_v58 = vmax.f32 %v1047_v10, 0.0 }
 0x209   :  { %v2303_v11 = vpop.f32.mrf.mxu0  ;;  %v2496_v56 = vpop.f32.mrf.mxu1  ;;  %v1295_v59 = vmax.f32 %v850_v13, 0.0 }
 0x20a   :  { %v8369_v47 = vadd.f32 %v2494_v44, %v2302_v23  ;;  %v2304_v2 = vadd.f32 %v2303_v11, %v8202_v54  ;;  %v1433_v20 = vpack.c.bf16 %v1305_v58, %v1297_v26 }
 0x20b   :  { %v2305_v15 = vpop.f32.mrf.mxu0  ;;  %v2498_v37 = vpop.f32.mrf.mxu1  ;;  %v1431_v12 = vpack.c.bf16 %v1303_v51, %v1295_v59 }
 0x20c   :  { %v8376_v29 = vadd.f32 %v2496_v56, %v2304_v2  ;;  %v2306_v8 = vadd.f32 %v2305_v15, %v8209_v30 }
 0x20d   :  { %v2309_v52 = vpop.f32.mrf.mxu0  ;;  %2774 = vmatmul.mubr.bf16.gmra.mxu0 %v1423_v62  ;;  %v2502_v6 = vpop.f32.mrf.mxu1  ;;  %2967 = vmatmul.mubr.bf16.gmra.mxu1 %v1425_v45 }
 0x20e   :  { %v8383_v38 = vadd.f32 %v2498_v37, %v2306_v8  ;;  %v2310_v17 = vadd.f32 %v2309_v52, %v8202_v54  ;;  %2783 = vmatprep.mubr.bf16.mxu0 %v1432_v33  ;;  %2976 = vmatprep.mubr.bf16.mxu1 %v1434_v50 }
 0x20f   :  { %v2311_v22 = vpop.f32.mrf.mxu0  ;;  %v2504_v28 = vpop.f32.mrf.mxu1 }
 0x210   :  { %v8386_v46 = vadd.f32 %v2502_v6, %v2310_v17  ;;  %v2312_v49 = vadd.f32 %v2311_v22, %v8209_v30 }
 0x211   :  { %v2313_v14 = vpop.f32.mrf.mxu0  ;;  %v2506_v44 = vpop.f32.mrf.mxu1 }
 0x212   :  { %v8389_v43 = vadd.f32 %v2504_v28, %v2312_v49  ;;  %v2314_v23 = vadd.f32 %v2313_v14, %v8202_v54 }
 0x213   :  { %v2315_v57 = vpop.f32.mrf.mxu0  ;;  %v2508_v2 = vpop.f32.mrf.mxu1 }
 0x214   :  { %v8392_v11 = vadd.f32 %v2506_v44, %v2314_v23  ;;  %v2316_v1 = vadd.f32 %v2315_v57, %v8209_v30 }
 0x215   :  { %v2319_v56 = vpop.f32.mrf.mxu0  ;;  %2784 = vmatmul.mubr.bf16.gmra.mxu0 %v1431_v12  ;;  %v2512_v7 = vpop.f32.mrf.mxu1  ;;  %2977 = vmatmul.mubr.bf16.gmra.mxu1 %v1433_v20 }
 0x216   :  { %v8395_v62 = vadd.f32 %v2508_v2, %v2316_v1  ;;  %v2320_v45 = vadd.f32 %v2319_v56, %v8202_v54 }
 0x217   :  { %v2321_v4 = vpop.f32.mrf.mxu0  ;;  %v2514_v55 = vpop.f32.mrf.mxu1 }
 0x218   :  { %v8398_v27 = vadd.f32 %v2512_v7, %v2320_v45  ;;  %v2322_v15 = vadd.f32 %v2321_v4, %v8209_v30 }
 0x219   :  { %v2323_v10 = vpop.f32.mrf.mxu0  ;;  %v2516_v33 = vpop.f32.mrf.mxu1 }
 0x21a   :  { %v8401_v8 = vadd.f32 %v2514_v55, %v2322_v15  ;;  %v2324_v37 = vadd.f32 %v2323_v10, %v8202_v54 }
 0x21b   :  { %v2325_v42 = vpop.f32.mrf.mxu0  ;;  %v2518_v50 = vpop.f32.mrf.mxu1 }
 0x21c   :  { %v8404_v13 = vadd.f32 %v2516_v33, %v2324_v37  ;;  %v2326_v52 = vadd.f32 %v2325_v42, %v8209_v30 }
 0x21d   :  { %v2329_v61 = vpop.f32.mrf.mxu0  ;;  %v2522_v6 = vpop.f32.mrf.mxu1 }
 0x21e   :  { %v8407_v5 = vadd.f32 %v2518_v50, %v2326_v52  ;;  %v2330_v17 = vadd.f32 %v2329_v61, %v8202_v54 }
 0x21f   :  { %v2331_v51 = vpop.f32.mrf.mxu0  ;;  %v2524_v49 = vpop.f32.mrf.mxu1 }
 0x220   :  { %v8410_v22 = vadd.f32 %v2522_v6, %v2330_v17  ;;  %v2332_v58 = vadd.f32 %v2331_v51, %v8209_v30 }
 0x221   :  { %v2333_v28 = vpop.f32.mrf.mxu0  ;;  %v2526_v26 = vpop.f32.mrf.mxu1 }
 0x222   :  { %v8413_v59 = vadd.f32 %v2524_v49, %v2332_v58  ;;  %v2334_v14 = vadd.f32 %v2333_v28, %v8202_v54 }
 0x223   :  { %v2335_v23 = vpop.f32.mrf.mxu0  ;;  %v2528_v57 = vpop.f32.mrf.mxu1 }
 0x224   :  { %v8416_v44 = vadd.f32 %v2526_v26, %v2334_v14  ;;  %v2336_v12 = vadd.f32 %v2335_v23, %v8209_v30 }
 0x225   :  { %v2339_v20 = vpop.f32.mrf.mxu0  ;;  %v2532_v56 = vpop.f32.mrf.mxu1 }
 0x226   :  { %v8419_v1 = vadd.f32 %v2528_v57, %v2336_v12  ;;  %v2340_v2 = vadd.f32 %v2339_v20, %v8202_v54 }
 0x227   :  { %v2341_v45 = vpop.f32.mrf.mxu0  ;;  %v2534_v15 = vpop.f32.mrf.mxu1 }
 0x228   :  { %v8422_v7 = vadd.f32 %v2532_v56, %v2340_v2  ;;  %v2342_v4 = vadd.f32 %v2341_v45, %v8209_v30 }
 0x229   :  { %v2343_v55 = vpop.f32.mrf.mxu0  ;;  %v2536_v33 = vpop.f32.mrf.mxu1 }
 0x22a   :  { %v8425_v10 = vadd.f32 %v2534_v15, %v2342_v4  ;;  %v2344_v37 = vadd.f32 %v2343_v55, %v8202_v54 }
 0x22b   :  { %v2345_v42 = vpop.f32.mrf.mxu0  ;;  %v2538_v61 = vpop.f32.mrf.mxu1 }
 0x22c   :  { %v8428_v52 = vadd.f32 %v2536_v33, %v2344_v37  ;;  %v2346_v50 = vadd.f32 %v2345_v42, %v8209_v30 }
 0x22d   :  { %v2349_v17 = vpop.f32.mrf.mxu0  ;;  %v2542_v58 = vpop.f32.mrf.mxu1 }
 0x22e   :  { %v8431_v6 = vadd.f32 %v2538_v61, %v2346_v50  ;;  %v2350_v51 = vadd.f32 %v2349_v17, %v8202_v54 }
 0x22f   :  { %v2351_v49 = vpop.f32.mrf.mxu0  ;;  %v2544_v26 = vpop.f32.mrf.mxu1 }
 0x230   :  { %v8434_v28 = vadd.f32 %v2542_v58, %v2350_v51  ;;  %v2352_v14 = vadd.f32 %v2351_v49, %v8209_v30 }
 0x231   :  { %v2353_v23 = vpop.f32.mrf.mxu0  ;;  %v2546_v20 = vpop.f32.mrf.mxu1 }
 0x232   :  { %v8437_v12 = vadd.f32 %v2544_v26, %v2352_v14  ;;  %v2354_v57 = vadd.f32 %v2353_v23, %v8202_v54 }
 0x233   :  { %v2355_v2 = vpop.f32.mrf.mxu0  ;;  %v2548_v4 = vpop.f32.mrf.mxu1 }
 0x234   :  { %v8440_v56 = vadd.f32 %v2546_v20, %v2354_v57  ;;  %v2356_v45 = vadd.f32 %v2355_v2, %v8209_v30 }
 0x235   :  { %v2359_v15 = vpop.f32.mrf.mxu0  ;;  %v2552_v33 = vpop.f32.mrf.mxu1 }
 0x236   :  { %v8443_v55 = vadd.f32 %v2548_v4, %v2356_v45  ;;  %v2360_v37 = vadd.f32 %v2359_v15, %v8202_v54 }
 0x237   :  { %v2361_v42 = vpop.f32.mrf.mxu0  ;;  %v2554_v17 = vpop.f32.mrf.mxu1 }
 0x238   :  { %v8446_v50 = vadd.f32 %v2552_v33, %v2360_v37  ;;  %v2362_v61 = vadd.f32 %v2361_v42, %v8209_v30 }
 0x239   :  { %v2363_v51 = vpop.f32.mrf.mxu0  ;;  %v2556_v14 = vpop.f32.mrf.mxu1 }
 0x23a   :  { %v8449_v58 = vadd.f32 %v2554_v17, %v2362_v61  ;;  %v2364_v49 = vadd.f32 %v2363_v51, %v8202_v54 }
 0x23b   :  { %v2365_v26 = vpop.f32.mrf.mxu0  ;;  %v2558_v20 = vpop.f32.mrf.mxu1 }
 0x23c   :  { %v8452_v23 = vadd.f32 %v2556_v14, %v2364_v49  ;;  %v2366_v57 = vadd.f32 %v2365_v26, %v8209_v30 }
 0x23d   :  { %v2369_v2 = vpop.f32.mrf.mxu0  ;;  %v2562_v15 = vpop.f32.mrf.mxu1 }
 0x23e   :  { %9677 = vst [vmem:[#allocation23_spill] sm:$0xff] %v8452_v23  ;;  %v8455_v45 = vadd.f32 %v2558_v20, %v2366_v57  ;;  %v2370_v4 = vadd.f32 %v2369_v2, %v8202_v54 }
 0x23f   :  { %v2371_v37 = vpop.f32.mrf.mxu0  ;;  %v2564_v61 = vpop.f32.mrf.mxu1 }
 0x240   :  { %9678 = vst [vmem:[#allocation22_spill] sm:$0xff] %v8455_v45  ;;  %v8458_v33 = vadd.f32 %v2562_v15, %v2370_v4  ;;  %v2372_v42 = vadd.f32 %v2371_v37, %v8209_v30 }
 0x241   :  { %v2373_v17 = vpop.f32.mrf.mxu0  ;;  %v2566_v14 = vpop.f32.mrf.mxu1 }
 0x242   :  { %9679 = vst [vmem:[#allocation25_spill] sm:$0xff] %v8458_v33  ;;  %v8461_v51 = vadd.f32 %v2564_v61, %v2372_v42  ;;  %v2374_v49 = vadd.f32 %v2373_v17, %v8202_v54 }
 0x243   :  { %v2375_v26 = vpop.f32.mrf.mxu0  ;;  %v2568_v20 = vpop.f32.mrf.mxu1 }
 0x244   :  { %9680 = vst [vmem:[#allocation27_spill] sm:$0xff] %v8461_v51  ;;  %v8464_v23 = vadd.f32 %v2566_v14, %v2374_v49  ;;  %v2376_v57 = vadd.f32 %v2375_v26, %v8209_v30 }
 0x245   :  { %v2379_v2 = vpop.f32.mrf.mxu0  ;;  %v2572_v15 = vpop.f32.mrf.mxu1 }
 0x246   :  { %9681 = vst [vmem:[#allocation26_spill] sm:$0xff] %v8464_v23  ;;  %v8467_v45 = vadd.f32 %v2568_v20, %v2376_v57  ;;  %v2380_v4 = vadd.f32 %v2379_v2, %v8202_v54 }
 0x247   :  { %v2381_v37 = vpop.f32.mrf.mxu0  ;;  %v2574_v61 = vpop.f32.mrf.mxu1 }
 0x248   :  { %9682 = vst [vmem:[#allocation18_spill] sm:$0xff] %v8467_v45  ;;  %v8470_v33 = vadd.f32 %v2572_v15, %v2380_v4  ;;  %v2382_v42 = vadd.f32 %v2381_v37, %v8209_v30 }
 0x249   :  { %v2383_v17 = vpop.f32.mrf.mxu0  ;;  %v2576_v14 = vpop.f32.mrf.mxu1 }
 0x24a   :  { %9683 = vst [vmem:[#allocation24_spill] sm:$0xff] %v8470_v33  ;;  %v8473_v51 = vadd.f32 %v2574_v61, %v2382_v42  ;;  %v2384_v49 = vadd.f32 %v2383_v17, %v8202_v54 }
 0x24b   :  { %v2385_v26 = vpop.f32.mrf.mxu0  ;;  %v2578_v20 = vpop.f32.mrf.mxu1 }
 0x24c   :  { %9684 = vst [vmem:[#allocation28_spill] sm:$0xff] %v8473_v51  ;;  %v8476_v23 = vadd.f32 %v2576_v14, %v2384_v49  ;;  %v2386_v57 = vadd.f32 %v2385_v26, %v8209_v30 }
 0x24d   :  { %v2389_v2 = vpop.f32.mrf.mxu0  ;;  %v2582_v15 = vpop.f32.mrf.mxu1 }
 0x24e   :  { %9685 = vst [vmem:[#allocation19_spill] sm:$0xff] %v8476_v23  ;;  %v8479_v45 = vadd.f32 %v2578_v20, %v2386_v57  ;;  %v2390_v4 = vadd.f32 %v2389_v2, %v8202_v54 }
 0x24f   :  { %v2391_v37 = vpop.f32.mrf.mxu0  ;;  %v2584_v61 = vpop.f32.mrf.mxu1 }
 0x250   :  { %9686 = vst [vmem:[#allocation29_spill] sm:$0xff] %v8479_v45  ;;  %v8482_v33 = vadd.f32 %v2582_v15, %v2390_v4  ;;  %v2392_v42 = vadd.f32 %v2391_v37, %v8209_v30 }
 0x251   :  { %v2393_v17 = vpop.f32.mrf.mxu0  ;;  %v2586_v14 = vpop.f32.mrf.mxu1 }
 0x252   :  { %9687 = vst [vmem:[#allocation30_spill] sm:$0xff] %v8482_v33  ;;  %v8485_v51 = vadd.f32 %v2584_v61, %v2392_v42  ;;  %v2394_v49 = vadd.f32 %v2393_v17, %v8202_v54 }
 0x253   :  { %v2395_v26 = vpop.f32.mrf.mxu0  ;;  %v2588_v20 = vpop.f32.mrf.mxu1 }
 0x254   :  { %9688 = vst [vmem:[#allocation11_spill] sm:$0xff] %v8485_v51  ;;  %v8488_v23 = vadd.f32 %v2586_v14, %v2394_v49  ;;  %v2396_v57 = vadd.f32 %v2395_v26, %v8209_v30 }
 0x255   :  { %v2399_v2 = vpop.f32.mrf.mxu0  ;;  %v2592_v15 = vpop.f32.mrf.mxu1 }
 0x256   :  { %9689 = vst [vmem:[#allocation20_spill] sm:$0xff] %v8488_v23  ;;  %v8491_v45 = vadd.f32 %v2588_v20, %v2396_v57  ;;  %v2400_v4 = vadd.f32 %v2399_v2, %v8202_v54 }
 0x257   :  { %v2401_v37 = vpop.f32.mrf.mxu0  ;;  %v2594_v61 = vpop.f32.mrf.mxu1 }
 0x258   :  { %9690 = vst [vmem:[#allocation31_spill] sm:$0xff] %v8491_v45  ;;  %v8494_v33 = vadd.f32 %v2592_v15, %v2400_v4  ;;  %v2402_v42 = vadd.f32 %v2401_v37, %v8209_v30 }
 0x259   :  { %v2403_v17 = vpop.f32.mrf.mxu0  ;;  %v2596_v14 = vpop.f32.mrf.mxu1 }
 0x25a   :  { %9691 = vst [vmem:[#allocation32_spill] sm:$0xff] %v8494_v33  ;;  %v8497_v51 = vadd.f32 %v2594_v61, %v2402_v42  ;;  %v2404_v49 = vadd.f32 %v2403_v17, %v8202_v54 }
 0x25b   :  { %v2405_v26 = vpop.f32.mrf.mxu0  ;;  %v2598_v20 = vpop.f32.mrf.mxu1 }
 0x25c   :  { %9692 = vst [vmem:[#allocation33_spill] sm:$0xff] %v8497_v51  ;;  %v8500_v23 = vadd.f32 %v2596_v14, %v2404_v49  ;;  %v2406_v57 = vadd.f32 %v2405_v26, %v8209_v30  ;;  %v3051_v30 = vld [vmem:[%s9547_s5] sm:$0x3]  ;;  %s6806_s5 = smov [#allocation6]  }
 0x25d   :  { %v2635_v2 = vpop.f32.mrf.mxu0  ;;  %v2828_v15 = vpop.f32.mrf.mxu1  ;;  %s6211_s8 = sshll.u32 %s6806_s5, 4  ;;  %s6212_s8 = int_to_ptr.vmem [resolvable:$true] %s6211_s8 }
 0x25e   :  { %v8503_v45 = vadd.f32 %v2598_v20, %v2406_v57  ;;  %v2636_v4 = vadd.f32 %v2635_v2, %v8226_v19  ;;  %v3052_v2 = vunpack.c.l.bf16 %v3051_v30  ;;  %v9694_v30 = vld [vmem:[#allocation15_spill] sm:$0xff]  ;;  %s6777_s9 = scalar_lea.vmem %s6212_s8, 32  ;;  %p6782_p6 = scmp.lt.s32.totalorder %s6212_s8, %s6212_s8 }
 0x25f   :  { %v2637_v37 = vpop.f32.mrf.mxu0  ;;  %v2830_v61 = vpop.f32.mrf.mxu1  ;;  %p6778_p5 = scmp.ne.s32.totalorder %s6212_s8, %s6777_s9  ;;  %p6783_p7 = scmp.lt.s32.totalorder %s6777_s9, %s6777_s9 }
 0x260   :  { %v2829_v33 = vadd.f32 %v2828_v15, %v2636_v4  ;;  %v2638_v42 = vadd.f32 %v2637_v37, %v8231_v63 }
 0x261   :  { %v2639_v51 = vpop.f32.mrf.mxu0  ;;  %v2832_v49 = vpop.f32.mrf.mxu1  ;;  %p6784_p8 = por %p6783_p7, %p6782_p6 }
 0x262   :  { %6628 = vtanh.f32 %v2829_v33  ;;  %v2831_v54 = vadd.f32 %v2830_v61, %v2638_v42  ;;  %v2640_v17 = vadd.f32 %v2639_v51, %v8240_v60  ;;  %v9693_v61 = vld [vmem:[#allocation13_spill] sm:$0xff] }
 0x263   :  { %v2641_v14 = vpop.f32.mrf.mxu0  ;;  %v2834_v57 = vpop.f32.mrf.mxu1  ;;  %p6785_p9 = pnand %p6784_p8, %p6778_p5 }
 0x264   :  { %6630 = vtanh.f32 %v2831_v54  ;;  %v2833_v26 = vadd.f32 %v2832_v49, %v2640_v17  ;;  %v2642_v19 = vadd.f32 %v2641_v14, %v8249_v35  ;;  %v3057_v54 = vrot.slane %v3052_v2, %v9693_v61 }
 0x265   :  { %v2645_v20 = vpop.f32.mrf.mxu0  ;;  %v2838_v4 = vpop.f32.mrf.mxu1  ;;  %v3061_v14 = vrot.slane %v3052_v2, %v9694_v30 }
 0x266   :  { %6632 = vtanh.f32 %v2833_v26  ;;  %v2835_v63 = vadd.f32 %v2834_v57, %v2642_v19  ;;  %v2646_v33 = vadd.f32 %v2645_v20, %v8254_v18 }
 0x267   :  { %v2647_v15 = vpop.f32.mrf.mxu0  ;;  %v2840_v37 = vpop.f32.mrf.mxu1 }
 0x268   :  { %6634 = vtanh.f32 %v2835_v63  ;;  %v2839_v60 = vadd.f32 %v2838_v4, %v2646_v33  ;;  %v2648_v51 = vadd.f32 %v2647_v15, %v8259_v25  ;;  %v8519_v25 = vrot.slane %v3057_v54, %v9693_v61 }
 0x269   :  { %v2649_v42 = vpop.f32.mrf.mxu0  ;;  %v2842_v49 = vpop.f32.mrf.mxu1 }
 0x26a   :  { %6636 = vtanh.f32 %v2839_v60  ;;  %v2841_v17 = vadd.f32 %v2840_v37, %v2648_v51  ;;  %v2650_v35 = vadd.f32 %v2649_v42, %v8268_v24  ;;  %v8523_v24 = vrot.slane %v3061_v14, %v9693_v61 }
 0x26b   :  { %v2651_v26 = vpop.f32.mrf.mxu0  ;;  %v2844_v57 = vpop.f32.mrf.mxu1 }
 0x26c   :  { %6638 = vtanh.f32 %v2841_v17  ;;  %v2843_v18 = vadd.f32 %v2842_v49, %v2650_v35  ;;  %v2652_v19 = vadd.f32 %v2651_v26, %v8277_v36 }
 0x26d   :  { %v2655_v20 = vpop.f32.mrf.mxu0  ;;  %v2848_v4 = vpop.f32.mrf.mxu1 }
 0x26e   :  { %6640 = vtanh.f32 %v2843_v18  ;;  %v2845_v63 = vadd.f32 %v2844_v57, %v2652_v19  ;;  %v2656_v33 = vadd.f32 %v2655_v20, %v8282_v16 }
 0x26f   :  { %v6629_v15 = vpop.eup %6628  ;;  %v2657_v2 = vpop.f32.mrf.mxu0 }
 0x270   :  { %6642 = vtanh.f32 %v2845_v63  ;;  %v2849_v60 = vadd.f32 %v2848_v4, %v2656_v33  ;;  %v2658_v51 = vadd.f32 %v2657_v2, %v8287_v31  ;;  %v2850_v36 = vpop.f32.mrf.mxu1  ;;  %v3072_v54 = vmul.f32 %v6629_v15, %v8519_v25 }
 0x271   :  { %v6631_v37 = vpop.eup %6630  ;;  %v2659_v42 = vpop.f32.mrf.mxu0 }
 0x272   :  { %6644 = vtanh.f32 %v2849_v60  ;;  %v2851_v17 = vadd.f32 %v2850_v36, %v2658_v51  ;;  %v2660_v35 = vadd.f32 %v2659_v42, %v8296_v32  ;;  %v2852_v16 = vpop.f32.mrf.mxu1  ;;  %v3073_v49 = vmul.f32 %v6631_v37, %v8523_v24 }
 0x273   :  { %v6633_v14 = vpop.eup %6632  ;;  %v2661_v26 = vpop.f32.mrf.mxu0 }
 0x274   :  { %6646 = vtanh.f32 %v2851_v17  ;;  %v2853_v18 = vadd.f32 %v2852_v16, %v2660_v35  ;;  %v2662_v19 = vadd.f32 %v2661_v26, %v8305_v41  ;;  %v2854_v57 = vpop.f32.mrf.mxu1  ;;  %v3136_v31 = vadd.f32 %v3073_v49, %v3072_v54 }
 0x275   :  { %v6635_v20 = vpop.eup %6634  ;;  %v2665_v63 = vpop.f32.mrf.mxu0  ;;  %v3074_v33 = vmul.f32 %v6633_v14, %v8519_v25 }
 0x276   :  { %6648 = vtanh.f32 %v2853_v18  ;;  %v2855_v4 = vadd.f32 %v2854_v57, %v2662_v19  ;;  %v2666_v15 = vadd.f32 %v2665_v63, %v8310_v39  ;;  %v2858_v32 = vpop.f32.mrf.mxu1  ;;  %3137 = vadd.xlane.f32.xlu0 %v3136_v31  ;;  %v3075_v2 = vmul.f32 %v6635_v20, %v8523_v24 }
 0x277   :  { %v6637_v60 = vpop.eup %6636  ;;  %v2667_v51 = vpop.f32.mrf.mxu0 }
 0x278   :  { %6650 = vtanh.f32 %v2855_v4  ;;  %v2859_v36 = vadd.f32 %v2858_v32, %v2666_v15  ;;  %v2668_v41 = vadd.f32 %v2667_v51, %v8315_v53  ;;  %v2860_v37 = vpop.f32.mrf.mxu1  ;;  %v3139_v42 = vadd.f32 %v3075_v2, %v3074_v33 }
 0x279   :  { %v6639_v54 = vpop.eup %6638  ;;  %v2669_v17 = vpop.f32.mrf.mxu0  ;;  %v3076_v35 = vmul.f32 %v6637_v60, %v8519_v25 }
 0x27a   :  { %6652 = vtanh.f32 %v2859_v36  ;;  %v2861_v16 = vadd.f32 %v2860_v37, %v2668_v41  ;;  %v2670_v39 = vadd.f32 %v2669_v17, %v8324_v21  ;;  %v2862_v49 = vpop.f32.mrf.mxu1  ;;  %3140 = vadd.xlane.f32.xlu0 %v3139_v42  ;;  %v3077_v14 = vmul.f32 %v6639_v54, %v8523_v24 }
 0x27b   :  { %v6641_v26 = vpop.eup %6640  ;;  %v2671_v18 = vpop.f32.mrf.mxu0 }
 0x27c   :  { %6654 = vtanh.f32 %v2861_v16  ;;  %v2863_v19 = vadd.f32 %v2862_v49, %v2670_v39  ;;  %v2672_v53 = vadd.f32 %v2671_v18, %v8333_v34  ;;  %v2864_v57 = vpop.f32.mrf.mxu1  ;;  %v3142_v31 = vadd.f32 %v3077_v14, %v3076_v35 }
 0x27d   :  { %v6643_v20 = vpop.eup %6642  ;;  %v2675_v63 = vpop.f32.mrf.mxu0  ;;  %v3078_v33 = vmul.f32 %v6641_v26, %v8519_v25 }
 0x27e   :  { %6656 = vtanh.f32 %v2863_v19  ;;  %v2865_v4 = vadd.f32 %v2864_v57, %v2672_v53  ;;  %v2676_v21 = vadd.f32 %v2675_v63, %v8338_v40  ;;  %v2868_v15 = vpop.f32.mrf.mxu1  ;;  %3143 = vadd.xlane.f32.xlu1 %v3142_v31  ;;  %v3079_v32 = vmul.f32 %v6643_v20, %v8523_v24 }
 0x27f   :  { %v6645_v2 = vpop.eup %6644  ;;  %v2677_v60 = vpop.f32.mrf.mxu0 }
 0x280   :  { %6658 = vtanh.f32 %v2865_v4  ;;  %v2869_v51 = vadd.f32 %v2868_v15, %v2676_v21  ;;  %v2678_v34 = vadd.f32 %v2677_v60, %v8341_v9  ;;  %v2870_v36 = vpop.f32.mrf.mxu1  ;;  %v3145_v41 = vadd.f32 %v3079_v32, %v3078_v33 }
 0x281   :  { %v6647_v37 = vpop.eup %6646  ;;  %v2679_v42 = vpop.f32.mrf.mxu0  ;;  %v3080_v54 = vmul.f32 %v6645_v2, %v8519_v25 }
 0x282   :  { %6660 = vtanh.f32 %v2869_v51  ;;  %v2871_v17 = vadd.f32 %v2870_v36, %v2678_v34  ;;  %v2680_v40 = vadd.f32 %v2679_v42, %v8350_v48  ;;  %v2872_v35 = vpop.f32.mrf.mxu1  ;;  %3146 = vadd.xlane.f32.xlu1 %v3145_v41  ;;  %v3081_v16 = vmul.f32 %v6647_v37, %v8523_v24 }
 0x283   :  { %v6649_v39 = vpop.eup %6648  ;;  %v2681_v49 = vpop.f32.mrf.mxu0 }
 0x284   :  { %6662 = vtanh.f32 %v2871_v17  ;;  %v2873_v14 = vadd.f32 %v2872_v35, %v2680_v40  ;;  %v2682_v9 = vadd.f32 %v2681_v49, %v8361_v0  ;;  %v2874_v26 = vpop.f32.mrf.mxu1  ;;  %v3148_v18 = vadd.f32 %v3081_v16, %v3080_v54 }
 0x285   :  { %v6651_v19 = vpop.eup %6650  ;;  %v2685_v53 = vpop.f32.mrf.mxu0  ;;  %v3082_v57 = vmul.f32 %v6649_v39, %v8519_v25 }
 0x286   :  { %6664 = vtanh.f32 %v2873_v14  ;;  %v2875_v31 = vadd.f32 %v2874_v26, %v2682_v9  ;;  %v2686_v48 = vadd.f32 %v2685_v53, %v8366_v3  ;;  %v2878_v20 = vpop.f32.mrf.mxu1  ;;  %3149 = vadd.xlane.f32.xlu0 %v3148_v18  ;;  %v3083_v63 = vmul.f32 %v6651_v19, %v8523_v24 }
 0x287   :  { %v6653_v33 = vpop.eup %6652  ;;  %v2687_v4 = vpop.f32.mrf.mxu0 }
 0x288   :  { %6666 = vtanh.f32 %v2875_v31  ;;  %v2879_v21 = vadd.f32 %v2878_v20, %v2686_v48  ;;  %v2688_v0 = vadd.f32 %v2687_v4, %v8369_v47  ;;  %v2880_v15 = vpop.f32.mrf.mxu1  ;;  %v3151_v32 = vadd.f32 %v3083_v63, %v3082_v57 }
 0x289   :  { %v6655_v2 = vpop.eup %6654  ;;  %v2689_v60 = vpop.f32.mrf.mxu0  ;;  %v3084_v51 = vmul.f32 %v6653_v33, %v8519_v25 }
 0x28a   :  { %6668 = vtanh.f32 %v2879_v21  ;;  %v2881_v34 = vadd.f32 %v2880_v15, %v2688_v0  ;;  %v2690_v3 = vadd.f32 %v2689_v60, %v8376_v29  ;;  %v2882_v36 = vpop.f32.mrf.mxu1  ;;  %3152 = vadd.xlane.f32.xlu1 %v3151_v32  ;;  %v3085_v41 = vmul.f32 %v6655_v2, %v8523_v24 }
 0x28b   :  { %v6657_v37 = vpop.eup %6656  ;;  %v2691_v42 = vpop.f32.mrf.mxu0 }
 0x28c   :  { %6670 = vtanh.f32 %v2881_v34  ;;  %v2883_v54 = vadd.f32 %v2882_v36, %v2690_v3  ;;  %v2692_v47 = vadd.f32 %v2691_v42, %v8383_v38  ;;  %v2884_v17 = vpop.f32.mrf.mxu1  ;;  %v3154_v40 = vadd.f32 %v3085_v41, %v3084_v51 }
 0x28d   :  { %v6659_v35 = vpop.eup %6658  ;;  %v2695_v16 = vpop.f32.mrf.mxu0  ;;  %v3086_v39 = vmul.f32 %v6657_v37, %v8519_v25 }
 0x28e   :  { %6672 = vtanh.f32 %v2883_v54  ;;  %v2885_v49 = vadd.f32 %v2884_v17, %v2692_v47  ;;  %v2696_v29 = vadd.f32 %v2695_v16, %v8386_v46  ;;  %v2888_v14 = vpop.f32.mrf.mxu1  ;;  %3155 = vadd.xlane.f32.xlu0 %v3154_v40  ;;  %v3087_v9 = vmul.f32 %v6659_v35, %v8523_v24 }
 0x28f   :  { %v6661_v26 = vpop.eup %6660  ;;  %v2697_v18 = vpop.f32.mrf.mxu0 }
 0x290   :  { %6674 = vtanh.f32 %v2885_v49  ;;  %v2889_v19 = vadd.f32 %v2888_v14, %v2696_v29  ;;  %v2698_v38 = vadd.f32 %v2697_v18, %v8389_v43  ;;  %v2890_v53 = vpop.f32.mrf.mxu1  ;;  %v3157_v57 = vadd.f32 %v3087_v9, %v3086_v39 }
 0x291   :  { %v6663_v31 = vpop.eup %6662  ;;  %v2699_v48 = vpop.f32.mrf.mxu0  ;;  %v3088_v20 = vmul.f32 %v6661_v26, %v8519_v25 }
 0x292   :  { %6676 = vtanh.f32 %v2889_v19  ;;  %v2891_v63 = vadd.f32 %v2890_v53, %v2698_v38  ;;  %v2700_v46 = vadd.f32 %v2699_v48, %v8392_v11  ;;  %v2892_v33 = vpop.f32.mrf.mxu1  ;;  %3158 = vadd.xlane.f32.xlu1 %v3157_v57  ;;  %v3089_v4 = vmul.f32 %v6663_v31, %v8523_v24 }
 0x293   :  { %v6665_v21 = vpop.eup %6664  ;;  %v2701_v0 = vpop.f32.mrf.mxu0 }
 0x294   :  { %6678 = vtanh.f32 %v2891_v63  ;;  %v2893_v15 = vadd.f32 %v2892_v33, %v2700_v46  ;;  %v2702_v43 = vadd.f32 %v2701_v0, %v8395_v62  ;;  %v2894_v32 = vpop.f32.mrf.mxu1  ;;  %v3160_v2 = vadd.f32 %v3089_v4, %v3088_v20 }
 0x295   :  { %v6667_v60 = vpop.eup %6666  ;;  %v2705_v51 = vpop.f32.mrf.mxu0  ;;  %v3090_v34 = vmul.f32 %v6665_v21, %v8519_v25 }
 0x296   :  { %6680 = vtanh.f32 %v2893_v15  ;;  %v2895_v3 = vadd.f32 %v2894_v32, %v2702_v43  ;;  %v2706_v11 = vadd.f32 %v2705_v51, %v8398_v27  ;;  %v2898_v36 = vpop.f32.mrf.mxu1  ;;  %3161 = vadd.xlane.f32.xlu0 %v3160_v2  ;;  %v3091_v41 = vmul.f32 %v6667_v60, %v8523_v24 }
 0x297   :  { %v6669_v37 = vpop.eup %6668  ;;  %v2707_v42 = vpop.f32.mrf.mxu0 }
 0x298   :  { %6682 = vtanh.f32 %v2895_v3  ;;  %v2899_v54 = vadd.f32 %v2898_v36, %v2706_v11  ;;  %v2708_v62 = vadd.f32 %v2707_v42, %v8401_v8  ;;  %v2900_v47 = vpop.f32.mrf.mxu1  ;;  %v3163_v17 = vadd.f32 %v3091_v41, %v3090_v34 }
 0x299   :  { %v6671_v40 = vpop.eup %6670  ;;  %v2709_v35 = vpop.f32.mrf.mxu0  ;;  %v3092_v16 = vmul.f32 %v6669_v37, %v8519_v25 }
 0x29a   :  { %6684 = vtanh.f32 %v2899_v54  ;;  %v2901_v39 = vadd.f32 %v2900_v47, %v2708_v62  ;;  %v2710_v27 = vadd.f32 %v2709_v35, %v8404_v13  ;;  %v2902_v49 = vpop.f32.mrf.mxu1  ;;  %3164 = vadd.xlane.f32.xlu1 %v3163_v17  ;;  %v3093_v29 = vmul.f32 %v6671_v40, %v8523_v24 }
 0x29b   :  { %v6673_v14 = vpop.eup %6672  ;;  %v2711_v9 = vpop.f32.mrf.mxu0 }
 0x29c   :  { %6686 = vtanh.f32 %v2901_v39  ;;  %v2903_v26 = vadd.f32 %v2902_v49, %v2710_v27  ;;  %v2712_v8 = vadd.f32 %v2711_v9, %v8407_v5  ;;  %v2904_v18 = vpop.f32.mrf.mxu1  ;;  %v3166_v19 = vadd.f32 %v3093_v29, %v3092_v16 }
 0x29d   :  { %v6675_v38 = vpop.eup %6674  ;;  %v2715_v53 = vpop.f32.mrf.mxu0  ;;  %v3094_v57 = vmul.f32 %v6673_v14, %v8519_v25 }
 0x29e   :  { %6688 = vtanh.f32 %v2903_v26  ;;  %v2905_v31 = vadd.f32 %v2904_v18, %v2712_v8  ;;  %v2716_v13 = vadd.f32 %v2715_v53, %v8410_v22  ;;  %v2908_v48 = vpop.f32.mrf.mxu1  ;;  %3167 = vadd.xlane.f32.xlu0 %v3166_v19  ;;  %v3095_v20 = vmul.f32 %v6675_v38, %v8523_v24 }
 0x29f   :  { %v6677_v63 = vpop.eup %6676  ;;  %v2717_v46 = vpop.f32.mrf.mxu0 }
 0x2a0   :  { %6690 = vtanh.f32 %v2905_v31  ;;  %v2909_v33 = vadd.f32 %v2908_v48, %v2716_v13  ;;  %v2718_v5 = vadd.f32 %v2717_v46, %v8413_v59  ;;  %v2910_v4 = vpop.f32.mrf.mxu1  ;;  %v3169_v21 = vadd.f32 %v3095_v20, %v3094_v57 }
 0x2a1   :  { %v6679_v0 = vpop.eup %6678  ;;  %v2719_v15 = vpop.f32.mrf.mxu0  ;;  %v3096_v43 = vmul.f32 %v6677_v63, %v8519_v25 }
 0x2a2   :  { %6692 = vtanh.f32 %v2909_v33  ;;  %v2911_v32 = vadd.f32 %v2910_v4, %v2718_v5  ;;  %v2720_v22 = vadd.f32 %v2719_v15, %v8416_v44  ;;  %v2912_v2 = vpop.f32.mrf.mxu1  ;;  %3170 = vadd.xlane.f32.xlu1 %v3169_v21  ;;  %v3097_v60 = vmul.f32 %v6679_v0, %v8523_v24 }
 0x2a3   :  { %v6681_v51 = vpop.eup %6680  ;;  %v2721_v34 = vpop.f32.mrf.mxu0 }
 0x2a4   :  { %6694 = vtanh.f32 %v2911_v32  ;;  %v2913_v3 = vadd.f32 %v2912_v2, %v2720_v22  ;;  %v2722_v59 = vadd.f32 %v2721_v34, %v8419_v1  ;;  %v2914_v11 = vpop.f32.mrf.mxu1  ;;  %v3172_v36 = vadd.f32 %v3097_v60, %v3096_v43 }
 0x2a5   :  { %v6683_v41 = vpop.eup %6682  ;;  %v2725_v37 = vpop.f32.mrf.mxu0  ;;  %v3098_v42 = vmul.f32 %v6681_v51, %v8519_v25 }
 0x2a6   :  { %6696 = vtanh.f32 %v2913_v3  ;;  %v2915_v54 = vadd.f32 %v2914_v11, %v2722_v59  ;;  %v2726_v44 = vadd.f32 %v2725_v37, %v8422_v7  ;;  %v2918_v62 = vpop.f32.mrf.mxu1  ;;  %3173 = vadd.xlane.f32.xlu0 %v3172_v36  ;;  %v3099_v47 = vmul.f32 %v6683_v41, %v8523_v24 }
 0x2a7   :  { %v6685_v17 = vpop.eup %6684  ;;  %v2727_v40 = vpop.f32.mrf.mxu0 }
 0x2a8   :  { %6698 = vtanh.f32 %v2915_v54  ;;  %v2919_v35 = vadd.f32 %v2918_v62, %v2726_v44  ;;  %v2728_v1 = vadd.f32 %v2727_v40, %v8425_v10  ;;  %v2920_v16 = vpop.f32.mrf.mxu1  ;;  %v3175_v39 = vadd.f32 %v3099_v47, %v3098_v42 }
 0x2a9   :  { %v6687_v27 = vpop.eup %6686  ;;  %v2729_v49 = vpop.f32.mrf.mxu0  ;;  %v3100_v29 = vmul.f32 %v6685_v17, %v8519_v25 }
 0x2aa   :  { %6700 = vtanh.f32 %v2919_v35  ;;  %v2921_v14 = vadd.f32 %v2920_v16, %v2728_v1  ;;  %v2730_v7 = vadd.f32 %v2729_v49, %v8428_v52  ;;  %v2922_v9 = vpop.f32.mrf.mxu1  ;;  %3176 = vadd.xlane.f32.xlu1 %v3175_v39  ;;  %v3101_v26 = vmul.f32 %v6687_v27, %v8523_v24  ;;  %v9695_v27 = vld [vmem:[#allocation23_spill] sm:$0xff] }
 0x2ab   :  { %v6689_v8 = vpop.eup %6688  ;;  %v2731_v18 = vpop.f32.mrf.mxu0 }
 0x2ac   :  { %6702 = vtanh.f32 %v2921_v14  ;;  %v2923_v19 = vadd.f32 %v2922_v9, %v2730_v7  ;;  %v2732_v10 = vadd.f32 %v2731_v18, %v8431_v6  ;;  %v2924_v38 = vpop.f32.mrf.mxu1  ;;  %v3178_v53 = vadd.f32 %v3101_v26, %v3100_v29  ;;  %v9696_v26 = vld [vmem:[#allocation22_spill] sm:$0xff] }
 0x2ad   :  { %v6691_v57 = vpop.eup %6690  ;;  %v2735_v31 = vpop.f32.mrf.mxu0  ;;  %v3102_v13 = vmul.f32 %v6689_v8, %v8519_v25 }
 0x2ae   :  { %6704 = vtanh.f32 %v2923_v19  ;;  %v2925_v48 = vadd.f32 %v2924_v38, %v2732_v10  ;;  %v2736_v52 = vadd.f32 %v2735_v31, %v8434_v28  ;;  %v2928_v20 = vpop.f32.mrf.mxu1  ;;  %3179 = vadd.xlane.f32.xlu0 %v3178_v53  ;;  %v3103_v63 = vmul.f32 %v6691_v57, %v8523_v24  ;;  %v9697_v57 = vld [vmem:[#allocation25_spill] sm:$0xff] }
 0x2af   :  { %v6693_v46 = vpop.eup %6692  ;;  %v2737_v33 = vpop.f32.mrf.mxu0 }
 0x2b0   :  { %6706 = vtanh.f32 %v2925_v48  ;;  %v2929_v5 = vadd.f32 %v2928_v20, %v2736_v52  ;;  %v2738_v6 = vadd.f32 %v2737_v33, %v8437_v12  ;;  %v2930_v4 = vpop.f32.mrf.mxu1  ;;  %v3181_v21 = vadd.f32 %v3103_v63, %v3102_v13 }
 0x2b1   :  { %v6695_v0 = vpop.eup %6694  ;;  %v2739_v15 = vpop.f32.mrf.mxu0  ;;  %v3104_v43 = vmul.f32 %v6693_v46, %v8519_v25  ;;  %v9698_v46 = vld [vmem:[#allocation27_spill] sm:$0xff] }
 0x2b2   :  { %6708 = vtanh.f32 %v2929_v5  ;;  %v2931_v32 = vadd.f32 %v2930_v4, %v2738_v6  ;;  %v2740_v28 = vadd.f32 %v2739_v15, %v8440_v56  ;;  %v2932_v22 = vpop.f32.mrf.mxu1  ;;  %3182 = vadd.xlane.f32.xlu1 %v3181_v21  ;;  %v3105_v2 = vmul.f32 %v6695_v0, %v8523_v24 }
 0x2b3   :  { %v6697_v60 = vpop.eup %6696  ;;  %v2741_v51 = vpop.f32.mrf.mxu0 }
 0x2b4   :  { %6710 = vtanh.f32 %v2931_v32  ;;  %v2933_v34 = vadd.f32 %v2932_v22, %v2740_v28  ;;  %v2742_v12 = vadd.f32 %v2741_v51, %v8443_v55  ;;  %v2934_v3 = vpop.f32.mrf.mxu1  ;;  %v3184_v59 = vadd.f32 %v3105_v2, %v3104_v43  ;;  %v9699_v43 = vld [vmem:[#allocation26_spill] sm:$0xff] }
 0x2b5   :  { %v6699_v11 = vpop.eup %6698  ;;  %v2745_v36 = vpop.f32.mrf.mxu0  ;;  %v3106_v41 = vmul.f32 %v6697_v60, %v8519_v25 }
 0x2b6   :  { %6712 = vtanh.f32 %v2933_v34  ;;  %v2935_v37 = vadd.f32 %v2934_v3, %v2742_v12  ;;  %v2746_v56 = vadd.f32 %v2745_v36, %v8446_v50  ;;  %v2938_v42 = vpop.f32.mrf.mxu1  ;;  %3185 = vadd.xlane.f32.xlu0 %v3184_v59  ;;  %v3107_v54 = vmul.f32 %v6699_v11, %v8523_v24  ;;  %v9700_v34 = vld [vmem:[#allocation18_spill] sm:$0xff] }
 0x2b7   :  { %v6701_v44 = vpop.eup %6700  ;;  %v2747_v62 = vpop.f32.mrf.mxu0 }
 0x2b8   :  { %6714 = vtanh.f32 %v2935_v37  ;;  %v2939_v47 = vadd.f32 %v2938_v42, %v2746_v56  ;;  %v2748_v55 = vadd.f32 %v2747_v62, %v8449_v58  ;;  %v2940_v17 = vpop.f32.mrf.mxu1  ;;  %v3187_v40 = vadd.f32 %v3107_v54, %v3106_v41  ;;  %v9701_v56 = vld [vmem:[#allocation24_spill] sm:$0xff] }
 0x2b9   :  { %v6703_v35 = vpop.eup %6702  ;;  %v2749_v1 = vpop.f32.mrf.mxu0  ;;  %v3108_v16 = vmul.f32 %v6701_v44, %v8519_v25 }
 0x2ba   :  { %6716 = vtanh.f32 %v2939_v47  ;;  %v2941_v39 = vadd.f32 %v2940_v17, %v2748_v55  ;;  %v2750_v50 = vadd.f32 %v2749_v1, %v9695_v27  ;;  %v2942_v49 = vpop.f32.mrf.mxu1  ;;  %3188 = vadd.xlane.f32.xlu1 %v3187_v40  ;;  %v3109_v29 = vmul.f32 %v6703_v35, %v8523_v24  ;;  %v9702_v17 = vld [vmem:[#allocation28_spill] sm:$0xff] }
 0x2bb   :  { %v6705_v14 = vpop.eup %6704  ;;  %v2751_v7 = vpop.f32.mrf.mxu0 }
 0x2bc   :  { %6718 = vtanh.f32 %v2941_v39  ;;  %v2943_v9 = vadd.f32 %v2942_v49, %v2750_v50  ;;  %v2752_v58 = vadd.f32 %v2751_v7, %v9696_v26  ;;  %v2944_v8 = vpop.f32.mrf.mxu1  ;;  %v3190_v18 = vadd.f32 %v3109_v29, %v3108_v16  ;;  %v9703_v49 = vld [vmem:[#allocation19_spill] sm:$0xff] }
 0x2bd   :  { %v6707_v19 = vpop.eup %6706  ;;  %v2755_v10 = vpop.f32.mrf.mxu0  ;;  %v3110_v38 = vmul.f32 %v6705_v14, %v8519_v25 }
 0x2be   :  { %6720 = vtanh.f32 %v2943_v9  ;;  %v2945_v53 = vadd.f32 %v2944_v8, %v2752_v58  ;;  %v2756_v31 = vadd.f32 %v2755_v10, %v9697_v57  ;;  %v2948_v13 = vpop.f32.mrf.mxu1  ;;  %3191 = vadd.xlane.f32.xlu0 %v3190_v18  ;;  %v3111_v48 = vmul.f32 %v6707_v19, %v8523_v24  ;;  %v9704_v8 = vld [vmem:[#allocation29_spill] sm:$0xff] }
 0x2bf   :  { %v6709_v52 = vpop.eup %6708  ;;  %v2757_v20 = vpop.f32.mrf.mxu0 }
 0x2c0   :  { %6722 = vtanh.f32 %v2945_v53  ;;  %v2949_v63 = vadd.f32 %v2948_v13, %v2756_v31  ;;  %v2758_v33 = vadd.f32 %v2757_v20, %v9698_v46  ;;  %v2950_v5 = vpop.f32.mrf.mxu1  ;;  %v3193_v6 = vadd.f32 %v3111_v48, %v3110_v38  ;;  %v9705_v13 = vld [vmem:[#allocation30_spill] sm:$0xff] }
 0x2c1   :  { %v6711_v4 = vpop.eup %6710  ;;  %v2759_v21 = vpop.f32.mrf.mxu0  ;;  %v3112_v0 = vmul.f32 %v6709_v52, %v8519_v25 }
 0x2c2   :  { %6724 = vtanh.f32 %v2949_v63  ;;  %v2951_v15 = vadd.f32 %v2950_v5, %v2758_v33  ;;  %v2760_v32 = vadd.f32 %v2759_v21, %v9699_v43  ;;  %v2952_v28 = vpop.f32.mrf.mxu1  ;;  %3194 = vadd.xlane.f32.xlu1 %v3193_v6  ;;  %v3113_v22 = vmul.f32 %v6711_v4, %v8523_v24  ;;  %v9706_v5 = vld [vmem:[#allocation11_spill] sm:$0xff] }
 0x2c3   :  { %v6713_v2 = vpop.eup %6712  ;;  %v2761_v60 = vpop.f32.mrf.mxu0 }
 0x2c4   :  { %6726 = vtanh.f32 %v2951_v15  ;;  %v2953_v51 = vadd.f32 %v2952_v28, %v2760_v32  ;;  %v2762_v12 = vadd.f32 %v2761_v60, %v9700_v34  ;;  %v2954_v3 = vpop.f32.mrf.mxu1  ;;  %v3196_v59 = vadd.f32 %v3113_v22, %v3112_v0  ;;  %v9707_v28 = vld [vmem:[#allocation20_spill] sm:$0xff] }
 0x2c5   :  { %v6715_v11 = vpop.eup %6714  ;;  %v2765_v36 = vpop.f32.mrf.mxu0  ;;  %v3114_v41 = vmul.f32 %v6713_v2, %v8519_v25 }
 0x2c6   :  { %6728 = vtanh.f32 %v2953_v51  ;;  %v2955_v37 = vadd.f32 %v2954_v3, %v2762_v12  ;;  %v2766_v42 = vadd.f32 %v2765_v36, %v9701_v56  ;;  %v2958_v54 = vpop.f32.mrf.mxu1  ;;  %3197 = vadd.xlane.f32.xlu0 %v3196_v59  ;;  %v3115_v44 = vmul.f32 %v6715_v11, %v8523_v24  ;;  %v9708_v3 = vld [vmem:[#allocation31_spill] sm:$0xff] }
 0x2c7   :  { %v6717_v62 = vpop.eup %6716  ;;  %v2767_v47 = vpop.f32.mrf.mxu0 }
 0x2c8   :  { %6730 = vtanh.f32 %v2955_v37  ;;  %v2959_v55 = vadd.f32 %v2958_v54, %v2766_v42  ;;  %v2768_v40 = vadd.f32 %v2767_v47, %v9702_v17  ;;  %v2960_v35 = vpop.f32.mrf.mxu1  ;;  %v3199_v1 = vadd.f32 %v3115_v44, %v3114_v41  ;;  %v9709_v54 = vld [vmem:[#allocation32_spill] sm:$0xff] }
 0x2c9   :  { %v6719_v16 = vpop.eup %6718  ;;  %v2769_v39 = vpop.f32.mrf.mxu0  ;;  %v3116_v27 = vmul.f32 %v6717_v62, %v8519_v25 }
 0x2ca   :  { %6732 = vtanh.f32 %v2959_v55  ;;  %v2961_v50 = vadd.f32 %v2960_v35, %v2768_v40  ;;  %v2770_v29 = vadd.f32 %v2769_v39, %v9703_v49  ;;  %v2962_v14 = vpop.f32.mrf.mxu1  ;;  %3200 = vadd.xlane.f32.xlu1 %v3199_v1  ;;  %v3117_v7 = vmul.f32 %v6719_v16, %v8523_v24  ;;  %v9710_v35 = vld [vmem:[#allocation33_spill] sm:$0xff] }
 0x2cb   :  { %v6721_v9 = vpop.eup %6720  ;;  %v2771_v26 = vpop.f32.mrf.mxu0 }
 0x2cc   :  { %6734 = vtanh.f32 %v2961_v50  ;;  %v2963_v58 = vadd.f32 %v2962_v14, %v2770_v29  ;;  %v2772_v18 = vadd.f32 %v2771_v26, %v9704_v8  ;;  %v2964_v19 = vpop.f32.mrf.mxu1  ;;  %v3202_v10 = vadd.f32 %v3117_v7, %v3116_v27 }
 0x2cd   :  { %v6723_v38 = vpop.eup %6722  ;;  %v2775_v53 = vpop.f32.mrf.mxu0  ;;  %v3118_v57 = vmul.f32 %v6721_v9, %v8519_v25 }
 0x2ce   :  { %6736 = vtanh.f32 %v2963_v58  ;;  %v2965_v31 = vadd.f32 %v2964_v19, %v2772_v18  ;;  %v2776_v48 = vadd.f32 %v2775_v53, %v9705_v13  ;;  %v2968_v52 = vpop.f32.mrf.mxu1  ;;  %3203 = vadd.xlane.f32.xlu0 %v3202_v10  ;;  %v3119_v20 = vmul.f32 %v6723_v38, %v8523_v24 }
 0x2cf   :  { %v6725_v63 = vpop.eup %6724  ;;  %v2777_v46 = vpop.f32.mrf.mxu0 }
 0x2d0   :  { %6738 = vtanh.f32 %v2965_v31  ;;  %v2969_v33 = vadd.f32 %v2968_v52, %v2776_v48  ;;  %v2778_v6 = vadd.f32 %v2777_v46, %v9706_v5  ;;  %v2970_v4 = vpop.f32.mrf.mxu1  ;;  %v3205_v21 = vadd.f32 %v3119_v20, %v3118_v57  ;;  %v3232_v52 = vld [vmem:[#allocation2] sm:$0x1] }
 0x2d1   :  { %v6727_v0 = vpop.eup %6726  ;;  %v2779_v15 = vpop.f32.mrf.mxu0  ;;  %v3120_v43 = vmul.f32 %v6725_v63, %v8519_v25 }
 0x2d2   :  { %6740 = vtanh.f32 %v2969_v33  ;;  %v2971_v32 = vadd.f32 %v2970_v4, %v2778_v6  ;;  %v2780_v22 = vadd.f32 %v2779_v15, %v9707_v28  ;;  %v2972_v2 = vpop.f32.mrf.mxu1  ;;  %3206 = vadd.xlane.f32.xlu1 %v3205_v21  ;;  %v3121_v60 = vmul.f32 %v6727_v0, %v8523_v24 }
 0x2d3   :  { %v6729_v51 = vpop.eup %6728  ;;  %v2781_v34 = vpop.f32.mrf.mxu0 }
 0x2d4   :  { %6742 = vtanh.f32 %v2971_v32  ;;  %v2973_v12 = vadd.f32 %v2972_v2, %v2780_v22  ;;  %v2782_v59 = vadd.f32 %v2781_v34, %v9708_v3  ;;  %v2974_v11 = vpop.f32.mrf.mxu1  ;;  %v3208_v36 = vadd.f32 %v3121_v60, %v3120_v43 }
 0x2d5   :  { %v6731_v41 = vpop.eup %6730  ;;  %v2785_v37 = vpop.f32.mrf.mxu0  ;;  %v3122_v56 = vmul.f32 %v6729_v51, %v8519_v25 }
 0x2d6   :  { %6744 = vtanh.f32 %v2973_v12  ;;  %v2975_v42 = vadd.f32 %v2974_v11, %v2782_v59  ;;  %v2786_v44 = vadd.f32 %v2785_v37, %v9709_v54  ;;  %v2978_v62 = vpop.f32.mrf.mxu1  ;;  %3209 = vadd.xlane.f32.xlu1 %v3208_v36  ;;  %v3123_v47 = vmul.f32 %v6731_v41, %v8523_v24 }
 0x2d7   :  { %v6733_v55 = vpop.eup %6732  ;;  %v2787_v17 = vpop.f32.mrf.mxu0 }
 0x2d8   :  { %6746 = vtanh.f32 %v2975_v42  ;;  %v2979_v40 = vadd.f32 %v2978_v62, %v2786_v44  ;;  %v2788_v1 = vadd.f32 %v2787_v17, %v9710_v35  ;;  %v2980_v16 = vpop.f32.mrf.mxu1  ;;  %v3211_v39 = vadd.f32 %v3123_v47, %v3122_v56 }
 0x2d9   :  { %v6735_v27 = vpop.eup %6734  ;;  %v2789_v50 = vpop.f32.mrf.mxu0  ;;  %v3124_v49 = vmul.f32 %v6733_v55, %v8519_v25 }
 0x2da   :  { %6748 = vtanh.f32 %v2979_v40  ;;  %v2981_v29 = vadd.f32 %v2980_v16, %v2788_v1  ;;  %v2790_v14 = vadd.f32 %v2789_v50, %v8500_v23  ;;  %v2982_v7 = vpop.f32.mrf.mxu1  ;;  %3212 = vadd.xlane.f32.xlu1 %v3211_v39  ;;  %v3125_v9 = vmul.f32 %v6735_v27, %v8523_v24 }
 0x2db   :  { %v6737_v26 = vpop.eup %6736  ;;  %v2791_v58 = vpop.f32.mrf.mxu0  ;;  %v6805_v39 = vmov 1966171168  }
 0x2dc   :  { %6750 = vtanh.f32 %v2981_v29  ;;  %v2983_v8 = vadd.f32 %v2982_v7, %v2790_v14  ;;  %v2792_v18 = vadd.f32 %v2791_v58, %v8503_v45  ;;  %v3214_v19 = vadd.f32 %v3125_v9, %v3124_v49  ;;  %v2984_v38 = vpop.f32.mrf.mxu1 }
 0x2dd   :  { %v6739_v10 = vpop.eup %6738  ;;  %v3126_v57 = vmul.f32 %v6737_v26, %v8519_v25  ;;  %v4335_v27 = vunpack.c.l.s4 %v6805_v39  ;;  %v9711_v26 = vld [vmem:[#allocation9_spill] sm:$0xff] }
 0x2de   :  { %6752 = vtanh.f32 %v2983_v8  ;;  %v2985_v53 = vadd.f32 %v2984_v38, %v2792_v18  ;;  %3215 = vadd.xlane.f32.xlu1 %v3214_v19  ;;  %v3127_v23 = vmul.f32 %v6739_v10, %v8523_v24 }
 0x2df   :  { %v6741_v31 = vpop.eup %6740  ;;  %v4336_v29 = vunpack.c.0.s8 %v4335_v27 }
 0x2e0   :  { %6754 = vtanh.f32 %v2985_v53  ;;  %v3217_v13 = vadd.f32 %v3127_v23, %v3126_v57  ;;  %v3128_v20 = vmul.f32 %v6741_v31, %v8519_v25 }
 0x2e1   :  { %v6743_v48 = vpop.eup %6742  ;;  %v8648_v58 = vsub.s32 %v4336_v29, %v9711_v26 }
 0x2e2   :  { %3218 = vadd.xlane.f32.xlu1 %v3217_v13  ;;  %v3129_v45 = vmul.f32 %v6743_v48, %v8523_v24 }
 0x2e3   :  { %v6745_v63 = vpop.eup %6744 }
 0x2e4   :  { %3235 = vperm.xlu0 %6434, %v3232_v52   ;;  %v3220_v46 = vadd.f32 %v3129_v45, %v3128_v20  ;;  %v3130_v5 = vmul.f32 %v6745_v63, %v8519_v25 }
 0x2e5   :  { %v6747_v33 = vpop.eup %6746 }
 0x2e6   :  { %3221 = vadd.xlane.f32.xlu1 %v3220_v46  ;;  %v3131_v6 = vmul.f32 %v6747_v33, %v8523_v24 }
 0x2e7   :  { %v6749_v4 = vpop.eup %6748 }
 0x2e8   :  { %v3223_v21 = vadd.f32 %v3131_v6, %v3130_v5  ;;  %v3132_v15 = vmul.f32 %v6749_v4, %v8519_v25 }
 0x2e9   :  { %v6751_v0 = vpop.eup %6750 }
 0x2ea   :  { %3224 = vadd.xlane.f32.xlu1 %v3223_v21  ;;  %v3133_v43 = vmul.f32 %v6751_v0, %v8523_v24 }
 0x2eb   :  { %v6753_v32 = vpop.eup %6752 }
 0x2ec   :  { %v3226_v28 = vadd.f32 %v3133_v43, %v3132_v15  ;;  %v3134_v2 = vmul.f32 %v6753_v32, %v8519_v25 }
 0x2ed   :  { %v6755_v22 = vpop.eup %6754 }
 0x2ee   :  { %3227 = vadd.xlane.f32.xlu1 %v3226_v28  ;;  %v3135_v60 = vmul.f32 %v6755_v22, %v8523_v24 }
 0x2f0   :  { %v3229_v51 = vadd.f32 %v3135_v60, %v3134_v2 }
 0x2f2   :  { %3230 = vadd.xlane.f32.xlu1 %v3229_v51 }
 0x2ff   :  { %v3138_v34 = vpop.xlane.xlu0 %3137 }
 0x303   :  { %v3141_v3 = vpop.xlane.xlu0 %3140 }
 0x307   :  { %v3144_v12 = vpop.xlane.xlu1 %3143 }
 0x30b   :  { %v3147_v59 = vpop.xlane.xlu1 %3146 }
 0x30f   :  { %v3150_v11 = vpop.xlane.xlu0 %3149 }
 0x313   :  { %v3153_v36 = vpop.xlane.xlu1 %3152 }
 0x317   :  { %v3156_v41 = vpop.xlane.xlu0 %3155 }
 0x31b   :  { %v3159_v37 = vpop.xlane.xlu1 %3158 }
 0x31f   :  { %v3162_v56 = vpop.xlane.xlu0 %3161 }
 0x323   :  { %v3165_v42 = vpop.xlane.xlu1 %3164 }
 0x327   :  { %v3168_v54 = vpop.xlane.xlu0 %3167 }
 0x32b   :  { %v3171_v44 = vpop.xlane.xlu1 %3170 }
 0x32f   :  { %v3174_v62 = vpop.xlane.xlu0 %3173 }
 0x333   :  { %v3177_v47 = vpop.xlane.xlu1 %3176 }
 0x337   :  { %v3180_v55 = vpop.xlane.xlu0 %3179 }
 0x33b   :  { %v3183_v25 = vpop.xlane.xlu1 %3182 }
 0x33f   :  { %v3186_v17 = vpop.xlane.xlu0 %3185 }
 0x343   :  { %v3189_v24 = vpop.xlane.xlu1 %3188 }
 0x347   :  { %v3192_v40 = vpop.xlane.xlu0 %3191 }
 0x34b   :  { %v3195_v35 = vpop.xlane.xlu1 %3194 }
 0x34f   :  { %v3198_v1 = vpop.xlane.xlu0 %3197 }
 0x353   :  { %v3201_v16 = vpop.xlane.xlu1 %3200 }
 0x357   :  { %v3204_v50 = vpop.xlane.xlu0 %3203 }
 0x35b   :  { %v3207_v49 = vpop.xlane.xlu1 %3206 }
 0x35f   :  { %v3210_v14 = vpop.xlane.xlu1 %3209  ;;  %v3236_v7 = vpop.permute.xlu0 %3235 }
 0x360   :  { %v8645_v9 = vrot.slane %v3236_v7, %v9693_v61 }
 0x362   :  { %v8651_v8 = vadd.f32 %v8645_v9, %v3138_v34  ;;  %v3243_v18 = vadd.f32 %v8645_v9, %v3141_v3  ;;  %v8655_v19 = vadd.f32 %v8645_v9, %v3144_v12  ;;  %v8658_v10 = vadd.f32 %v8645_v9, %v3147_v59  ;;  %v9712_v34 = vld [vmem:[#allocation10_spill] sm:$0xff]  ;;  %v9713_v59 = vld [vmem:[#allocation12_spill] sm:$0xff] }
 0x363   :  { %v8661_v38 = vadd.f32 %v8645_v9, %v3150_v11  ;;  %v8664_v53 = vadd.f32 %v8645_v9, %v3153_v36  ;;  %v8667_v57 = vadd.f32 %v8645_v9, %v3156_v41  ;;  %v8670_v23 = vadd.f32 %v8645_v9, %v3159_v37  ;;  %v3213_v31 = vpop.xlane.xlu1 %3212  ;;  %v9714_v36 = vld [vmem:[#allocation14_spill] sm:$0xff]  ;;  %v9715_v37 = vld [vmem:[#allocation17_spill] sm:$0xff] }
 0x364   :  { %v8673_v13 = vadd.f32 %v8645_v9, %v3162_v56  ;;  %v8676_v48 = vadd.f32 %v8645_v9, %v3165_v42  ;;  %v8679_v52 = vadd.f32 %v8645_v9, %v3168_v54  ;;  %v8682_v20 = vadd.f32 %v8645_v9, %v3171_v44  ;;  %v9716_v42 = vld [vmem:[#allocation21_spill] sm:$0xff]  ;;  %v9717_v44 = vld [vmem:[#allocation16_spill] sm:$0xff] }
 0x365   :  { %v8685_v45 = vadd.f32 %v8645_v9, %v3174_v62  ;;  %v8688_v63 = vadd.f32 %v8645_v9, %v3177_v47  ;;  %v8691_v46 = vadd.f32 %v8645_v9, %v3180_v55  ;;  %v8694_v33 = vadd.f32 %v8645_v9, %v3183_v25 }
 0x366   :  { %v8697_v5 = vadd.f32 %v8645_v9, %v3186_v17  ;;  %v8700_v6 = vadd.f32 %v8645_v9, %v3189_v24  ;;  %v8703_v4 = vadd.f32 %v8645_v9, %v3192_v40  ;;  %v8706_v21 = vadd.f32 %v8645_v9, %v3195_v35 }
 0x367   :  { %v8709_v0 = vadd.f32 %v8645_v9, %v3198_v1  ;;  %v8712_v15 = vadd.f32 %v8645_v9, %v3201_v16  ;;  %v8715_v43 = vadd.f32 %v8645_v9, %v3204_v50  ;;  %v8718_v32 = vadd.f32 %v8645_v9, %v3207_v49  ;;  %v3216_v28 = vpop.xlane.xlu1 %3215 }
 0x368   :  { %v8721_v22 = vadd.f32 %v8645_v9, %v3210_v14  ;;  %v8724_v2 = vadd.f32 %v8645_v9, %v3213_v31  ;;  %v8727_v60 = vadd.f32 %v8645_v9, %v3216_v28  ;;  %v3341_v51 = vrot.slane %v3243_v18, %v9693_v61 }
 0x369   :  { %v3345_v12 = vrot.slane %v3243_v18, %v9712_v34  ;;  %v3349_v3 = vrot.slane %v3243_v18, %v9694_v30  ;;  %v3353_v11 = vrot.slane %v3243_v18, %v9713_v59  ;;  %v3357_v41 = vrot.slane %v3243_v18, %v9714_v36 }
 0x36a   :  { %v3361_v56 = vrot.slane %v3243_v18, %v9715_v37  ;;  %v3365_v54 = vrot.slane %v3243_v18, %v9716_v42  ;;  %v3369_v62 = vrot.slane %v3243_v18, %v9717_v44  ;;  %v3309_v47 = vrot.slane %v8651_v8, %v9693_v61 }
 0x36b   :  { %v3219_v55 = vpop.xlane.xlu1 %3218  ;;  %v4379_v25 = vcombine.low %v3341_v51, %v3345_v12  ;;  %v4380_v17 = vcombine.low %v3349_v3, %v3353_v11  ;;  %v3313_v24 = vrot.slane %v8651_v8, %v9712_v34  ;;  %v3317_v40 = vrot.slane %v8651_v8, %v9694_v30 }
 0x36c   :  { %v8744_v35 = vadd.f32 %v8645_v9, %v3219_v55  ;;  %v4381_v1 = vcombine.low %v3357_v41, %v3361_v56  ;;  %v4382_v16 = vcombine.low %v3365_v54, %v3369_v62  ;;  %v3321_v39 = vrot.slane %v8651_v8, %v9713_v59 }
 0x36d   :  { %v4389_v27 = vrot.slane %v4379_v25, %v8648_v58  ;;  %v4396_v50 = vrot.slane %v4380_v17, %v8648_v58  ;;  %v3325_v49 = vrot.slane %v8651_v8, %v9714_v36  ;;  %v3329_v29 = vrot.slane %v8651_v8, %v9715_v37 }
 0x36e   :  { %v4403_v14 = vrot.slane %v4381_v1, %v8648_v58  ;;  %v4410_v7 = vrot.slane %v4382_v16, %v8648_v58  ;;  %v3333_v18 = vrot.slane %v8651_v8, %v9716_v42  ;;  %v3337_v31 = vrot.slane %v8651_v8, %v9717_v44 }
 0x36f   :  { %v3222_v28 = vpop.xlane.xlu1 %3221  ;;  %v4411_v51 = vcombine.low %v4389_v27, %v4396_v50  ;;  %v4330_v12 = vcombine.low %v3309_v47, %v3313_v24  ;;  %v4331_v3 = vcombine.low %v3317_v40, %v3321_v39  ;;  %v4332_v11 = vcombine.low %v3325_v49, %v3329_v29 }
 0x370   :  { %v8761_v41 = vadd.f32 %v8645_v9, %v3222_v28  ;;  %v4412_v56 = vcombine.low %v4403_v14, %v4410_v7  ;;  %v4333_v54 = vcombine.low %v3333_v18, %v3337_v31  ;;  %v3373_v62 = vrot.slane %v8655_v19, %v9693_v61 }
 0x371   :  { %v4419_v55 = vrot.slane %v4411_v51, %v8648_v58  ;;  %v4340_v25 = vrot.slane %v4330_v12, %v8648_v58  ;;  %v4347_v17 = vrot.slane %v4331_v3, %v8648_v58  ;;  %v4354_v8 = vrot.slane %v4332_v11, %v8648_v58 }
 0x372   :  { %v4426_v47 = vrot.slane %v4412_v56, %v8648_v58  ;;  %v4361_v24 = vrot.slane %v4333_v54, %v8648_v58  ;;  %v3377_v40 = vrot.slane %v8655_v19, %v9712_v34  ;;  %v3381_v1 = vrot.slane %v8655_v19, %v9694_v30 }
 0x373   :  { %v4362_v16 = vcombine.low %v4340_v25, %v4347_v17  ;;  %v3225_v39 = vpop.xlane.xlu1 %3224  ;;  %v3385_v27 = vrot.slane %v8655_v19, %v9713_v59  ;;  %v3389_v50 = vrot.slane %v8655_v19, %v9714_v36  ;;  %v3393_v49 = vrot.slane %v8655_v19, %v9715_v37 }
 0x374   :  { %v4427_v29 = vcombine.low %v4419_v55, %v4426_v47  ;;  %v4363_v14 = vcombine.low %v4354_v8, %v4361_v24  ;;  %v8782_v7 = vadd.f32 %v8645_v9, %v3225_v39  ;;  %v3397_v18 = vrot.slane %v8655_v19, %v9716_v42 }
 0x375   :  { %v4370_v31 = vrot.slane %v4362_v16, %v8648_v58  ;;  %v3401_v28 = vrot.slane %v8655_v19, %v9717_v44  ;;  %v4428_v51 = vcombine.low %v3373_v62, %v3377_v40  ;;  %v4429_v12 = vcombine.low %v3381_v1, %v3385_v27 }
 0x376   :  { %5902 = vperm.xlu0 %6434, %v4427_v29   ;;  %v4377_v3 = vrot.slane %v4363_v14, %v8648_v58  ;;  %v4430_v11 = vcombine.low %v3389_v50, %v3393_v49  ;;  %v3821_v56 = vrot.slane %v8697_v5, %v9693_v61  ;;  %v3825_v54 = vrot.slane %v8697_v5, %v9712_v34 }
 0x377   :  { %v4431_v55 = vcombine.low %v3397_v18, %v3401_v28  ;;  %v4438_v25 = vrot.slane %v4428_v51, %v8648_v58  ;;  %v4445_v17 = vrot.slane %v4429_v12, %v8648_v58  ;;  %v3829_v19 = vrot.slane %v8697_v5, %v9694_v30  ;;  %v3228_v62 = vpop.xlane.xlu1 %3227 }
 0x378   :  { %v4378_v8 = vcombine.low %v4370_v31, %v4377_v3  ;;  %v4452_v47 = vrot.slane %v4430_v11, %v8648_v58  ;;  %v3833_v24 = vrot.slane %v8697_v5, %v9713_v59  ;;  %v3837_v40 = vrot.slane %v8697_v5, %v9714_v36 }
 0x379   :  { %v4459_v1 = vrot.slane %v4431_v55, %v8648_v58  ;;  %v4460_v16 = vcombine.low %v4438_v25, %v4445_v17  ;;  %v3841_v39 = vrot.slane %v8697_v5, %v9715_v37  ;;  %v3845_v27 = vrot.slane %v8697_v5, %v9716_v42 }
 0x37a   :  { %5899 = vperm.xlu1 %6435, %v4378_v8   ;;  %v3849_v50 = vrot.slane %v8697_v5, %v9717_v44  ;;  %v5114_v49 = vcombine.low %v3821_v56, %v3825_v54  ;;  %v5115_v29 = vcombine.low %v3829_v19, %v3833_v24  ;;  %v8811_v14 = vadd.f32 %v8645_v9, %v3228_v62 }
 0x37b   :  { %v4461_v18 = vcombine.low %v4452_v47, %v4459_v1  ;;  %v4468_v31 = vrot.slane %v4460_v16, %v8648_v58  ;;  %v5116_v28 = vcombine.low %v3837_v40, %v3841_v39  ;;  %v3405_v51 = vrot.slane %v8658_v10, %v9693_v61 }
 0x37c   :  { %v5117_v12 = vcombine.low %v3845_v27, %v3849_v50  ;;  %v5124_v3 = vrot.slane %v5114_v49, %v8648_v58  ;;  %v5131_v11 = vrot.slane %v5115_v29, %v8648_v58  ;;  %v3409_v5 = vrot.slane %v8658_v10, %v9712_v34 }
 0x37d   :  { %v4475_v56 = vrot.slane %v4461_v18, %v8648_v58  ;;  %v5138_v54 = vrot.slane %v5116_v28, %v8648_v58  ;;  %v3413_v55 = vrot.slane %v8658_v10, %v9694_v30  ;;  %v3417_v25 = vrot.slane %v8658_v10, %v9713_v59 }
 0x37e   :  { %v5145_v17 = vrot.slane %v5117_v12, %v8648_v58  ;;  %v5146_v19 = vcombine.low %v5124_v3, %v5131_v11  ;;  %v3421_v62 = vrot.slane %v8658_v10, %v9714_v36  ;;  %v3425_v8 = vrot.slane %v8658_v10, %v9715_v37 }
 0x37f   :  { %v4476_v47 = vcombine.low %v4468_v31, %v4475_v56  ;;  %v3429_v24 = vrot.slane %v8658_v10, %v9716_v42  ;;  %v3433_v40 = vrot.slane %v8658_v10, %v9717_v44  ;;  %v4477_v1 = vcombine.low %v3405_v51, %v3409_v5 }
 0x380   :  { %v5147_v16 = vcombine.low %v5138_v54, %v5145_v17  ;;  %v5154_v39 = vrot.slane %v5146_v19, %v8648_v58  ;;  %v4478_v27 = vcombine.low %v3413_v55, %v3417_v25  ;;  %v4479_v50 = vcombine.low %v3421_v62, %v3425_v8  ;;  %v3231_v54 = vpop.xlane.xlu1 %3230 }
 0x381   :  { %5905 = vperm.xlu0 %6434, %v4476_v47   ;;  %v4480_v49 = vcombine.low %v3429_v24, %v3433_v40  ;;  %v4487_v29 = vrot.slane %v4477_v1, %v8648_v58  ;;  %v3885_v18 = vrot.slane %v8703_v4, %v9693_v61  ;;  %v3889_v31 = vrot.slane %v8703_v4, %v9712_v34 }
 0x382   :  { %v5161_v28 = vrot.slane %v5147_v16, %v8648_v58  ;;  %v4494_v10 = vrot.slane %v4478_v27, %v8648_v58  ;;  %v4501_v51 = vrot.slane %v4479_v50, %v8648_v58  ;;  %v3893_v12 = vrot.slane %v8703_v4, %v9694_v30 }
 0x383   :  { %v4508_v3 = vrot.slane %v4480_v49, %v8648_v58  ;;  %v3897_v11 = vrot.slane %v8703_v4, %v9713_v59  ;;  %v3901_v5 = vrot.slane %v8703_v4, %v9714_v36  ;;  %v3905_v56 = vrot.slane %v8703_v4, %v9715_v37 }
 0x384   :  { %v5162_v55 = vcombine.low %v5154_v39, %v5161_v28  ;;  %v4509_v25 = vcombine.low %v4487_v29, %v4494_v10  ;;  %v3909_v17 = vrot.slane %v8703_v4, %v9716_v42  ;;  %v3913_v19 = vrot.slane %v8703_v4, %v9717_v44 }
 0x385   :  { %v4510_v62 = vcombine.low %v4501_v51, %v4508_v3  ;;  %v5212_v8 = vcombine.low %v3885_v18, %v3889_v31  ;;  %v5213_v47 = vcombine.low %v3893_v12, %v3897_v11  ;;  %v5214_v24 = vcombine.low %v3901_v5, %v3905_v56 }
 0x386   :  { %5947 = vperm.xlu1 %6435, %v5162_v55   ;;  %v4517_v40 = vrot.slane %v4509_v25, %v8648_v58  ;;  %v5215_v1 = vcombine.low %v3909_v17, %v3913_v19  ;;  %v8859_v16 = vadd.f32 %v8645_v9, %v3231_v54  ;;  %v3437_v39 = vrot.slane %v8661_v38, %v9693_v61 }
 0x387   :  { %v4524_v27 = vrot.slane %v4510_v62, %v8648_v58  ;;  %v5222_v50 = vrot.slane %v5212_v8, %v8648_v58  ;;  %v5229_v4 = vrot.slane %v5213_v47, %v8648_v58  ;;  %v5236_v49 = vrot.slane %v5214_v24, %v8648_v58 }
 0x388   :  { %v5243_v29 = vrot.slane %v5215_v1, %v8648_v58  ;;  %v3441_v18 = vrot.slane %v8661_v38, %v9712_v34  ;;  %v3445_v9 = vrot.slane %v8661_v38, %v9694_v30  ;;  %v3449_v31 = vrot.slane %v8661_v38, %v9713_v59 }
 0x389   :  { %v4525_v28 = vcombine.low %v4517_v40, %v4524_v27  ;;  %v5244_v10 = vcombine.low %v5222_v50, %v5229_v4  ;;  %v3453_v51 = vrot.slane %v8661_v38, %v9714_v36  ;;  %v3457_v12 = vrot.slane %v8661_v38, %v9715_v37 }
 0x38a   :  { %v5245_v3 = vcombine.low %v5236_v49, %v5243_v29  ;;  %v3461_v11 = vrot.slane %v8661_v38, %v9716_v42  ;;  %v3465_v5 = vrot.slane %v8661_v38, %v9717_v44  ;;  %v4526_v56 = vcombine.low %v3437_v39, %v3441_v18 }
 0x38b   :  { %5908 = vperm.xlu0 %6434, %v4525_v28   ;;  %v5252_v54 = vrot.slane %v5244_v10, %v8648_v58  ;;  %v4527_v55 = vcombine.low %v3445_v9, %v3449_v31  ;;  %v4528_v25 = vcombine.low %v3453_v51, %v3457_v12  ;;  %v3917_v17 = vrot.slane %v8706_v21, %v9693_v61 }
 0x38c   :  { %v5259_v19 = vrot.slane %v5245_v3, %v8648_v58  ;;  %v4529_v62 = vcombine.low %v3461_v11, %v3465_v5  ;;  %v4536_v8 = vrot.slane %v4526_v56, %v8648_v58  ;;  %v3921_v47 = vrot.slane %v8706_v21, %v9712_v34 }
 0x38d   :  { %v4543_v24 = vrot.slane %v4527_v55, %v8648_v58  ;;  %v4550_v38 = vrot.slane %v4528_v25, %v8648_v58  ;;  %v3925_v40 = vrot.slane %v8706_v21, %v9694_v30  ;;  %v3929_v1 = vrot.slane %v8706_v21, %v9713_v59 }
 0x38e   :  { %v5260_v39 = vcombine.low %v5252_v54, %v5259_v19  ;;  %v4557_v27 = vrot.slane %v4529_v62, %v8648_v58  ;;  %v3933_v50 = vrot.slane %v8706_v21, %v9714_v36  ;;  %v3937_v4 = vrot.slane %v8706_v21, %v9715_v37 }
 0x38f   :  { %v4558_v49 = vcombine.low %v4536_v8, %v4543_v24  ;;  %v3941_v29 = vrot.slane %v8706_v21, %v9716_v42  ;;  %v3945_v18 = vrot.slane %v8706_v21, %v9717_v44  ;;  %v5261_v9 = vcombine.low %v3917_v17, %v3921_v47 }
 0x390   :  { %5953 = vperm.xlu1 %6435, %v5260_v39   ;;  %v4559_v31 = vcombine.low %v4550_v38, %v4557_v27  ;;  %v5262_v28 = vcombine.low %v3925_v40, %v3929_v1  ;;  %v5263_v10 = vcombine.low %v3933_v50, %v3937_v4  ;;  %v3469_v51 = vrot.slane %v8664_v53, %v9693_v61 }
 0x391   :  { %v4566_v12 = vrot.slane %v4558_v49, %v8648_v58  ;;  %v5264_v3 = vcombine.low %v3941_v29, %v3945_v18  ;;  %v5271_v11 = vrot.slane %v5261_v9, %v8648_v58  ;;  %v3473_v5 = vrot.slane %v8664_v53, %v9712_v34 }
 0x392   :  { %v4573_v56 = vrot.slane %v4559_v31, %v8648_v58  ;;  %v5278_v21 = vrot.slane %v5262_v28, %v8648_v58  ;;  %v5285_v54 = vrot.slane %v5263_v10, %v8648_v58  ;;  %v3477_v55 = vrot.slane %v8664_v53, %v9694_v30 }
 0x393   :  { %v5292_v25 = vrot.slane %v5264_v3, %v8648_v58  ;;  %v3481_v17 = vrot.slane %v8664_v53, %v9713_v59  ;;  %v3485_v19 = vrot.slane %v8664_v53, %v9714_v36  ;;  %v3489_v62 = vrot.slane %v8664_v53, %v9715_v37 }
 0x394   :  { %v4574_v8 = vcombine.low %v4566_v12, %v4573_v56  ;;  %v5293_v47 = vcombine.low %v5271_v11, %v5278_v21  ;;  %v3493_v24 = vrot.slane %v8664_v53, %v9716_v42  ;;  %v3497_v38 = vrot.slane %v8664_v53, %v9717_v44 }
 0x395   :  { %v5294_v40 = vcombine.low %v5285_v54, %v5292_v25  ;;  %v4575_v1 = vcombine.low %v3469_v51, %v3473_v5  ;;  %v4576_v39 = vcombine.low %v3477_v55, %v3481_v17  ;;  %v4577_v27 = vcombine.low %v3485_v19, %v3489_v62 }
 0x396   :  { %5911 = vperm.xlu0 %6434, %v4574_v8   ;;  %v5301_v50 = vrot.slane %v5293_v47, %v8648_v58  ;;  %v4578_v4 = vcombine.low %v3493_v24, %v3497_v38  ;;  %v3949_v49 = vrot.slane %v8709_v0, %v9693_v61  ;;  %v3953_v29 = vrot.slane %v8709_v0, %v9712_v34 }
 0x397   :  { %v5308_v18 = vrot.slane %v5294_v40, %v8648_v58  ;;  %v4585_v9 = vrot.slane %v4575_v1, %v8648_v58  ;;  %v4592_v53 = vrot.slane %v4576_v39, %v8648_v58  ;;  %v4599_v31 = vrot.slane %v4577_v27, %v8648_v58 }
 0x398   :  { %v4606_v28 = vrot.slane %v4578_v4, %v8648_v58  ;;  %v3957_v10 = vrot.slane %v8709_v0, %v9694_v30  ;;  %v3961_v51 = vrot.slane %v8709_v0, %v9713_v59  ;;  %v3965_v12 = vrot.slane %v8709_v0, %v9714_v36 }
 0x399   :  { %v5309_v3 = vcombine.low %v5301_v50, %v5308_v18  ;;  %v4607_v11 = vcombine.low %v4585_v9, %v4592_v53  ;;  %v3969_v5 = vrot.slane %v8709_v0, %v9715_v37  ;;  %v3973_v56 = vrot.slane %v8709_v0, %v9716_v42 }
 0x39a   :  { %v4608_v21 = vcombine.low %v4599_v31, %v4606_v28  ;;  %v3977_v54 = vrot.slane %v8709_v0, %v9717_v44  ;;  %v5310_v55 = vcombine.low %v3949_v49, %v3953_v29  ;;  %v5311_v25 = vcombine.low %v3957_v10, %v3961_v51 }
 0x39b   :  { %5956 = vperm.xlu1 %6435, %v5309_v3   ;;  %v4615_v17 = vrot.slane %v4607_v11, %v8648_v58  ;;  %v5312_v19 = vcombine.low %v3965_v12, %v3969_v5  ;;  %v3501_v62 = vrot.slane %v8667_v57, %v9693_v61  ;;  %v3505_v8 = vrot.slane %v8667_v57, %v9712_v34 }
 0x39c   :  { %v4622_v47 = vrot.slane %v4608_v21, %v8648_v58  ;;  %v5313_v24 = vcombine.low %v3973_v56, %v3977_v54  ;;  %v5320_v38 = vrot.slane %v5310_v55, %v8648_v58  ;;  %v5327_v40 = vrot.slane %v5311_v25, %v8648_v58 }
 0x39d   :  { %v5334_v0 = vrot.slane %v5312_v19, %v8648_v58  ;;  %v3509_v1 = vrot.slane %v8667_v57, %v9694_v30  ;;  %v3513_v39 = vrot.slane %v8667_v57, %v9713_v59  ;;  %v3517_v27 = vrot.slane %v8667_v57, %v9714_v36 }
 0x39e   :  { %v4623_v50 = vcombine.low %v4615_v17, %v4622_v47  ;;  %v5341_v4 = vrot.slane %v5313_v24, %v8648_v58  ;;  %v5342_v49 = vcombine.low %v5320_v38, %v5327_v40  ;;  %v3521_v29 = vrot.slane %v8667_v57, %v9715_v37 }
 0x39f   :  { %v3525_v18 = vrot.slane %v8667_v57, %v9716_v42  ;;  %v3529_v9 = vrot.slane %v8667_v57, %v9717_v44  ;;  %v4624_v53 = vcombine.low %v3501_v62, %v3505_v8  ;;  %v4625_v31 = vcombine.low %v3509_v1, %v3513_v39 }
 0x3a0   :  { %5914 = vperm.xlu0 %6434, %v4623_v50   ;;  %v5343_v28 = vcombine.low %v5334_v0, %v5341_v4  ;;  %v5350_v10 = vrot.slane %v5342_v49, %v8648_v58  ;;  %v4626_v51 = vcombine.low %v3517_v27, %v3521_v29  ;;  %v3981_v12 = vrot.slane %v8712_v15, %v9693_v61 }
 0x3a1   :  { %v4627_v3 = vcombine.low %v3525_v18, %v3529_v9  ;;  %v4634_v11 = vrot.slane %v4624_v53, %v8648_v58  ;;  %v4641_v5 = vrot.slane %v4625_v31, %v8648_v58  ;;  %v3985_v56 = vrot.slane %v8712_v15, %v9712_v34 }
 0x3a2   :  { %v5357_v57 = vrot.slane %v5343_v28, %v8648_v58  ;;  %v4648_v21 = vrot.slane %v4626_v51, %v8648_v58  ;;  %v3989_v54 = vrot.slane %v8712_v15, %v9694_v30  ;;  %v3993_v55 = vrot.slane %v8712_v15, %v9713_v59 }
 0x3a3   :  { %v4655_v25 = vrot.slane %v4627_v3, %v8648_v58  ;;  %v4656_v17 = vcombine.low %v4634_v11, %v4641_v5  ;;  %v3997_v19 = vrot.slane %v8712_v15, %v9714_v36  ;;  %v4001_v62 = vrot.slane %v8712_v15, %v9715_v37 }
 0x3a4   :  { %v5358_v8 = vcombine.low %v5350_v10, %v5357_v57  ;;  %v4005_v47 = vrot.slane %v8712_v15, %v9716_v42  ;;  %v4009_v24 = vrot.slane %v8712_v15, %v9717_v44  ;;  %v5359_v38 = vcombine.low %v3981_v12, %v3985_v56 }
 0x3a5   :  { %v4657_v40 = vcombine.low %v4648_v21, %v4655_v25  ;;  %v4664_v0 = vrot.slane %v4656_v17, %v8648_v58  ;;  %v5360_v1 = vcombine.low %v3989_v54, %v3993_v55  ;;  %v5361_v39 = vcombine.low %v3997_v19, %v4001_v62 }
 0x3a6   :  { %5959 = vperm.xlu1 %6435, %v5358_v8   ;;  %v5362_v27 = vcombine.low %v4005_v47, %v4009_v24  ;;  %v5369_v50 = vrot.slane %v5359_v38, %v8648_v58  ;;  %v3533_v4 = vrot.slane %v8670_v23, %v9693_v61  ;;  %v3537_v49 = vrot.slane %v8670_v23, %v9712_v34 }
 0x3a7   :  { %v4671_v29 = vrot.slane %v4657_v40, %v8648_v58  ;;  %v5376_v15 = vrot.slane %v5360_v1, %v8648_v58  ;;  %v5383_v18 = vrot.slane %v5361_v39, %v8648_v58  ;;  %v3541_v9 = vrot.slane %v8670_v23, %v9694_v30 }
 0x3a8   :  { %v5390_v53 = vrot.slane %v5362_v27, %v8648_v58  ;;  %v3545_v31 = vrot.slane %v8670_v23, %v9713_v59  ;;  %v3549_v28 = vrot.slane %v8670_v23, %v9714_v36  ;;  %v3553_v10 = vrot.slane %v8670_v23, %v9715_v37 }
 0x3a9   :  { %v4672_v51 = vcombine.low %v4664_v0, %v4671_v29  ;;  %v5391_v12 = vcombine.low %v5369_v50, %v5376_v15  ;;  %v3557_v3 = vrot.slane %v8670_v23, %v9716_v42  ;;  %v3561_v11 = vrot.slane %v8670_v23, %v9717_v44 }
 0x3aa   :  { %v5392_v5 = vcombine.low %v5383_v18, %v5390_v53  ;;  %v4673_v56 = vcombine.low %v3533_v4, %v3537_v49  ;;  %v4674_v57 = vcombine.low %v3541_v9, %v3545_v31  ;;  %v4675_v21 = vcombine.low %v3549_v28, %v3553_v10 }
 0x3ab   :  { %5917 = vperm.xlu0 %6434, %v4672_v51   ;;  %v5399_v54 = vrot.slane %v5391_v12, %v8648_v58  ;;  %v4676_v55 = vcombine.low %v3557_v3, %v3561_v11  ;;  %v4013_v25 = vrot.slane %v8715_v43, %v9693_v61  ;;  %v4017_v17 = vrot.slane %v8715_v43, %v9712_v34 }
 0x3ac   :  { %v5406_v19 = vrot.slane %v5392_v5, %v8648_v58  ;;  %v4683_v62 = vrot.slane %v4673_v56, %v8648_v58  ;;  %v4690_v23 = vrot.slane %v4674_v57, %v8648_v58  ;;  %v4697_v8 = vrot.slane %v4675_v21, %v8648_v58 }
 0x3ad   :  { %v4704_v47 = vrot.slane %v4676_v55, %v8648_v58  ;;  %v4021_v24 = vrot.slane %v8715_v43, %v9694_v30  ;;  %v4025_v38 = vrot.slane %v8715_v43, %v9713_v59  ;;  %v4029_v40 = vrot.slane %v8715_v43, %v9714_v36 }
 0x3ae   :  { %v5407_v0 = vcombine.low %v5399_v54, %v5406_v19  ;;  %v4705_v1 = vcombine.low %v4683_v62, %v4690_v23  ;;  %v4033_v39 = vrot.slane %v8715_v43, %v9715_v37  ;;  %v4037_v27 = vrot.slane %v8715_v43, %v9716_v42 }
 0x3af   :  { %v4706_v50 = vcombine.low %v4697_v8, %v4704_v47  ;;  %v4041_v4 = vrot.slane %v8715_v43, %v9717_v44  ;;  %v5408_v49 = vcombine.low %v4013_v25, %v4017_v17  ;;  %v5409_v29 = vcombine.low %v4021_v24, %v4025_v38 }
 0x3b0   :  { %5962 = vperm.xlu1 %6435, %v5407_v0   ;;  %v4713_v15 = vrot.slane %v4705_v1, %v8648_v58  ;;  %v5410_v18 = vcombine.low %v4029_v40, %v4033_v39  ;;  %v3565_v9 = vrot.slane %v8673_v13, %v9693_v61  ;;  %v3569_v53 = vrot.slane %v8673_v13, %v9712_v34 }
 0x3b1   :  { %v4720_v31 = vrot.slane %v4706_v50, %v8648_v58  ;;  %v5411_v28 = vcombine.low %v4037_v27, %v4041_v4  ;;  %v5418_v10 = vrot.slane %v5408_v49, %v8648_v58  ;;  %v5425_v51 = vrot.slane %v5409_v29, %v8648_v58 }
 0x3b2   :  { %v5432_v43 = vrot.slane %v5410_v18, %v8648_v58  ;;  %v3573_v12 = vrot.slane %v8673_v13, %v9694_v30  ;;  %v3577_v3 = vrot.slane %v8673_v13, %v9713_v59  ;;  %v3581_v11 = vrot.slane %v8673_v13, %v9714_v36 }
 0x3b3   :  { %v4721_v5 = vcombine.low %v4713_v15, %v4720_v31  ;;  %v5439_v56 = vrot.slane %v5411_v28, %v8648_v58  ;;  %v5440_v57 = vcombine.low %v5418_v10, %v5425_v51  ;;  %v3585_v21 = vrot.slane %v8673_v13, %v9715_v37 }
 0x3b4   :  { %v3589_v54 = vrot.slane %v8673_v13, %v9716_v42  ;;  %v3593_v55 = vrot.slane %v8673_v13, %v9717_v44  ;;  %v4722_v25 = vcombine.low %v3565_v9, %v3569_v53  ;;  %v4723_v17 = vcombine.low %v3573_v12, %v3577_v3 }
 0x3b5   :  { %5920 = vperm.xlu0 %6434, %v4721_v5   ;;  %v5441_v19 = vcombine.low %v5432_v43, %v5439_v56  ;;  %v5448_v62 = vrot.slane %v5440_v57, %v8648_v58  ;;  %v4724_v23 = vcombine.low %v3581_v11, %v3585_v21  ;;  %v4045_v8 = vrot.slane %v8718_v32, %v9693_v61 }
 0x3b6   :  { %v4725_v47 = vcombine.low %v3589_v54, %v3593_v55  ;;  %v4732_v24 = vrot.slane %v4722_v25, %v8648_v58  ;;  %v4739_v38 = vrot.slane %v4723_v17, %v8648_v58  ;;  %v4049_v40 = vrot.slane %v8718_v32, %v9712_v34 }
 0x3b7   :  { %v5455_v13 = vrot.slane %v5441_v19, %v8648_v58  ;;  %v4746_v0 = vrot.slane %v4724_v23, %v8648_v58  ;;  %v4053_v1 = vrot.slane %v8718_v32, %v9694_v30  ;;  %v4057_v39 = vrot.slane %v8718_v32, %v9713_v59 }
 0x3b8   :  { %v4753_v27 = vrot.slane %v4725_v47, %v8648_v58  ;;  %v4754_v50 = vcombine.low %v4732_v24, %v4739_v38  ;;  %v4061_v4 = vrot.slane %v8718_v32, %v9714_v36  ;;  %v4065_v49 = vrot.slane %v8718_v32, %v9715_v37 }
 0x3b9   :  { %v5456_v29 = vcombine.low %v5448_v62, %v5455_v13  ;;  %v4069_v15 = vrot.slane %v8718_v32, %v9716_v42  ;;  %v4073_v18 = vrot.slane %v8718_v32, %v9717_v44  ;;  %v5457_v9 = vcombine.low %v4045_v8, %v4049_v40 }
 0x3ba   :  { %v4755_v53 = vcombine.low %v4746_v0, %v4753_v27  ;;  %v4762_v31 = vrot.slane %v4754_v50, %v8648_v58  ;;  %v5458_v28 = vcombine.low %v4053_v1, %v4057_v39  ;;  %v5459_v10 = vcombine.low %v4061_v4, %v4065_v49 }
 0x3bb   :  { %5965 = vperm.xlu1 %6435, %v5456_v29   ;;  %v5460_v51 = vcombine.low %v4069_v15, %v4073_v18  ;;  %v5467_v43 = vrot.slane %v5457_v9, %v8648_v58  ;;  %v3597_v12 = vrot.slane %v8676_v48, %v9693_v61  ;;  %v3601_v3 = vrot.slane %v8676_v48, %v9712_v34 }
 0x3bc   :  { %v4769_v11 = vrot.slane %v4755_v53, %v8648_v58  ;;  %v5474_v32 = vrot.slane %v5458_v28, %v8648_v58  ;;  %v5481_v5 = vrot.slane %v5459_v10, %v8648_v58  ;;  %v3605_v56 = vrot.slane %v8676_v48, %v9694_v30 }
 0x3bd   :  { %v5488_v57 = vrot.slane %v5460_v51, %v8648_v58  ;;  %v3609_v21 = vrot.slane %v8676_v48, %v9713_v59  ;;  %v3613_v54 = vrot.slane %v8676_v48, %v9714_v36  ;;  %v3617_v55 = vrot.slane %v8676_v48, %v9715_v37 }
 0x3be   :  { %v4770_v25 = vcombine.low %v4762_v31, %v4769_v11  ;;  %v5489_v17 = vcombine.low %v5467_v43, %v5474_v32  ;;  %v3621_v19 = vrot.slane %v8676_v48, %v9716_v42  ;;  %v3625_v62 = vrot.slane %v8676_v48, %v9717_v44 }
 0x3bf   :  { %v5490_v23 = vcombine.low %v5481_v5, %v5488_v57  ;;  %v4771_v8 = vcombine.low %v3597_v12, %v3601_v3  ;;  %v4772_v47 = vcombine.low %v3605_v56, %v3609_v21  ;;  %v4773_v24 = vcombine.low %v3613_v54, %v3617_v55 }
 0x3c0   :  { %5923 = vperm.xlu0 %6434, %v4770_v25   ;;  %v5497_v38 = vrot.slane %v5489_v17, %v8648_v58  ;;  %v4774_v40 = vcombine.low %v3621_v19, %v3625_v62  ;;  %v4077_v13 = vrot.slane %v8721_v22, %v9693_v61  ;;  %v4081_v0 = vrot.slane %v8721_v22, %v9712_v34 }
 0x3c1   :  { %v5504_v1 = vrot.slane %v5490_v23, %v8648_v58  ;;  %v4781_v39 = vrot.slane %v4771_v8, %v8648_v58  ;;  %v4788_v48 = vrot.slane %v4772_v47, %v8648_v58  ;;  %v4795_v27 = vrot.slane %v4773_v24, %v8648_v58 }
 0x3c2   :  { %v4802_v50 = vrot.slane %v4774_v40, %v8648_v58  ;;  %v4085_v4 = vrot.slane %v8721_v22, %v9694_v30  ;;  %v4089_v49 = vrot.slane %v8721_v22, %v9713_v59  ;;  %v4093_v29 = vrot.slane %v8721_v22, %v9714_v36 }
 0x3c3   :  { %v5505_v15 = vcombine.low %v5497_v38, %v5504_v1  ;;  %v4803_v18 = vcombine.low %v4781_v39, %v4788_v48  ;;  %v4097_v9 = vrot.slane %v8721_v22, %v9715_v37  ;;  %v4101_v53 = vrot.slane %v8721_v22, %v9716_v42 }
 0x3c4   :  { %v4804_v31 = vcombine.low %v4795_v27, %v4802_v50  ;;  %v4105_v28 = vrot.slane %v8721_v22, %v9717_v44  ;;  %v5506_v10 = vcombine.low %v4077_v13, %v4081_v0  ;;  %v5507_v51 = vcombine.low %v4085_v4, %v4089_v49 }
 0x3c5   :  { %5968 = vperm.xlu1 %6435, %v5505_v15   ;;  %v4811_v43 = vrot.slane %v4803_v18, %v8648_v58  ;;  %v5508_v12 = vcombine.low %v4093_v29, %v4097_v9  ;;  %v3629_v3 = vrot.slane %v8679_v52, %v9693_v61  ;;  %v3633_v11 = vrot.slane %v8679_v52, %v9712_v34 }
 0x3c6   :  { %v4818_v32 = vrot.slane %v4804_v31, %v8648_v58  ;;  %v5509_v5 = vcombine.low %v4101_v53, %v4105_v28  ;;  %v5516_v56 = vrot.slane %v5506_v10, %v8648_v58  ;;  %v5523_v57 = vrot.slane %v5507_v51, %v8648_v58 }
 0x3c7   :  { %v5530_v22 = vrot.slane %v5508_v12, %v8648_v58  ;;  %v3637_v21 = vrot.slane %v8679_v52, %v9694_v30  ;;  %v3641_v54 = vrot.slane %v8679_v52, %v9713_v59  ;;  %v3645_v55 = vrot.slane %v8679_v52, %v9714_v36 }
 0x3c8   :  { %v4819_v25 = vcombine.low %v4811_v43, %v4818_v32  ;;  %v5537_v17 = vrot.slane %v5509_v5, %v8648_v58  ;;  %v5538_v19 = vcombine.low %v5516_v56, %v5523_v57  ;;  %v3649_v62 = vrot.slane %v8679_v52, %v9715_v37 }
 0x3c9   :  { %v3653_v23 = vrot.slane %v8679_v52, %v9716_v42  ;;  %v3657_v8 = vrot.slane %v8679_v52, %v9717_v44  ;;  %v4820_v47 = vcombine.low %v3629_v3, %v3633_v11  ;;  %v4821_v24 = vcombine.low %v3637_v21, %v3641_v54 }
 0x3ca   :  { %5926 = vperm.xlu0 %6434, %v4819_v25   ;;  %v5539_v38 = vcombine.low %v5530_v22, %v5537_v17  ;;  %v5546_v40 = vrot.slane %v5538_v19, %v8648_v58  ;;  %v4822_v13 = vcombine.low %v3645_v55, %v3649_v62  ;;  %v4109_v0 = vrot.slane %v8724_v2, %v9693_v61 }
 0x3cb   :  { %v4823_v1 = vcombine.low %v3653_v23, %v3657_v8  ;;  %v4830_v39 = vrot.slane %v4820_v47, %v8648_v58  ;;  %v4837_v48 = vrot.slane %v4821_v24, %v8648_v58  ;;  %v4113_v27 = vrot.slane %v8724_v2, %v9712_v34 }
 0x3cc   :  { %v5553_v52 = vrot.slane %v5539_v38, %v8648_v58  ;;  %v4844_v50 = vrot.slane %v4822_v13, %v8648_v58  ;;  %v4117_v4 = vrot.slane %v8724_v2, %v9694_v30  ;;  %v4121_v49 = vrot.slane %v8724_v2, %v9713_v59 }
 0x3cd   :  { %v4851_v29 = vrot.slane %v4823_v1, %v8648_v58  ;;  %v4852_v15 = vcombine.low %v4830_v39, %v4837_v48  ;;  %v4125_v18 = vrot.slane %v8724_v2, %v9714_v36  ;;  %v4129_v9 = vrot.slane %v8724_v2, %v9715_v37 }
 0x3ce   :  { %v5554_v53 = vcombine.low %v5546_v40, %v5553_v52  ;;  %v4133_v31 = vrot.slane %v8724_v2, %v9716_v42  ;;  %v4137_v28 = vrot.slane %v8724_v2, %v9717_v44  ;;  %v5555_v10 = vcombine.low %v4109_v0, %v4113_v27 }
 0x3cf   :  { %v4853_v51 = vcombine.low %v4844_v50, %v4851_v29  ;;  %v4860_v43 = vrot.slane %v4852_v15, %v8648_v58  ;;  %v5556_v12 = vcombine.low %v4117_v4, %v4121_v49  ;;  %v5557_v3 = vcombine.low %v4125_v18, %v4129_v9 }
 0x3d0   :  { %5971 = vperm.xlu1 %6435, %v5554_v53   ;;  %v5558_v11 = vcombine.low %v4133_v31, %v4137_v28  ;;  %v5565_v32 = vrot.slane %v5555_v10, %v8648_v58  ;;  %v3661_v5 = vrot.slane %v8682_v20, %v9693_v61  ;;  %v3665_v56 = vrot.slane %v8682_v20, %v9712_v34 }
 0x3d1   :  { %v4867_v57 = vrot.slane %v4853_v51, %v8648_v58  ;;  %v5572_v2 = vrot.slane %v5556_v12, %v8648_v58  ;;  %v5579_v22 = vrot.slane %v5557_v3, %v8648_v58  ;;  %v3669_v21 = vrot.slane %v8682_v20, %v9694_v30 }
 0x3d2   :  { %v5586_v54 = vrot.slane %v5558_v11, %v8648_v58  ;;  %v3673_v55 = vrot.slane %v8682_v20, %v9713_v59  ;;  %v3677_v25 = vrot.slane %v8682_v20, %v9714_v36  ;;  %v3681_v17 = vrot.slane %v8682_v20, %v9715_v37 }
 0x3d3   :  { %v4868_v19 = vcombine.low %v4860_v43, %v4867_v57  ;;  %v5587_v62 = vcombine.low %v5565_v32, %v5572_v2  ;;  %v3685_v23 = vrot.slane %v8682_v20, %v9716_v42  ;;  %v3689_v8 = vrot.slane %v8682_v20, %v9717_v44 }
 0x3d4   :  { %v5588_v47 = vcombine.low %v5579_v22, %v5586_v54  ;;  %v4869_v24 = vcombine.low %v3661_v5, %v3665_v56  ;;  %v4870_v38 = vcombine.low %v3669_v21, %v3673_v55  ;;  %v4871_v40 = vcombine.low %v3677_v25, %v3681_v17 }
 0x3d5   :  { %5929 = vperm.xlu0 %6434, %v4868_v19   ;;  %v5595_v13 = vrot.slane %v5587_v62, %v8648_v58  ;;  %v4872_v0 = vcombine.low %v3685_v23, %v3689_v8  ;;  %v4141_v1 = vrot.slane %v8727_v60, %v9693_v61  ;;  %v4145_v39 = vrot.slane %v8727_v60, %v9712_v34 }
 0x3d6   :  { %v5602_v48 = vrot.slane %v5588_v47, %v8648_v58  ;;  %v4879_v27 = vrot.slane %v4869_v24, %v8648_v58  ;;  %v4886_v20 = vrot.slane %v4870_v38, %v8648_v58  ;;  %v4893_v52 = vrot.slane %v4871_v40, %v8648_v58 }
 0x3d7   :  { %v4900_v50 = vrot.slane %v4872_v0, %v8648_v58  ;;  %v4149_v4 = vrot.slane %v8727_v60, %v9694_v30  ;;  %v4153_v49 = vrot.slane %v8727_v60, %v9713_v59  ;;  %v4157_v29 = vrot.slane %v8727_v60, %v9714_v36 }
 0x3d8   :  { %v5603_v15 = vcombine.low %v5595_v13, %v5602_v48  ;;  %v4901_v18 = vcombine.low %v4879_v27, %v4886_v20  ;;  %v4161_v9 = vrot.slane %v8727_v60, %v9715_v37  ;;  %v4165_v53 = vrot.slane %v8727_v60, %v9716_v42 }
 0x3d9   :  { %v4902_v31 = vcombine.low %v4893_v52, %v4900_v50  ;;  %v4169_v28 = vrot.slane %v8727_v60, %v9717_v44  ;;  %v5604_v10 = vcombine.low %v4141_v1, %v4145_v39  ;;  %v5605_v51 = vcombine.low %v4149_v4, %v4153_v49 }
 0x3da   :  { %5974 = vperm.xlu1 %6435, %v5603_v15   ;;  %v4909_v43 = vrot.slane %v4901_v18, %v8648_v58  ;;  %v5606_v12 = vcombine.low %v4157_v29, %v4161_v9  ;;  %v3853_v3 = vrot.slane %v8700_v6, %v9693_v61  ;;  %v3857_v11 = vrot.slane %v8700_v6, %v9712_v34 }
 0x3db   :  { %v4916_v32 = vrot.slane %v4902_v31, %v8648_v58  ;;  %v5607_v5 = vcombine.low %v4165_v53, %v4169_v28  ;;  %v5614_v56 = vrot.slane %v5604_v10, %v8648_v58  ;;  %v5621_v57 = vrot.slane %v5605_v51, %v8648_v58 }
 0x3dc   :  { %v5628_v60 = vrot.slane %v5606_v12, %v8648_v58  ;;  %v3861_v2 = vrot.slane %v8700_v6, %v9694_v30  ;;  %v3865_v22 = vrot.slane %v8700_v6, %v9713_v59  ;;  %v3869_v21 = vrot.slane %v8700_v6, %v9714_v36 }
 0x3dd   :  { %v4917_v54 = vcombine.low %v4909_v43, %v4916_v32  ;;  %v5635_v55 = vrot.slane %v5607_v5, %v8648_v58  ;;  %v5636_v25 = vcombine.low %v5614_v56, %v5621_v57  ;;  %v3873_v17 = vrot.slane %v8700_v6, %v9715_v37 }
 0x3de   :  { %v3877_v19 = vrot.slane %v8700_v6, %v9716_v42  ;;  %v3881_v62 = vrot.slane %v8700_v6, %v9717_v44  ;;  %v5163_v23 = vcombine.low %v3853_v3, %v3857_v11  ;;  %v5164_v8 = vcombine.low %v3861_v2, %v3865_v22 }
 0x3df   :  { %5932 = vperm.xlu0 %6434, %v4917_v54   ;;  %v5637_v47 = vcombine.low %v5628_v60, %v5635_v55  ;;  %v5644_v24 = vrot.slane %v5636_v25, %v8648_v58  ;;  %v5165_v38 = vcombine.low %v3869_v21, %v3873_v17  ;;  %v4173_v40 = vrot.slane %v8744_v35, %v9693_v61 }
 0x3e0   :  { %v5166_v13 = vcombine.low %v3877_v19, %v3881_v62  ;;  %v5173_v0 = vrot.slane %v5163_v23, %v8648_v58  ;;  %v5180_v1 = vrot.slane %v5164_v8, %v8648_v58  ;;  %v4177_v39 = vrot.slane %v8744_v35, %v9712_v34 }
 0x3e1   :  { %v5651_v6 = vrot.slane %v5637_v47, %v8648_v58  ;;  %v5187_v48 = vrot.slane %v5165_v38, %v8648_v58  ;;  %v4181_v27 = vrot.slane %v8744_v35, %v9694_v30  ;;  %v4185_v20 = vrot.slane %v8744_v35, %v9713_v59 }
 0x3e2   :  { %v5194_v52 = vrot.slane %v5166_v13, %v8648_v58  ;;  %v5195_v50 = vcombine.low %v5173_v0, %v5180_v1  ;;  %v4189_v4 = vrot.slane %v8744_v35, %v9714_v36  ;;  %v4193_v49 = vrot.slane %v8744_v35, %v9715_v37 }
 0x3e3   :  { %v5652_v29 = vcombine.low %v5644_v24, %v5651_v6  ;;  %v4197_v15 = vrot.slane %v8744_v35, %v9716_v42  ;;  %v4201_v18 = vrot.slane %v8744_v35, %v9717_v44  ;;  %v5653_v9 = vcombine.low %v4173_v40, %v4177_v39 }
 0x3e4   :  { %v5196_v53 = vcombine.low %v5187_v48, %v5194_v52  ;;  %v5203_v31 = vrot.slane %v5195_v50, %v8648_v58  ;;  %v5654_v28 = vcombine.low %v4181_v27, %v4185_v20  ;;  %v5655_v10 = vcombine.low %v4189_v4, %v4193_v49 }
 0x3e5   :  { %5977 = vperm.xlu1 %6435, %v5652_v29   ;;  %v5656_v51 = vcombine.low %v4197_v15, %v4201_v18  ;;  %v5663_v43 = vrot.slane %v5653_v9, %v8648_v58  ;;  %v3693_v12 = vrot.slane %v8685_v45, %v9693_v61  ;;  %v3697_v3 = vrot.slane %v8685_v45, %v9712_v34 }
 0x3e6   :  { %v5210_v11 = vrot.slane %v5196_v53, %v8648_v58  ;;  %v5670_v35 = vrot.slane %v5654_v28, %v8648_v58  ;;  %v5677_v32 = vrot.slane %v5655_v10, %v8648_v58  ;;  %v3701_v5 = vrot.slane %v8685_v45, %v9694_v30 }
 0x3e7   :  { %v5684_v56 = vrot.slane %v5656_v51, %v8648_v58  ;;  %v3705_v57 = vrot.slane %v8685_v45, %v9713_v59  ;;  %v3709_v60 = vrot.slane %v8685_v45, %v9714_v36  ;;  %v3713_v2 = vrot.slane %v8685_v45, %v9715_v37 }
 0x3e8   :  { %v5211_v22 = vcombine.low %v5203_v31, %v5210_v11  ;;  %v5685_v21 = vcombine.low %v5663_v43, %v5670_v35  ;;  %v3717_v54 = vrot.slane %v8685_v45, %v9716_v42  ;;  %v3721_v55 = vrot.slane %v8685_v45, %v9717_v44 }
 0x3e9   :  { %v5686_v25 = vcombine.low %v5677_v32, %v5684_v56  ;;  %v4918_v17 = vcombine.low %v3693_v12, %v3697_v3  ;;  %v4919_v19 = vcombine.low %v3701_v5, %v3705_v57  ;;  %v4920_v62 = vcombine.low %v3709_v60, %v3713_v2 }
 0x3ea   :  { %5950 = vperm.xlu0 %6434, %v5211_v22   ;;  %v5693_v23 = vrot.slane %v5685_v21, %v8648_v58  ;;  %v4921_v8 = vcombine.low %v3717_v54, %v3721_v55  ;;  %v4205_v47 = vrot.slane %v8761_v41, %v9693_v61  ;;  %v4209_v24 = vrot.slane %v8761_v41, %v9712_v34 }
 0x3eb   :  { %v5700_v38 = vrot.slane %v5686_v25, %v8648_v58  ;;  %v4928_v40 = vrot.slane %v4918_v17, %v8648_v58  ;;  %v4935_v45 = vrot.slane %v4919_v19, %v8648_v58  ;;  %v4942_v13 = vrot.slane %v4920_v62, %v8648_v58 }
 0x3ec   :  { %v4949_v0 = vrot.slane %v4921_v8, %v8648_v58  ;;  %v4213_v1 = vrot.slane %v8761_v41, %v9694_v30  ;;  %v4217_v39 = vrot.slane %v8761_v41, %v9713_v59  ;;  %v4221_v6 = vrot.slane %v8761_v41, %v9714_v36 }
 0x3ed   :  { %v5701_v48 = vcombine.low %v5693_v23, %v5700_v38  ;;  %v4950_v27 = vcombine.low %v4928_v40, %v4935_v45  ;;  %v4225_v20 = vrot.slane %v8761_v41, %v9715_v37  ;;  %v4229_v52 = vrot.slane %v8761_v41, %v9716_v42 }
 0x3ee   :  { %v4951_v50 = vcombine.low %v4942_v13, %v4949_v0  ;;  %v4233_v4 = vrot.slane %v8761_v41, %v9717_v44  ;;  %v5702_v49 = vcombine.low %v4205_v47, %v4209_v24  ;;  %v5703_v29 = vcombine.low %v4213_v1, %v4217_v39 }
 0x3ef   :  { %5980 = vperm.xlu1 %6435, %v5701_v48   ;;  %v4958_v15 = vrot.slane %v4950_v27, %v8648_v58  ;;  %v5704_v18 = vcombine.low %v4221_v6, %v4225_v20  ;;  %v3725_v9 = vrot.slane %v8688_v63, %v9693_v61  ;;  %v3729_v53 = vrot.slane %v8688_v63, %v9712_v34 }
 0x3f0   :  { %v4965_v31 = vrot.slane %v4951_v50, %v8648_v58  ;;  %v5705_v28 = vcombine.low %v4229_v52, %v4233_v4  ;;  %v5712_v10 = vrot.slane %v5702_v49, %v8648_v58  ;;  %v5719_v51 = vrot.slane %v5703_v29, %v8648_v58 }
 0x3f1   :  { %v5726_v41 = vrot.slane %v5704_v18, %v8648_v58  ;;  %v3733_v43 = vrot.slane %v8688_v63, %v9694_v30  ;;  %v3737_v12 = vrot.slane %v8688_v63, %v9713_v59  ;;  %v3741_v3 = vrot.slane %v8688_v63, %v9714_v36 }
 0x3f2   :  { %v4966_v11 = vcombine.low %v4958_v15, %v4965_v31  ;;  %v5733_v35 = vrot.slane %v5705_v28, %v8648_v58  ;;  %v5734_v32 = vcombine.low %v5712_v10, %v5719_v51  ;;  %v3745_v5 = vrot.slane %v8688_v63, %v9715_v37 }
 0x3f3   :  { %v3749_v56 = vrot.slane %v8688_v63, %v9716_v42  ;;  %v3753_v57 = vrot.slane %v8688_v63, %v9717_v44  ;;  %v4967_v60 = vcombine.low %v3725_v9, %v3729_v53  ;;  %v4968_v2 = vcombine.low %v3733_v43, %v3737_v12 }
 0x3f4   :  { %5935 = vperm.xlu0 %6434, %v4966_v11   ;;  %v5735_v22 = vcombine.low %v5726_v41, %v5733_v35  ;;  %v5742_v21 = vrot.slane %v5734_v32, %v8648_v58  ;;  %v4969_v54 = vcombine.low %v3741_v3, %v3745_v5  ;;  %v4237_v55 = vrot.slane %v8782_v7, %v9693_v61 }
 0x3f5   :  { %v4970_v25 = vcombine.low %v3749_v56, %v3753_v57  ;;  %v4977_v17 = vrot.slane %v4967_v60, %v8648_v58  ;;  %v4984_v19 = vrot.slane %v4968_v2, %v8648_v58  ;;  %v4241_v62 = vrot.slane %v8782_v7, %v9712_v34 }
 0x3f6   :  { %v5749_v63 = vrot.slane %v5735_v22, %v8648_v58  ;;  %v4991_v23 = vrot.slane %v4969_v54, %v8648_v58  ;;  %v4245_v8 = vrot.slane %v8782_v7, %v9694_v30  ;;  %v4249_v47 = vrot.slane %v8782_v7, %v9713_v59 }
 0x3f7   :  { %v4998_v24 = vrot.slane %v4970_v25, %v8648_v58  ;;  %v4999_v38 = vcombine.low %v4977_v17, %v4984_v19  ;;  %v4253_v40 = vrot.slane %v8782_v7, %v9714_v36  ;;  %v4257_v45 = vrot.slane %v8782_v7, %v9715_v37 }
 0x3f8   :  { %v5750_v13 = vcombine.low %v5742_v21, %v5749_v63  ;;  %v4261_v0 = vrot.slane %v8782_v7, %v9716_v42  ;;  %v4265_v1 = vrot.slane %v8782_v7, %v9717_v44  ;;  %v5751_v39 = vcombine.low %v4237_v55, %v4241_v62 }
 0x3f9   :  { %v5000_v6 = vcombine.low %v4991_v23, %v4998_v24  ;;  %v5007_v48 = vrot.slane %v4999_v38, %v8648_v58  ;;  %v5752_v27 = vcombine.low %v4245_v8, %v4249_v47  ;;  %v5753_v20 = vcombine.low %v4253_v40, %v4257_v45 }
 0x3fa   :  { %5983 = vperm.xlu1 %6435, %v5750_v13   ;;  %v5754_v52 = vcombine.low %v4261_v0, %v4265_v1  ;;  %v5761_v50 = vrot.slane %v5751_v39, %v8648_v58  ;;  %v3757_v4 = vrot.slane %v8691_v46, %v9693_v61  ;;  %v3761_v49 = vrot.slane %v8691_v46, %v9712_v34 }
 0x3fb   :  { %v5014_v29 = vrot.slane %v5000_v6, %v8648_v58  ;;  %v5768_v7 = vrot.slane %v5752_v27, %v8648_v58  ;;  %v5775_v15 = vrot.slane %v5753_v20, %v8648_v58  ;;  %v3765_v18 = vrot.slane %v8691_v46, %v9694_v30 }
 0x3fc   :  { %v5782_v9 = vrot.slane %v5754_v52, %v8648_v58  ;;  %v3769_v53 = vrot.slane %v8691_v46, %v9713_v59  ;;  %v3773_v31 = vrot.slane %v8691_v46, %v9714_v36  ;;  %v3777_v28 = vrot.slane %v8691_v46, %v9715_v37 }
 0x3fd   :  { %v5015_v10 = vcombine.low %v5007_v48, %v5014_v29  ;;  %v5783_v51 = vcombine.low %v5761_v50, %v5768_v7  ;;  %v3781_v41 = vrot.slane %v8691_v46, %v9716_v42  ;;  %v3785_v43 = vrot.slane %v8691_v46, %v9717_v44 }
 0x3fe   :  { %v5784_v12 = vcombine.low %v5775_v15, %v5782_v9  ;;  %v5016_v3 = vcombine.low %v3757_v4, %v3761_v49  ;;  %v5017_v11 = vcombine.low %v3765_v18, %v3769_v53  ;;  %v5018_v35 = vcombine.low %v3773_v31, %v3777_v28 }
 0x3ff   :  { %5938 = vperm.xlu0 %6434, %v5015_v10   ;;  %v5791_v32 = vrot.slane %v5783_v51, %v8648_v58  ;;  %v5019_v5 = vcombine.low %v3781_v41, %v3785_v43  ;;  %v4269_v56 = vrot.slane %v8811_v14, %v9693_v61  ;;  %v4273_v57 = vrot.slane %v8811_v14, %v9712_v34 }
 0x400   :  { %v5798_v60 = vrot.slane %v5784_v12, %v8648_v58  ;;  %v5026_v2 = vrot.slane %v5016_v3, %v8648_v58  ;;  %v5033_v46 = vrot.slane %v5017_v11, %v8648_v58  ;;  %v5040_v22 = vrot.slane %v5018_v35, %v8648_v58 }
 0x401   :  { %v5047_v21 = vrot.slane %v5019_v5, %v8648_v58  ;;  %v4277_v54 = vrot.slane %v8811_v14, %v9694_v30  ;;  %v4281_v55 = vrot.slane %v8811_v14, %v9713_v59  ;;  %v4285_v25 = vrot.slane %v8811_v14, %v9714_v36 }
 0x402   :  { %v5799_v17 = vcombine.low %v5791_v32, %v5798_v60  ;;  %v5048_v19 = vcombine.low %v5026_v2, %v5033_v46  ;;  %v4289_v62 = vrot.slane %v8811_v14, %v9715_v37  ;;  %v4293_v63 = vrot.slane %v8811_v14, %v9716_v42 }
 0x403   :  { %v5049_v23 = vcombine.low %v5040_v22, %v5047_v21  ;;  %v4297_v8 = vrot.slane %v8811_v14, %v9717_v44  ;;  %v5800_v47 = vcombine.low %v4269_v56, %v4273_v57  ;;  %v5801_v24 = vcombine.low %v4277_v54, %v4281_v55 }
 0x404   :  { %5986 = vperm.xlu1 %6435, %v5799_v17   ;;  %v5056_v38 = vrot.slane %v5048_v19, %v8648_v58  ;;  %v5802_v40 = vcombine.low %v4285_v25, %v4289_v62  ;;  %v3789_v45 = vrot.slane %v8694_v33, %v9693_v61  ;;  %v3793_v13 = vrot.slane %v8694_v33, %v9712_v34  ;;  %v9440_v62 = vpop.permute.xlu0 %5902 }
 0x405   :  { %v5063_v0 = vrot.slane %v5049_v23, %v8648_v58  ;;  %v5803_v1 = vcombine.low %v4293_v63, %v4297_v8  ;;  %v5810_v39 = vrot.slane %v5800_v47, %v8648_v58  ;;  %v5817_v6 = vrot.slane %v5801_v24, %v8648_v58  ;;  %v9448_v47 = vpop.permute.xlu1 %5899 }
 0x406   :  { %v5824_v14 = vrot.slane %v5802_v40, %v8648_v58  ;;  %v3797_v48 = vrot.slane %v8694_v33, %v9694_v30  ;;  %v3801_v27 = vrot.slane %v8694_v33, %v9713_v59  ;;  %v3805_v20 = vrot.slane %v8694_v33, %v9714_v36 }
 0x407   :  { %v5064_v52 = vcombine.low %v5056_v38, %v5063_v0  ;;  %v5831_v50 = vrot.slane %v5803_v1, %v8648_v58  ;;  %v5832_v4 = vcombine.low %v5810_v39, %v5817_v6  ;;  %v3809_v49 = vrot.slane %v8694_v33, %v9715_v37 }
 0x408   :  { %v3813_v29 = vrot.slane %v8694_v33, %v9716_v42  ;;  %v3817_v7 = vrot.slane %v8694_v33, %v9717_v44  ;;  %v5065_v15 = vcombine.low %v3789_v45, %v3793_v13  ;;  %v5066_v18 = vcombine.low %v3797_v48, %v3801_v27  ;;  %v9442_v63 = vpop.permute.xlu0 %5905 }
 0x409   :  { %5941 = vperm.xlu0 %6434, %v5064_v52   ;;  %v5833_v9 = vcombine.low %v5824_v14, %v5831_v50  ;;  %v5840_v53 = vrot.slane %v5832_v4, %v8648_v58  ;;  %v5067_v31 = vcombine.low %v3805_v20, %v3809_v49  ;;  %v4301_v28 = vrot.slane %v8859_v16, %v9693_v61  ;;  %v5948_v38 = vpop.permute.xlu1 %5947 }
 0x40a   :  { %v5068_v10 = vcombine.low %v3813_v29, %v3817_v7  ;;  %v5075_v51 = vrot.slane %v5065_v15, %v8648_v58  ;;  %v5082_v41 = vrot.slane %v5066_v18, %v8648_v58  ;;  %v4305_v43 = vrot.slane %v8859_v16, %v9712_v34 }
 0x40b   :  { %v5847_v33 = vrot.slane %v5833_v9, %v8648_v58  ;;  %v5089_v12 = vrot.slane %v5067_v31, %v8648_v58  ;;  %v4309_v3 = vrot.slane %v8859_v16, %v9694_v30  ;;  %v4313_v11 = vrot.slane %v8859_v16, %v9713_v59 }
 0x40c   :  { %v5096_v61 = vrot.slane %v5068_v10, %v8648_v58  ;;  %v5097_v35 = vcombine.low %v5075_v51, %v5082_v41  ;;  %v4317_v32 = vrot.slane %v8859_v16, %v9714_v36  ;;  %v4321_v5 = vrot.slane %v8859_v16, %v9715_v37  ;;  %v9444_v23 = vpop.permute.xlu0 %5908 }
 0x40d   :  { %v5848_v34 = vcombine.low %v5840_v53, %v5847_v33  ;;  %v4325_v56 = vrot.slane %v8859_v16, %v9716_v42  ;;  %v4329_v57 = vrot.slane %v8859_v16, %v9717_v44  ;;  %v5849_v30 = vcombine.low %v4301_v28, %v4305_v43  ;;  %v5954_v45 = vpop.permute.xlu1 %5953 }
 0x40e   :  { %v5098_v60 = vcombine.low %v5089_v12, %v5096_v61  ;;  %v5105_v59 = vrot.slane %v5097_v35, %v8648_v58  ;;  %v5850_v2 = vcombine.low %v4309_v3, %v4313_v11  ;;  %v5851_v46 = vcombine.low %v4317_v32, %v4321_v5 }
 0x40f   :  { %5989 = vperm.xlu1 %6435, %v5848_v34   ;;  %v5852_v22 = vcombine.low %v4325_v56, %v4329_v57  ;;  %v5859_v36 = vrot.slane %v5849_v30, %v8648_v58  ;;  %v9718_v20 = vlaneseq }
 0x410   :  { %v5112_v21 = vrot.slane %v5098_v60, %v8648_v58  ;;  %v5866_v37 = vrot.slane %v5850_v2, %v8648_v58  ;;  %v5873_v54 = vrot.slane %v5851_v46, %v8648_v58 }
 0x411   :  { %v5880_v42 = vrot.slane %v5852_v22, %v8648_v58  ;;  %v9446_v8 = vpop.permute.xlu0 %5911  ;;  %v9463_v52 = vand.u32 127, %v9718_v20  ;;  %vm6202_vm0 = vcmp.lt.s32.totalorder %v9718_v20, 256 }
 0x412   :  { %v5113_v55 = vcombine.low %v5105_v59, %v5112_v21  ;;  %v5881_v44 = vcombine.low %v5859_v36, %v5866_v37 }
 0x413   :  { %v5882_v16 = vcombine.low %v5873_v54, %v5880_v42  ;;  %v6000_v49 = vadd.s32 4294967288, %v9463_v52  ;;  %v6007_v15 = vadd.s32 4294967280, %v9463_v52  ;;  %v5998_v9 = vsub.s32 %v9463_v52, %v9711_v26 }
 0x414   :  { %5944 = vperm.xlu0 %6434, %v5113_v55   ;;  %v5889_v25 = vrot.slane %v5881_v44, %v8648_v58  ;;  %v6014_v28 = vadd.s32 4294967272, %v9463_v52  ;;  %v6021_v43 = vadd.s32 4294967264, %v9463_v52  ;;  %v6028_v61 = vadd.s32 4294967256, %v9463_v52 }
 0x415   :  { %v5896_v17 = vrot.slane %v5882_v16, %v8648_v58  ;;  %v6003_v7 = vsub.s32 %v6000_v49, %v9711_v26  ;;  %v6108_v31 = vrot.slane %v5948_v38, %v5998_v9  ;;  %v6010_v10 = vsub.s32 %v6007_v15, %v9711_v26 }
 0x416   :  { %v5957_v0 = vpop.permute.xlu1 %5956  ;;  %v6017_v12 = vsub.s32 %v6014_v28, %v9711_v26  ;;  %v6024_v35 = vsub.s32 %v6021_v43, %v9711_v26  ;;  %v6035_v34 = vadd.s32 4294967248, %v9463_v52  ;;  %v6031_v57 = vsub.s32 %v6028_v61, %v9711_v26 }
 0x417   :  { %v5897_v19 = vcombine.low %v5889_v25, %v5896_v17  ;;  %v6117_v41 = vrot.slane %v5954_v45, %v6010_v10  ;;  %v6042_v59 = vadd.s32 4294967240, %v9463_v52  ;;  %v6049_v36 = vadd.s32 4294967232, %v9463_v52 }
 0x418   :  { %v6122_v11 = vrot.slane %v5957_v0, %v6017_v12  ;;  %v6038_v2 = vsub.s32 %v6035_v34, %v9711_v26  ;;  %v6056_v44 = vadd.s32 4294967224, %v9463_v52  ;;  %v6004_v25 = vrot.slane %v9440_v62, %v6003_v7 }
 0x419   :  { %5992 = vperm.xlu1 %6435, %v5897_v19   ;;  %v6045_v37 = vsub.s32 %v6042_v59, %v9711_v26  ;;  %v6052_v16 = vsub.s32 %v6049_v36, %v9711_v26  ;;  %v5999_v17 = vrot.slane %v9448_v47, %v5998_v9  ;;  %v6063_v45 = vadd.s32 4294967216, %v9463_v52 }
 0x41a   :  { %v6070_v47 = vadd.s32 4294967208, %v9463_v52 }
 0x41b   :  { %v9450_v24 = vpop.permute.xlu0 %5914  ;;  %v6006_v62 = vsel %vm6005_vm1, %v6004_v25, %v5999_v17  ;;  %v6066_v15 = vsub.s32 %v6063_v45, %v9711_v26 }
 0x41c   :  { %v6032_v9 = vrot.slane %v9450_v24, %v6031_v57  ;;  %v6073_v43 = vsub.s32 %v6070_v47, %v9711_v26  ;;  %v6098_v24 = vadd.s32 4294967176, %v9463_v52 }
 0x421   :  { %v5960_v39 = vpop.permute.xlu1 %5959 }
 0x422   :  { %v6127_v5 = vrot.slane %v5960_v39, %v6024_v35  ;;  %v6011_v39 = vrot.slane %v9442_v63, %v6010_v10  ;;  %v6077_v63 = vadd.s32 4294967200, %v9463_v52 }
 0x426   :  { %v9452_v40 = vpop.permute.xlu0 %5917 }
 0x427   :  { %v6039_v28 = vrot.slane %v9452_v40, %v6038_v2  ;;  %v6080_v40 = vsub.s32 %v6077_v63, %v9711_v26 }
 0x42b   :  { %v5963_v14 = vpop.permute.xlu1 %5962 }
 0x42c   :  { %v6132_v60 = vrot.slane %v5963_v14, %v6031_v57  ;;  %v6059_v14 = vsub.s32 %v6056_v44, %v9711_v26 }
 0x430   :  { %v9454_v13 = vpop.permute.xlu0 %5920 }
 0x436   :  { %v5966_v27 = vpop.permute.xlu1 %5965 }
 0x437   :  { %v6137_v22 = vrot.slane %v5966_v27, %v6038_v2 }
 0x43b   :  { %v9456_v1 = vpop.permute.xlu0 %5923 }
 0x440   :  { %v5969_v4 = vpop.permute.xlu1 %5968 }
 0x441   :  { %v6142_v55 = vrot.slane %v5969_v4, %v6045_v37  ;;  %v6018_v4 = vrot.slane %v9444_v23, %v6017_v12 }
 0x445   :  { %v9458_v6 = vpop.permute.xlu0 %5926 }
 0x44b   :  { %v5972_v18 = vpop.permute.xlu1 %5971 }
 0x44c   :  { %v6147_v38 = vrot.slane %v5972_v18, %v6052_v16  ;;  %v6013_v18 = vsel %vm6012_vm2, %v6011_v39, %v6006_v62 }
 0x450   :  { %v9460_v48 = vpop.permute.xlu0 %5929 }
 0x451   :  { %v6067_v34 = vrot.slane %v9460_v48, %v6066_v15 }
 0x455   :  { %v5975_v33 = vpop.permute.xlu1 %5974 }
 0x45a   :  { %v9465_v50 = vpop.permute.xlu0 %5932 }
 0x460   :  { %v5978_v56 = vpop.permute.xlu1 %5977 }
 0x461   :  { %v6157_v10 = vrot.slane %v5978_v56, %v6066_v15  ;;  %v6074_v56 = vrot.slane %v9465_v50, %v6073_v43 }
 0x465   :  { %v5951_v29 = vpop.permute.xlu0 %5950 }
 0x466   :  { %v6112_v53 = vrot.slane %v5951_v29, %v6003_v7  ;;  %v6152_v29 = vrot.slane %v5975_v33, %v6059_v14  ;;  %v6025_v7 = vrot.slane %v9446_v8, %v6024_v35  ;;  %v6091_v8 = vadd.s32 4294967184, %v9463_v52 }
 0x467   :  { %v6060_v35 = vrot.slane %v9458_v6, %v6059_v14 }
 0x468   :  { %v6113_v51 = vsel %vm6005_vm1, %v6112_v53, %v6108_v31  ;;  %v6084_v53 = vadd.s32 4294967192, %v9463_v52  ;;  %v6020_v31 = vsel %vm6019_vm3, %v6018_v4, %v6013_v18  ;;  %v6094_v52 = vsub.s32 %v6091_v8, %v9711_v26 }
 0x469   :  { %v6118_v3 = vsel %vm6012_vm2, %v6117_v41, %v6113_v51  ;;  %v6046_v41 = vrot.slane %v9454_v13, %v6045_v37  ;;  %v6027_v12 = vsel %vm6026_vm4, %v6025_v7, %v6020_v31 }
 0x46a   :  { %v6123_v32 = vsel %vm6019_vm3, %v6122_v11, %v6118_v3  ;;  %v5981_v21 = vpop.permute.xlu1 %5980  ;;  %v6053_v3 = vrot.slane %v9456_v1, %v6052_v16  ;;  %v6034_v61 = vsel %vm6033_vm5, %v6032_v9, %v6027_v12  ;;  %v6087_v13 = vsub.s32 %v6084_v53, %v9711_v26 }
 0x46b   :  { %v6128_v30 = vsel %vm6026_vm4, %v6127_v5, %v6123_v32  ;;  %v6162_v32 = vrot.slane %v5981_v21, %v6073_v43  ;;  %v6041_v5 = vsel %vm6040_vm6, %v6039_v28, %v6034_v61 }
 0x46c   :  { %v6133_v46 = vsel %vm6033_vm5, %v6132_v60, %v6128_v30  ;;  %v6048_v1 = vsel %vm6047_vm7, %v6046_v41, %v6041_v5  ;;  %v6101_v30 = vsub.s32 %v6098_v24, %v9711_v26 }
 0x46d   :  { %v6138_v42 = vsel %vm6040_vm6, %v6137_v22, %v6133_v46  ;;  %v6055_v6 = vsel %vm6054_vm8, %v6053_v3, %v6048_v1 }
 0x46e   :  { %v6143_v19 = vsel %vm6047_vm7, %v6142_v55, %v6138_v42  ;;  %v6062_v46 = vsel %vm6061_vm9, %v6060_v35, %v6055_v6 }
 0x46f   :  { %v9489_v54 = vpop.permute.xlu0 %5935  ;;  %v6148_v49 = vsel %vm6054_vm8, %v6147_v38, %v6143_v19  ;;  %v6069_v36 = vsel %vm6068_vm10, %v6067_v34, %v6062_v46 }
 0x470   :  { %v6153_v23 = vsel %vm6061_vm9, %v6152_v29, %v6148_v49  ;;  %v6081_v60 = vrot.slane %v9489_v54, %v6080_v40  ;;  %v6076_v37 = vsel %vm6075_vm11, %v6074_v56, %v6069_v36 }
 0x471   :  { %v6158_v11 = vsel %vm6068_vm10, %v6157_v10, %v6153_v23 }
 0x472   :  { %v6163_v57 = vsel %vm6075_vm11, %v6162_v32, %v6158_v11  ;;  %v6083_v55 = vsel %vm6082_vm12, %v6081_v60, %v6076_v37 }
 0x475   :  { %v5984_v0 = vpop.permute.xlu1 %5983 }
 0x476   :  { %v6167_v59 = vrot.slane %v5984_v0, %v6080_v40 }
 0x478   :  { %v6168_v21 = vsel %vm6082_vm12, %v6167_v59, %v6163_v57 }
 0x47a   :  { %v5939_v27 = vpop.permute.xlu0 %5938 }
 0x47b   :  { %v6088_v48 = vrot.slane %v5939_v27, %v6087_v13 }
 0x47d   :  { %v6090_v54 = vsel %vm6089_vm13, %v6088_v48, %v6083_v55 }
 0x47f   :  { %v5987_v51 = vpop.permute.xlu1 %5986 }
 0x480   :  { %v6172_v42 = vrot.slane %v5987_v51, %v6087_v13 }
 0x482   :  { %v6173_v16 = vsel %vm6089_vm13, %v6172_v42, %v6168_v21 }
 0x484   :  { %v5942_v33 = vpop.permute.xlu0 %5941 }
 0x485   :  { %v6095_v50 = vrot.slane %v5942_v33, %v6094_v52 }
 0x487   :  { %v6097_v25 = vsel %vm6096_vm14, %v6095_v50, %v6090_v54 }
 0x48a   :  { %v5990_v2 = vpop.permute.xlu1 %5989 }
 0x48b   :  { %v6177_v44 = vrot.slane %v5990_v2, %v6094_v52 }
 0x48d   :  { %v6178_v45 = vsel %vm6096_vm14, %v6177_v44, %v6173_v16 }
 0x48f   :  { %v5945_v22 = vpop.permute.xlu0 %5944 }
 0x490   :  { %v6102_v26 = vrot.slane %v5945_v22, %v6101_v30 }
 0x492   :  { %v6104_v19 = vsel %vm6103_vm15, %v6102_v26, %v6097_v25 }
 0x494   :  { %v5993_v17 = vpop.permute.xlu1 %5992 }
 0x495   :  { %v6182_v38 = vrot.slane %v5993_v17, %v6101_v30 }
 0x497   :  { %v6183_v0 = vsel %vm6103_vm15, %v6182_v38, %v6178_v45 }
 0x498   :  { %v6184_v39 = vcombine.low %v6104_v19, %v6183_v0 }
 0x49a   :  { %v6191_v14 = vrot.slane %v6184_v39, %v8648_v58 }
 0x49c   :  { %v6198_v27 = vrot.slane %v6191_v14, %v8648_v58 }
 0x49e   :  { %6204 = vst.msk [vmem:[#allocation6] sm:$0x3] %vm6202_vm0, %v6198_v27 }
 0x49f   :  { %6788 = shalt.err (!%p6785_p9)
}
 0x4a0   :  { %6214 = dma.vmem_to_hbm [thread:$0]  %s6212_s8, 32, %s9549_s7, [#allocation5]  }
 0x4a1   :  { %6799 = dma.done.wait [#allocation5], 32  }
 0x4a2   :  { %6800 = vsyncadd [#allocation5], 4294967264 }
 0x4a3   :  { %6218 = vsyncpa [#allocation4], 1 }
 0x4a4   :  { %6219 = vsyncpa [#allocation5], 1 }

</bundles_post_ra>
